<compile_context>
chip_gen: v7x
topology: tpu7x:2x2x1
jax: 0.10.0
libtpu: 0.0.40
codegen_flags: <defaults>
</compile_context>

<pallas_src>
import jax
import jax.numpy as jnp
from jax.experimental import pallas as pl
from jax.experimental.pallas import tpu as pltpu


# ----------------------------------------------------------------------------
# Fused backbone kernel builder
# ----------------------------------------------------------------------------
def _make_backbone_call(n, h, w, cin, cmid, lpad, wpad, out_dtype):
    """Build a grid-less pallas_call running the whole backbone in VMEM."""
    hpad = h + 2
    m = n * h * w
    inv_hw = 1.0 / float(h * w)

    def conv3x3(pad_ref, w_ref, b_ref):
        """3x3 conv (stride 1, pad 1) with BN folded into w/b.

        pad_ref : (n, h+2, wpad, c_in) f32, valid data at [:, 1:h+1, lpad:lpad+w, :]
        w_ref   : (3, 3, c_in, c_out) bf16 (BN scale pre-folded)
        b_ref   : (1, c_out) f32 (folded BN bias)
        returns : (m, c_out) f32
        """
        c_in = w_ref.shape[-2]
        c_out = w_ref.shape[-1]
        acc = jnp.zeros((m, c_out), jnp.float32)
        # In-kernel im2col: 9 statically shifted windows, each a skinny MXU
        # matmul accumulated in f32.  All traffic stays in VMEM.
        for di in range(3):
            for dj in range(3):
                c0 = lpad - 1 + dj
                patch = pad_ref[:, di:di + h, c0:c0 + w, :]          # (n,h,w,c_in)
                acc = acc + jnp.dot(
                    patch.reshape(m, c_in).astype(jnp.bfloat16),
                    w_ref[di, dj],                                   # (c_in,c_out) bf16
                    preferred_element_type=jnp.float32)
        return acc + b_ref[...]                                      # broadcast bias

    def kernel(xp_ref, w0_ref, b0_ref, w1_ref, b1_ref, w2_ref, b2_ref,
               o_ref, padh_ref, pady_ref):
        # --- stem: conv3x3 + (folded) BN + ReLU ---
        h0 = jnp.maximum(conv3x3(xp_ref, w0_ref, b0_ref), 0.0)       # (m, cmid) f32

        # Re-pad h0 in VMEM (zero border == conv padding).  lpad == 8 keeps the
        # interior store sublane-aligned along the W (sublane) axis.
        padh_ref[...] = jnp.zeros_like(padh_ref)
        padh_ref[:, 1:h + 1, lpad:lpad + w, :] = h0.reshape(n, h, w, cmid)

        # --- basic block, conv1: conv + BN + ReLU ---
        y = jnp.maximum(conv3x3(padh_ref, w1_ref, b1_ref), 0.0)
        pady_ref[...] = jnp.zeros_like(pady_ref)
        pady_ref[:, 1:h + 1, lpad:lpad + w, :] = y.reshape(n, h, w, cmid)

        # --- basic block, conv2: conv + BN + residual skip + ReLU ---
        z = jnp.maximum(conv3x3(pady_ref, w2_ref, b2_ref) + h0, 0.0)

        # --- global average pool + flatten, fused (constant 1/(H*W) multiply) ---
        pooled = jnp.sum(z.reshape(n, h * w, cmid), axis=1) * inv_hw
        o_ref[...] = pooled.astype(o_ref.dtype)

    vmem = pltpu.MemorySpace.VMEM
    return pl.pallas_call(
        kernel,
        out_shape=jax.ShapeDtypeStruct((n, cmid), out_dtype),
        in_specs=[pl.BlockSpec(memory_space=vmem)] * 7,
        out_specs=pl.BlockSpec(memory_space=vmem),
        scratch_shapes=[
            pltpu.VMEM((n, hpad, wpad, cmid), jnp.float32),   # zero-padded h0
            pltpu.VMEM((n, hpad, wpad, cmid), jnp.float32),   # zero-padded y
        ],
    )


# ----------------------------------------------------------------------------
# Host-side glue: BN folding (eval-mode BN) and input padding
# ----------------------------------------------------------------------------
def _fold_bn(w_oihw, gamma, beta, mean, var, eps=1e-5):
    """Fold BN scale into the conv weight; return (kh,kw,cin,cout) bf16 W and f32 bias."""
    inv_std = 1.0 / jnp.sqrt(var + eps)
    scale = gamma * inv_std                                    # (cout,)
    w = w_oihw * scale[:, None, None, None]                    # scale folded into W
    w_kkio = jnp.transpose(w, (2, 3, 1, 0)).astype(jnp.bfloat16)   # (kh,kw,cin,cout)
    bias = (beta - mean * scale).reshape(1, -1).astype(jnp.float32)
    return w_kkio, bias


def timm_feature_extractor_forward(params, x_nchw, eps=1e-5):
    """backbone -> GAP -> flatten (the 'resnet' branch of TimmFeatureExtractor)."""
    n, cin, h, w = x_nchw.shape
    cmid = params["stem_w"].shape[0]
    lpad = 8                       # left pad of 8 -> sublane-aligned interior stores
    wpad = lpad + w + 8            # keep W (sublane dim) a multiple of 8

    # NCHW (PyTorch) -> NHWC, zero-padded once on the host for the stem conv.
    x = jnp.transpose(x_nchw, (0, 2, 3, 1)).astype(jnp.float32)
    xp = jnp.pad(x, ((0, 0), (1, 1), (lpad, wpad - lpad - w), (0, 0)))

    w0, b0 = _fold_bn(params["stem_w"], *params["stem_bn"], eps=eps)
    w1, b1 = _fold_bn(params["b1_w"], *params["b1_bn"], eps=eps)
    w2, b2 = _fold_bn(params["b2_w"], *params["b2_bn"], eps=eps)

    call = _make_backbone_call(n, h, w, cin, cmid, lpad, wpad, jnp.float32)
    feats = call(xp, w0, b0, w1, b1, w2, b2)

    # features.view(N, -1): no-op on the already-flat (N, C) pooled features.
    return feats.reshape(feats.shape[0], -1)


# ----------------------------------------------------------------------------
# Deterministic synthetic parameters (distinct PRNG keys per tensor)
# ----------------------------------------------------------------------------
def init_params(key, cin=4, cmid=32):
    ks = jax.random.split(key, 15)

    def conv_w(k, co, ci):
        return jax.random.normal(k, (co, ci, 3, 3), jnp.float32) * 0.1

    def bn(k0, k1, k2, k3, c):
        gamma = 1.0 + 0.1 * jax.random.normal(k0, (c,), jnp.float32)
        beta = 0.1 * jax.random.normal(k1, (c,), jnp.float32)
        mean = 0.1 * jax.random.normal(k2, (c,), jnp.float32)
        var = 1.0 + 0.1 * jnp.abs(jax.random.normal(k3, (c,), jnp.float32))
        return gamma, beta, mean, var

    return {
        "stem_w": conv_w(ks[0], cmid, cin),
        "stem_bn": bn(ks[1], ks[2], ks[3], ks[4], cmid),
        "b1_w": conv_w(ks[5], cmid, cmid),
        "b1_bn": bn(ks[6], ks[7], ks[8], ks[9], cmid),
        "b2_w": conv_w(ks[10], cmid, cmid),
        "b2_bn": bn(ks[11], ks[12], ks[13], ks[14], cmid),
    }


if __name__ == "__main__":
    key = jax.random.PRNGKey(0)
    kx, kp = jax.random.split(key)

    # Input in PyTorch NCHW convention (batch=2, channels=4, spatial=16).
    x = jax.random.normal(kx, (2, 4, 16, 16), jnp.float32)
    params = init_params(kp, cin=4, cmid=32)

    fwd = jax.jit(timm_feature_extractor_forward)
    feats = jax.block_until_ready(fwd(params, x))

    assert feats.shape == (2, 32), feats.shape
    assert feats.dtype == jnp.float32
    assert bool(jnp.all(jnp.isfinite(feats)))
    print("KERNEL_OK")
</pallas_src>

<mosaic_0001>
module attributes {stable_mosaic.version = 11 : i64} {
  func.func @kernel(%arg0: memref<2x18x32x4xf32, #tpu.memory_space<vmem>>, %arg1: memref<3x3x4x32xbf16, #tpu.memory_space<vmem>>, %arg2: memref<1x32xf32, #tpu.memory_space<vmem>>, %arg3: memref<3x3x32x32xbf16, #tpu.memory_space<vmem>>, %arg4: memref<1x32xf32, #tpu.memory_space<vmem>>, %arg5: memref<3x3x32x32xbf16, #tpu.memory_space<vmem>>, %arg6: memref<1x32xf32, #tpu.memory_space<vmem>>, %arg7: memref<2x32xf32, #tpu.memory_space<vmem>>, %arg8: memref<2x18x32x32xf32, #tpu.memory_space<vmem>>, %arg9: memref<2x18x32x32xf32, #tpu.memory_space<vmem>>) attributes {dimension_semantics = [], scalar_prefetch = 0 : i64, scratch_operands = 2 : i64, tpu.core_type = #tpu.core_type<tc>} {
    %cst = arith.constant 0.000000e+00 : f32
    %0 = vector.broadcast %cst : f32 to vector<512x32xf32>
    %c0 = arith.constant 0 : index
    %c0_0 = arith.constant 0 : index
    %c7 = arith.constant 7 : index
    %c0_1 = arith.constant 0 : index
    %1 = vector.load %arg0[%c0, %c0_0, %c7, %c0_1] : memref<2x18x32x4xf32, #tpu.memory_space<vmem>>, vector<2x16x16x4xf32>
    %2 = vector.shape_cast %1 : vector<2x16x16x4xf32> to vector<512x4xf32>
    %3 = arith.truncf %2 : vector<512x4xf32> to vector<512x4xbf16>
    %c0_2 = arith.constant 0 : index
    %c0_3 = arith.constant 0 : index
    %c0_4 = arith.constant 0 : index
    %c0_5 = arith.constant 0 : index
    %4 = vector.load %arg1[%c0_2, %c0_3, %c0_4, %c0_5] : memref<3x3x4x32xbf16, #tpu.memory_space<vmem>>, vector<1x1x4x32xbf16>
    %5 = vector.shape_cast %4 : vector<1x1x4x32xbf16> to vector<4x32xbf16>
    %cst_6 = arith.constant dense<0.000000e+00> : vector<512x32xf32>
    %6 = tpu.matmul %3, %5, %cst_6 {dimension_numbers = #tpu.dot_dimension_numbers<[1], [0], [0], [1], [0, 0, 1, 1], [], []>} : vector<512x4xbf16>, vector<4x32xbf16>, vector<512x32xf32> -> vector<512x32xf32>
    %7 = arith.addf %0, %6 : vector<512x32xf32>
    %c0_7 = arith.constant 0 : index
    %c0_8 = arith.constant 0 : index
    %c8 = arith.constant 8 : index
    %c0_9 = arith.constant 0 : index
    %8 = vector.load %arg0[%c0_7, %c0_8, %c8, %c0_9] : memref<2x18x32x4xf32, #tpu.memory_space<vmem>>, vector<2x16x16x4xf32>
    %9 = vector.shape_cast %8 : vector<2x16x16x4xf32> to vector<512x4xf32>
    %10 = arith.truncf %9 : vector<512x4xf32> to vector<512x4xbf16>
    %c0_10 = arith.constant 0 : index
    %c1 = arith.constant 1 : index
    %c0_11 = arith.constant 0 : index
    %c0_12 = arith.constant 0 : index
    %11 = vector.load %arg1[%c0_10, %c1, %c0_11, %c0_12] : memref<3x3x4x32xbf16, #tpu.memory_space<vmem>>, vector<1x1x4x32xbf16>
    %12 = vector.shape_cast %11 : vector<1x1x4x32xbf16> to vector<4x32xbf16>
    %cst_13 = arith.constant dense<0.000000e+00> : vector<512x32xf32>
    %13 = tpu.matmul %10, %12, %cst_13 {dimension_numbers = #tpu.dot_dimension_numbers<[1], [0], [0], [1], [0, 0, 1, 1], [], []>} : vector<512x4xbf16>, vector<4x32xbf16>, vector<512x32xf32> -> vector<512x32xf32>
    %14 = arith.addf %7, %13 : vector<512x32xf32>
    %c0_14 = arith.constant 0 : index
    %c0_15 = arith.constant 0 : index
    %c9 = arith.constant 9 : index
    %c0_16 = arith.constant 0 : index
    %15 = vector.load %arg0[%c0_14, %c0_15, %c9, %c0_16] : memref<2x18x32x4xf32, #tpu.memory_space<vmem>>, vector<2x16x16x4xf32>
    %16 = vector.shape_cast %15 : vector<2x16x16x4xf32> to vector<512x4xf32>
    %17 = arith.truncf %16 : vector<512x4xf32> to vector<512x4xbf16>
    %c0_17 = arith.constant 0 : index
    %c2 = arith.constant 2 : index
    %c0_18 = arith.constant 0 : index
    %c0_19 = arith.constant 0 : index
    %18 = vector.load %arg1[%c0_17, %c2, %c0_18, %c0_19] : memref<3x3x4x32xbf16, #tpu.memory_space<vmem>>, vector<1x1x4x32xbf16>
    %19 = vector.shape_cast %18 : vector<1x1x4x32xbf16> to vector<4x32xbf16>
    %cst_20 = arith.constant dense<0.000000e+00> : vector<512x32xf32>
    %20 = tpu.matmul %17, %19, %cst_20 {dimension_numbers = #tpu.dot_dimension_numbers<[1], [0], [0], [1], [0, 0, 1, 1], [], []>} : vector<512x4xbf16>, vector<4x32xbf16>, vector<512x32xf32> -> vector<512x32xf32>
    %21 = arith.addf %14, %20 : vector<512x32xf32>
    %c0_21 = arith.constant 0 : index
    %c1_22 = arith.constant 1 : index
    %c7_23 = arith.constant 7 : index
    %c0_24 = arith.constant 0 : index
    %22 = vector.load %arg0[%c0_21, %c1_22, %c7_23, %c0_24] : memref<2x18x32x4xf32, #tpu.memory_space<vmem>>, vector<2x16x16x4xf32>
    %23 = vector.shape_cast %22 : vector<2x16x16x4xf32> to vector<512x4xf32>
    %24 = arith.truncf %23 : vector<512x4xf32> to vector<512x4xbf16>
    %c1_25 = arith.constant 1 : index
    %c0_26 = arith.constant 0 : index
    %c0_27 = arith.constant 0 : index
    %c0_28 = arith.constant 0 : index
    %25 = vector.load %arg1[%c1_25, %c0_26, %c0_27, %c0_28] : memref<3x3x4x32xbf16, #tpu.memory_space<vmem>>, vector<1x1x4x32xbf16>
    %26 = vector.shape_cast %25 : vector<1x1x4x32xbf16> to vector<4x32xbf16>
    %cst_29 = arith.constant dense<0.000000e+00> : vector<512x32xf32>
    %27 = tpu.matmul %24, %26, %cst_29 {dimension_numbers = #tpu.dot_dimension_numbers<[1], [0], [0], [1], [0, 0, 1, 1], [], []>} : vector<512x4xbf16>, vector<4x32xbf16>, vector<512x32xf32> -> vector<512x32xf32>
    %28 = arith.addf %21, %27 : vector<512x32xf32>
    %c0_30 = arith.constant 0 : index
    %c1_31 = arith.constant 1 : index
    %c8_32 = arith.constant 8 : index
    %c0_33 = arith.constant 0 : index
    %29 = vector.load %arg0[%c0_30, %c1_31, %c8_32, %c0_33] : memref<2x18x32x4xf32, #tpu.memory_space<vmem>>, vector<2x16x16x4xf32>
    %30 = vector.shape_cast %29 : vector<2x16x16x4xf32> to vector<512x4xf32>
    %31 = arith.truncf %30 : vector<512x4xf32> to vector<512x4xbf16>
    %c1_34 = arith.constant 1 : index
    %c1_35 = arith.constant 1 : index
    %c0_36 = arith.constant 0 : index
    %c0_37 = arith.constant 0 : index
    %32 = vector.load %arg1[%c1_34, %c1_35, %c0_36, %c0_37] : memref<3x3x4x32xbf16, #tpu.memory_space<vmem>>, vector<1x1x4x32xbf16>
    %33 = vector.shape_cast %32 : vector<1x1x4x32xbf16> to vector<4x32xbf16>
    %cst_38 = arith.constant dense<0.000000e+00> : vector<512x32xf32>
    %34 = tpu.matmul %31, %33, %cst_38 {dimension_numbers = #tpu.dot_dimension_numbers<[1], [0], [0], [1], [0, 0, 1, 1], [], []>} : vector<512x4xbf16>, vector<4x32xbf16>, vector<512x32xf32> -> vector<512x32xf32>
    %35 = arith.addf %28, %34 : vector<512x32xf32>
    %c0_39 = arith.constant 0 : index
    %c1_40 = arith.constant 1 : index
    %c9_41 = arith.constant 9 : index
    %c0_42 = arith.constant 0 : index
    %36 = vector.load %arg0[%c0_39, %c1_40, %c9_41, %c0_42] : memref<2x18x32x4xf32, #tpu.memory_space<vmem>>, vector<2x16x16x4xf32>
    %37 = vector.shape_cast %36 : vector<2x16x16x4xf32> to vector<512x4xf32>
    %38 = arith.truncf %37 : vector<512x4xf32> to vector<512x4xbf16>
    %c1_43 = arith.constant 1 : index
    %c2_44 = arith.constant 2 : index
    %c0_45 = arith.constant 0 : index
    %c0_46 = arith.constant 0 : index
    %39 = vector.load %arg1[%c1_43, %c2_44, %c0_45, %c0_46] : memref<3x3x4x32xbf16, #tpu.memory_space<vmem>>, vector<1x1x4x32xbf16>
    %40 = vector.shape_cast %39 : vector<1x1x4x32xbf16> to vector<4x32xbf16>
    %cst_47 = arith.constant dense<0.000000e+00> : vector<512x32xf32>
    %41 = tpu.matmul %38, %40, %cst_47 {dimension_numbers = #tpu.dot_dimension_numbers<[1], [0], [0], [1], [0, 0, 1, 1], [], []>} : vector<512x4xbf16>, vector<4x32xbf16>, vector<512x32xf32> -> vector<512x32xf32>
    %42 = arith.addf %35, %41 : vector<512x32xf32>
    %c0_48 = arith.constant 0 : index
    %c2_49 = arith.constant 2 : index
    %c7_50 = arith.constant 7 : index
    %c0_51 = arith.constant 0 : index
    %43 = vector.load %arg0[%c0_48, %c2_49, %c7_50, %c0_51] : memref<2x18x32x4xf32, #tpu.memory_space<vmem>>, vector<2x16x16x4xf32>
    %44 = vector.shape_cast %43 : vector<2x16x16x4xf32> to vector<512x4xf32>
    %45 = arith.truncf %44 : vector<512x4xf32> to vector<512x4xbf16>
    %c2_52 = arith.constant 2 : index
    %c0_53 = arith.constant 0 : index
    %c0_54 = arith.constant 0 : index
    %c0_55 = arith.constant 0 : index
    %46 = vector.load %arg1[%c2_52, %c0_53, %c0_54, %c0_55] : memref<3x3x4x32xbf16, #tpu.memory_space<vmem>>, vector<1x1x4x32xbf16>
    %47 = vector.shape_cast %46 : vector<1x1x4x32xbf16> to vector<4x32xbf16>
    %cst_56 = arith.constant dense<0.000000e+00> : vector<512x32xf32>
    %48 = tpu.matmul %45, %47, %cst_56 {dimension_numbers = #tpu.dot_dimension_numbers<[1], [0], [0], [1], [0, 0, 1, 1], [], []>} : vector<512x4xbf16>, vector<4x32xbf16>, vector<512x32xf32> -> vector<512x32xf32>
    %49 = arith.addf %42, %48 : vector<512x32xf32>
    %c0_57 = arith.constant 0 : index
    %c2_58 = arith.constant 2 : index
    %c8_59 = arith.constant 8 : index
    %c0_60 = arith.constant 0 : index
    %50 = vector.load %arg0[%c0_57, %c2_58, %c8_59, %c0_60] : memref<2x18x32x4xf32, #tpu.memory_space<vmem>>, vector<2x16x16x4xf32>
    %51 = vector.shape_cast %50 : vector<2x16x16x4xf32> to vector<512x4xf32>
    %52 = arith.truncf %51 : vector<512x4xf32> to vector<512x4xbf16>
    %c2_61 = arith.constant 2 : index
    %c1_62 = arith.constant 1 : index
    %c0_63 = arith.constant 0 : index
    %c0_64 = arith.constant 0 : index
    %53 = vector.load %arg1[%c2_61, %c1_62, %c0_63, %c0_64] : memref<3x3x4x32xbf16, #tpu.memory_space<vmem>>, vector<1x1x4x32xbf16>
    %54 = vector.shape_cast %53 : vector<1x1x4x32xbf16> to vector<4x32xbf16>
    %cst_65 = arith.constant dense<0.000000e+00> : vector<512x32xf32>
    %55 = tpu.matmul %52, %54, %cst_65 {dimension_numbers = #tpu.dot_dimension_numbers<[1], [0], [0], [1], [0, 0, 1, 1], [], []>} : vector<512x4xbf16>, vector<4x32xbf16>, vector<512x32xf32> -> vector<512x32xf32>
    %56 = arith.addf %49, %55 : vector<512x32xf32>
    %c0_66 = arith.constant 0 : index
    %c2_67 = arith.constant 2 : index
    %c9_68 = arith.constant 9 : index
    %c0_69 = arith.constant 0 : index
    %57 = vector.load %arg0[%c0_66, %c2_67, %c9_68, %c0_69] : memref<2x18x32x4xf32, #tpu.memory_space<vmem>>, vector<2x16x16x4xf32>
    %58 = vector.shape_cast %57 : vector<2x16x16x4xf32> to vector<512x4xf32>
    %59 = arith.truncf %58 : vector<512x4xf32> to vector<512x4xbf16>
    %c2_70 = arith.constant 2 : index
    %c2_71 = arith.constant 2 : index
    %c0_72 = arith.constant 0 : index
    %c0_73 = arith.constant 0 : index
    %60 = vector.load %arg1[%c2_70, %c2_71, %c0_72, %c0_73] : memref<3x3x4x32xbf16, #tpu.memory_space<vmem>>, vector<1x1x4x32xbf16>
    %61 = vector.shape_cast %60 : vector<1x1x4x32xbf16> to vector<4x32xbf16>
    %cst_74 = arith.constant dense<0.000000e+00> : vector<512x32xf32>
    %62 = tpu.matmul %59, %61, %cst_74 {dimension_numbers = #tpu.dot_dimension_numbers<[1], [0], [0], [1], [0, 0, 1, 1], [], []>} : vector<512x4xbf16>, vector<4x32xbf16>, vector<512x32xf32> -> vector<512x32xf32>
    %63 = arith.addf %56, %62 : vector<512x32xf32>
    %c0_75 = arith.constant 0 : index
    %c0_76 = arith.constant 0 : index
    %64 = vector.load %arg2[%c0_75, %c0_76] : memref<1x32xf32, #tpu.memory_space<vmem>>, vector<1x32xf32>
    %65 = vector.broadcast %64 : vector<1x32xf32> to vector<512x32xf32>
    %66 = arith.addf %63, %65 : vector<512x32xf32>
    %cst_77 = arith.constant 0.000000e+00 : f32
    %67 = vector.broadcast %cst_77 : f32 to vector<512x32xf32>
    %68 = arith.maximumf %66, %67 : vector<512x32xf32>
    %cst_78 = arith.constant 0.000000e+00 : f32
    %69 = vector.broadcast %cst_78 : f32 to vector<2x18x32x32xf32>
    %c0_79 = arith.constant 0 : index
    %c0_80 = arith.constant 0 : index
    %c0_81 = arith.constant 0 : index
    %c0_82 = arith.constant 0 : index
    %70 = vector.load %arg8[%c0_79, %c0_80, %c0_81, %c0_82] : memref<2x18x32x32xf32, #tpu.memory_space<vmem>>, vector<2x18x32x32xf32>
    tpu.vector_store %arg8[%c0_79, %c0_80, %c0_81, %c0_82], %69 {strides = array<i32>} : memref<2x18x32x32xf32, #tpu.memory_space<vmem>>, vector<2x18x32x32xf32>,
    %71 = vector.shape_cast %68 : vector<512x32xf32> to vector<2x16x16x32xf32>
    %c0_83 = arith.constant 0 : index
    %c1_84 = arith.constant 1 : index
    %c8_85 = arith.constant 8 : index
    %c0_86 = arith.constant 0 : index
    %72 = vector.load %arg8[%c0_83, %c1_84, %c8_85, %c0_86] : memref<2x18x32x32xf32, #tpu.memory_space<vmem>>, vector<2x16x16x32xf32>
    tpu.vector_store %arg8[%c0_83, %c1_84, %c8_85, %c0_86], %71 {strides = array<i32>} : memref<2x18x32x32xf32, #tpu.memory_space<vmem>>, vector<2x16x16x32xf32>,
    %cst_87 = arith.constant 0.000000e+00 : f32
    %73 = vector.broadcast %cst_87 : f32 to vector<512x32xf32>
    %c0_88 = arith.constant 0 : index
    %c0_89 = arith.constant 0 : index
    %c7_90 = arith.constant 7 : index
    %c0_91 = arith.constant 0 : index
    %74 = vector.load %arg8[%c0_88, %c0_89, %c7_90, %c0_91] : memref<2x18x32x32xf32, #tpu.memory_space<vmem>>, vector<2x16x16x32xf32>
    %75 = vector.shape_cast %74 : vector<2x16x16x32xf32> to vector<512x32xf32>
    %76 = arith.truncf %75 : vector<512x32xf32> to vector<512x32xbf16>
    %c0_92 = arith.constant 0 : index
    %c0_93 = arith.constant 0 : index
    %c0_94 = arith.constant 0 : index
    %c0_95 = arith.constant 0 : index
    %77 = vector.load %arg3[%c0_92, %c0_93, %c0_94, %c0_95] : memref<3x3x32x32xbf16, #tpu.memory_space<vmem>>, vector<1x1x32x32xbf16>
    %78 = vector.shape_cast %77 : vector<1x1x32x32xbf16> to vector<32x32xbf16>
    %cst_96 = arith.constant dense<0.000000e+00> : vector<512x32xf32>
    %79 = tpu.matmul %76, %78, %cst_96 {dimension_numbers = #tpu.dot_dimension_numbers<[1], [0], [0], [1], [0, 0, 1, 1], [], []>} : vector<512x32xbf16>, vector<32x32xbf16>, vector<512x32xf32> -> vector<512x32xf32>
    %80 = arith.addf %73, %79 : vector<512x32xf32>
    %c0_97 = arith.constant 0 : index
    %c0_98 = arith.constant 0 : index
    %c8_99 = arith.constant 8 : index
    %c0_100 = arith.constant 0 : index
    %81 = vector.load %arg8[%c0_97, %c0_98, %c8_99, %c0_100] : memref<2x18x32x32xf32, #tpu.memory_space<vmem>>, vector<2x16x16x32xf32>
    %82 = vector.shape_cast %81 : vector<2x16x16x32xf32> to vector<512x32xf32>
    %83 = arith.truncf %82 : vector<512x32xf32> to vector<512x32xbf16>
    %c0_101 = arith.constant 0 : index
    %c1_102 = arith.constant 1 : index
    %c0_103 = arith.constant 0 : index
    %c0_104 = arith.constant 0 : index
    %84 = vector.load %arg3[%c0_101, %c1_102, %c0_103, %c0_104] : memref<3x3x32x32xbf16, #tpu.memory_space<vmem>>, vector<1x1x32x32xbf16>
    %85 = vector.shape_cast %84 : vector<1x1x32x32xbf16> to vector<32x32xbf16>
    %cst_105 = arith.constant dense<0.000000e+00> : vector<512x32xf32>
    %86 = tpu.matmul %83, %85, %cst_105 {dimension_numbers = #tpu.dot_dimension_numbers<[1], [0], [0], [1], [0, 0, 1, 1], [], []>} : vector<512x32xbf16>, vector<32x32xbf16>, vector<512x32xf32> -> vector<512x32xf32>
    %87 = arith.addf %80, %86 : vector<512x32xf32>
    %c0_106 = arith.constant 0 : index
    %c0_107 = arith.constant 0 : index
    %c9_108 = arith.constant 9 : index
    %c0_109 = arith.constant 0 : index
    %88 = vector.load %arg8[%c0_106, %c0_107, %c9_108, %c0_109] : memref<2x18x32x32xf32, #tpu.memory_space<vmem>>, vector<2x16x16x32xf32>
    %89 = vector.shape_cast %88 : vector<2x16x16x32xf32> to vector<512x32xf32>
    %90 = arith.truncf %89 : vector<512x32xf32> to vector<512x32xbf16>
    %c0_110 = arith.constant 0 : index
    %c2_111 = arith.constant 2 : index
    %c0_112 = arith.constant 0 : index
    %c0_113 = arith.constant 0 : index
    %91 = vector.load %arg3[%c0_110, %c2_111, %c0_112, %c0_113] : memref<3x3x32x32xbf16, #tpu.memory_space<vmem>>, vector<1x1x32x32xbf16>
    %92 = vector.shape_cast %91 : vector<1x1x32x32xbf16> to vector<32x32xbf16>
    %cst_114 = arith.constant dense<0.000000e+00> : vector<512x32xf32>
    %93 = tpu.matmul %90, %92, %cst_114 {dimension_numbers = #tpu.dot_dimension_numbers<[1], [0], [0], [1], [0, 0, 1, 1], [], []>} : vector<512x32xbf16>, vector<32x32xbf16>, vector<512x32xf32> -> vector<512x32xf32>
    %94 = arith.addf %87, %93 : vector<512x32xf32>
    %c0_115 = arith.constant 0 : index
    %c1_116 = arith.constant 1 : index
    %c7_117 = arith.constant 7 : index
    %c0_118 = arith.constant 0 : index
    %95 = vector.load %arg8[%c0_115, %c1_116, %c7_117, %c0_118] : memref<2x18x32x32xf32, #tpu.memory_space<vmem>>, vector<2x16x16x32xf32>
    %96 = vector.shape_cast %95 : vector<2x16x16x32xf32> to vector<512x32xf32>
    %97 = arith.truncf %96 : vector<512x32xf32> to vector<512x32xbf16>
    %c1_119 = arith.constant 1 : index
    %c0_120 = arith.constant 0 : index
    %c0_121 = arith.constant 0 : index
    %c0_122 = arith.constant 0 : index
    %98 = vector.load %arg3[%c1_119, %c0_120, %c0_121, %c0_122] : memref<3x3x32x32xbf16, #tpu.memory_space<vmem>>, vector<1x1x32x32xbf16>
    %99 = vector.shape_cast %98 : vector<1x1x32x32xbf16> to vector<32x32xbf16>
    %cst_123 = arith.constant dense<0.000000e+00> : vector<512x32xf32>
    %100 = tpu.matmul %97, %99, %cst_123 {dimension_numbers = #tpu.dot_dimension_numbers<[1], [0], [0], [1], [0, 0, 1, 1], [], []>} : vector<512x32xbf16>, vector<32x32xbf16>, vector<512x32xf32> -> vector<512x32xf32>
    %101 = arith.addf %94, %100 : vector<512x32xf32>
    %c0_124 = arith.constant 0 : index
    %c1_125 = arith.constant 1 : index
    %c8_126 = arith.constant 8 : index
    %c0_127 = arith.constant 0 : index
    %102 = vector.load %arg8[%c0_124, %c1_125, %c8_126, %c0_127] : memref<2x18x32x32xf32, #tpu.memory_space<vmem>>, vector<2x16x16x32xf32>
    %103 = vector.shape_cast %102 : vector<2x16x16x32xf32> to vector<512x32xf32>
    %104 = arith.truncf %103 : vector<512x32xf32> to vector<512x32xbf16>
    %c1_128 = arith.constant 1 : index
    %c1_129 = arith.constant 1 : index
    %c0_130 = arith.constant 0 : index
    %c0_131 = arith.constant 0 : index
    %105 = vector.load %arg3[%c1_128, %c1_129, %c0_130, %c0_131] : memref<3x3x32x32xbf16, #tpu.memory_space<vmem>>, vector<1x1x32x32xbf16>
    %106 = vector.shape_cast %105 : vector<1x1x32x32xbf16> to vector<32x32xbf16>
    %cst_132 = arith.constant dense<0.000000e+00> : vector<512x32xf32>
    %107 = tpu.matmul %104, %106, %cst_132 {dimension_numbers = #tpu.dot_dimension_numbers<[1], [0], [0], [1], [0, 0, 1, 1], [], []>} : vector<512x32xbf16>, vector<32x32xbf16>, vector<512x32xf32> -> vector<512x32xf32>
    %108 = arith.addf %101, %107 : vector<512x32xf32>
    %c0_133 = arith.constant 0 : index
    %c1_134 = arith.constant 1 : index
    %c9_135 = arith.constant 9 : index
    %c0_136 = arith.constant 0 : index
    %109 = vector.load %arg8[%c0_133, %c1_134, %c9_135, %c0_136] : memref<2x18x32x32xf32, #tpu.memory_space<vmem>>, vector<2x16x16x32xf32>
    %110 = vector.shape_cast %109 : vector<2x16x16x32xf32> to vector<512x32xf32>
    %111 = arith.truncf %110 : vector<512x32xf32> to vector<512x32xbf16>
    %c1_137 = arith.constant 1 : index
    %c2_138 = arith.constant 2 : index
    %c0_139 = arith.constant 0 : index
    %c0_140 = arith.constant 0 : index
    %112 = vector.load %arg3[%c1_137, %c2_138, %c0_139, %c0_140] : memref<3x3x32x32xbf16, #tpu.memory_space<vmem>>, vector<1x1x32x32xbf16>
    %113 = vector.shape_cast %112 : vector<1x1x32x32xbf16> to vector<32x32xbf16>
    %cst_141 = arith.constant dense<0.000000e+00> : vector<512x32xf32>
    %114 = tpu.matmul %111, %113, %cst_141 {dimension_numbers = #tpu.dot_dimension_numbers<[1], [0], [0], [1], [0, 0, 1, 1], [], []>} : vector<512x32xbf16>, vector<32x32xbf16>, vector<512x32xf32> -> vector<512x32xf32>
    %115 = arith.addf %108, %114 : vector<512x32xf32>
    %c0_142 = arith.constant 0 : index
    %c2_143 = arith.constant 2 : index
    %c7_144 = arith.constant 7 : index
    %c0_145 = arith.constant 0 : index
    %116 = vector.load %arg8[%c0_142, %c2_143, %c7_144, %c0_145] : memref<2x18x32x32xf32, #tpu.memory_space<vmem>>, vector<2x16x16x32xf32>
    %117 = vector.shape_cast %116 : vector<2x16x16x32xf32> to vector<512x32xf32>
    %118 = arith.truncf %117 : vector<512x32xf32> to vector<512x32xbf16>
    %c2_146 = arith.constant 2 : index
    %c0_147 = arith.constant 0 : index
    %c0_148 = arith.constant 0 : index
    %c0_149 = arith.constant 0 : index
    %119 = vector.load %arg3[%c2_146, %c0_147, %c0_148, %c0_149] : memref<3x3x32x32xbf16, #tpu.memory_space<vmem>>, vector<1x1x32x32xbf16>
    %120 = vector.shape_cast %119 : vector<1x1x32x32xbf16> to vector<32x32xbf16>
    %cst_150 = arith.constant dense<0.000000e+00> : vector<512x32xf32>
    %121 = tpu.matmul %118, %120, %cst_150 {dimension_numbers = #tpu.dot_dimension_numbers<[1], [0], [0], [1], [0, 0, 1, 1], [], []>} : vector<512x32xbf16>, vector<32x32xbf16>, vector<512x32xf32> -> vector<512x32xf32>
    %122 = arith.addf %115, %121 : vector<512x32xf32>
    %c0_151 = arith.constant 0 : index
    %c2_152 = arith.constant 2 : index
    %c8_153 = arith.constant 8 : index
    %c0_154 = arith.constant 0 : index
    %123 = vector.load %arg8[%c0_151, %c2_152, %c8_153, %c0_154] : memref<2x18x32x32xf32, #tpu.memory_space<vmem>>, vector<2x16x16x32xf32>
    %124 = vector.shape_cast %123 : vector<2x16x16x32xf32> to vector<512x32xf32>
    %125 = arith.truncf %124 : vector<512x32xf32> to vector<512x32xbf16>
    %c2_155 = arith.constant 2 : index
    %c1_156 = arith.constant 1 : index
    %c0_157 = arith.constant 0 : index
    %c0_158 = arith.constant 0 : index
    %126 = vector.load %arg3[%c2_155, %c1_156, %c0_157, %c0_158] : memref<3x3x32x32xbf16, #tpu.memory_space<vmem>>, vector<1x1x32x32xbf16>
    %127 = vector.shape_cast %126 : vector<1x1x32x32xbf16> to vector<32x32xbf16>
    %cst_159 = arith.constant dense<0.000000e+00> : vector<512x32xf32>
    %128 = tpu.matmul %125, %127, %cst_159 {dimension_numbers = #tpu.dot_dimension_numbers<[1], [0], [0], [1], [0, 0, 1, 1], [], []>} : vector<512x32xbf16>, vector<32x32xbf16>, vector<512x32xf32> -> vector<512x32xf32>
    %129 = arith.addf %122, %128 : vector<512x32xf32>
    %c0_160 = arith.constant 0 : index
    %c2_161 = arith.constant 2 : index
    %c9_162 = arith.constant 9 : index
    %c0_163 = arith.constant 0 : index
    %130 = vector.load %arg8[%c0_160, %c2_161, %c9_162, %c0_163] : memref<2x18x32x32xf32, #tpu.memory_space<vmem>>, vector<2x16x16x32xf32>
    %131 = vector.shape_cast %130 : vector<2x16x16x32xf32> to vector<512x32xf32>
    %132 = arith.truncf %131 : vector<512x32xf32> to vector<512x32xbf16>
    %c2_164 = arith.constant 2 : index
    %c2_165 = arith.constant 2 : index
    %c0_166 = arith.constant 0 : index
    %c0_167 = arith.constant 0 : index
    %133 = vector.load %arg3[%c2_164, %c2_165, %c0_166, %c0_167] : memref<3x3x32x32xbf16, #tpu.memory_space<vmem>>, vector<1x1x32x32xbf16>
    %134 = vector.shape_cast %133 : vector<1x1x32x32xbf16> to vector<32x32xbf16>
    %cst_168 = arith.constant dense<0.000000e+00> : vector<512x32xf32>
    %135 = tpu.matmul %132, %134, %cst_168 {dimension_numbers = #tpu.dot_dimension_numbers<[1], [0], [0], [1], [0, 0, 1, 1], [], []>} : vector<512x32xbf16>, vector<32x32xbf16>, vector<512x32xf32> -> vector<512x32xf32>
    %136 = arith.addf %129, %135 : vector<512x32xf32>
    %c0_169 = arith.constant 0 : index
    %c0_170 = arith.constant 0 : index
    %137 = vector.load %arg4[%c0_169, %c0_170] : memref<1x32xf32, #tpu.memory_space<vmem>>, vector<1x32xf32>
    %138 = vector.broadcast %137 : vector<1x32xf32> to vector<512x32xf32>
    %139 = arith.addf %136, %138 : vector<512x32xf32>
    %cst_171 = arith.constant 0.000000e+00 : f32
    %140 = vector.broadcast %cst_171 : f32 to vector<512x32xf32>
    %141 = arith.maximumf %139, %140 : vector<512x32xf32>
    %cst_172 = arith.constant 0.000000e+00 : f32
    %142 = vector.broadcast %cst_172 : f32 to vector<2x18x32x32xf32>
    %c0_173 = arith.constant 0 : index
    %c0_174 = arith.constant 0 : index
    %c0_175 = arith.constant 0 : index
    %c0_176 = arith.constant 0 : index
    %143 = vector.load %arg9[%c0_173, %c0_174, %c0_175, %c0_176] : memref<2x18x32x32xf32, #tpu.memory_space<vmem>>, vector<2x18x32x32xf32>
    tpu.vector_store %arg9[%c0_173, %c0_174, %c0_175, %c0_176], %142 {strides = array<i32>} : memref<2x18x32x32xf32, #tpu.memory_space<vmem>>, vector<2x18x32x32xf32>,
    %144 = vector.shape_cast %141 : vector<512x32xf32> to vector<2x16x16x32xf32>
    %c0_177 = arith.constant 0 : index
    %c1_178 = arith.constant 1 : index
    %c8_179 = arith.constant 8 : index
    %c0_180 = arith.constant 0 : index
    %145 = vector.load %arg9[%c0_177, %c1_178, %c8_179, %c0_180] : memref<2x18x32x32xf32, #tpu.memory_space<vmem>>, vector<2x16x16x32xf32>
    tpu.vector_store %arg9[%c0_177, %c1_178, %c8_179, %c0_180], %144 {strides = array<i32>} : memref<2x18x32x32xf32, #tpu.memory_space<vmem>>, vector<2x16x16x32xf32>,
    %cst_181 = arith.constant 0.000000e+00 : f32
    %146 = vector.broadcast %cst_181 : f32 to vector<512x32xf32>
    %c0_182 = arith.constant 0 : index
    %c0_183 = arith.constant 0 : index
    %c7_184 = arith.constant 7 : index
    %c0_185 = arith.constant 0 : index
    %147 = vector.load %arg9[%c0_182, %c0_183, %c7_184, %c0_185] : memref<2x18x32x32xf32, #tpu.memory_space<vmem>>, vector<2x16x16x32xf32>
    %148 = vector.shape_cast %147 : vector<2x16x16x32xf32> to vector<512x32xf32>
    %149 = arith.truncf %148 : vector<512x32xf32> to vector<512x32xbf16>
    %c0_186 = arith.constant 0 : index
    %c0_187 = arith.constant 0 : index
    %c0_188 = arith.constant 0 : index
    %c0_189 = arith.constant 0 : index
    %150 = vector.load %arg5[%c0_186, %c0_187, %c0_188, %c0_189] : memref<3x3x32x32xbf16, #tpu.memory_space<vmem>>, vector<1x1x32x32xbf16>
    %151 = vector.shape_cast %150 : vector<1x1x32x32xbf16> to vector<32x32xbf16>
    %cst_190 = arith.constant dense<0.000000e+00> : vector<512x32xf32>
    %152 = tpu.matmul %149, %151, %cst_190 {dimension_numbers = #tpu.dot_dimension_numbers<[1], [0], [0], [1], [0, 0, 1, 1], [], []>} : vector<512x32xbf16>, vector<32x32xbf16>, vector<512x32xf32> -> vector<512x32xf32>
    %153 = arith.addf %146, %152 : vector<512x32xf32>
    %c0_191 = arith.constant 0 : index
    %c0_192 = arith.constant 0 : index
    %c8_193 = arith.constant 8 : index
    %c0_194 = arith.constant 0 : index
    %154 = vector.load %arg9[%c0_191, %c0_192, %c8_193, %c0_194] : memref<2x18x32x32xf32, #tpu.memory_space<vmem>>, vector<2x16x16x32xf32>
    %155 = vector.shape_cast %154 : vector<2x16x16x32xf32> to vector<512x32xf32>
    %156 = arith.truncf %155 : vector<512x32xf32> to vector<512x32xbf16>
    %c0_195 = arith.constant 0 : index
    %c1_196 = arith.constant 1 : index
    %c0_197 = arith.constant 0 : index
    %c0_198 = arith.constant 0 : index
    %157 = vector.load %arg5[%c0_195, %c1_196, %c0_197, %c0_198] : memref<3x3x32x32xbf16, #tpu.memory_space<vmem>>, vector<1x1x32x32xbf16>
    %158 = vector.shape_cast %157 : vector<1x1x32x32xbf16> to vector<32x32xbf16>
    %cst_199 = arith.constant dense<0.000000e+00> : vector<512x32xf32>
    %159 = tpu.matmul %156, %158, %cst_199 {dimension_numbers = #tpu.dot_dimension_numbers<[1], [0], [0], [1], [0, 0, 1, 1], [], []>} : vector<512x32xbf16>, vector<32x32xbf16>, vector<512x32xf32> -> vector<512x32xf32>
    %160 = arith.addf %153, %159 : vector<512x32xf32>
    %c0_200 = arith.constant 0 : index
    %c0_201 = arith.constant 0 : index
    %c9_202 = arith.constant 9 : index
    %c0_203 = arith.constant 0 : index
    %161 = vector.load %arg9[%c0_200, %c0_201, %c9_202, %c0_203] : memref<2x18x32x32xf32, #tpu.memory_space<vmem>>, vector<2x16x16x32xf32>
    %162 = vector.shape_cast %161 : vector<2x16x16x32xf32> to vector<512x32xf32>
    %163 = arith.truncf %162 : vector<512x32xf32> to vector<512x32xbf16>
    %c0_204 = arith.constant 0 : index
    %c2_205 = arith.constant 2 : index
    %c0_206 = arith.constant 0 : index
    %c0_207 = arith.constant 0 : index
    %164 = vector.load %arg5[%c0_204, %c2_205, %c0_206, %c0_207] : memref<3x3x32x32xbf16, #tpu.memory_space<vmem>>, vector<1x1x32x32xbf16>
    %165 = vector.shape_cast %164 : vector<1x1x32x32xbf16> to vector<32x32xbf16>
    %cst_208 = arith.constant dense<0.000000e+00> : vector<512x32xf32>
    %166 = tpu.matmul %163, %165, %cst_208 {dimension_numbers = #tpu.dot_dimension_numbers<[1], [0], [0], [1], [0, 0, 1, 1], [], []>} : vector<512x32xbf16>, vector<32x32xbf16>, vector<512x32xf32> -> vector<512x32xf32>
    %167 = arith.addf %160, %166 : vector<512x32xf32>
    %c0_209 = arith.constant 0 : index
    %c1_210 = arith.constant 1 : index
    %c7_211 = arith.constant 7 : index
    %c0_212 = arith.constant 0 : index
    %168 = vector.load %arg9[%c0_209, %c1_210, %c7_211, %c0_212] : memref<2x18x32x32xf32, #tpu.memory_space<vmem>>, vector<2x16x16x32xf32>
    %169 = vector.shape_cast %168 : vector<2x16x16x32xf32> to vector<512x32xf32>
    %170 = arith.truncf %169 : vector<512x32xf32> to vector<512x32xbf16>
    %c1_213 = arith.constant 1 : index
    %c0_214 = arith.constant 0 : index
    %c0_215 = arith.constant 0 : index
    %c0_216 = arith.constant 0 : index
    %171 = vector.load %arg5[%c1_213, %c0_214, %c0_215, %c0_216] : memref<3x3x32x32xbf16, #tpu.memory_space<vmem>>, vector<1x1x32x32xbf16>
    %172 = vector.shape_cast %171 : vector<1x1x32x32xbf16> to vector<32x32xbf16>
    %cst_217 = arith.constant dense<0.000000e+00> : vector<512x32xf32>
    %173 = tpu.matmul %170, %172, %cst_217 {dimension_numbers = #tpu.dot_dimension_numbers<[1], [0], [0], [1], [0, 0, 1, 1], [], []>} : vector<512x32xbf16>, vector<32x32xbf16>, vector<512x32xf32> -> vector<512x32xf32>
    %174 = arith.addf %167, %173 : vector<512x32xf32>
    %c0_218 = arith.constant 0 : index
    %c1_219 = arith.constant 1 : index
    %c8_220 = arith.constant 8 : index
    %c0_221 = arith.constant 0 : index
    %175 = vector.load %arg9[%c0_218, %c1_219, %c8_220, %c0_221] : memref<2x18x32x32xf32, #tpu.memory_space<vmem>>, vector<2x16x16x32xf32>
    %176 = vector.shape_cast %175 : vector<2x16x16x32xf32> to vector<512x32xf32>
    %177 = arith.truncf %176 : vector<512x32xf32> to vector<512x32xbf16>
    %c1_222 = arith.constant 1 : index
    %c1_223 = arith.constant 1 : index
    %c0_224 = arith.constant 0 : index
    %c0_225 = arith.constant 0 : index
    %178 = vector.load %arg5[%c1_222, %c1_223, %c0_224, %c0_225] : memref<3x3x32x32xbf16, #tpu.memory_space<vmem>>, vector<1x1x32x32xbf16>
    %179 = vector.shape_cast %178 : vector<1x1x32x32xbf16> to vector<32x32xbf16>
    %cst_226 = arith.constant dense<0.000000e+00> : vector<512x32xf32>
    %180 = tpu.matmul %177, %179, %cst_226 {dimension_numbers = #tpu.dot_dimension_numbers<[1], [0], [0], [1], [0, 0, 1, 1], [], []>} : vector<512x32xbf16>, vector<32x32xbf16>, vector<512x32xf32> -> vector<512x32xf32>
    %181 = arith.addf %174, %180 : vector<512x32xf32>
    %c0_227 = arith.constant 0 : index
    %c1_228 = arith.constant 1 : index
    %c9_229 = arith.constant 9 : index
    %c0_230 = arith.constant 0 : index
    %182 = vector.load %arg9[%c0_227, %c1_228, %c9_229, %c0_230] : memref<2x18x32x32xf32, #tpu.memory_space<vmem>>, vector<2x16x16x32xf32>
    %183 = vector.shape_cast %182 : vector<2x16x16x32xf32> to vector<512x32xf32>
    %184 = arith.truncf %183 : vector<512x32xf32> to vector<512x32xbf16>
    %c1_231 = arith.constant 1 : index
    %c2_232 = arith.constant 2 : index
    %c0_233 = arith.constant 0 : index
    %c0_234 = arith.constant 0 : index
    %185 = vector.load %arg5[%c1_231, %c2_232, %c0_233, %c0_234] : memref<3x3x32x32xbf16, #tpu.memory_space<vmem>>, vector<1x1x32x32xbf16>
    %186 = vector.shape_cast %185 : vector<1x1x32x32xbf16> to vector<32x32xbf16>
    %cst_235 = arith.constant dense<0.000000e+00> : vector<512x32xf32>
    %187 = tpu.matmul %184, %186, %cst_235 {dimension_numbers = #tpu.dot_dimension_numbers<[1], [0], [0], [1], [0, 0, 1, 1], [], []>} : vector<512x32xbf16>, vector<32x32xbf16>, vector<512x32xf32> -> vector<512x32xf32>
    %188 = arith.addf %181, %187 : vector<512x32xf32>
    %c0_236 = arith.constant 0 : index
    %c2_237 = arith.constant 2 : index
    %c7_238 = arith.constant 7 : index
    %c0_239 = arith.constant 0 : index
    %189 = vector.load %arg9[%c0_236, %c2_237, %c7_238, %c0_239] : memref<2x18x32x32xf32, #tpu.memory_space<vmem>>, vector<2x16x16x32xf32>
    %190 = vector.shape_cast %189 : vector<2x16x16x32xf32> to vector<512x32xf32>
    %191 = arith.truncf %190 : vector<512x32xf32> to vector<512x32xbf16>
    %c2_240 = arith.constant 2 : index
    %c0_241 = arith.constant 0 : index
    %c0_242 = arith.constant 0 : index
    %c0_243 = arith.constant 0 : index
    %192 = vector.load %arg5[%c2_240, %c0_241, %c0_242, %c0_243] : memref<3x3x32x32xbf16, #tpu.memory_space<vmem>>, vector<1x1x32x32xbf16>
    %193 = vector.shape_cast %192 : vector<1x1x32x32xbf16> to vector<32x32xbf16>
    %cst_244 = arith.constant dense<0.000000e+00> : vector<512x32xf32>
    %194 = tpu.matmul %191, %193, %cst_244 {dimension_numbers = #tpu.dot_dimension_numbers<[1], [0], [0], [1], [0, 0, 1, 1], [], []>} : vector<512x32xbf16>, vector<32x32xbf16>, vector<512x32xf32> -> vector<512x32xf32>
    %195 = arith.addf %188, %194 : vector<512x32xf32>
    %c0_245 = arith.constant 0 : index
    %c2_246 = arith.constant 2 : index
    %c8_247 = arith.constant 8 : index
    %c0_248 = arith.constant 0 : index
    %196 = vector.load %arg9[%c0_245, %c2_246, %c8_247, %c0_248] : memref<2x18x32x32xf32, #tpu.memory_space<vmem>>, vector<2x16x16x32xf32>
    %197 = vector.shape_cast %196 : vector<2x16x16x32xf32> to vector<512x32xf32>
    %198 = arith.truncf %197 : vector<512x32xf32> to vector<512x32xbf16>
    %c2_249 = arith.constant 2 : index
    %c1_250 = arith.constant 1 : index
    %c0_251 = arith.constant 0 : index
    %c0_252 = arith.constant 0 : index
    %199 = vector.load %arg5[%c2_249, %c1_250, %c0_251, %c0_252] : memref<3x3x32x32xbf16, #tpu.memory_space<vmem>>, vector<1x1x32x32xbf16>
    %200 = vector.shape_cast %199 : vector<1x1x32x32xbf16> to vector<32x32xbf16>
    %cst_253 = arith.constant dense<0.000000e+00> : vector<512x32xf32>
    %201 = tpu.matmul %198, %200, %cst_253 {dimension_numbers = #tpu.dot_dimension_numbers<[1], [0], [0], [1], [0, 0, 1, 1], [], []>} : vector<512x32xbf16>, vector<32x32xbf16>, vector<512x32xf32> -> vector<512x32xf32>
    %202 = arith.addf %195, %201 : vector<512x32xf32>
    %c0_254 = arith.constant 0 : index
    %c2_255 = arith.constant 2 : index
    %c9_256 = arith.constant 9 : index
    %c0_257 = arith.constant 0 : index
    %203 = vector.load %arg9[%c0_254, %c2_255, %c9_256, %c0_257] : memref<2x18x32x32xf32, #tpu.memory_space<vmem>>, vector<2x16x16x32xf32>
    %204 = vector.shape_cast %203 : vector<2x16x16x32xf32> to vector<512x32xf32>
    %205 = arith.truncf %204 : vector<512x32xf32> to vector<512x32xbf16>
    %c2_258 = arith.constant 2 : index
    %c2_259 = arith.constant 2 : index
    %c0_260 = arith.constant 0 : index
    %c0_261 = arith.constant 0 : index
    %206 = vector.load %arg5[%c2_258, %c2_259, %c0_260, %c0_261] : memref<3x3x32x32xbf16, #tpu.memory_space<vmem>>, vector<1x1x32x32xbf16>
    %207 = vector.shape_cast %206 : vector<1x1x32x32xbf16> to vector<32x32xbf16>
    %cst_262 = arith.constant dense<0.000000e+00> : vector<512x32xf32>
    %208 = tpu.matmul %205, %207, %cst_262 {dimension_numbers = #tpu.dot_dimension_numbers<[1], [0], [0], [1], [0, 0, 1, 1], [], []>} : vector<512x32xbf16>, vector<32x32xbf16>, vector<512x32xf32> -> vector<512x32xf32>
    %209 = arith.addf %202, %208 : vector<512x32xf32>
    %c0_263 = arith.constant 0 : index
    %c0_264 = arith.constant 0 : index
    %210 = vector.load %arg6[%c0_263, %c0_264] : memref<1x32xf32, #tpu.memory_space<vmem>>, vector<1x32xf32>
    %211 = vector.broadcast %210 : vector<1x32xf32> to vector<512x32xf32>
    %212 = arith.addf %209, %211 : vector<512x32xf32>
    %213 = arith.addf %212, %68 : vector<512x32xf32>
    %cst_265 = arith.constant 0.000000e+00 : f32
    %214 = vector.broadcast %cst_265 : f32 to vector<512x32xf32>
    %215 = arith.maximumf %213, %214 : vector<512x32xf32>
    %216 = vector.shape_cast %215 : vector<512x32xf32> to vector<2x256x32xf32>
    %cst_266 = arith.constant dense<0.000000e+00> : vector<2x32xf32>
    %217 = vector.multi_reduction <add>, %216, %cst_266 [1] : vector<2x256x32xf32> to vector<2x32xf32>
    %cst_267 = arith.constant 3.906250e-03 : f32
    %218 = vector.broadcast %cst_267 : f32 to vector<2x32xf32>
    %219 = arith.mulf %217, %218 : vector<2x32xf32>
    %c0_268 = arith.constant 0 : index
    %c0_269 = arith.constant 0 : index
    %220 = vector.load %arg7[%c0_268, %c0_269] : memref<2x32xf32, #tpu.memory_space<vmem>>, vector<2x32xf32>
    tpu.vector_store %arg7[%c0_268, %c0_269], %219 {strides = array<i32>} : memref<2x32xf32, #tpu.memory_space<vmem>>, vector<2x32xf32>,
    return
  }
}

</mosaic_0001>

<bundles_post_ra>
// kernel: timm_feature_extractor_forward.1
= control target key start
LH: loop header
LB: loop body
LE: loop exit
PB: predicated region body
PF: predicated region fallthrough
CT: control target
= control target key end

     0   :  { %vm320_vm0 = vcmask 1041408   ;;  %vm223_vm1 = vcmask 31744   ;;  %s26319_s0 = inlined_call_operand.vmem [shape: f32[2,18,32,4], index: 0, kind: input, shape index: {}]   ;;  %s26320_s1 = inlined_call_operand.vmem [shape: bf16[3,3,4,32], index: 1, kind: input, shape index: {}]   ;;  %s26321_s2 = inlined_call_operand.vmem [shape: f32[1,32], index: 2, kind: input, shape index: {}]   ;;  %s26322_s3 = inlined_call_operand.vmem [shape: bf16[3,3,32,32], index: 3, kind: input, shape index: {}]   ;;  %s26323_s4 = inlined_call_operand.vmem [shape: f32[1,32], index: 4, kind: input, shape index: {}]   ;;  %s26324_s5 = inlined_call_operand.vmem [shape: bf16[3,3,32,32], index: 5, kind: input, shape index: {}]   ;;  %s26325_s6 = inlined_call_operand.vmem [shape: f32[1,32], index: 6, kind: input, shape index: {}]   ;;  %s26326_s7 = inlined_call_operand.hbm [shape: f32[2,32], index: 7, kind: output, shape index: {}]  }
   0x1   :  { %v15762_v0 = vld [vmem:[%s26320_s1 + $0x2] sm:$0x3]  ;;  %v16021_v1 = vld [vmem:[%s26320_s1 + $0x8] sm:$0x3]  ;;  %v126_v5 = vld [vmem:[%s26319_s0 + $0x10] sm:$0xff] }
   0x2   :  { %v125_v2 = vld [vmem:[%s26319_s0 + $0x8] sm:$0xff]  ;;  %21386 = vmatprep.subr.msk.bf16.mxu1 %vm320_vm0, %v15762_v0  ;;  %21390 = vmatprep.subr.msk.bf16.mxu0 %vm320_vm0, %v16021_v1  ;;  %v322_v3 = vsel %vm320_vm0, %v15762_v0, 0  ;;  %v21514_v4 = vsel %vm320_vm0, %v16021_v1, 0  ;;  %v15958_v7 = vld [vmem:[%s26319_s0 + $0x30] sm:$0xff]  ;;  %v124_v10 = vld [vmem:[%s26320_s1] sm:$0x3] }
   0x3   :  { %v15957_v6 = vld [vmem:[%s26319_s0 + $0x28] sm:$0xff]  ;;  %18031 = vmatpush3.bf16.msra.mxu1 %v322_v3  ;;  %18295 = vmatpush3.bf16.msra.mxu0 %v21514_v4  ;;  %v189_v8 = vpack.c.bf16 %v126_v5, %v125_v2  ;;  %v15960_v12 = vld [vmem:[%s26319_s0 + $0x50] sm:$0xff]  ;;  %v710_v15 = vsel %vm320_vm0, %v124_v10, 0  ;;  %v21624_v45 = vld [vmem:[%s26320_s1 + $0x4] sm:$0x3] }
   0x4   :  { %v2166_v9 = vpack.c.bf16 %v15958_v7, %v15957_v6  ;;  %v15959_v11 = vld [vmem:[%s26319_s0 + $0x48] sm:$0xff]  ;;  %21387 = vmatprep.subr.msk.bf16.mxu1 %vm320_vm0, %v124_v10  ;;  %v15962_v17 = vld [vmem:[%s26319_s0 + $0x70] sm:$0xff] }
   0x5   :  { %v2167_v13 = vpack.c.bf16 %v15960_v12, %v15959_v11  ;;  %v16118_v14 = vld [vmem:[%s26320_s1 + $0xa] sm:$0x3]  ;;  %18032 = vmatprep.mubr.msk.bf16.mxu1 %vm223_vm1, %v189_v8  ;;  %v15964_v21 = vld [vmem:[%s26319_s0 + $0x90] sm:$0xff]  ;;  %v21585_v30 = vld [vmem:[%s26320_s1 + $0xc] sm:$0x3] }
   0x6   :  { %v15961_v16 = vld [vmem:[%s26319_s0 + $0x68] sm:$0xff]  ;;  %18296 = vmatprep.mubr.msk.bf16.mxu0 %vm223_vm1, %v2166_v9  ;;  %v2847_v18 = vsel %vm320_vm0, %v16118_v14, 0  ;;  %18033 = vmatmul.mubr.msk.bf16.vlgmr.msra.gmra.mrb[0].mxu1 %vm223_vm1, %v2166_v9  ;;  %v15966_v23 = vld [vmem:[%s26319_s0 + $0xb0] sm:$0xff]  ;;  %v3398_v10 = vsel %vm320_vm0, %v21585_v30, 0 }
   0x7   :  { %v2168_v19 = vpack.c.bf16 %v15962_v17, %v15961_v16  ;;  %18297 = vmatmul.mubr.msk.bf16.vlgmr.msra.gmra.mrb[0].mxu0 %vm223_vm1, %v2167_v13  ;;  %21392 = vmatprep.subr.msk.bf16.mxu0 %vm320_vm0, %v16118_v14  ;;  %v15963_v20 = vld [vmem:[%s26319_s0 + $0x88] sm:$0xff]  ;;  %v15968_v27 = vld [vmem:[%s26319_s0 + $0xd0] sm:$0xff] }
   0x8   :  { %18097 = vmatpush3.bf16.msra.mxu1 %v710_v15  ;;  %18361 = vmatpush3.bf16.msra.mxu0 %v2847_v18  ;;  %v15965_v22 = vld [vmem:[%s26319_s0 + $0xa8] sm:$0xff]  ;;  %v2169_v24 = vpack.c.bf16 %v15964_v21, %v15963_v20  ;;  %v15970_v29 = vld [vmem:[%s26319_s0 + $0xf0] sm:$0xff] }
   0x9   :  { %18036 = vmatprep.mubr.msk.bf16.mxu1 %vm223_vm1, %v2167_v13  ;;  %18300 = vmatprep.mubr.msk.bf16.mxu0 %vm223_vm1, %v2168_v19  ;;  %v2170_v25 = vpack.c.bf16 %v15966_v23, %v15965_v22  ;;  %v15967_v26 = vld [vmem:[%s26319_s0 + $0xc8] sm:$0xff]  ;;  %v15972_v34 = vld [vmem:[%s26319_s0 + $0x110] sm:$0xff] }
   0xa   :  { %v15969_v28 = vld [vmem:[%s26319_s0 + $0xe8] sm:$0xff]  ;;  %21393 = vmatprep.subr.msk.bf16.mxu0 %vm320_vm0, %v21585_v30  ;;  %v2171_v31 = vpack.c.bf16 %v15968_v27, %v15967_v26  ;;  %v15974_v36 = vld [vmem:[%s26319_s0 + $0x130] sm:$0xff]  ;;  %21388 = vmatprep.subr.msk.bf16.mxu1 %vm320_vm0, %v21624_v45 }
   0xb   :  { %v2172_v32 = vpack.c.bf16 %v15970_v29, %v15969_v28  ;;  %v15971_v33 = vld [vmem:[%s26319_s0 + $0x108] sm:$0xff]  ;;  %v15976_v40 = vld [vmem:[%s26319_s0 + $0x150] sm:$0xff] }
   0xc   :  { %v15973_v35 = vld [vmem:[%s26319_s0 + $0x128] sm:$0xff]  ;;  %v2173_v37 = vpack.c.bf16 %v15972_v34, %v15971_v33  ;;  %v15978_v42 = vld [vmem:[%s26319_s0 + $0x170] sm:$0xff] }
   0xd   :  { %v2174_v38 = vpack.c.bf16 %v15974_v36, %v15973_v35  ;;  %v15975_v39 = vld [vmem:[%s26319_s0 + $0x148] sm:$0xff]  ;;  %v15980_v47 = vld [vmem:[%s26319_s0 + $0x190] sm:$0xff] }
   0xe   :  { %18037 = vmatmul.mubr.msk.bf16.gmra.mrb[4].mxu1 %vm223_vm1, %v2168_v19  ;;  %v15977_v41 = vld [vmem:[%s26319_s0 + $0x168] sm:$0xff]  ;;  %v2175_v43 = vpack.c.bf16 %v15976_v40, %v15975_v39  ;;  %v15982_v49 = vld [vmem:[%s26319_s0 + $0x1b0] sm:$0xff] }
   0xf   :  { %18301 = vmatmul.mubr.msk.bf16.gmra.mrb[4].mxu0 %vm223_vm1, %v2169_v24  ;;  %18040 = vmatprep.mubr.msk.bf16.mxu1 %vm223_vm1, %v2169_v24  ;;  %v2176_v44 = vpack.c.bf16 %v15978_v42, %v15977_v41  ;;  %v15979_v46 = vld [vmem:[%s26319_s0 + $0x188] sm:$0xff]  ;;  %v15984_v53 = vld [vmem:[%s26319_s0 + $0x1d0] sm:$0xff] }
  0x10   :  { %18304 = vmatprep.mubr.msk.bf16.mxu0 %vm223_vm1, %v2170_v25  ;;  %v15981_v48 = vld [vmem:[%s26319_s0 + $0x1a8] sm:$0xff]  ;;  %v2177_v50 = vpack.c.bf16 %v15980_v47, %v15979_v46  ;;  %v15986_v55 = vld [vmem:[%s26319_s0 + $0x1f0] sm:$0xff] }
  0x11   :  { %v2178_v51 = vpack.c.bf16 %v15982_v49, %v15981_v48  ;;  %v15983_v52 = vld [vmem:[%s26319_s0 + $0x1c8] sm:$0xff]  ;;  %v15988_v59 = vld [vmem:[%s26319_s0 + $0x210] sm:$0xff] }
  0x12   :  { %v15985_v54 = vld [vmem:[%s26319_s0 + $0x1e8] sm:$0xff]  ;;  %v2179_v56 = vpack.c.bf16 %v15984_v53, %v15983_v52  ;;  %v158_v61 = vld [vmem:[%s26319_s0 + $0x250] sm:$0xff] }
  0x13   :  { %v2180_v57 = vpack.c.bf16 %v15986_v55, %v15985_v54  ;;  %v15987_v58 = vld [vmem:[%s26319_s0 + $0x208] sm:$0xff]  ;;  %v16055_v63 = vld [vmem:[%s26319_s0 + $0x31] sm:$0xff] }
  0x14   :  { %v157_v60 = vld [vmem:[%s26319_s0 + $0x248] sm:$0xff]  ;;  %v2181_v0 = vpack.c.bf16 %v15988_v59, %v15987_v58  ;;  %v160_v5 = vld [vmem:[%s26319_s0 + $0x270] sm:$0xff] }
  0x15   :  { %v16054_v62 = vld [vmem:[%s26319_s0 + $0x29] sm:$0xff]  ;;  %v205_v1 = vpack.c.bf16 %v158_v61, %v157_v60  ;;  %v16057_v7 = vld [vmem:[%s26319_s0 + $0x51] sm:$0xff] }
  0x16   :  { %18041 = vmatmul.mubr.msk.bf16.gmra.mrb[8].mxu1 %vm223_vm1, %v2170_v25  ;;  %v21682_v2 = vpack.c.bf16 %v16055_v63, %v16054_v62  ;;  %v159_v3 = vld [vmem:[%s26319_s0 + $0x268] sm:$0xff]  ;;  %v162_v9 = vld [vmem:[%s26319_s0 + $0x290] sm:$0xff] }
  0x17   :  { %18305 = vmatmul.mubr.msk.bf16.gmra.mrb[8].mxu0 %vm223_vm1, %v2171_v31  ;;  %18044 = vmatprep.mubr.msk.bf16.mxu1 %vm223_vm1, %v2171_v31  ;;  %v16056_v6 = vld [vmem:[%s26319_s0 + $0x49] sm:$0xff]  ;;  %v16059_v12 = vld [vmem:[%s26319_s0 + $0x71] sm:$0xff]  ;;  %v206_v13 = vpack.c.bf16 %v160_v5, %v159_v3 }
  0x18   :  { %18308 = vmatprep.mubr.msk.bf16.mxu0 %vm223_vm1, %v2172_v32  ;;  %v161_v8 = vld [vmem:[%s26319_s0 + $0x288] sm:$0xff]  ;;  %v21715_v14 = vpack.c.bf16 %v16057_v7, %v16056_v6  ;;  %v164_v18 = vld [vmem:[%s26319_s0 + $0x2b0] sm:$0xff] }
  0x19   :  { %v16058_v11 = vld [vmem:[%s26319_s0 + $0x69] sm:$0xff]  ;;  %v207_v15 = vpack.c.bf16 %v162_v9, %v161_v8  ;;  %v16061_v20 = vld [vmem:[%s26319_s0 + $0x91] sm:$0xff] }
  0x1a   :  { %v21717_v16 = vpack.c.bf16 %v16059_v12, %v16058_v11  ;;  %v163_v17 = vld [vmem:[%s26319_s0 + $0x2a8] sm:$0xff]  ;;  %v166_v23 = vld [vmem:[%s26319_s0 + $0x2d0] sm:$0xff] }
  0x1b   :  { %v16060_v19 = vld [vmem:[%s26319_s0 + $0x89] sm:$0xff]  ;;  %v16063_v25 = vld [vmem:[%s26319_s0 + $0xb1] sm:$0xff]  ;;  %v208_v26 = vpack.c.bf16 %v164_v18, %v163_v17 }
  0x1c   :  { %v21737_v21 = vld [vmem:[%s26320_s1 + $0xe] sm:$0x3]  ;;  %v21756_v27 = vpack.c.bf16 %v16061_v20, %v16060_v19  ;;  %v168_v31 = vld [vmem:[%s26319_s0 + $0x2f0] sm:$0xff] }
  0x1d   :  { %v165_v22 = vld [vmem:[%s26319_s0 + $0x2c8] sm:$0xff]  ;;  %v16065_v33 = vld [vmem:[%s26319_s0 + $0xd1] sm:$0xff] }
  0x1e   :  { %18045 = vmatmul.mubr.msk.bf16.gmra.mrb[12].mxu1 %vm223_vm1, %v2172_v32  ;;  %v16062_v24 = vld [vmem:[%s26319_s0 + $0xa9] sm:$0xff]  ;;  %v209_v28 = vpack.c.bf16 %v166_v23, %v165_v22 }
  0x1f   :  { %18309 = vmatmul.mubr.msk.bf16.gmra.mrb[12].mxu0 %vm223_vm1, %v2173_v37  ;;  %18048 = vmatprep.mubr.msk.bf16.mxu1 %vm223_vm1, %v2173_v37  ;;  %v21758_v29 = vpack.c.bf16 %v16063_v25, %v16062_v24  ;;  %v167_v30 = vld [vmem:[%s26319_s0 + $0x2e8] sm:$0xff]  ;;  %v170_v35 = vld [vmem:[%s26319_s0 + $0x310] sm:$0xff] }
  0x20   :  { %18312 = vmatprep.mubr.msk.bf16.mxu0 %vm223_vm1, %v2174_v38  ;;  %v16064_v32 = vld [vmem:[%s26319_s0 + $0xc9] sm:$0xff]  ;;  %v16067_v37 = vld [vmem:[%s26319_s0 + $0xf1] sm:$0xff] }
  0x21   :  { %v169_v34 = vld [vmem:[%s26319_s0 + $0x308] sm:$0xff]  ;;  %v21790_v39 = vpack.c.bf16 %v16065_v33, %v16064_v32 }
  0x22   :  { %v16066_v36 = vld [vmem:[%s26319_s0 + $0xe9] sm:$0xff]  ;;  %v211_v40 = vpack.c.bf16 %v170_v35, %v169_v34 }
  0x23   :  { %v21792_v41 = vpack.c.bf16 %v16067_v37, %v16066_v36 }
  0x26   :  { %18049 = vmatmul.mubr.msk.bf16.gmra.mrb[16].mxu1 %vm223_vm1, %v2174_v38  ;;  %v210_v38 = vpack.c.bf16 %v168_v31, %v167_v30 }
  0x27   :  { %18313 = vmatmul.mubr.msk.bf16.gmra.mrb[16].mxu0 %vm223_vm1, %v2175_v43  ;;  %18052 = vmatprep.mubr.msk.bf16.mxu1 %vm223_vm1, %v2175_v43 }
  0x28   :  { %18316 = vmatprep.mubr.msk.bf16.mxu0 %vm223_vm1, %v2176_v44 }
  0x2e   :  { %18053 = vmatmul.mubr.msk.bf16.gmra.mrb[20].mxu1 %vm223_vm1, %v2176_v44 }
  0x2f   :  { %18317 = vmatmul.mubr.msk.bf16.gmra.mrb[20].mxu0 %vm223_vm1, %v2177_v50  ;;  %18056 = vmatprep.mubr.msk.bf16.mxu1 %vm223_vm1, %v2177_v50 }
  0x30   :  { %18320 = vmatprep.mubr.msk.bf16.mxu0 %vm223_vm1, %v2178_v51 }
  0x36   :  { %18057 = vmatmul.mubr.msk.bf16.gmra.mrb[24].mxu1 %vm223_vm1, %v2178_v51 }
  0x37   :  { %18321 = vmatmul.mubr.msk.bf16.gmra.mrb[24].mxu0 %vm223_vm1, %v2179_v56  ;;  %18060 = vmatprep.mubr.msk.bf16.mxu1 %vm223_vm1, %v2179_v56 }
  0x38   :  { %18324 = vmatprep.mubr.msk.bf16.mxu0 %vm223_vm1, %v2180_v57 }
  0x3e   :  { %18061 = vmatmul.mubr.msk.bf16.gmra.mrb[28].mxu1 %vm223_vm1, %v2180_v57 }
  0x3f   :  { %18325 = vmatmul.mubr.msk.bf16.gmra.mrb[28].mxu0 %vm223_vm1, %v2181_v0  ;;  %18064 = vmatprep.mubr.msk.bf16.mxu1 %vm223_vm1, %v205_v1 }
  0x40   :  { %18362 = vmatprep.mubr.msk.bf16.mxu0 %vm223_vm1, %v21682_v2 }
  0x46   :  { %18065 = vmatmul.mubr.msk.bf16.gmra.mrb[32].mxu1 %vm223_vm1, %v206_v13 }
  0x47   :  { %18363 = vmatmul.mubr.msk.bf16.vlgmr.msra.gmra.mrb[0].mxu0 %vm223_vm1, %v21715_v14  ;;  %18068 = vmatprep.mubr.msk.bf16.mxu1 %vm223_vm1, %v207_v15 }
  0x48   :  { %18427 = vmatpush3.bf16.msra.mxu0 %v3398_v10  ;;  %18366 = vmatprep.mubr.msk.bf16.mxu0 %vm223_vm1, %v21717_v16 }
  0x49   :  { %21394 = vmatprep.subr.msk.bf16.mxu0 %vm320_vm0, %v21737_v21 }
  0x4e   :  { %18069 = vmatmul.mubr.msk.bf16.gmra.mrb[36].mxu1 %vm223_vm1, %v208_v26 }
  0x4f   :  { %18367 = vmatmul.mubr.msk.bf16.gmra.mrb[4].mxu0 %vm223_vm1, %v21756_v27  ;;  %18072 = vmatprep.mubr.msk.bf16.mxu1 %vm223_vm1, %v209_v28 }
  0x50   :  { %18370 = vmatprep.mubr.msk.bf16.mxu0 %vm223_vm1, %v21758_v29 }
  0x51   :  { %12 = vsyncpa [#allocation5], 0  ;;  %v171_v42 = vld [vmem:[%s26319_s0 + $0x328] sm:$0xff]  ;;  %v172_v43 = vld [vmem:[%s26319_s0 + $0x330] sm:$0xff]  ;;  %vm4988_vm2 = vcmask 261120   ;;  %vm15743_vm3 = vcmask 1041409  }
  0x52   :  { %v16068_v44 = vld [vmem:[%s26319_s0 + $0x109] sm:$0xff]  ;;  %v16069_v46 = vld [vmem:[%s26319_s0 + $0x111] sm:$0xff]  ;;  %v212_v51 = vpack.c.bf16 %v172_v43, %v171_v42  ;;  %vm15746_vm4 = vcmask 254976  }
  0x53   :  { %v173_v47 = vld [vmem:[%s26319_s0 + $0x348] sm:$0xff]  ;;  %v174_v48 = vld [vmem:[%s26319_s0 + $0x350] sm:$0xff]  ;;  %v21824_v52 = vpack.c.bf16 %v16069_v46, %v16068_v44 }
  0x54   :  { %v16070_v49 = vld [vmem:[%s26319_s0 + $0x129] sm:$0xff]  ;;  %v16071_v50 = vld [vmem:[%s26319_s0 + $0x131] sm:$0xff]  ;;  %v213_v53 = vpack.c.bf16 %v174_v48, %v173_v47 }
  0x55   :  { %v21826_v54 = vpack.c.bf16 %v16071_v50, %v16070_v49  ;;  %v175_v55 = vld [vmem:[%s26319_s0 + $0x368] sm:$0xff]  ;;  %v176_v56 = vld [vmem:[%s26319_s0 + $0x370] sm:$0xff] }
  0x56   :  { %18073 = vmatmul.mubr.msk.bf16.gmra.mrb[40].mxu1 %vm223_vm1, %v210_v38  ;;  %v16072_v57 = vld [vmem:[%s26319_s0 + $0x149] sm:$0xff]  ;;  %v16073_v58 = vld [vmem:[%s26319_s0 + $0x151] sm:$0xff]  ;;  %v214_v63 = vpack.c.bf16 %v176_v56, %v175_v55 }
  0x57   :  { %18371 = vmatmul.mubr.msk.bf16.gmra.mrb[8].mxu0 %vm223_vm1, %v21790_v39  ;;  %18076 = vmatprep.mubr.msk.bf16.mxu1 %vm223_vm1, %v211_v40  ;;  %v177_v59 = vld [vmem:[%s26319_s0 + $0x388] sm:$0xff]  ;;  %v178_v60 = vld [vmem:[%s26319_s0 + $0x390] sm:$0xff]  ;;  %v21858_v0 = vpack.c.bf16 %v16073_v58, %v16072_v57 }
  0x58   :  { %18374 = vmatprep.mubr.msk.bf16.mxu0 %vm223_vm1, %v21792_v41  ;;  %v16074_v61 = vld [vmem:[%s26319_s0 + $0x169] sm:$0xff]  ;;  %v16075_v62 = vld [vmem:[%s26319_s0 + $0x171] sm:$0xff]  ;;  %v215_v1 = vpack.c.bf16 %v178_v60, %v177_v59 }
  0x59   :  { %v21860_v3 = vpack.c.bf16 %v16075_v62, %v16074_v61  ;;  %v179_v5 = vld [vmem:[%s26319_s0 + $0x3a8] sm:$0xff]  ;;  %v180_v6 = vld [vmem:[%s26319_s0 + $0x3b0] sm:$0xff]  ;;  %v1196_v62 = vsel %vm320_vm0, %v21624_v45, 0 }
  0x5a   :  { %v16076_v7 = vld [vmem:[%s26319_s0 + $0x189] sm:$0xff]  ;;  %v16077_v8 = vld [vmem:[%s26319_s0 + $0x191] sm:$0xff]  ;;  %v216_v13 = vpack.c.bf16 %v180_v6, %v179_v5  ;;  %v22011_v6 = vld [vmem:[%s26320_s1 + $0x6] sm:$0x3] }
  0x5b   :  { %v181_v9 = vld [vmem:[%s26319_s0 + $0x3c8] sm:$0xff]  ;;  %v182_v10 = vld [vmem:[%s26319_s0 + $0x3d0] sm:$0xff]  ;;  %v21892_v15 = vpack.c.bf16 %v16077_v8, %v16076_v7 }
  0x5c   :  { %v16078_v11 = vld [vmem:[%s26319_s0 + $0x1a9] sm:$0xff]  ;;  %v16079_v12 = vld [vmem:[%s26319_s0 + $0x1b1] sm:$0xff]  ;;  %v217_v17 = vpack.c.bf16 %v182_v10, %v181_v9 }
  0x5d   :  { %v21894_v18 = vpack.c.bf16 %v16079_v12, %v16078_v11  ;;  %v183_v19 = vld [vmem:[%s26319_s0 + $0x3e8] sm:$0xff]  ;;  %v184_v20 = vld [vmem:[%s26319_s0 + $0x3f0] sm:$0xff] }
  0x5e   :  { %18077 = vmatmul.mubr.msk.bf16.gmra.mrb[44].mxu1 %vm223_vm1, %v212_v51  ;;  %v16080_v22 = vld [vmem:[%s26319_s0 + $0x1c9] sm:$0xff]  ;;  %v16081_v23 = vld [vmem:[%s26319_s0 + $0x1d1] sm:$0xff]  ;;  %v218_v30 = vpack.c.bf16 %v184_v20, %v183_v19 }
  0x5f   :  { %18375 = vmatmul.mubr.msk.bf16.gmra.mrb[12].mxu0 %vm223_vm1, %v21824_v52  ;;  %18080 = vmatprep.mubr.msk.bf16.mxu1 %vm223_vm1, %v213_v53  ;;  %v185_v24 = vld [vmem:[%s26319_s0 + $0x408] sm:$0xff]  ;;  %v186_v25 = vld [vmem:[%s26319_s0 + $0x410] sm:$0xff]  ;;  %v21926_v31 = vpack.c.bf16 %v16081_v23, %v16080_v22 }
  0x60   :  { %18378 = vmatprep.mubr.msk.bf16.mxu0 %vm223_vm1, %v21826_v54  ;;  %v16082_v26 = vld [vmem:[%s26319_s0 + $0x1e9] sm:$0xff]  ;;  %v16083_v28 = vld [vmem:[%s26319_s0 + $0x1f1] sm:$0xff]  ;;  %v219_v32 = vpack.c.bf16 %v186_v25, %v185_v24 }
  0x61   :  { %v21928_v33 = vpack.c.bf16 %v16083_v28, %v16082_v26  ;;  %v187_v34 = vld [vmem:[%s26319_s0 + $0x428] sm:$0xff]  ;;  %v188_v35 = vld [vmem:[%s26319_s0 + $0x430] sm:$0xff] }
  0x62   :  { %v16084_v36 = vld [vmem:[%s26319_s0 + $0x209] sm:$0xff]  ;;  %v16085_v37 = vld [vmem:[%s26319_s0 + $0x211] sm:$0xff]  ;;  %v220_v44 = vpack.c.bf16 %v188_v35, %v187_v34 }
  0x63   :  { %v28_v38 = vld [vmem:[%s26319_s0 + $0x7] sm:$0xff]  ;;  %v29_v40 = vld [vmem:[%s26319_s0 + $0xf] sm:$0xff]  ;;  %v2731_v46 = vpack.c.bf16 %v16085_v37, %v16084_v36 }
  0x64   :  { %v16086_v42 = vld [vmem:[%s26319_s0 + $0x269] sm:$0xff]  ;;  %v16087_v43 = vld [vmem:[%s26319_s0 + $0x271] sm:$0xff]  ;;  %v92_v47 = vpack.c.bf16 %v29_v40, %v28_v38 }
  0x65   :  { %v21960_v48 = vpack.c.bf16 %v16087_v43, %v16086_v42  ;;  %v30_v49 = vld [vmem:[%s26319_s0 + $0x27] sm:$0xff]  ;;  %v31_v50 = vld [vmem:[%s26319_s0 + $0x2f] sm:$0xff] }
  0x66   :  { %18081 = vmatmul.mubr.msk.bf16.gmra.mrb[48].mxu1 %vm223_vm1, %v214_v63  ;;  %v16088_v51 = vld [vmem:[%s26319_s0 + $0x289] sm:$0xff]  ;;  %v16089_v53 = vld [vmem:[%s26319_s0 + $0x291] sm:$0xff]  ;;  %v93_v59 = vpack.c.bf16 %v31_v50, %v30_v49 }
  0x67   :  { %18379 = vmatmul.mubr.msk.bf16.gmra.mrb[16].mxu0 %vm223_vm1, %v21858_v0  ;;  %18084 = vmatprep.mubr.msk.bf16.mxu1 %vm223_vm1, %v215_v1  ;;  %v32_v55 = vld [vmem:[%s26319_s0 + $0x47] sm:$0xff]  ;;  %v33_v56 = vld [vmem:[%s26319_s0 + $0x4f] sm:$0xff]  ;;  %v21991_v60 = vpack.c.bf16 %v16089_v53, %v16088_v51 }
  0x68   :  { %18382 = vmatprep.mubr.msk.bf16.mxu0 %vm223_vm1, %v21860_v3  ;;  %v16090_v57 = vld [vmem:[%s26319_s0 + $0x2a9] sm:$0xff]  ;;  %v16091_v58 = vld [vmem:[%s26319_s0 + $0x2b1] sm:$0xff]  ;;  %v21993_v61 = vpack.c.bf16 %v33_v56, %v32_v55 }
  0x69   :  { %v21997_v63 = vpack.c.bf16 %v16091_v58, %v16090_v57  ;;  %v34_v1 = vld [vmem:[%s26319_s0 + $0x67] sm:$0xff]  ;;  %v35_v5 = vld [vmem:[%s26319_s0 + $0x6f] sm:$0xff] }
  0x6a   :  { %v16092_v45 = vld [vmem:[%s26319_s0 + $0x2c9] sm:$0xff]  ;;  %v16093_v7 = vld [vmem:[%s26319_s0 + $0x2d1] sm:$0xff]  ;;  %v22037_v12 = vpack.c.bf16 %v35_v5, %v34_v1 }
  0x6b   :  { %v36_v8 = vld [vmem:[%s26319_s0 + $0x87] sm:$0xff]  ;;  %v37_v9 = vld [vmem:[%s26319_s0 + $0x8f] sm:$0xff] }
  0x6c   :  { %v16094_v10 = vld [vmem:[%s26319_s0 + $0x2e9] sm:$0xff]  ;;  %v16095_v11 = vld [vmem:[%s26319_s0 + $0x2f1] sm:$0xff] }
  0x6d   :  { %v22043_v19 = vpack.c.bf16 %v16095_v11, %v16094_v10  ;;  %v38_v20 = vld [vmem:[%s26319_s0 + $0xa7] sm:$0xff]  ;;  %v39_v22 = vld [vmem:[%s26319_s0 + $0xaf] sm:$0xff] }
  0x6e   :  { %18085 = vmatmul.mubr.msk.bf16.gmra.mrb[52].mxu1 %vm223_vm1, %v216_v13  ;;  %v22039_v13 = vpack.c.bf16 %v16093_v7, %v16092_v45  ;;  %v16096_v23 = vld [vmem:[%s26319_s0 + $0x309] sm:$0xff]  ;;  %v16097_v24 = vld [vmem:[%s26319_s0 + $0x311] sm:$0xff] }
  0x6f   :  { %18383 = vmatmul.mubr.msk.bf16.gmra.mrb[20].mxu0 %vm223_vm1, %v21892_v15  ;;  %18088 = vmatprep.mubr.msk.bf16.mxu1 %vm223_vm1, %v217_v17  ;;  %v22041_v17 = vpack.c.bf16 %v37_v9, %v36_v8  ;;  %v40_v25 = vld [vmem:[%s26319_s0 + $0xc7] sm:$0xff]  ;;  %v41_v26 = vld [vmem:[%s26319_s0 + $0xcf] sm:$0xff]  ;;  %v22079_v34 = vpack.c.bf16 %v16097_v24, %v16096_v23 }
  0x70   :  { %18386 = vmatprep.mubr.msk.bf16.mxu0 %vm223_vm1, %v21894_v18  ;;  %v16098_v28 = vld [vmem:[%s26319_s0 + $0x329] sm:$0xff]  ;;  %v22081_v35 = vpack.c.bf16 %v41_v26, %v40_v25  ;;  %v16101_v42 = vld [vmem:[%s26319_s0 + $0x351] sm:$0xff] }
  0x71   :  { %v42_v37 = vld [vmem:[%s26319_s0 + $0xe7] sm:$0xff]  ;;  %v43_v38 = vld [vmem:[%s26319_s0 + $0xef] sm:$0xff] }
  0x72   :  { %v16100_v40 = vld [vmem:[%s26319_s0 + $0x349] sm:$0xff]  ;;  %v22117_v49 = vpack.c.bf16 %v43_v38, %v42_v37  ;;  %v16105_v58 = vld [vmem:[%s26319_s0 + $0x391] sm:$0xff] }
  0x73   :  { %v44_v43 = vld [vmem:[%s26319_s0 + $0x107] sm:$0xff]  ;;  %v22119_v50 = vpack.c.bf16 %v16101_v42, %v16100_v40  ;;  %v47_v56 = vld [vmem:[%s26319_s0 + $0x12f] sm:$0xff] }
  0x74   :  { %v46_v55 = vld [vmem:[%s26319_s0 + $0x127] sm:$0xff]  ;;  %v16107_v5 = vld [vmem:[%s26319_s0 + $0x3b1] sm:$0xff] }
  0x75   :  { %v16104_v57 = vld [vmem:[%s26319_s0 + $0x389] sm:$0xff]  ;;  %v22157_v45 = vpack.c.bf16 %v47_v56, %v46_v55  ;;  %v16111_v26 = vld [vmem:[%s26319_s0 + $0x3f1] sm:$0xff] }
  0x76   :  { %18089 = vmatmul.mubr.msk.bf16.gmra.mrb[56].mxu1 %vm223_vm1, %v218_v30  ;;  %v16099_v30 = vld [vmem:[%s26319_s0 + $0x331] sm:$0xff]  ;;  %v16106_v1 = vld [vmem:[%s26319_s0 + $0x3a9] sm:$0xff]  ;;  %v22159_v7 = vpack.c.bf16 %v16105_v58, %v16104_v57 }
  0x77   :  { %18387 = vmatmul.mubr.msk.bf16.gmra.mrb[24].mxu0 %vm223_vm1, %v21926_v31  ;;  %18092 = vmatprep.mubr.msk.bf16.mxu1 %vm223_vm1, %v219_v32  ;;  %v22077_v32 = vpack.c.bf16 %v39_v22, %v38_v20  ;;  %v22083_v36 = vpack.c.bf16 %v16099_v30, %v16098_v28  ;;  %v22163_v9 = vpack.c.bf16 %v16107_v5, %v16106_v1  ;;  %v50_v10 = vld [vmem:[%s26319_s0 + $0x167] sm:$0xff]  ;;  %v51_v11 = vld [vmem:[%s26319_s0 + $0x16f] sm:$0xff] }
  0x78   :  { %18390 = vmatprep.mubr.msk.bf16.mxu0 %vm223_vm1, %v21928_v33  ;;  %v16108_v20 = vld [vmem:[%s26319_s0 + $0x3c9] sm:$0xff]  ;;  %v16109_v22 = vld [vmem:[%s26319_s0 + $0x3d1] sm:$0xff]  ;;  %v22197_v28 = vpack.c.bf16 %v51_v11, %v50_v10 }
  0x79   :  { %v52_v23 = vld [vmem:[%s26319_s0 + $0x187] sm:$0xff]  ;;  %v53_v24 = vld [vmem:[%s26319_s0 + $0x18f] sm:$0xff]  ;;  %v22199_v30 = vpack.c.bf16 %v16109_v22, %v16108_v20 }
  0x7a   :  { %v16110_v25 = vld [vmem:[%s26319_s0 + $0x3e9] sm:$0xff]  ;;  %v22201_v37 = vpack.c.bf16 %v53_v24, %v52_v23  ;;  %v16115_v56 = vld [vmem:[%s26319_s0 + $0x431] sm:$0xff] }
  0x7b   :  { %v22203_v38 = vpack.c.bf16 %v16111_v26, %v16110_v25  ;;  %v54_v40 = vld [vmem:[%s26319_s0 + $0x1a7] sm:$0xff]  ;;  %v55_v42 = vld [vmem:[%s26319_s0 + $0x1af] sm:$0xff] }
  0x7c   :  { %v16114_v55 = vld [vmem:[%s26319_s0 + $0x429] sm:$0xff]  ;;  %v22237_v57 = vpack.c.bf16 %v55_v42, %v54_v40  ;;  %v16117_v11 = vld [vmem:[%s26319_s0 + $0x451] sm:$0xff] }
  0x7d   :  { %v58_v1 = vld [vmem:[%s26319_s0 + $0x1e7] sm:$0xff]  ;;  %v59_v5 = vld [vmem:[%s26319_s0 + $0x1ef] sm:$0xff] }
  0x7e   :  { %18093 = vmatmul.mubr.msk.bf16.gmra.mrb[60].mxu1 %vm223_vm1, %v220_v44  ;;  %v45_v44 = vld [vmem:[%s26319_s0 + $0x10f] sm:$0xff]  ;;  %v60_v20 = vld [vmem:[%s26319_s0 + $0x247] sm:$0xff]  ;;  %v22271_v23 = vpack.c.bf16 %v59_v5, %v58_v1 }
  0x7f   :  { %18391 = vmatmul.mubr.msk.bf16.gmra.mrb[28].mxu0 %vm223_vm1, %v2731_v46  ;;  %18098 = vmatprep.mubr.msk.bf16.mxu1 %vm223_vm1, %v92_v47  ;;  %v16102_v46 = vld [vmem:[%s26319_s0 + $0x369] sm:$0xff]  ;;  %v16103_v47 = vld [vmem:[%s26319_s0 + $0x371] sm:$0xff]  ;;  %v22121_v51 = vpack.c.bf16 %v45_v44, %v44_v43 }
  0x80   :  { %18394 = vmatprep.mubr.msk.bf16.mxu0 %vm223_vm1, %v21960_v48  ;;  %v22123_v53 = vpack.c.bf16 %v16103_v47, %v16102_v46  ;;  %v16112_v43 = vld [vmem:[%s26319_s0 + $0x409] sm:$0xff]  ;;  %v16113_v44 = vld [vmem:[%s26319_s0 + $0x411] sm:$0xff] }
  0x81   :  { %v56_v46 = vld [vmem:[%s26319_s0 + $0x1c7] sm:$0xff]  ;;  %v57_v47 = vld [vmem:[%s26319_s0 + $0x1cf] sm:$0xff]  ;;  %v22239_v58 = vpack.c.bf16 %v16113_v44, %v16112_v43 }
  0x82   :  { %v16116_v10 = vld [vmem:[%s26319_s0 + $0x449] sm:$0xff] }
  0x83   :  { %v61_v22 = vld [vmem:[%s26319_s0 + $0x24f] sm:$0xff]  ;;  %v2747_v24 = vpack.c.bf16 %v16117_v11, %v16116_v10  ;;  %v62_v26 = vld [vmem:[%s26319_s0 + $0x267] sm:$0xff] }
  0x84   :  { %v108_v25 = vpack.c.bf16 %v61_v22, %v60_v20  ;;  %v63_v40 = vld [vmem:[%s26319_s0 + $0x26f] sm:$0xff]  ;;  %v64_v42 = vld [vmem:[%s26319_s0 + $0x287] sm:$0xff] }
  0x85   :  { %v65_v43 = vld [vmem:[%s26319_s0 + $0x28f] sm:$0xff]  ;;  %v109_v44 = vpack.c.bf16 %v63_v40, %v62_v26  ;;  %v72_v11 = vld [vmem:[%s26319_s0 + $0x307] sm:$0xff] }
  0x86   :  { %18099 = vmatmul.mubr.msk.bf16.vlgmr.msra.gmra.mrb[0].mxu1 %vm223_vm1, %v93_v59  ;;  %v48_v59 = vld [vmem:[%s26319_s0 + $0x147] sm:$0xff]  ;;  %v71_v10 = vld [vmem:[%s26319_s0 + $0x2ef] sm:$0xff] }
  0x87   :  { %18395 = vmatmul.mubr.msk.bf16.gmra.mrb[32].mxu0 %vm223_vm1, %v21991_v60  ;;  %18163 = vmatpush3.bf16.msra.mxu1 %v1196_v62  ;;  %v49_v62 = vld [vmem:[%s26319_s0 + $0x14f] sm:$0xff] }
  0x88   :  { %18102 = vmatprep.mubr.msk.bf16.mxu1 %vm223_vm1, %v21993_v61  ;;  %18398 = vmatprep.mubr.msk.bf16.mxu0 %vm223_vm1, %v21997_v63  ;;  %v22161_v8 = vpack.c.bf16 %v49_v62, %v48_v59  ;;  %v22241_v59 = vpack.c.bf16 %v57_v47, %v56_v46  ;;  %v22243_v62 = vpack.c.bf16 %v16115_v56, %v16114_v55  ;;  %v22301_v47 = vld [vmem:[%s26320_s1 + $0x10] sm:$0x3]  ;;  %v66_v55 = vld [vmem:[%s26319_s0 + $0x2a7] sm:$0xff] }
  0x89   :  { %21389 = vmatprep.subr.msk.bf16.mxu1 %vm320_vm0, %v22011_v6  ;;  %v22291_v46 = vpack.c.bf16 %v65_v43, %v64_v42  ;;  %v69_v56 = vld [vmem:[%s26319_s0 + $0x2cf] sm:$0xff]  ;;  %v80_v43 = vld [vmem:[%s26319_s0 + $0x387] sm:$0xff] }
  0x8a   :  { %v79_v42 = vld [vmem:[%s26319_s0 + $0x36f] sm:$0xff] }
  0x8e   :  { %18103 = vmatmul.mubr.msk.bf16.gmra.mrb[4].mxu1 %vm223_vm1, %v22037_v12 }
  0x8f   :  { %18399 = vmatmul.mubr.msk.bf16.gmra.mrb[36].mxu0 %vm223_vm1, %v22039_v13  ;;  %18106 = vmatprep.mubr.msk.bf16.mxu1 %vm223_vm1, %v22041_v17 }
  0x90   :  { %18402 = vmatprep.mubr.msk.bf16.mxu0 %vm223_vm1, %v22043_v19 }
  0x96   :  { %18107 = vmatmul.mubr.msk.bf16.gmra.mrb[8].mxu1 %vm223_vm1, %v22077_v32 }
  0x97   :  { %18403 = vmatmul.mubr.msk.bf16.gmra.mrb[40].mxu0 %vm223_vm1, %v22079_v34  ;;  %18110 = vmatprep.mubr.msk.bf16.mxu1 %vm223_vm1, %v22081_v35 }
  0x98   :  { %18406 = vmatprep.mubr.msk.bf16.mxu0 %vm223_vm1, %v22083_v36 }
  0x9e   :  { %18111 = vmatmul.mubr.msk.bf16.gmra.mrb[12].mxu1 %vm223_vm1, %v22117_v49 }
  0x9f   :  { %18407 = vmatmul.mubr.msk.bf16.gmra.mrb[44].mxu0 %vm223_vm1, %v22119_v50  ;;  %18114 = vmatprep.mubr.msk.bf16.mxu1 %vm223_vm1, %v22121_v51 }
  0xa0   :  { %18410 = vmatprep.mubr.msk.bf16.mxu0 %vm223_vm1, %v22123_v53 }
  0xa6   :  { %18115 = vmatmul.mubr.msk.bf16.gmra.mrb[16].mxu1 %vm223_vm1, %v22157_v45 }
  0xa7   :  { %18411 = vmatmul.mubr.msk.bf16.gmra.mrb[48].mxu0 %vm223_vm1, %v22159_v7  ;;  %18118 = vmatprep.mubr.msk.bf16.mxu1 %vm223_vm1, %v22161_v8 }
  0xa8   :  { %18414 = vmatprep.mubr.msk.bf16.mxu0 %vm223_vm1, %v22163_v9 }
  0xae   :  { %18119 = vmatmul.mubr.msk.bf16.gmra.mrb[20].mxu1 %vm223_vm1, %v22197_v28 }
  0xaf   :  { %18415 = vmatmul.mubr.msk.bf16.gmra.mrb[52].mxu0 %vm223_vm1, %v22199_v30  ;;  %18122 = vmatprep.mubr.msk.bf16.mxu1 %vm223_vm1, %v22201_v37 }
  0xb0   :  { %18418 = vmatprep.mubr.msk.bf16.mxu0 %vm223_vm1, %v22203_v38 }
  0xb6   :  { %18123 = vmatmul.mubr.msk.bf16.gmra.mrb[24].mxu1 %vm223_vm1, %v22237_v57 }
  0xb7   :  { %18419 = vmatmul.mubr.msk.bf16.gmra.mrb[56].mxu0 %vm223_vm1, %v22239_v58  ;;  %18126 = vmatprep.mubr.msk.bf16.mxu1 %vm223_vm1, %v22241_v59 }
  0xb8   :  { %18422 = vmatprep.mubr.msk.bf16.mxu0 %vm223_vm1, %v22243_v62 }
  0xbe   :  { %18127 = vmatmul.mubr.msk.bf16.gmra.mrb[28].mxu1 %vm223_vm1, %v22271_v23 }
  0xbf   :  { %18423 = vmatmul.mubr.msk.bf16.gmra.mrb[60].mxu0 %vm223_vm1, %v2747_v24  ;;  %18130 = vmatprep.mubr.msk.bf16.mxu1 %vm223_vm1, %v108_v25  ;;  %v75_v24 = vld [vmem:[%s26319_s0 + $0x32f] sm:$0xff]  ;;  %v76_v25 = vld [vmem:[%s26319_s0 + $0x347] sm:$0xff] }
  0xc0   :  { %18428 = vmatprep.mubr.msk.bf16.mxu0 %vm223_vm1, %v21993_v61  ;;  %v3948_v61 = vsel %vm320_vm0, %v21737_v21, 0  ;;  %v67_v21 = vld [vmem:[%s26319_s0 + $0x2af] sm:$0xff] }
  0xc1   :  { %v22321_v1 = vpack.c.bf16 %v67_v21, %v66_v55  ;;  %v83_v55 = vld [vmem:[%s26319_s0 + $0x3af] sm:$0xff]  ;;  %v84_v21 = vld [vmem:[%s26319_s0 + $0x3c7] sm:$0xff] }
  0xc6   :  { %18131 = vmatmul.mubr.msk.bf16.gmra.mrb[32].mxu1 %vm223_vm1, %v109_v44 }
  0xc7   :  { %18429 = vmatmul.mubr.msk.bf16.vlgmr.msra.gmra.mrb[0].mxu0 %vm223_vm1, %v22037_v12  ;;  %18134 = vmatprep.mubr.msk.bf16.mxu1 %vm223_vm1, %v22291_v46  ;;  %v68_v12 = vld [vmem:[%s26319_s0 + $0x2c7] sm:$0xff] }
  0xc8   :  { %18493 = vmatpush3.bf16.msra.mxu0 %v3948_v61  ;;  %18432 = vmatprep.mubr.msk.bf16.mxu0 %vm223_vm1, %v22041_v17  ;;  %v22323_v5 = vpack.c.bf16 %v69_v56, %v68_v12  ;;  %v70_v17 = vld [vmem:[%s26319_s0 + $0x2e7] sm:$0xff] }
  0xc9   :  { %21395 = vmatprep.subr.msk.bf16.mxu0 %vm320_vm0, %v22301_v47  ;;  %v22345_v20 = vpack.c.bf16 %v71_v10, %v70_v17  ;;  %v87_v17 = vld [vmem:[%s26319_s0 + $0x3ef] sm:$0xff]  ;;  %v88_v10 = vld [vmem:[%s26319_s0 + $0x407] sm:$0xff] }
  0xce   :  { %18135 = vmatmul.mubr.msk.bf16.gmra.mrb[36].mxu1 %vm223_vm1, %v22321_v1 }
  0xcf   :  { %18433 = vmatmul.mubr.msk.bf16.gmra.mrb[4].mxu0 %vm223_vm1, %v22077_v32  ;;  %18138 = vmatprep.mubr.msk.bf16.mxu1 %vm223_vm1, %v22323_v5  ;;  %v73_v32 = vld [vmem:[%s26319_s0 + $0x30f] sm:$0xff] }
  0xd0   :  { %18436 = vmatprep.mubr.msk.bf16.mxu0 %vm223_vm1, %v22081_v35  ;;  %v22347_v22 = vpack.c.bf16 %v73_v32, %v72_v11  ;;  %v74_v35 = vld [vmem:[%s26319_s0 + $0x327] sm:$0xff]  ;;  %v16180_v11 = vld [vmem:[%s26319_s0 + $0x20f] sm:$0xff] }
  0xd1   :  { %v22369_v26 = vpack.c.bf16 %v75_v24, %v74_v35 }
  0xd6   :  { %18139 = vmatmul.mubr.msk.bf16.gmra.mrb[40].mxu1 %vm223_vm1, %v22345_v20 }
  0xd7   :  { %18437 = vmatmul.mubr.msk.bf16.gmra.mrb[8].mxu0 %vm223_vm1, %v22117_v49  ;;  %18142 = vmatprep.mubr.msk.bf16.mxu1 %vm223_vm1, %v22347_v22  ;;  %v77_v49 = vld [vmem:[%s26319_s0 + $0x34f] sm:$0xff] }
  0xd8   :  { %18440 = vmatprep.mubr.msk.bf16.mxu0 %vm223_vm1, %v22121_v51  ;;  %v22371_v40 = vpack.c.bf16 %v77_v49, %v76_v25  ;;  %v78_v51 = vld [vmem:[%s26319_s0 + $0x367] sm:$0xff]  ;;  %v91_v49 = vld [vmem:[%s26319_s0 + $0x42f] sm:$0xff] }
  0xd9   :  { %v117_v44 = vpack.c.bf16 %v79_v42, %v78_v51  ;;  %v90_v25 = vld [vmem:[%s26319_s0 + $0x427] sm:$0xff] }
  0xda   :  { %v16181_v51 = vld [vmem:[%s26319_s0 + $0x227] sm:$0xff] }
  0xdb   :  { %v1001_v42 = vld [vmem:[%s26319_s0 + $0x9] sm:$0xff] }
  0xde   :  { %18143 = vmatmul.mubr.msk.bf16.gmra.mrb[44].mxu1 %vm223_vm1, %v22369_v26 }
  0xdf   :  { %18441 = vmatmul.mubr.msk.bf16.gmra.mrb[12].mxu0 %vm223_vm1, %v22157_v45  ;;  %18146 = vmatprep.mubr.msk.bf16.mxu1 %vm223_vm1, %v22371_v40  ;;  %v81_v45 = vld [vmem:[%s26319_s0 + $0x38f] sm:$0xff] }
  0xe0   :  { %18444 = vmatprep.mubr.msk.bf16.mxu0 %vm223_vm1, %v22161_v8  ;;  %v118_v61 = vpack.c.bf16 %v81_v45, %v80_v43  ;;  %v82_v8 = vld [vmem:[%s26319_s0 + $0x3a7] sm:$0xff]  ;;  %v1002_v43 = vld [vmem:[%s26319_s0 + $0x11] sm:$0xff]  ;;  %v123_v45 = vpack.c.bf16 %v91_v49, %v90_v25 }
  0xe1   :  { %v119_v12 = vpack.c.bf16 %v83_v55, %v82_v8  ;;  %v1065_v55 = vpack.c.bf16 %v1002_v43, %v1001_v42  ;;  %v16271_v25 = vld [vmem:[%s26319_s0 + $0x1b0] sm:$0xff]  ;;  %v16272_v49 = vld [vmem:[%s26319_s0 + $0x1c8] sm:$0xff] }
  0xe2   :  { %v16275_v42 = vld [vmem:[%s26319_s0 + $0x1f0] sm:$0xff]  ;;  %v16276_v43 = vld [vmem:[%s26319_s0 + $0x208] sm:$0xff] }
  0xe6   :  { %18147 = vmatmul.mubr.msk.bf16.gmra.mrb[48].mxu1 %vm223_vm1, %v117_v44 }
  0xe7   :  { %18445 = vmatmul.mubr.msk.bf16.gmra.mrb[16].mxu0 %vm223_vm1, %v22197_v28  ;;  %18150 = vmatprep.mubr.msk.bf16.mxu1 %vm223_vm1, %v118_v61  ;;  %v85_v28 = vld [vmem:[%s26319_s0 + $0x3cf] sm:$0xff] }
  0xe8   :  { %18448 = vmatprep.mubr.msk.bf16.mxu0 %vm223_vm1, %v22201_v37  ;;  %v120_v56 = vpack.c.bf16 %v85_v28, %v84_v21  ;;  %v86_v37 = vld [vmem:[%s26319_s0 + $0x3e7] sm:$0xff]  ;;  %v1747_v21 = vsel %vm320_vm0, %v22011_v6, 0 }
  0xe9   :  { %v121_v32 = vpack.c.bf16 %v87_v17, %v86_v37  ;;  %v16252_v6 = vld [vmem:[%s26319_s0 + $0x88] sm:$0xff]  ;;  %v16263_v37 = vld [vmem:[%s26319_s0 + $0x130] sm:$0xff] }
  0xea   :  { %v16260_v28 = vld [vmem:[%s26319_s0 + $0x108] sm:$0xff] }
  0xeb   :  { %v16264_v17 = vld [vmem:[%s26319_s0 + $0x148] sm:$0xff] }
  0xee   :  { %18151 = vmatmul.mubr.msk.bf16.gmra.mrb[52].mxu1 %vm223_vm1, %v119_v12 }
  0xef   :  { %18449 = vmatmul.mubr.msk.bf16.gmra.mrb[20].mxu0 %vm223_vm1, %v22237_v57  ;;  %18154 = vmatprep.mubr.msk.bf16.mxu1 %vm223_vm1, %v120_v56  ;;  %v89_v57 = vld [vmem:[%s26319_s0 + $0x40f] sm:$0xff] }
  0xf0   :  { %18452 = vmatprep.mubr.msk.bf16.mxu0 %vm223_vm1, %v22241_v59  ;;  %v16179_v59 = vld [vmem:[%s26319_s0 + $0x207] sm:$0xff]  ;;  %v122_v35 = vpack.c.bf16 %v89_v57, %v88_v10 }
  0xf1   :  { %v22435_v24 = vpack.c.bf16 %v16180_v11, %v16179_v59  ;;  %v16266_v57 = vld [vmem:[%s26319_s0 + $0x168] sm:$0xff]  ;;  %v16267_v59 = vld [vmem:[%s26319_s0 + $0x170] sm:$0xff] }
  0xf2   :  { %v16268_v11 = vld [vmem:[%s26319_s0 + $0x188] sm:$0xff] }
  0xf6   :  { %18155 = vmatmul.mubr.msk.bf16.gmra.mrb[56].mxu1 %vm223_vm1, %v121_v32 }
  0xf7   :  { %18453 = vmatmul.mubr.msk.bf16.gmra.mrb[24].mxu0 %vm223_vm1, %v22271_v23  ;;  %18158 = vmatprep.mubr.msk.bf16.mxu1 %vm223_vm1, %v122_v35  ;;  %v16182_v23 = vld [vmem:[%s26319_s0 + $0x22f] sm:$0xff] }
  0xf8   :  { %18456 = vmatprep.mubr.msk.bf16.mxu0 %vm223_vm1, %v22435_v24  ;;  %v3282_v8 = vpack.c.bf16 %v16182_v23, %v16181_v51  ;;  %v16274_v23 = vld [vmem:[%s26319_s0 + $0x1e8] sm:$0xff] }
  0xfe   :  { %18159 = vmatmul.mubr.msk.bf16.gmra.mrb[60].mxu1 %vm223_vm1, %v123_v45 }
  0xff   :  { %18457 = vmatmul.mubr.msk.bf16.gmra.mrb[28].mxu0 %vm223_vm1, %v3282_v8  ;;  %18164 = vmatprep.mubr.msk.bf16.mxu1 %vm223_vm1, %v1065_v55  ;;  %v16278_v8 = vld [vmem:[%s26319_s0 + $0x228] sm:$0xff]  ;;  %v16279_v55 = vld [vmem:[%s26319_s0 + $0x230] sm:$0xff] }
 0x100   :  { %18460 = vmatprep.mubr.msk.bf16.mxu0 %vm223_vm1, %v22291_v46  ;;  %v21434_v46 = vld [vmem:[%s26320_s1 + $0x8] sm:$0x3] }
 0x106   :  { %18165 = vmatmul.mubr.msk.bf16.vlgmr.msra.gmra.mrb[0].mxu1 %vm223_vm1, %v21682_v2  ;;  %v16211_v2 = vld [vmem:[%s26319_s0 + $0x447] sm:$0xff] }
 0x107   :  { %18461 = vmatmul.mubr.msk.bf16.gmra.mrb[32].mxu0 %vm223_vm1, %v22321_v1  ;;  %18229 = vmatpush3.bf16.msra.mxu1 %v1747_v21  ;;  %v15860_v21 = vld [vmem:[%s26319_s0 + $0x27] sm:$0xff] }
 0x108   :  { %18168 = vmatprep.mubr.msk.bf16.mxu1 %vm223_vm1, %v21715_v14  ;;  %18464 = vmatprep.mubr.msk.bf16.mxu0 %vm223_vm1, %v22323_v5  ;;  %v16212_v14 = vld [vmem:[%s26319_s0 + $0x44f] sm:$0xff]  ;;  %v4498_v5 = vsel %vm320_vm0, %v22301_v47, 0 }
 0x109   :  { %21391 = vmatprep.subr.msk.bf16.mxu1 %vm320_vm0, %v21434_v46  ;;  %v16257_v47 = vld [vmem:[%s26319_s0 + $0xd0] sm:$0xff] }
 0x10a   :  { %v16281_v46 = vld [vmem:[%s26319_s0 + $0x290] sm:$0xff] }
 0x10e   :  { %18169 = vmatmul.mubr.msk.bf16.gmra.mrb[4].mxu1 %vm223_vm1, %v21717_v16  ;;  %v22520_v16 = vpack.c.bf16 %v16212_v14, %v16211_v2  ;;  %v3832_v2 = vpack.c.bf16 %v16279_v55, %v16278_v8  ;;  %v15881_v8 = vld [vmem:[%s26319_s0 + $0x16f] sm:$0xff] }
 0x10f   :  { %18465 = vmatmul.mubr.msk.bf16.gmra.mrb[36].mxu0 %vm223_vm1, %v22345_v20  ;;  %18172 = vmatprep.mubr.msk.bf16.mxu1 %vm223_vm1, %v21756_v27  ;;  %v16213_v27 = vld [vmem:[%s26319_s0 + $0x467] sm:$0xff] }
 0x110   :  { %18468 = vmatprep.mubr.msk.bf16.mxu0 %vm223_vm1, %v22347_v22  ;;  %v16254_v22 = vld [vmem:[%s26319_s0 + $0xa8] sm:$0xff] }
 0x111   :  { %v16300_v55 = vld [vmem:[%s26319_s0 + $0x3c8] sm:$0xff] }
 0x116   :  { %18173 = vmatmul.mubr.msk.bf16.gmra.mrb[8].mxu1 %vm223_vm1, %v21758_v29  ;;  %v16214_v29 = vld [vmem:[%s26319_s0 + $0x46f] sm:$0xff] }
 0x117   :  { %18469 = vmatmul.mubr.msk.bf16.gmra.mrb[40].mxu0 %vm223_vm1, %v22369_v26  ;;  %18176 = vmatprep.mubr.msk.bf16.mxu1 %vm223_vm1, %v21790_v39  ;;  %v1033_v39 = vld [vmem:[%s26319_s0 + $0x249] sm:$0xff] }
 0x118   :  { %18472 = vmatprep.mubr.msk.bf16.mxu0 %vm223_vm1, %v22371_v40  ;;  %v16255_v26 = vld [vmem:[%s26319_s0 + $0xb0] sm:$0xff] }
 0x119   :  { %v3820_v40 = vpack.c.bf16 %v16255_v26, %v16254_v22  ;;  %v15868_v22 = vld [vmem:[%s26319_s0 + $0xa7] sm:$0xff] }
 0x11a   :  { %v16288_v26 = vld [vmem:[%s26319_s0 + $0x308] sm:$0xff] }
 0x11e   :  { %18177 = vmatmul.mubr.msk.bf16.gmra.mrb[12].mxu1 %vm223_vm1, %v21792_v41  ;;  %v1034_v41 = vld [vmem:[%s26319_s0 + $0x251] sm:$0xff] }
 0x11f   :  { %18473 = vmatmul.mubr.msk.bf16.gmra.mrb[44].mxu0 %vm223_vm1, %v117_v44  ;;  %18180 = vmatprep.mubr.msk.bf16.mxu1 %vm223_vm1, %v21824_v52  ;;  %v16248_v52 = vld [vmem:[%s26319_s0 + $0x48] sm:$0xff] }
 0x120   :  { %18476 = vmatprep.mubr.msk.bf16.mxu0 %vm223_vm1, %v118_v61  ;;  %v16258_v44 = vld [vmem:[%s26319_s0 + $0xe8] sm:$0xff]  ;;  %v16259_v61 = vld [vmem:[%s26319_s0 + $0xf0] sm:$0xff] }
 0x126   :  { %18181 = vmatmul.mubr.msk.bf16.gmra.mrb[16].mxu1 %vm223_vm1, %v21826_v54  ;;  %v16249_v54 = vld [vmem:[%s26319_s0 + $0x50] sm:$0xff] }
 0x127   :  { %18477 = vmatmul.mubr.msk.bf16.gmra.mrb[48].mxu0 %vm223_vm1, %v119_v12  ;;  %18184 = vmatprep.mubr.msk.bf16.mxu1 %vm223_vm1, %v21858_v0  ;;  %v3298_v0 = vpack.c.bf16 %v16214_v29, %v16213_v27  ;;  %v3822_v12 = vpack.c.bf16 %v16259_v61, %v16258_v44  ;;  %v15862_v29 = vld [vmem:[%s26319_s0 + $0x47] sm:$0xff] }
 0x128   :  { %18480 = vmatprep.mubr.msk.bf16.mxu0 %vm223_vm1, %v120_v56  ;;  %v16262_v56 = vld [vmem:[%s26319_s0 + $0x128] sm:$0xff] }
 0x129   :  { %v3824_v10 = vpack.c.bf16 %v16263_v37, %v16262_v56  ;;  %v15870_v61 = vld [vmem:[%s26319_s0 + $0xc7] sm:$0xff]  ;;  %v15873_v56 = vld [vmem:[%s26319_s0 + $0xef] sm:$0xff] }
 0x12a   :  { %v16292_v37 = vld [vmem:[%s26319_s0 + $0x348] sm:$0xff] }
 0x12e   :  { %18185 = vmatmul.mubr.msk.bf16.gmra.mrb[20].mxu1 %vm223_vm1, %v21860_v3  ;;  %v1081_v3 = vpack.c.bf16 %v1034_v41, %v1033_v39  ;;  %v15863_v39 = vld [vmem:[%s26319_s0 + $0x4f] sm:$0xff] }
 0x12f   :  { %18481 = vmatmul.mubr.msk.bf16.gmra.mrb[52].mxu0 %vm223_vm1, %v121_v32  ;;  %18188 = vmatprep.mubr.msk.bf16.mxu1 %vm223_vm1, %v21892_v15  ;;  %v3817_v15 = vpack.c.bf16 %v16249_v54, %v16248_v52  ;;  %v3826_v32 = vpack.c.bf16 %v16267_v59, %v16266_v57  ;;  %v16282_v41 = vld [vmem:[%s26319_s0 + $0x2a8] sm:$0xff] }
 0x130   :  { %18484 = vmatprep.mubr.msk.bf16.mxu0 %vm223_vm1, %v122_v35  ;;  %v16270_v35 = vld [vmem:[%s26319_s0 + $0x1a8] sm:$0xff] }
 0x131   :  { %v3828_v51 = vpack.c.bf16 %v16271_v25, %v16270_v35  ;;  %v15864_v52 = vld [vmem:[%s26319_s0 + $0x67] sm:$0xff]  ;;  %v15865_v54 = vld [vmem:[%s26319_s0 + $0x6f] sm:$0xff] }
 0x132   :  { %v15874_v59 = vld [vmem:[%s26319_s0 + $0x107] sm:$0xff]  ;;  %v15877_v35 = vld [vmem:[%s26319_s0 + $0x12f] sm:$0xff] }
 0x133   :  { %v16296_v25 = vld [vmem:[%s26319_s0 + $0x388] sm:$0xff] }
 0x136   :  { %18189 = vmatmul.mubr.msk.bf16.gmra.mrb[24].mxu1 %vm223_vm1, %v21894_v18  ;;  %v16250_v18 = vld [vmem:[%s26319_s0 + $0x68] sm:$0xff] }
 0x137   :  { %18485 = vmatmul.mubr.msk.bf16.gmra.mrb[56].mxu0 %vm223_vm1, %v123_v45  ;;  %18192 = vmatprep.mubr.msk.bf16.mxu1 %vm223_vm1, %v21926_v31  ;;  %v16251_v31 = vld [vmem:[%s26319_s0 + $0x70] sm:$0xff]  ;;  %v3830_v45 = vpack.c.bf16 %v16275_v42, %v16274_v23  ;;  %v15878_v42 = vld [vmem:[%s26319_s0 + $0x147] sm:$0xff] }
 0x138   :  { %18488 = vmatprep.mubr.msk.bf16.mxu0 %vm223_vm1, %v22520_v16  ;;  %v3818_v1 = vpack.c.bf16 %v16251_v31, %v16250_v18  ;;  %v1618_v31 = vpack.c.bf16 %v15865_v54, %v15864_v52  ;;  %v15885_v52 = vld [vmem:[%s26319_s0 + $0x1af] sm:$0xff] }
 0x139   :  { %v16304_v54 = vld [vmem:[%s26319_s0 + $0x408] sm:$0xff] }
 0x13e   :  { %18193 = vmatmul.mubr.msk.bf16.gmra.mrb[28].mxu1 %vm223_vm1, %v21928_v33  ;;  %v16253_v33 = vld [vmem:[%s26319_s0 + $0x90] sm:$0xff] }
 0x13f   :  { %18489 = vmatmul.mubr.msk.bf16.gmra.mrb[60].mxu0 %vm223_vm1, %v3298_v0  ;;  %18196 = vmatprep.mubr.msk.bf16.mxu1 %vm223_vm1, %v1081_v3  ;;  %v3819_v20 = vpack.c.bf16 %v16253_v33, %v16252_v6  ;;  %v16284_v0 = vld [vmem:[%s26319_s0 + $0x2c8] sm:$0xff]  ;;  %v16285_v3 = vld [vmem:[%s26319_s0 + $0x2d0] sm:$0xff] }
 0x140   :  { %18494 = vmatprep.mubr.msk.bf16.mxu0 %vm223_vm1, %v3817_v15  ;;  %v1617_v15 = vpack.c.bf16 %v15863_v39, %v15862_v29  ;;  %v22732_v6 = vpack.c.bf16 %v16285_v3, %v16284_v0  ;;  %v15866_v33 = vld [vmem:[%s26319_s0 + $0x87] sm:$0xff]  ;;  %v15883_v29 = vld [vmem:[%s26319_s0 + $0x18f] sm:$0xff] }
 0x141   :  { %v16302_v39 = vld [vmem:[%s26319_s0 + $0x3e8] sm:$0xff]  ;;  %v16305_v0 = vld [vmem:[%s26319_s0 + $0x410] sm:$0xff] }
 0x146   :  { %18197 = vmatmul.mubr.msk.bf16.gmra.mrb[32].mxu1 %vm223_vm1, %v21960_v48  ;;  %v16256_v48 = vld [vmem:[%s26319_s0 + $0xc8] sm:$0xff] }
 0x147   :  { %18495 = vmatmul.mubr.msk.bf16.vlgmr.msra.gmra.mrb[0].mxu0 %vm223_vm1, %v3818_v1  ;;  %18200 = vmatprep.mubr.msk.bf16.mxu1 %vm223_vm1, %v21991_v60  ;;  %v3821_v60 = vpack.c.bf16 %v16257_v47, %v16256_v48  ;;  %v15867_v1 = vld [vmem:[%s26319_s0 + $0x8f] sm:$0xff] }
 0x148   :  { %18559 = vmatpush3.bf16.msra.mxu0 %v4498_v5  ;;  %18498 = vmatprep.mubr.msk.bf16.mxu0 %vm223_vm1, %v3819_v20  ;;  %v16286_v5 = vld [vmem:[%s26319_s0 + $0x2e8] sm:$0xff]  ;;  %v16287_v20 = vld [vmem:[%s26319_s0 + $0x2f0] sm:$0xff]  ;;  %v1619_v47 = vpack.c.bf16 %v15867_v1, %v15866_v33  ;;  %v22903_v33 = vpack.c.bf16 %v16305_v0, %v16304_v54 }
 0x149   :  { %v16289_v48 = vld [vmem:[%s26319_s0 + $0x310] sm:$0xff]  ;;  %v15886_v1 = vld [vmem:[%s26319_s0 + $0x1c7] sm:$0xff] }
 0x14a   :  { %v22767_v44 = vpack.c.bf16 %v16289_v48, %v16288_v26  ;;  %v15889_v26 = vld [vmem:[%s26319_s0 + $0x1ef] sm:$0xff] }
 0x14b   :  { %v16308_v48 = vld [vmem:[%s26319_s0 + $0x448] sm:$0xff] }
 0x14c   :  { %v15903_v54 = vld [vmem:[%s26319_s0 + $0x30f] sm:$0xff] }
 0x14d   :  { %v16355_v0 = vld [vmem:[%s26319_s0 + $0xe9] sm:$0xff] }
 0x14e   :  { %18201 = vmatmul.mubr.msk.bf16.gmra.mrb[36].mxu1 %vm223_vm1, %v21997_v63  ;;  %v16261_v63 = vld [vmem:[%s26319_s0 + $0x110] sm:$0xff] }
 0x14f   :  { %18499 = vmatmul.mubr.msk.bf16.gmra.mrb[4].mxu0 %vm223_vm1, %v3820_v40  ;;  %18204 = vmatprep.mubr.msk.bf16.mxu1 %vm223_vm1, %v22039_v13  ;;  %v3823_v13 = vpack.c.bf16 %v16261_v63, %v16260_v28  ;;  %v22765_v40 = vpack.c.bf16 %v16287_v20, %v16286_v5  ;;  %v15871_v28 = vld [vmem:[%s26319_s0 + $0xcf] sm:$0xff] }
 0x150   :  { %18502 = vmatprep.mubr.msk.bf16.mxu0 %vm223_vm1, %v3821_v60  ;;  %v16290_v63 = vld [vmem:[%s26319_s0 + $0x328] sm:$0xff] }
 0x151   :  { %v15887_v5 = vld [vmem:[%s26319_s0 + $0x1cf] sm:$0xff] }
 0x152   :  { %v16306_v20 = vld [vmem:[%s26319_s0 + $0x428] sm:$0xff] }
 0x156   :  { %18205 = vmatmul.mubr.msk.bf16.gmra.mrb[40].mxu1 %vm223_vm1, %v22043_v19  ;;  %v16265_v19 = vld [vmem:[%s26319_s0 + $0x150] sm:$0xff] }
 0x157   :  { %18503 = vmatmul.mubr.msk.bf16.gmra.mrb[8].mxu0 %vm223_vm1, %v3822_v12  ;;  %18208 = vmatprep.mubr.msk.bf16.mxu1 %vm223_vm1, %v22079_v34  ;;  %v3825_v34 = vpack.c.bf16 %v16265_v19, %v16264_v17  ;;  %v16291_v12 = vld [vmem:[%s26319_s0 + $0x330] sm:$0xff]  ;;  %v1621_v19 = vpack.c.bf16 %v15871_v28, %v15870_v61 }
 0x158   :  { %18506 = vmatprep.mubr.msk.bf16.mxu0 %vm223_vm1, %v3823_v13  ;;  %v15872_v13 = vld [vmem:[%s26319_s0 + $0xe7] sm:$0xff]  ;;  %v16293_v17 = vld [vmem:[%s26319_s0 + $0x350] sm:$0xff] }
 0x159   :  { %v22801_v57 = vpack.c.bf16 %v16293_v17, %v16292_v37  ;;  %v15893_v37 = vld [vmem:[%s26319_s0 + $0x26f] sm:$0xff] }
 0x15a   :  { %v16345_v17 = vld [vmem:[%s26319_s0 + $0x49] sm:$0xff] }
 0x15e   :  { %18209 = vmatmul.mubr.msk.bf16.gmra.mrb[44].mxu1 %vm223_vm1, %v22083_v36  ;;  %v16269_v36 = vld [vmem:[%s26319_s0 + $0x190] sm:$0xff] }
 0x15f   :  { %18507 = vmatmul.mubr.msk.bf16.gmra.mrb[12].mxu0 %vm223_vm1, %v3824_v10  ;;  %18212 = vmatprep.mubr.msk.bf16.mxu1 %vm223_vm1, %v22119_v50  ;;  %v3827_v50 = vpack.c.bf16 %v16269_v36, %v16268_v11  ;;  %v22799_v10 = vpack.c.bf16 %v16291_v12, %v16290_v63  ;;  %v15875_v11 = vld [vmem:[%s26319_s0 + $0x10f] sm:$0xff] }
 0x160   :  { %18510 = vmatprep.mubr.msk.bf16.mxu0 %vm223_vm1, %v3825_v34  ;;  %v1622_v34 = vpack.c.bf16 %v15873_v56, %v15872_v13  ;;  %v16294_v36 = vld [vmem:[%s26319_s0 + $0x368] sm:$0xff]  ;;  %v16311_v13 = vld [vmem:[%s26319_s0 + $0x470] sm:$0xff] }
 0x161   :  { %v16310_v12 = vld [vmem:[%s26319_s0 + $0x468] sm:$0xff] }
 0x162   :  { %v15892_v56 = vld [vmem:[%s26319_s0 + $0x267] sm:$0xff] }
 0x166   :  { %18213 = vmatmul.mubr.msk.bf16.gmra.mrb[48].mxu1 %vm223_vm1, %v22123_v53  ;;  %v16273_v53 = vld [vmem:[%s26319_s0 + $0x1d0] sm:$0xff] }
 0x167   :  { %18511 = vmatmul.mubr.msk.bf16.gmra.mrb[16].mxu0 %vm223_vm1, %v3826_v32  ;;  %18216 = vmatprep.mubr.msk.bf16.mxu1 %vm223_vm1, %v22159_v7  ;;  %v3829_v7 = vpack.c.bf16 %v16273_v53, %v16272_v49  ;;  %v16295_v32 = vld [vmem:[%s26319_s0 + $0x370] sm:$0xff]  ;;  %v1623_v53 = vpack.c.bf16 %v15875_v11, %v15874_v59  ;;  %v1632_v59 = vpack.c.bf16 %v15893_v37, %v15892_v56 }
 0x168   :  { %18514 = vmatprep.mubr.msk.bf16.mxu0 %vm223_vm1, %v3827_v50  ;;  %v15876_v50 = vld [vmem:[%s26319_s0 + $0x127] sm:$0xff]  ;;  %v16297_v49 = vld [vmem:[%s26319_s0 + $0x390] sm:$0xff] }
 0x169   :  { %v22835_v23 = vpack.c.bf16 %v16297_v49, %v16296_v25  ;;  %v15897_v25 = vld [vmem:[%s26319_s0 + $0x2af] sm:$0xff] }
 0x16a   :  { %v16349_v49 = vld [vmem:[%s26319_s0 + $0x89] sm:$0xff] }
 0x16b   :  { %v15909_v56 = vld [vmem:[%s26319_s0 + $0x36f] sm:$0xff] }
 0x16c   :  { %v16361_v37 = vld [vmem:[%s26319_s0 + $0x149] sm:$0xff] }
 0x16e   :  { %18217 = vmatmul.mubr.msk.bf16.gmra.mrb[52].mxu1 %vm223_vm1, %v22163_v9  ;;  %v16277_v9 = vld [vmem:[%s26319_s0 + $0x210] sm:$0xff] }
 0x16f   :  { %18515 = vmatmul.mubr.msk.bf16.gmra.mrb[20].mxu0 %vm223_vm1, %v3828_v51  ;;  %18220 = vmatprep.mubr.msk.bf16.mxu1 %vm223_vm1, %v22199_v30  ;;  %v3831_v30 = vpack.c.bf16 %v16277_v9, %v16276_v43  ;;  %v22833_v51 = vpack.c.bf16 %v16295_v32, %v16294_v36  ;;  %v15879_v43 = vld [vmem:[%s26319_s0 + $0x14f] sm:$0xff]  ;;  %v15894_v36 = vld [vmem:[%s26319_s0 + $0x287] sm:$0xff] }
 0x170   :  { %18518 = vmatprep.mubr.msk.bf16.mxu0 %vm223_vm1, %v3829_v7  ;;  %v1624_v7 = vpack.c.bf16 %v15877_v35, %v15876_v50  ;;  %v16298_v9 = vld [vmem:[%s26319_s0 + $0x3a8] sm:$0xff] }
 0x171   :  { %v15895_v32 = vld [vmem:[%s26319_s0 + $0x28f] sm:$0xff]  ;;  %v15896_v35 = vld [vmem:[%s26319_s0 + $0x2a7] sm:$0xff] }
 0x172   :  { %v16347_v50 = vld [vmem:[%s26319_s0 + $0x69] sm:$0xff] }
 0x176   :  { %18221 = vmatmul.mubr.msk.bf16.gmra.mrb[56].mxu1 %vm223_vm1, %v22203_v38  ;;  %v15861_v38 = vld [vmem:[%s26319_s0 + $0x2f] sm:$0xff] }
 0x177   :  { %18519 = vmatmul.mubr.msk.bf16.gmra.mrb[24].mxu0 %vm223_vm1, %v3830_v45  ;;  %18224 = vmatprep.mubr.msk.bf16.mxu1 %vm223_vm1, %v22239_v58  ;;  %v16280_v58 = vld [vmem:[%s26319_s0 + $0x288] sm:$0xff]  ;;  %v1616_v14 = vpack.c.bf16 %v15861_v38, %v15860_v21  ;;  %v16299_v45 = vld [vmem:[%s26319_s0 + $0x3b0] sm:$0xff]  ;;  %v1625_v38 = vpack.c.bf16 %v15879_v43, %v15878_v42  ;;  %v1634_v43 = vpack.c.bf16 %v15897_v25, %v15896_v35 }
 0x178   :  { %18522 = vmatprep.mubr.msk.bf16.mxu0 %vm223_vm1, %v3831_v30  ;;  %v22698_v27 = vpack.c.bf16 %v16281_v46, %v16280_v58  ;;  %v15880_v30 = vld [vmem:[%s26319_s0 + $0x167] sm:$0xff]  ;;  %v16301_v21 = vld [vmem:[%s26319_s0 + $0x3d0] sm:$0xff]  ;;  %v22867_v58 = vpack.c.bf16 %v16299_v45, %v16298_v9 }
 0x179   :  { %v1626_v46 = vpack.c.bf16 %v15881_v8, %v15880_v30  ;;  %v15898_v45 = vld [vmem:[%s26319_s0 + $0x2c7] sm:$0xff]  ;;  %v15899_v30 = vld [vmem:[%s26319_s0 + $0x2cf] sm:$0xff] }
 0x17a   :  { %v16351_v8 = vld [vmem:[%s26319_s0 + $0xa9] sm:$0xff] }
 0x17b   :  { %v15912_v35 = vld [vmem:[%s26319_s0 + $0x3a7] sm:$0xff]  ;;  %v15913_v25 = vld [vmem:[%s26319_s0 + $0x3af] sm:$0xff] }
 0x17e   :  { %18225 = vmatmul.mubr.msk.bf16.gmra.mrb[60].mxu1 %vm223_vm1, %v22243_v62  ;;  %v16283_v62 = vld [vmem:[%s26319_s0 + $0x2b0] sm:$0xff] }
 0x17f   :  { %18523 = vmatmul.mubr.msk.bf16.gmra.mrb[28].mxu0 %vm223_vm1, %v3832_v2  ;;  %18230 = vmatprep.mubr.msk.bf16.mxu1 %vm223_vm1, %v1616_v14  ;;  %v22730_v18 = vpack.c.bf16 %v16283_v62, %v16282_v41  ;;  %v22869_v2 = vpack.c.bf16 %v16301_v21, %v16300_v55  ;;  %v15882_v14 = vld [vmem:[%s26319_s0 + $0x187] sm:$0xff]  ;;  %v16303_v41 = vld [vmem:[%s26319_s0 + $0x3f0] sm:$0xff] }
 0x180   :  { %18526 = vmatprep.mubr.msk.bf16.mxu0 %vm223_vm1, %v22698_v27  ;;  %v15884_v62 = vld [vmem:[%s26319_s0 + $0x1a7] sm:$0xff]  ;;  %v1627_v3 = vpack.c.bf16 %v15883_v29, %v15882_v14  ;;  %v16352_v55 = vld [vmem:[%s26319_s0 + $0xb1] sm:$0xff]  ;;  %v1635_v29 = vpack.c.bf16 %v15899_v30, %v15898_v45 }
 0x181   :  { %v15900_v21 = vld [vmem:[%s26319_s0 + $0x2e7] sm:$0xff]  ;;  %v16354_v14 = vld [vmem:[%s26319_s0 + $0xd1] sm:$0xff] }
 0x182   :  { %v15914_v45 = vld [vmem:[%s26319_s0 + $0x3c7] sm:$0xff]  ;;  %v15915_v30 = vld [vmem:[%s26319_s0 + $0x3cf] sm:$0xff] }
 0x186   :  { %18231 = vmatmul.mubr.msk.bf16.vlgmr.msra.gmra.mrb[0].mxu1 %vm223_vm1, %v1617_v15  ;;  %v22901_v15 = vpack.c.bf16 %v16303_v41, %v16302_v39  ;;  %v4370_v39 = vpack.c.bf16 %v16352_v55, %v16351_v8  ;;  %v16367_v8 = vld [vmem:[%s26319_s0 + $0x1a9] sm:$0xff]  ;;  %v16368_v55 = vld [vmem:[%s26319_s0 + $0x1b1] sm:$0xff] }
 0x187   :  { %18527 = vmatmul.mubr.msk.bf16.gmra.mrb[32].mxu0 %vm223_vm1, %v22730_v18  ;;  %19849 = vmatpush3.bf16.msra.mxu1 %v21514_v4  ;;  %v15869_v4 = vld [vmem:[%s26319_s0 + $0xaf] sm:$0xff] }
 0x188   :  { %18234 = vmatprep.mubr.msk.bf16.mxu1 %vm223_vm1, %v1618_v31  ;;  %18530 = vmatprep.mubr.msk.bf16.mxu0 %vm223_vm1, %v22732_v6  ;;  %v1620_v60 = vpack.c.bf16 %v15869_v4, %v15868_v22  ;;  %v1628_v31 = vpack.c.bf16 %v15885_v52, %v15884_v62  ;;  %v16307_v22 = vld [vmem:[%s26319_s0 + $0x430] sm:$0xff]  ;;  %v15888_v4 = vld [vmem:[%s26319_s0 + $0x1e7] sm:$0xff] }
 0x189   :  { %v22935_v61 = vpack.c.bf16 %v16307_v22, %v16306_v20  ;;  %v1630_v28 = vpack.c.bf16 %v15889_v26, %v15888_v4  ;;  %v15902_v52 = vld [vmem:[%s26319_s0 + $0x307] sm:$0xff]  ;;  %v16358_v20 = vld [vmem:[%s26319_s0 + $0x111] sm:$0xff] }
 0x18a   :  { %v1637_v22 = vpack.c.bf16 %v15903_v54, %v15902_v52  ;;  %v21398_v52 = vld [vmem:[%s26322_s3 + $0x10] sm:$0xff]   ;;  %v15918_v54 = vld [vmem:[%s26319_s0 + $0x407] sm:$0xff] }
 0x18b   :  { %18624 = vmatprep.subr.bf16.mxu1 %v21398_v52 }
 0x18e   :  { %18235 = vmatmul.mubr.msk.bf16.gmra.mrb[4].mxu1 %vm223_vm1, %v1619_v47  ;;  %v16309_v47 = vld [vmem:[%s26319_s0 + $0x450] sm:$0xff] }
 0x18f   :  { %18531 = vmatmul.mubr.msk.bf16.gmra.mrb[36].mxu0 %vm223_vm1, %v22765_v40  ;;  %18238 = vmatprep.mubr.msk.bf16.mxu1 %vm223_vm1, %v1620_v60  ;;  %v1629_v60 = vpack.c.bf16 %v15887_v5, %v15886_v1  ;;  %v22937_v63 = vpack.c.bf16 %v16309_v47, %v16308_v48  ;;  %v15905_v1 = vld [vmem:[%s26319_s0 + $0x32f] sm:$0xff]  ;;  %v15906_v47 = vld [vmem:[%s26319_s0 + $0x347] sm:$0xff] }
 0x190   :  { %18534 = vmatprep.mubr.msk.bf16.mxu0 %vm223_vm1, %v22767_v44  ;;  %v16357_v5 = vld [vmem:[%s26319_s0 + $0x109] sm:$0xff] }
 0x191   :  { %v4373_v48 = vpack.c.bf16 %v16358_v20, %v16357_v5  ;;  %v15921_v5 = vld [vmem:[%s26319_s0 + $0x42f] sm:$0xff] }
 0x192   :  { %v16373_v20 = vld [vmem:[%s26319_s0 + $0x209] sm:$0xff] }
 0x196   :  { %18239 = vmatmul.mubr.msk.bf16.gmra.mrb[8].mxu1 %vm223_vm1, %v1621_v19  ;;  %v16346_v19 = vld [vmem:[%s26319_s0 + $0x51] sm:$0xff] }
 0x197   :  { %18535 = vmatmul.mubr.msk.bf16.gmra.mrb[40].mxu0 %vm223_vm1, %v22799_v10  ;;  %18242 = vmatprep.mubr.msk.bf16.mxu1 %vm223_vm1, %v1622_v34  ;;  %v3848_v34 = vpack.c.bf16 %v16311_v13, %v16310_v12  ;;  %v4367_v11 = vpack.c.bf16 %v16346_v19, %v16345_v17  ;;  %v16360_v12 = vld [vmem:[%s26319_s0 + $0x131] sm:$0xff]  ;;  %v15908_v13 = vld [vmem:[%s26319_s0 + $0x367] sm:$0xff] }
 0x198   :  { %18538 = vmatprep.mubr.msk.bf16.mxu0 %vm223_vm1, %v22801_v57  ;;  %v16362_v17 = vld [vmem:[%s26319_s0 + $0x151] sm:$0xff] }
 0x19e   :  { %18243 = vmatmul.mubr.msk.bf16.gmra.mrb[12].mxu1 %vm223_vm1, %v1623_v53  ;;  %v16350_v53 = vld [vmem:[%s26319_s0 + $0x91] sm:$0xff] }
 0x19f   :  { %18539 = vmatmul.mubr.msk.bf16.gmra.mrb[44].mxu0 %vm223_vm1, %v22833_v51  ;;  %18246 = vmatprep.mubr.msk.bf16.mxu1 %vm223_vm1, %v1624_v7  ;;  %v1633_v7 = vpack.c.bf16 %v15895_v32, %v15894_v36  ;;  %v4369_v9 = vpack.c.bf16 %v16350_v53, %v16349_v49  ;;  %v15910_v36 = vld [vmem:[%s26319_s0 + $0x387] sm:$0xff]  ;;  %v15911_v32 = vld [vmem:[%s26319_s0 + $0x38f] sm:$0xff] }
 0x1a0   :  { %18542 = vmatprep.mubr.msk.bf16.mxu0 %vm223_vm1, %v22835_v23  ;;  %v16365_v49 = vld [vmem:[%s26319_s0 + $0x189] sm:$0xff]  ;;  %v16366_v53 = vld [vmem:[%s26319_s0 + $0x191] sm:$0xff] }
 0x1a6   :  { %18247 = vmatmul.mubr.msk.bf16.gmra.mrb[16].mxu1 %vm223_vm1, %v1625_v38  ;;  %v15901_v38 = vld [vmem:[%s26319_s0 + $0x2ef] sm:$0xff] }
 0x1a7   :  { %18543 = vmatmul.mubr.msk.bf16.gmra.mrb[48].mxu0 %vm223_vm1, %v22867_v58  ;;  %18250 = vmatprep.mubr.msk.bf16.mxu1 %vm223_vm1, %v1626_v46  ;;  %v16353_v46 = vld [vmem:[%s26319_s0 + $0xc9] sm:$0xff]  ;;  %v1636_v41 = vpack.c.bf16 %v15901_v38, %v15900_v21 }
 0x1a8   :  { %18546 = vmatprep.mubr.msk.bf16.mxu0 %vm223_vm1, %v22869_v2  ;;  %v4371_v62 = vpack.c.bf16 %v16354_v14, %v16353_v46  ;;  %v15916_v21 = vld [vmem:[%s26319_s0 + $0x3e7] sm:$0xff]  ;;  %v15917_v38 = vld [vmem:[%s26319_s0 + $0x3ef] sm:$0xff] }
 0x1a9   :  { %v16369_v46 = vld [vmem:[%s26319_s0 + $0x1c9] sm:$0xff]  ;;  %v16370_v14 = vld [vmem:[%s26319_s0 + $0x1d1] sm:$0xff] }
 0x1ae   :  { %18251 = vmatmul.mubr.msk.bf16.gmra.mrb[20].mxu1 %vm223_vm1, %v1627_v3  ;;  %v16356_v3 = vld [vmem:[%s26319_s0 + $0xf1] sm:$0xff] }
 0x1af   :  { %18547 = vmatmul.mubr.msk.bf16.gmra.mrb[52].mxu0 %vm223_vm1, %v22901_v15  ;;  %18254 = vmatprep.mubr.msk.bf16.mxu1 %vm223_vm1, %v1628_v31  ;;  %v15904_v31 = vld [vmem:[%s26319_s0 + $0x327] sm:$0xff]  ;;  %v4372_v4 = vpack.c.bf16 %v16356_v3, %v16355_v0  ;;  %v15919_v0 = vld [vmem:[%s26319_s0 + $0x40f] sm:$0xff] }
 0x1b0   :  { %18550 = vmatprep.mubr.msk.bf16.mxu0 %vm223_vm1, %v22903_v33  ;;  %v1638_v26 = vpack.c.bf16 %v15905_v1, %v15904_v31  ;;  %v16371_v3 = vld [vmem:[%s26319_s0 + $0x1e9] sm:$0xff]  ;;  %v16372_v31 = vld [vmem:[%s26319_s0 + $0x1f1] sm:$0xff] }
 0x1b1   :  { %v15920_v1 = vld [vmem:[%s26319_s0 + $0x427] sm:$0xff] }
 0x1b6   :  { %18255 = vmatmul.mubr.msk.bf16.gmra.mrb[24].mxu1 %vm223_vm1, %v1629_v60  ;;  %v15907_v60 = vld [vmem:[%s26319_s0 + $0x34f] sm:$0xff] }
 0x1b7   :  { %18551 = vmatmul.mubr.msk.bf16.gmra.mrb[56].mxu0 %vm223_vm1, %v22935_v61  ;;  %18258 = vmatprep.mubr.msk.bf16.mxu1 %vm223_vm1, %v1630_v28  ;;  %v16359_v28 = vld [vmem:[%s26319_s0 + $0x129] sm:$0xff]  ;;  %v1639_v19 = vpack.c.bf16 %v15907_v60, %v15906_v47 }
 0x1b8   :  { %18554 = vmatprep.mubr.msk.bf16.mxu0 %vm223_vm1, %v22937_v63  ;;  %v16375_v60 = vld [vmem:[%s26319_s0 + $0x229] sm:$0xff] }
 0x1be   :  { %18259 = vmatmul.mubr.msk.bf16.gmra.mrb[28].mxu1 %vm223_vm1, %v22435_v24  ;;  %v16348_v24 = vld [vmem:[%s26319_s0 + $0x71] sm:$0xff] }
 0x1bf   :  { %18555 = vmatmul.mubr.msk.bf16.gmra.mrb[60].mxu0 %vm223_vm1, %v3848_v34  ;;  %18262 = vmatprep.mubr.msk.bf16.mxu1 %vm223_vm1, %v1632_v59  ;;  %v4368_v42 = vpack.c.bf16 %v16348_v24, %v16347_v50  ;;  %v4374_v34 = vpack.c.bf16 %v16360_v12, %v16359_v28  ;;  %v1640_v59 = vpack.c.bf16 %v15909_v56, %v15908_v13  ;;  %v16363_v50 = vld [vmem:[%s26319_s0 + $0x169] sm:$0xff]  ;;  %v16364_v24 = vld [vmem:[%s26319_s0 + $0x171] sm:$0xff] }
 0x1c0   :  { %18560 = vmatprep.mubr.msk.bf16.mxu0 %vm223_vm1, %v4367_v11  ;;  %v4375_v11 = vpack.c.bf16 %v16362_v17, %v16361_v37  ;;  %v16376_v28 = vld [vmem:[%s26319_s0 + $0x231] sm:$0xff]  ;;  %v15989_v12 = vld [vmem:[%s26319_s0 + $0x268] sm:$0xff] }
 0x1c1   :  { %v15990_v13 = vld [vmem:[%s26319_s0 + $0x270] sm:$0xff]  ;;  %v4382_v17 = vpack.c.bf16 %v16376_v28, %v16375_v60 }
 0x1c2   :  { %v16377_v56 = vld [vmem:[%s26319_s0 + $0x289] sm:$0xff]  ;;  %v16378_v37 = vld [vmem:[%s26319_s0 + $0x291] sm:$0xff] }
 0x1c6   :  { %18263 = vmatmul.mubr.msk.bf16.gmra.mrb[32].mxu1 %vm223_vm1, %v1633_v7  ;;  %v1641_v7 = vpack.c.bf16 %v15911_v32, %v15910_v36  ;;  %v16381_v36 = vld [vmem:[%s26319_s0 + $0x2c9] sm:$0xff] }
 0x1c7   :  { %18561 = vmatmul.mubr.msk.bf16.vlgmr.msra.gmra.mrb[0].mxu0 %vm223_vm1, %v4368_v42  ;;  %18266 = vmatprep.mubr.msk.bf16.mxu1 %vm223_vm1, %v1634_v43  ;;  %v4376_v42 = vpack.c.bf16 %v16364_v24, %v16363_v50  ;;  %v1642_v43 = vpack.c.bf16 %v15913_v25, %v15912_v35  ;;  %v16383_v24 = vld [vmem:[%s26319_s0 + $0x2e9] sm:$0xff]  ;;  %v16384_v35 = vld [vmem:[%s26319_s0 + $0x2f1] sm:$0xff] }
 0x1c8   :  { %18564 = vmatprep.mubr.msk.bf16.mxu0 %vm223_vm1, %v4369_v9  ;;  %v4377_v9 = vpack.c.bf16 %v16366_v53, %v16365_v49  ;;  %v16385_v25 = vld [vmem:[%s26319_s0 + $0x309] sm:$0xff]  ;;  %v21399_v53 = vld [vmem:[%s26322_s3 + $0x18] sm:$0xff]  }
 0x1ce   :  { %18267 = vmatmul.mubr.msk.bf16.gmra.mrb[36].mxu1 %vm223_vm1, %v1635_v29  ;;  %v1643_v29 = vpack.c.bf16 %v15915_v30, %v15914_v45  ;;  %v16391_v45 = vld [vmem:[%s26319_s0 + $0x369] sm:$0xff]  ;;  %v16392_v30 = vld [vmem:[%s26319_s0 + $0x371] sm:$0xff] }
 0x1cf   :  { %18565 = vmatmul.mubr.msk.bf16.gmra.mrb[4].mxu0 %vm223_vm1, %v4370_v39  ;;  %18270 = vmatprep.mubr.msk.bf16.mxu1 %vm223_vm1, %v1636_v41  ;;  %v4378_v39 = vpack.c.bf16 %v16368_v55, %v16367_v8  ;;  %v1644_v41 = vpack.c.bf16 %v15917_v38, %v15916_v21  ;;  %v16393_v8 = vld [vmem:[%s26319_s0 + $0x389] sm:$0xff]  ;;  %v4390_v55 = vpack.c.bf16 %v16392_v30, %v16391_v45  ;;  %v23273_v38 = vld [vmem:[%s26319_s0 + $0x3b1] sm:$0xff]  ;;  %v23968_v30 = vld [vmem:[%s26321_s2] ss:$0 sm:$0xff] }
 0x1d0   :  { %18568 = vmatprep.mubr.msk.bf16.mxu0 %vm223_vm1, %v4371_v62  ;;  %v4379_v62 = vpack.c.bf16 %v16370_v14, %v16369_v46  ;;  %v23268_v21 = vld [vmem:[%s26319_s0 + $0x3a9] sm:$0xff]  ;;  %v21459_v46 = vmov 0.0  }
 0x1d1   :  { %4998 = vst.msk [vmem:[#allocation2 + $0x48] sm:$0xff] %vm4988_vm2, %v21459_v46  ;;  %4989 = vst.msk [vmem:[#allocation2] sm:$0xff] %vm4988_vm2, %v21459_v46  ;;  %v4392_v14 = vpack.c.bf16 %v23273_v38, %v23268_v21 }
 0x1d2   :  { %4990 = vst.msk [vmem:[#allocation2 + $0x8] sm:$0xff] %vm4988_vm2, %v21459_v46  ;;  %4991 = vst.msk [vmem:[#allocation2 + $0x10] sm:$0xff] %vm4988_vm2, %v21459_v46 }
 0x1d3   :  { %4992 = vst.msk [vmem:[#allocation2 + $0x18] sm:$0xff] %vm4988_vm2, %v21459_v46  ;;  %4993 = vst.msk [vmem:[#allocation2 + $0x20] sm:$0xff] %vm4988_vm2, %v21459_v46 }
 0x1d4   :  { %4994 = vst.msk [vmem:[#allocation2 + $0x28] sm:$0xff] %vm4988_vm2, %v21459_v46  ;;  %4995 = vst.msk [vmem:[#allocation2 + $0x30] sm:$0xff] %vm4988_vm2, %v21459_v46 }
 0x1d5   :  { %4996 = vst.msk [vmem:[#allocation2 + $0x38] sm:$0xff] %vm4988_vm2, %v21459_v46  ;;  %4997 = vst.msk [vmem:[#allocation2 + $0x40] sm:$0xff] %vm4988_vm2, %v21459_v46 }
 0x1d6   :  { %18271 = vmatmul.mubr.msk.bf16.gmra.mrb[40].mxu1 %vm223_vm1, %v1637_v22  ;;  %v16374_v22 = vld [vmem:[%s26319_s0 + $0x211] sm:$0xff]  ;;  %4999 = vst.msk [vmem:[#allocation2 + $0x50] sm:$0xff] %vm4988_vm2, %v21459_v46  ;;  %5000 = vst.msk [vmem:[#allocation2 + $0x58] sm:$0xff] %vm4988_vm2, %v21459_v46 }
 0x1d7   :  { %18569 = vmatmul.mubr.msk.bf16.gmra.mrb[8].mxu0 %vm223_vm1, %v4372_v4  ;;  %18274 = vmatprep.mubr.msk.bf16.mxu1 %vm223_vm1, %v1638_v26  ;;  %v1645_v4 = vpack.c.bf16 %v15919_v0, %v15918_v54  ;;  %v4380_v26 = vpack.c.bf16 %v16372_v31, %v16371_v3  ;;  %v4381_v47 = vpack.c.bf16 %v16374_v22, %v16373_v20  ;;  %v16403_v54 = vld [vmem:[%s26319_s0 + $0x429] sm:$0xff]  ;;  %v16404_v0 = vld [vmem:[%s26319_s0 + $0x431] sm:$0xff] }
 0x1d8   :  { %18572 = vmatprep.mubr.msk.bf16.mxu0 %vm223_vm1, %v4373_v48  ;;  %v1646_v48 = vpack.c.bf16 %v15921_v5, %v15920_v1  ;;  %5001 = vst.msk [vmem:[#allocation2 + $0x60] sm:$0xff] %vm4988_vm2, %v21459_v46  ;;  %5002 = vst.msk [vmem:[#allocation2 + $0x68] sm:$0xff] %vm4988_vm2, %v21459_v46  ;;  %v16405_v3 = vld [vmem:[%s26319_s0 + $0x449] sm:$0xff]  ;;  %v4396_v31 = vpack.c.bf16 %v16404_v0, %v16403_v54  ;;  %v23898_v1 = vld [vmem:[%s26322_s3] sm:$0xff]  }
 0x1d9   :  { %5003 = vst.msk [vmem:[#allocation2 + $0x70] sm:$0xff] %vm4988_vm2, %v21459_v46  ;;  %5004 = vst.msk [vmem:[#allocation2 + $0x78] sm:$0xff] %vm4988_vm2, %v21459_v46  ;;  %v16407_v5 = vld [vmem:[%s26319_s0 + $0x469] sm:$0xff]  ;;  %v16408_v20 = vld [vmem:[%s26319_s0 + $0x471] sm:$0xff] }
 0x1da   :  { %5005 = vst.msk [vmem:[#allocation2 + $0x80] sm:$0xff] %vm4988_vm2, %v21459_v46  ;;  %5006 = vst.msk [vmem:[#allocation2 + $0x88] sm:$0xff] %vm4988_vm2, %v21459_v46  ;;  %v5298_v22 = vld [vmem:[#allocation2 + $0x8] sm:$0xff] }
 0x1db   :  { %5007 = vst.msk [vmem:[#allocation2 + $0x90] sm:$0xff] %vm4988_vm2, %v21459_v46  ;;  %5008 = vst.msk [vmem:[#allocation2 + $0x98] sm:$0xff] %vm4988_vm2, %v21459_v46 }
 0x1dc   :  { %5009 = vst.msk [vmem:[#allocation2 + $0xa0] sm:$0xff] %vm4988_vm2, %v21459_v46  ;;  %5010 = vst.msk [vmem:[#allocation2 + $0xa8] sm:$0xff] %vm4988_vm2, %v21459_v46 }
 0x1dd   :  { %5011 = vst.msk [vmem:[#allocation2 + $0xb0] sm:$0xff] %vm4988_vm2, %v21459_v46  ;;  %5012 = vst.msk [vmem:[#allocation2 + $0xb8] sm:$0xff] %vm4988_vm2, %v21459_v46 }
 0x1de   :  { %18275 = vmatmul.mubr.msk.bf16.gmra.mrb[44].mxu1 %vm223_vm1, %v1639_v19  ;;  %v2182_v19 = vpack.c.bf16 %v15990_v13, %v15989_v12  ;;  %5013 = vst.msk [vmem:[#allocation2 + $0xc0] sm:$0xff] %vm4988_vm2, %v21459_v46  ;;  %5014 = vst.msk [vmem:[#allocation2 + $0xc8] sm:$0xff] %vm4988_vm2, %v21459_v46 }
 0x1df   :  { %18573 = vmatmul.mubr.msk.bf16.gmra.mrb[12].mxu0 %vm223_vm1, %v4374_v34  ;;  %18278 = vmatprep.mubr.msk.bf16.mxu1 %vm223_vm1, %v1640_v59  ;;  %v4383_v34 = vpack.c.bf16 %v16378_v37, %v16377_v56  ;;  %v16379_v59 = vld [vmem:[%s26319_s0 + $0x2a9] sm:$0xff]  ;;  %5015 = vst.msk [vmem:[#allocation2 + $0xd0] sm:$0xff] %vm4988_vm2, %v21459_v46  ;;  %5016 = vst.msk [vmem:[#allocation2 + $0xd8] sm:$0xff] %vm4988_vm2, %v21459_v46 }
 0x1e0   :  { %18576 = vmatprep.mubr.msk.bf16.mxu0 %vm223_vm1, %v4375_v11  ;;  %v16380_v11 = vld [vmem:[%s26319_s0 + $0x2b1] sm:$0xff]  ;;  %5017 = vst.msk [vmem:[#allocation2 + $0xe0] sm:$0xff] %vm4988_vm2, %v21459_v46  ;;  %5018 = vst.msk [vmem:[#allocation2 + $0xe8] sm:$0xff] %vm4988_vm2, %v21459_v46 }
 0x1e1   :  { %v4384_v32 = vpack.c.bf16 %v16380_v11, %v16379_v59  ;;  %5019 = vst.msk [vmem:[#allocation2 + $0xf0] sm:$0xff] %vm4988_vm2, %v21459_v46  ;;  %5020 = vst.msk [vmem:[#allocation2 + $0xf8] sm:$0xff] %vm4988_vm2, %v21459_v46 }
 0x1e2   :  { %5021 = vst.msk [vmem:[#allocation2 + $0x100] sm:$0xff] %vm4988_vm2, %v21459_v46  ;;  %5022 = vst.msk [vmem:[#allocation2 + $0x108] sm:$0xff] %vm4988_vm2, %v21459_v46 }
 0x1e3   :  { %5023 = vst.msk [vmem:[#allocation2 + $0x110] sm:$0xff] %vm4988_vm2, %v21459_v46  ;;  %5024 = vst.msk [vmem:[#allocation2 + $0x118] sm:$0xff] %vm4988_vm2, %v21459_v46 }
 0x1e4   :  { %5025 = vst.msk [vmem:[#allocation2 + $0x120] sm:$0xff] %vm4988_vm2, %v21459_v46  ;;  %5026 = vst.msk [vmem:[#allocation2 + $0x128] sm:$0xff] %vm4988_vm2, %v21459_v46 }
 0x1e5   :  { %5027 = vst.msk [vmem:[#allocation2 + $0x130] sm:$0xff] %vm4988_vm2, %v21459_v46  ;;  %5028 = vst.msk [vmem:[#allocation2 + $0x138] sm:$0xff] %vm4988_vm2, %v21459_v46 }
 0x1e6   :  { %18279 = vmatmul.mubr.msk.bf16.gmra.mrb[48].mxu1 %vm223_vm1, %v1641_v7  ;;  %v16387_v7 = vld [vmem:[%s26319_s0 + $0x329] sm:$0xff]  ;;  %5029 = vst.msk [vmem:[#allocation2 + $0x140] sm:$0xff] %vm4988_vm2, %v21459_v46  ;;  %5030 = vst.msk [vmem:[#allocation2 + $0x148] sm:$0xff] %vm4988_vm2, %v21459_v46 }
 0x1e7   :  { %18577 = vmatmul.mubr.msk.bf16.gmra.mrb[16].mxu0 %vm223_vm1, %v4376_v42  ;;  %18282 = vmatprep.mubr.msk.bf16.mxu1 %vm223_vm1, %v1642_v43  ;;  %v16388_v42 = vld [vmem:[%s26319_s0 + $0x331] sm:$0xff]  ;;  %v16389_v43 = vld [vmem:[%s26319_s0 + $0x349] sm:$0xff]  ;;  %5031 = vst.msk [vmem:[#allocation2 + $0x150] sm:$0xff] %vm4988_vm2, %v21459_v46  ;;  %5032 = vst.msk [vmem:[#allocation2 + $0x158] sm:$0xff] %vm4988_vm2, %v21459_v46 }
 0x1e8   :  { %18580 = vmatprep.mubr.msk.bf16.mxu0 %vm223_vm1, %v4377_v9  ;;  %5033 = vst.msk [vmem:[#allocation2 + $0x160] sm:$0xff] %vm4988_vm2, %v21459_v46  ;;  %5034 = vst.msk [vmem:[#allocation2 + $0x168] sm:$0xff] %vm4988_vm2, %v21459_v46 }
 0x1e9   :  { %5035 = vst.msk [vmem:[#allocation2 + $0x170] sm:$0xff] %vm4988_vm2, %v21459_v46  ;;  %5036 = vst.msk [vmem:[#allocation2 + $0x178] sm:$0xff] %vm4988_vm2, %v21459_v46 }
 0x1ea   :  { %5037 = vst.msk [vmem:[#allocation2 + $0x180] sm:$0xff] %vm4988_vm2, %v21459_v46  ;;  %5038 = vst.msk [vmem:[#allocation2 + $0x188] sm:$0xff] %vm4988_vm2, %v21459_v46 }
 0x1eb   :  { %5039 = vst.msk [vmem:[#allocation2 + $0x190] sm:$0xff] %vm4988_vm2, %v21459_v46  ;;  %5040 = vst.msk [vmem:[#allocation2 + $0x198] sm:$0xff] %vm4988_vm2, %v21459_v46 }
 0x1ec   :  { %5041 = vst.msk [vmem:[#allocation2 + $0x1a0] sm:$0xff] %vm4988_vm2, %v21459_v46  ;;  %5042 = vst.msk [vmem:[#allocation2 + $0x1a8] sm:$0xff] %vm4988_vm2, %v21459_v46 }
 0x1ed   :  { %5043 = vst.msk [vmem:[#allocation2 + $0x1b0] sm:$0xff] %vm4988_vm2, %v21459_v46  ;;  %5044 = vst.msk [vmem:[#allocation2 + $0x1b8] sm:$0xff] %vm4988_vm2, %v21459_v46 }
 0x1ee   :  { %18283 = vmatmul.mubr.msk.bf16.gmra.mrb[52].mxu1 %vm223_vm1, %v1643_v29  ;;  %5045 = vst.msk [vmem:[#allocation2 + $0x1c0] sm:$0xff] %vm4988_vm2, %v21459_v46  ;;  %5046 = vst.msk [vmem:[#allocation2 + $0x1c8] sm:$0xff] %vm4988_vm2, %v21459_v46 }
 0x1ef   :  { %18581 = vmatmul.mubr.msk.bf16.gmra.mrb[20].mxu0 %vm223_vm1, %v4378_v39  ;;  %18286 = vmatprep.mubr.msk.bf16.mxu1 %vm223_vm1, %v1644_v41  ;;  %5047 = vst.msk [vmem:[#allocation2 + $0x1d0] sm:$0xff] %vm4988_vm2, %v21459_v46  ;;  %5048 = vst.msk [vmem:[#allocation2 + $0x1d8] sm:$0xff] %vm4988_vm2, %v21459_v46  ;;  %v16399_v39 = vld [vmem:[%s26319_s0 + $0x3e9] sm:$0xff]  ;;  %v16400_v41 = vld [vmem:[%s26319_s0 + $0x3f1] sm:$0xff] }
 0x1f0   :  { %18584 = vmatprep.mubr.msk.bf16.mxu0 %vm223_vm1, %v4379_v62  ;;  %5049 = vst.msk [vmem:[#allocation2 + $0x1e0] sm:$0xff] %vm4988_vm2, %v21459_v46  ;;  %5050 = vst.msk [vmem:[#allocation2 + $0x1e8] sm:$0xff] %vm4988_vm2, %v21459_v46  ;;  %v16401_v62 = vld [vmem:[%s26319_s0 + $0x409] sm:$0xff] }
 0x1f1   :  { %5051 = vst.msk [vmem:[#allocation2 + $0x1f0] sm:$0xff] %vm4988_vm2, %v21459_v46  ;;  %5052 = vst.msk [vmem:[#allocation2 + $0x1f8] sm:$0xff] %vm4988_vm2, %v21459_v46 }
 0x1f2   :  { %5053 = vst.msk [vmem:[#allocation2 + $0x200] sm:$0xff] %vm4988_vm2, %v21459_v46  ;;  %5054 = vst.msk [vmem:[#allocation2 + $0x208] sm:$0xff] %vm4988_vm2, %v21459_v46 }
 0x1f3   :  { %5055 = vst.msk [vmem:[#allocation2 + $0x210] sm:$0xff] %vm4988_vm2, %v21459_v46  ;;  %5056 = vst.msk [vmem:[#allocation2 + $0x218] sm:$0xff] %vm4988_vm2, %v21459_v46 }
 0x1f4   :  { %5057 = vst.msk [vmem:[#allocation2 + $0x220] sm:$0xff] %vm4988_vm2, %v21459_v46  ;;  %5058 = vst.msk [vmem:[#allocation2 + $0x228] sm:$0xff] %vm4988_vm2, %v21459_v46 }
 0x1f5   :  { %5059 = vst.msk [vmem:[#allocation2 + $0x230] sm:$0xff] %vm4988_vm2, %v21459_v46  ;;  %5060 = vst.msk [vmem:[#allocation2 + $0x238] sm:$0xff] %vm4988_vm2, %v21459_v46 }
 0x1f6   :  { %18287 = vmatmul.mubr.msk.bf16.gmra.mrb[56].mxu1 %vm223_vm1, %v1645_v4  ;;  %5061 = vst.msk [vmem:[#allocation2 + $0x240] sm:$0xff] %vm4988_vm2, %v21459_v46  ;;  %5062 = vst.msk [vmem:[#allocation2 + $0x248] sm:$0xff] %vm4988_vm2, %v21459_v46  ;;  %v5299_v4 = vld [vmem:[#allocation2 + $0x10] sm:$0xff] }
 0x1f7   :  { %18585 = vmatmul.mubr.msk.bf16.gmra.mrb[24].mxu0 %vm223_vm1, %v4380_v26  ;;  %18290 = vmatprep.mubr.msk.bf16.mxu1 %vm223_vm1, %v1646_v48  ;;  %5063 = vst.msk [vmem:[#allocation2 + $0x250] sm:$0xff] %vm4988_vm2, %v21459_v46  ;;  %5064 = vst.msk [vmem:[#allocation2 + $0x258] sm:$0xff] %vm4988_vm2, %v21459_v46  ;;  %v4398_v26 = vpack.c.bf16 %v16408_v20, %v16407_v5  ;;  %v5362_v48 = vpack.c.bf16 %v5299_v4, %v5298_v22 }
 0x1f8   :  { %18588 = vmatprep.mubr.msk.bf16.mxu0 %vm223_vm1, %v4381_v47  ;;  %5065 = vst.msk [vmem:[#allocation2 + $0x260] sm:$0xff] %vm4988_vm2, %v21459_v46  ;;  %5066 = vst.msk [vmem:[#allocation2 + $0x268] sm:$0xff] %vm4988_vm2, %v21459_v46 }
 0x1f9   :  { %5067 = vst.msk [vmem:[#allocation2 + $0x270] sm:$0xff] %vm4988_vm2, %v21459_v46  ;;  %5068 = vst.msk [vmem:[#allocation2 + $0x278] sm:$0xff] %vm4988_vm2, %v21459_v46 }
 0x1fa   :  { %5069 = vst.msk [vmem:[#allocation2 + $0x280] sm:$0xff] %vm4988_vm2, %v21459_v46  ;;  %5070 = vst.msk [vmem:[#allocation2 + $0x288] sm:$0xff] %vm4988_vm2, %v21459_v46 }
 0x1fb   :  { %5071 = vst.msk [vmem:[#allocation2 + $0x290] sm:$0xff] %vm4988_vm2, %v21459_v46  ;;  %5072 = vst.msk [vmem:[#allocation2 + $0x298] sm:$0xff] %vm4988_vm2, %v21459_v46 }
 0x1fc   :  { %5073 = vst.msk [vmem:[#allocation2 + $0x2a0] sm:$0xff] %vm4988_vm2, %v21459_v46  ;;  %5074 = vst.msk [vmem:[#allocation2 + $0x2a8] sm:$0xff] %vm4988_vm2, %v21459_v46 }
 0x1fd   :  { %5075 = vst.msk [vmem:[#allocation2 + $0x2b0] sm:$0xff] %vm4988_vm2, %v21459_v46  ;;  %5076 = vst.msk [vmem:[#allocation2 + $0x2b8] sm:$0xff] %vm4988_vm2, %v21459_v46 }
 0x1fe   :  { %18291 = vmatmul.mubr.msk.bf16.gmra.mrb[60].mxu1 %vm223_vm1, %v22520_v16  ;;  %v16382_v16 = vld [vmem:[%s26319_s0 + $0x2d1] sm:$0xff]  ;;  %5077 = vst.msk [vmem:[#allocation2 + $0x2c0] sm:$0xff] %vm4988_vm2, %v21459_v46  ;;  %5078 = vst.msk [vmem:[#allocation2 + $0x2c8] sm:$0xff] %vm4988_vm2, %v21459_v46 }
 0x1ff   :  { %18589 = vmatmul.mubr.msk.bf16.gmra.mrb[28].mxu0 %vm223_vm1, %v4382_v17  ;;  %18328 = vmatprep.mubr.msk.bf16.mxu1 %vm223_vm1, %v2182_v19  ;;  %v4385_v50 = vpack.c.bf16 %v16382_v16, %v16381_v36  ;;  %5079 = vst.msk [vmem:[#allocation2 + $0x2d0] sm:$0xff] %vm4988_vm2, %v21459_v46  ;;  %5080 = vst.msk [vmem:[#allocation2 + $0x2d8] sm:$0xff] %vm4988_vm2, %v21459_v46 }
 0x200   :  { %18592 = vmatprep.mubr.msk.bf16.mxu0 %vm223_vm1, %v4383_v34  ;;  %5081 = vst.msk [vmem:[#allocation2 + $0x2e0] sm:$0xff] %vm4988_vm2, %v21459_v46  ;;  %5082 = vst.msk [vmem:[#allocation2 + $0x2e8] sm:$0xff] %vm4988_vm2, %v21459_v46 }
 0x201   :  { %5083 = vst.msk [vmem:[#allocation2 + $0x2f0] sm:$0xff] %vm4988_vm2, %v21459_v46  ;;  %5084 = vst.msk [vmem:[#allocation2 + $0x2f8] sm:$0xff] %vm4988_vm2, %v21459_v46 }
 0x202   :  { %5085 = vst.msk [vmem:[#allocation2 + $0x300] sm:$0xff] %vm4988_vm2, %v21459_v46  ;;  %5086 = vst.msk [vmem:[#allocation2 + $0x308] sm:$0xff] %vm4988_vm2, %v21459_v46 }
 0x203   :  { %5087 = vst.msk [vmem:[#allocation2 + $0x310] sm:$0xff] %vm4988_vm2, %v21459_v46  ;;  %5088 = vst.msk [vmem:[#allocation2 + $0x318] sm:$0xff] %vm4988_vm2, %v21459_v46 }
 0x204   :  { %5089 = vst.msk [vmem:[#allocation2 + $0x320] sm:$0xff] %vm4988_vm2, %v21459_v46  ;;  %5090 = vst.msk [vmem:[#allocation2 + $0x328] sm:$0xff] %vm4988_vm2, %v21459_v46 }
 0x205   :  { %5091 = vst.msk [vmem:[#allocation2 + $0x330] sm:$0xff] %vm4988_vm2, %v21459_v46  ;;  %5092 = vst.msk [vmem:[#allocation2 + $0x338] sm:$0xff] %vm4988_vm2, %v21459_v46 }
 0x206   :  { %18329 = vmatmul.mubr.msk.bf16.vlgmr.msra.gmra.mrb[32].mxu1 %vm223_vm1, %v22698_v27  ;;  %v16386_v27 = vld [vmem:[%s26319_s0 + $0x311] sm:$0xff]  ;;  %5093 = vst.msk [vmem:[#allocation2 + $0x340] sm:$0xff] %vm4988_vm2, %v21459_v46  ;;  %5094 = vst.msk [vmem:[#allocation2 + $0x348] sm:$0xff] %vm4988_vm2, %v21459_v46 }
 0x207   :  { %18593 = vmatmul.mubr.msk.bf16.gmra.mrb[32].mxu0 %vm223_vm1, %v4384_v32  ;;  %18332 = vmatprep.mubr.msk.bf16.mxu1 %vm223_vm1, %v22730_v18  ;;  %v4386_v18 = vpack.c.bf16 %v16384_v35, %v16383_v24  ;;  %v4387_v49 = vpack.c.bf16 %v16386_v27, %v16385_v25  ;;  %5095 = vst.msk [vmem:[#allocation2 + $0x350] sm:$0xff] %vm4988_vm2, %v21459_v46  ;;  %5096 = vst.msk [vmem:[#allocation2 + $0x358] sm:$0xff] %vm4988_vm2, %v21459_v46 }
 0x208   :  { %18596 = vmatprep.mubr.msk.bf16.mxu0 %vm223_vm1, %v4385_v50  ;;  %18625 = vmatpush3.bf16.msra.mxu1 %v21398_v52  ;;  %5097 = vst.msk [vmem:[#allocation2 + $0x360] sm:$0xff] %vm4988_vm2, %v21459_v46  ;;  %5098 = vst.msk [vmem:[#allocation2 + $0x368] sm:$0xff] %vm4988_vm2, %v21459_v46  ;;  %v4394_v52 = vpack.c.bf16 %v16400_v41, %v16399_v39 }
 0x209   :  { %18626 = vmatprep.subr.bf16.mxu1 %v21399_v53  ;;  %5099 = vst.msk [vmem:[#allocation2 + $0x370] sm:$0xff] %vm4988_vm2, %v21459_v46  ;;  %5100 = vst.msk [vmem:[#allocation2 + $0x378] sm:$0xff] %vm4988_vm2, %v21459_v46 }
 0x20a   :  { %5101 = vst.msk [vmem:[#allocation2 + $0x380] sm:$0xff] %vm4988_vm2, %v21459_v46  ;;  %5102 = vst.msk [vmem:[#allocation2 + $0x388] sm:$0xff] %vm4988_vm2, %v21459_v46 }
 0x20b   :  { %5103 = vst.msk [vmem:[#allocation2 + $0x390] sm:$0xff] %vm4988_vm2, %v21459_v46  ;;  %5104 = vst.msk [vmem:[#allocation2 + $0x398] sm:$0xff] %vm4988_vm2, %v21459_v46 }
 0x20c   :  { %18627 = vmatpush3.bf16.msra.mxu1 %v21399_v53  ;;  %5105 = vst.msk [vmem:[#allocation2 + $0x3a0] sm:$0xff] %vm4988_vm2, %v21459_v46  ;;  %5106 = vst.msk [vmem:[#allocation2 + $0x3a8] sm:$0xff] %vm4988_vm2, %v21459_v46 }
 0x20d   :  { %5107 = vst.msk [vmem:[#allocation2 + $0x3b0] sm:$0xff] %vm4988_vm2, %v21459_v46  ;;  %5108 = vst.msk [vmem:[#allocation2 + $0x3b8] sm:$0xff] %vm4988_vm2, %v21459_v46  ;;  %18692 = vmatprep.subr.bf16.mxu1 %v23898_v1 }
 0x20e   :  { %18333 = vmatmul.mubr.msk.bf16.gmra.mrb[36].mxu1 %vm223_vm1, %v22732_v6  ;;  %v16390_v6 = vld [vmem:[%s26319_s0 + $0x351] sm:$0xff]  ;;  %5109 = vst.msk [vmem:[#allocation2 + $0x3c0] sm:$0xff] %vm4988_vm2, %v21459_v46  ;;  %5110 = vst.msk [vmem:[#allocation2 + $0x3c8] sm:$0xff] %vm4988_vm2, %v21459_v46 }
 0x20f   :  { %18597 = vmatmul.mubr.msk.bf16.gmra.mrb[36].mxu0 %vm223_vm1, %v4386_v18  ;;  %18336 = vmatprep.mubr.msk.bf16.mxu1 %vm223_vm1, %v22765_v40  ;;  %v4388_v40 = vpack.c.bf16 %v16388_v42, %v16387_v7  ;;  %v4389_v9 = vpack.c.bf16 %v16390_v6, %v16389_v43  ;;  %5111 = vst.msk [vmem:[#allocation2 + $0x3d0] sm:$0xff] %vm4988_vm2, %v21459_v46  ;;  %5112 = vst.msk [vmem:[#allocation2 + $0x3d8] sm:$0xff] %vm4988_vm2, %v21459_v46 }
 0x210   :  { %18600 = vmatprep.mubr.msk.bf16.mxu0 %vm223_vm1, %v4387_v49  ;;  %5113 = vst.msk [vmem:[#allocation2 + $0x3e0] sm:$0xff] %vm4988_vm2, %v21459_v46  ;;  %5114 = vst.msk [vmem:[#allocation2 + $0x3e8] sm:$0xff] %vm4988_vm2, %v21459_v46 }
 0x211   :  { %5115 = vst.msk [vmem:[#allocation2 + $0x3f0] sm:$0xff] %vm4988_vm2, %v21459_v46  ;;  %5116 = vst.msk [vmem:[#allocation2 + $0x3f8] sm:$0xff] %vm4988_vm2, %v21459_v46 }
 0x212   :  { %5117 = vst.msk [vmem:[#allocation2 + $0x400] sm:$0xff] %vm4988_vm2, %v21459_v46  ;;  %5118 = vst.msk [vmem:[#allocation2 + $0x408] sm:$0xff] %vm4988_vm2, %v21459_v46 }
 0x213   :  { %5119 = vst.msk [vmem:[#allocation2 + $0x410] sm:$0xff] %vm4988_vm2, %v21459_v46  ;;  %5120 = vst.msk [vmem:[#allocation2 + $0x418] sm:$0xff] %vm4988_vm2, %v21459_v46 }
 0x214   :  { %5121 = vst.msk [vmem:[#allocation2 + $0x420] sm:$0xff] %vm4988_vm2, %v21459_v46  ;;  %5122 = vst.msk [vmem:[#allocation2 + $0x428] sm:$0xff] %vm4988_vm2, %v21459_v46 }
 0x215   :  { %5123 = vst.msk [vmem:[#allocation2 + $0x430] sm:$0xff] %vm4988_vm2, %v21459_v46  ;;  %5124 = vst.msk [vmem:[#allocation2 + $0x438] sm:$0xff] %vm4988_vm2, %v21459_v46 }
 0x216   :  { %18337 = vmatmul.mubr.msk.bf16.gmra.mrb[40].mxu1 %vm223_vm1, %v22767_v44  ;;  %v16394_v44 = vld [vmem:[%s26319_s0 + $0x391] sm:$0xff]  ;;  %5125 = vst.msk [vmem:[#allocation2 + $0x440] sm:$0xff] %vm4988_vm2, %v21459_v46  ;;  %5126 = vst.msk [vmem:[#allocation2 + $0x448] sm:$0xff] %vm4988_vm2, %v21459_v46 }
 0x217   :  { %18601 = vmatmul.mubr.msk.bf16.gmra.mrb[40].mxu0 %vm223_vm1, %v4388_v40  ;;  %18340 = vmatprep.mubr.msk.bf16.mxu1 %vm223_vm1, %v22799_v10  ;;  %v4391_v10 = vpack.c.bf16 %v16394_v44, %v16393_v8  ;;  %5127 = vst.msk [vmem:[#allocation2 + $0x450] sm:$0xff] %vm4988_vm2, %v21459_v46  ;;  %5128 = vst.msk [vmem:[#allocation2 + $0x458] sm:$0xff] %vm4988_vm2, %v21459_v46 }
 0x218   :  { %18604 = vmatprep.mubr.msk.bf16.mxu0 %vm223_vm1, %v4389_v9  ;;  %5129 = vst.msk [vmem:[#allocation2 + $0x460] sm:$0xff] %vm4988_vm2, %v21459_v46  ;;  %5130 = vst.msk [vmem:[#allocation2 + $0x468] sm:$0xff] %vm4988_vm2, %v21459_v46 }
 0x219   :  { %5131 = vst.msk [vmem:[#allocation2 + $0x470] sm:$0xff] %vm4988_vm2, %v21459_v46  ;;  %5132 = vst.msk [vmem:[#allocation2 + $0x478] sm:$0xff] %vm4988_vm2, %v21459_v46 }
 0x21a   :  { %10263 = vst.msk [vmem:[#allocation3] sm:$0xff] %vm4988_vm2, %v21459_v46  ;;  %10264 = vst.msk [vmem:[#allocation3 + $0x8] sm:$0xff] %vm4988_vm2, %v21459_v46 }
 0x21b   :  { %10265 = vst.msk [vmem:[#allocation3 + $0x10] sm:$0xff] %vm4988_vm2, %v21459_v46  ;;  %10266 = vst.msk [vmem:[#allocation3 + $0x18] sm:$0xff] %vm4988_vm2, %v21459_v46 }
 0x21c   :  { %10267 = vst.msk [vmem:[#allocation3 + $0x20] sm:$0xff] %vm4988_vm2, %v21459_v46  ;;  %10268 = vst.msk [vmem:[#allocation3 + $0x28] sm:$0xff] %vm4988_vm2, %v21459_v46 }
 0x21d   :  { %10269 = vst.msk [vmem:[#allocation3 + $0x30] sm:$0xff] %vm4988_vm2, %v21459_v46  ;;  %10270 = vst.msk [vmem:[#allocation3 + $0x38] sm:$0xff] %vm4988_vm2, %v21459_v46 }
 0x21e   :  { %18341 = vmatmul.mubr.msk.bf16.gmra.mrb[44].mxu1 %vm223_vm1, %v22801_v57  ;;  %10271 = vst.msk [vmem:[#allocation3 + $0x40] sm:$0xff] %vm4988_vm2, %v21459_v46  ;;  %10272 = vst.msk [vmem:[#allocation3 + $0x48] sm:$0xff] %vm4988_vm2, %v21459_v46  ;;  %v16397_v57 = vld [vmem:[%s26319_s0 + $0x3c9] sm:$0xff] }
 0x21f   :  { %18605 = vmatmul.mubr.msk.bf16.gmra.mrb[44].mxu0 %vm223_vm1, %v4390_v55  ;;  %18344 = vmatprep.mubr.msk.bf16.mxu1 %vm223_vm1, %v22833_v51  ;;  %10273 = vst.msk [vmem:[#allocation3 + $0x50] sm:$0xff] %vm4988_vm2, %v21459_v46  ;;  %10274 = vst.msk [vmem:[#allocation3 + $0x58] sm:$0xff] %vm4988_vm2, %v21459_v46  ;;  %v16398_v51 = vld [vmem:[%s26319_s0 + $0x3d1] sm:$0xff] }
 0x220   :  { %18608 = vmatprep.mubr.msk.bf16.mxu0 %vm223_vm1, %v4391_v10  ;;  %10275 = vst.msk [vmem:[#allocation3 + $0x60] sm:$0xff] %vm4988_vm2, %v21459_v46  ;;  %10276 = vst.msk [vmem:[#allocation3 + $0x68] sm:$0xff] %vm4988_vm2, %v21459_v46  ;;  %v4393_v29 = vpack.c.bf16 %v16398_v51, %v16397_v57 }
 0x221   :  { %10277 = vst.msk [vmem:[#allocation3 + $0x70] sm:$0xff] %vm4988_vm2, %v21459_v46  ;;  %10278 = vst.msk [vmem:[#allocation3 + $0x78] sm:$0xff] %vm4988_vm2, %v21459_v46 }
 0x222   :  { %10279 = vst.msk [vmem:[#allocation3 + $0x80] sm:$0xff] %vm4988_vm2, %v21459_v46  ;;  %10280 = vst.msk [vmem:[#allocation3 + $0x88] sm:$0xff] %vm4988_vm2, %v21459_v46 }
 0x223   :  { %10281 = vst.msk [vmem:[#allocation3 + $0x90] sm:$0xff] %vm4988_vm2, %v21459_v46  ;;  %10282 = vst.msk [vmem:[#allocation3 + $0x98] sm:$0xff] %vm4988_vm2, %v21459_v46 }
 0x224   :  { %10283 = vst.msk [vmem:[#allocation3 + $0xa0] sm:$0xff] %vm4988_vm2, %v21459_v46  ;;  %10284 = vst.msk [vmem:[#allocation3 + $0xa8] sm:$0xff] %vm4988_vm2, %v21459_v46 }
 0x225   :  { %10285 = vst.msk [vmem:[#allocation3 + $0xb0] sm:$0xff] %vm4988_vm2, %v21459_v46  ;;  %10286 = vst.msk [vmem:[#allocation3 + $0xb8] sm:$0xff] %vm4988_vm2, %v21459_v46 }
 0x226   :  { %10287 = vst.msk [vmem:[#allocation3 + $0xc0] sm:$0xff] %vm4988_vm2, %v21459_v46  ;;  %10288 = vst.msk [vmem:[#allocation3 + $0xc8] sm:$0xff] %vm4988_vm2, %v21459_v46  ;;  %18345 = vmatmul.mubr.msk.bf16.gmra.mrb[48].mxu1 %vm223_vm1, %v22835_v23  ;;  %v16402_v23 = vld [vmem:[%s26319_s0 + $0x411] sm:$0xff] }
 0x227   :  { %10289 = vst.msk [vmem:[#allocation3 + $0xd0] sm:$0xff] %vm4988_vm2, %v21459_v46  ;;  %10290 = vst.msk [vmem:[#allocation3 + $0xd8] sm:$0xff] %vm4988_vm2, %v21459_v46  ;;  %18609 = vmatmul.mubr.msk.bf16.gmra.mrb[48].mxu0 %vm223_vm1, %v4392_v14  ;;  %18348 = vmatprep.mubr.msk.bf16.mxu1 %vm223_vm1, %v22867_v58  ;;  %v4395_v58 = vpack.c.bf16 %v16402_v23, %v16401_v62 }
 0x228   :  { %10291 = vst.msk [vmem:[#allocation3 + $0xe0] sm:$0xff] %vm4988_vm2, %v21459_v46  ;;  %10292 = vst.msk [vmem:[#allocation3 + $0xe8] sm:$0xff] %vm4988_vm2, %v21459_v46  ;;  %18612 = vmatprep.mubr.msk.bf16.mxu0 %vm223_vm1, %v4393_v29 }
 0x229   :  { %10293 = vst.msk [vmem:[#allocation3 + $0xf0] sm:$0xff] %vm4988_vm2, %v21459_v46  ;;  %10294 = vst.msk [vmem:[#allocation3 + $0xf8] sm:$0xff] %vm4988_vm2, %v21459_v46 }
 0x22a   :  { %10295 = vst.msk [vmem:[#allocation3 + $0x100] sm:$0xff] %vm4988_vm2, %v21459_v46  ;;  %10296 = vst.msk [vmem:[#allocation3 + $0x108] sm:$0xff] %vm4988_vm2, %v21459_v46 }
 0x22b   :  { %10297 = vst.msk [vmem:[#allocation3 + $0x110] sm:$0xff] %vm4988_vm2, %v21459_v46  ;;  %10298 = vst.msk [vmem:[#allocation3 + $0x118] sm:$0xff] %vm4988_vm2, %v21459_v46 }
 0x22c   :  { %10299 = vst.msk [vmem:[#allocation3 + $0x120] sm:$0xff] %vm4988_vm2, %v21459_v46  ;;  %10300 = vst.msk [vmem:[#allocation3 + $0x128] sm:$0xff] %vm4988_vm2, %v21459_v46 }
 0x22d   :  { %10301 = vst.msk [vmem:[#allocation3 + $0x130] sm:$0xff] %vm4988_vm2, %v21459_v46  ;;  %10302 = vst.msk [vmem:[#allocation3 + $0x138] sm:$0xff] %vm4988_vm2, %v21459_v46 }
 0x22e   :  { %10303 = vst.msk [vmem:[#allocation3 + $0x140] sm:$0xff] %vm4988_vm2, %v21459_v46  ;;  %10304 = vst.msk [vmem:[#allocation3 + $0x148] sm:$0xff] %vm4988_vm2, %v21459_v46  ;;  %18349 = vmatmul.mubr.msk.bf16.gmra.mrb[52].mxu1 %vm223_vm1, %v22869_v2  ;;  %v16406_v2 = vld [vmem:[%s26319_s0 + $0x451] sm:$0xff] }
 0x22f   :  { %10305 = vst.msk [vmem:[#allocation3 + $0x150] sm:$0xff] %vm4988_vm2, %v21459_v46  ;;  %10306 = vst.msk [vmem:[#allocation3 + $0x158] sm:$0xff] %vm4988_vm2, %v21459_v46  ;;  %18613 = vmatmul.mubr.msk.bf16.gmra.mrb[52].mxu0 %vm223_vm1, %v4394_v52  ;;  %18352 = vmatprep.mubr.msk.bf16.mxu1 %vm223_vm1, %v22901_v15  ;;  %v4397_v15 = vpack.c.bf16 %v16406_v2, %v16405_v3 }
 0x230   :  { %10307 = vst.msk [vmem:[#allocation3 + $0x160] sm:$0xff] %vm4988_vm2, %v21459_v46  ;;  %10308 = vst.msk [vmem:[#allocation3 + $0x168] sm:$0xff] %vm4988_vm2, %v21459_v46  ;;  %18616 = vmatprep.mubr.msk.bf16.mxu0 %vm223_vm1, %v4395_v58 }
 0x231   :  { %10309 = vst.msk [vmem:[#allocation3 + $0x170] sm:$0xff] %vm4988_vm2, %v21459_v46  ;;  %10310 = vst.msk [vmem:[#allocation3 + $0x178] sm:$0xff] %vm4988_vm2, %v21459_v46 }
 0x232   :  { %10311 = vst.msk [vmem:[#allocation3 + $0x180] sm:$0xff] %vm4988_vm2, %v21459_v46  ;;  %10312 = vst.msk [vmem:[#allocation3 + $0x188] sm:$0xff] %vm4988_vm2, %v21459_v46 }
 0x233   :  { %10313 = vst.msk [vmem:[#allocation3 + $0x190] sm:$0xff] %vm4988_vm2, %v21459_v46  ;;  %10314 = vst.msk [vmem:[#allocation3 + $0x198] sm:$0xff] %vm4988_vm2, %v21459_v46 }
 0x234   :  { %10315 = vst.msk [vmem:[#allocation3 + $0x1a0] sm:$0xff] %vm4988_vm2, %v21459_v46  ;;  %10316 = vst.msk [vmem:[#allocation3 + $0x1a8] sm:$0xff] %vm4988_vm2, %v21459_v46 }
 0x235   :  { %10317 = vst.msk [vmem:[#allocation3 + $0x1b0] sm:$0xff] %vm4988_vm2, %v21459_v46  ;;  %10318 = vst.msk [vmem:[#allocation3 + $0x1b8] sm:$0xff] %vm4988_vm2, %v21459_v46 }
 0x236   :  { %10319 = vst.msk [vmem:[#allocation3 + $0x1c0] sm:$0xff] %vm4988_vm2, %v21459_v46  ;;  %10320 = vst.msk [vmem:[#allocation3 + $0x1c8] sm:$0xff] %vm4988_vm2, %v21459_v46  ;;  %18353 = vmatmul.mubr.msk.bf16.gmra.mrb[56].mxu1 %vm223_vm1, %v22903_v33 }
 0x237   :  { %10321 = vst.msk [vmem:[#allocation3 + $0x1d0] sm:$0xff] %vm4988_vm2, %v21459_v46  ;;  %10322 = vst.msk [vmem:[#allocation3 + $0x1d8] sm:$0xff] %vm4988_vm2, %v21459_v46  ;;  %18617 = vmatmul.mubr.msk.bf16.gmra.mrb[56].mxu0 %vm223_vm1, %v4396_v31  ;;  %18356 = vmatprep.mubr.msk.bf16.mxu1 %vm223_vm1, %v22935_v61 }
 0x238   :  { %10323 = vst.msk [vmem:[#allocation3 + $0x1e0] sm:$0xff] %vm4988_vm2, %v21459_v46  ;;  %10324 = vst.msk [vmem:[#allocation3 + $0x1e8] sm:$0xff] %vm4988_vm2, %v21459_v46  ;;  %18620 = vmatprep.mubr.msk.bf16.mxu0 %vm223_vm1, %v4397_v15 }
 0x239   :  { %10325 = vst.msk [vmem:[#allocation3 + $0x1f0] sm:$0xff] %vm4988_vm2, %v21459_v46  ;;  %10326 = vst.msk [vmem:[#allocation3 + $0x1f8] sm:$0xff] %vm4988_vm2, %v21459_v46 }
 0x23a   :  { %10327 = vst.msk [vmem:[#allocation3 + $0x200] sm:$0xff] %vm4988_vm2, %v21459_v46  ;;  %10328 = vst.msk [vmem:[#allocation3 + $0x208] sm:$0xff] %vm4988_vm2, %v21459_v46 }
 0x23b   :  { %10329 = vst.msk [vmem:[#allocation3 + $0x210] sm:$0xff] %vm4988_vm2, %v21459_v46  ;;  %10330 = vst.msk [vmem:[#allocation3 + $0x218] sm:$0xff] %vm4988_vm2, %v21459_v46 }
 0x23c   :  { %10331 = vst.msk [vmem:[#allocation3 + $0x220] sm:$0xff] %vm4988_vm2, %v21459_v46  ;;  %10332 = vst.msk [vmem:[#allocation3 + $0x228] sm:$0xff] %vm4988_vm2, %v21459_v46 }
 0x23d   :  { %10333 = vst.msk [vmem:[#allocation3 + $0x230] sm:$0xff] %vm4988_vm2, %v21459_v46  ;;  %10334 = vst.msk [vmem:[#allocation3 + $0x238] sm:$0xff] %vm4988_vm2, %v21459_v46 }
 0x23e   :  { %10335 = vst.msk [vmem:[#allocation3 + $0x240] sm:$0xff] %vm4988_vm2, %v21459_v46  ;;  %10336 = vst.msk [vmem:[#allocation3 + $0x248] sm:$0xff] %vm4988_vm2, %v21459_v46  ;;  %18357 = vmatmul.mubr.msk.bf16.gmra.mrb[60].mxu1 %vm223_vm1, %v22937_v63 }
 0x23f   :  { %10337 = vst.msk [vmem:[#allocation3 + $0x250] sm:$0xff] %vm4988_vm2, %v21459_v46  ;;  %10338 = vst.msk [vmem:[#allocation3 + $0x258] sm:$0xff] %vm4988_vm2, %v21459_v46  ;;  %18621 = vmatmul.mubr.msk.bf16.gmra.mrb[60].mxu0 %vm223_vm1, %v4398_v26  ;;  %18628 = vmatprep.mubr.msk.bf16.mxu1 %vm4988_vm2, %v5362_v48 }
 0x240   :  { %10339 = vst.msk [vmem:[#allocation3 + $0x260] sm:$0xff] %vm4988_vm2, %v21459_v46  ;;  %10340 = vst.msk [vmem:[#allocation3 + $0x268] sm:$0xff] %vm4988_vm2, %v21459_v46 }
 0x241   :  { %10341 = vst.msk [vmem:[#allocation3 + $0x270] sm:$0xff] %vm4988_vm2, %v21459_v46  ;;  %10342 = vst.msk [vmem:[#allocation3 + $0x278] sm:$0xff] %vm4988_vm2, %v21459_v46 }
 0x242   :  { %10343 = vst.msk [vmem:[#allocation3 + $0x280] sm:$0xff] %vm4988_vm2, %v21459_v46  ;;  %10344 = vst.msk [vmem:[#allocation3 + $0x288] sm:$0xff] %vm4988_vm2, %v21459_v46 }
 0x243   :  { %10345 = vst.msk [vmem:[#allocation3 + $0x290] sm:$0xff] %vm4988_vm2, %v21459_v46  ;;  %10346 = vst.msk [vmem:[#allocation3 + $0x298] sm:$0xff] %vm4988_vm2, %v21459_v46 }
 0x244   :  { %10347 = vst.msk [vmem:[#allocation3 + $0x2a0] sm:$0xff] %vm4988_vm2, %v21459_v46  ;;  %10348 = vst.msk [vmem:[#allocation3 + $0x2a8] sm:$0xff] %vm4988_vm2, %v21459_v46 }
 0x245   :  { %10349 = vst.msk [vmem:[#allocation3 + $0x2b0] sm:$0xff] %vm4988_vm2, %v21459_v46  ;;  %10350 = vst.msk [vmem:[#allocation3 + $0x2b8] sm:$0xff] %vm4988_vm2, %v21459_v46 }
 0x246   :  { %10351 = vst.msk [vmem:[#allocation3 + $0x2c0] sm:$0xff] %vm4988_vm2, %v21459_v46  ;;  %10352 = vst.msk [vmem:[#allocation3 + $0x2c8] sm:$0xff] %vm4988_vm2, %v21459_v46 }
 0x247   :  { %10353 = vst.msk [vmem:[#allocation3 + $0x2d0] sm:$0xff] %vm4988_vm2, %v21459_v46  ;;  %10354 = vst.msk [vmem:[#allocation3 + $0x2d8] sm:$0xff] %vm4988_vm2, %v21459_v46 }
 0x248   :  { %10355 = vst.msk [vmem:[#allocation3 + $0x2e0] sm:$0xff] %vm4988_vm2, %v21459_v46  ;;  %10356 = vst.msk [vmem:[#allocation3 + $0x2e8] sm:$0xff] %vm4988_vm2, %v21459_v46 }
 0x249   :  { %10357 = vst.msk [vmem:[#allocation3 + $0x2f0] sm:$0xff] %vm4988_vm2, %v21459_v46  ;;  %10358 = vst.msk [vmem:[#allocation3 + $0x2f8] sm:$0xff] %vm4988_vm2, %v21459_v46 }
 0x24a   :  { %10359 = vst.msk [vmem:[#allocation3 + $0x300] sm:$0xff] %vm4988_vm2, %v21459_v46  ;;  %10360 = vst.msk [vmem:[#allocation3 + $0x308] sm:$0xff] %vm4988_vm2, %v21459_v46 }
 0x24b   :  { %10361 = vst.msk [vmem:[#allocation3 + $0x310] sm:$0xff] %vm4988_vm2, %v21459_v46  ;;  %10362 = vst.msk [vmem:[#allocation3 + $0x318] sm:$0xff] %vm4988_vm2, %v21459_v46 }
 0x24c   :  { %10363 = vst.msk [vmem:[#allocation3 + $0x320] sm:$0xff] %vm4988_vm2, %v21459_v46  ;;  %10364 = vst.msk [vmem:[#allocation3 + $0x328] sm:$0xff] %vm4988_vm2, %v21459_v46 }
 0x24d   :  { %10365 = vst.msk [vmem:[#allocation3 + $0x330] sm:$0xff] %vm4988_vm2, %v21459_v46  ;;  %10366 = vst.msk [vmem:[#allocation3 + $0x338] sm:$0xff] %vm4988_vm2, %v21459_v46 }
 0x24e   :  { %10367 = vst.msk [vmem:[#allocation3 + $0x340] sm:$0xff] %vm4988_vm2, %v21459_v46  ;;  %10368 = vst.msk [vmem:[#allocation3 + $0x348] sm:$0xff] %vm4988_vm2, %v21459_v46 }
 0x24f   :  { %10369 = vst.msk [vmem:[#allocation3 + $0x350] sm:$0xff] %vm4988_vm2, %v21459_v46  ;;  %10370 = vst.msk [vmem:[#allocation3 + $0x358] sm:$0xff] %vm4988_vm2, %v21459_v46 }
 0x250   :  { %10371 = vst.msk [vmem:[#allocation3 + $0x360] sm:$0xff] %vm4988_vm2, %v21459_v46  ;;  %10372 = vst.msk [vmem:[#allocation3 + $0x368] sm:$0xff] %vm4988_vm2, %v21459_v46 }
 0x251   :  { %10373 = vst.msk [vmem:[#allocation3 + $0x370] sm:$0xff] %vm4988_vm2, %v21459_v46  ;;  %10374 = vst.msk [vmem:[#allocation3 + $0x378] sm:$0xff] %vm4988_vm2, %v21459_v46 }
 0x252   :  { %10375 = vst.msk [vmem:[#allocation3 + $0x380] sm:$0xff] %vm4988_vm2, %v21459_v46  ;;  %10376 = vst.msk [vmem:[#allocation3 + $0x388] sm:$0xff] %vm4988_vm2, %v21459_v46 }
 0x253   :  { %10377 = vst.msk [vmem:[#allocation3 + $0x390] sm:$0xff] %vm4988_vm2, %v21459_v46  ;;  %10378 = vst.msk [vmem:[#allocation3 + $0x398] sm:$0xff] %vm4988_vm2, %v21459_v46 }
 0x254   :  { %10379 = vst.msk [vmem:[#allocation3 + $0x3a0] sm:$0xff] %vm4988_vm2, %v21459_v46  ;;  %10380 = vst.msk [vmem:[#allocation3 + $0x3a8] sm:$0xff] %vm4988_vm2, %v21459_v46 }
 0x255   :  { %10381 = vst.msk [vmem:[#allocation3 + $0x3b0] sm:$0xff] %vm4988_vm2, %v21459_v46  ;;  %10382 = vst.msk [vmem:[#allocation3 + $0x3b8] sm:$0xff] %vm4988_vm2, %v21459_v46 }
 0x256   :  { %10383 = vst.msk [vmem:[#allocation3 + $0x3c0] sm:$0xff] %vm4988_vm2, %v21459_v46  ;;  %10384 = vst.msk [vmem:[#allocation3 + $0x3c8] sm:$0xff] %vm4988_vm2, %v21459_v46 }
 0x257   :  { %10385 = vst.msk [vmem:[#allocation3 + $0x3d0] sm:$0xff] %vm4988_vm2, %v21459_v46  ;;  %10386 = vst.msk [vmem:[#allocation3 + $0x3d8] sm:$0xff] %vm4988_vm2, %v21459_v46 }
 0x258   :  { %10387 = vst.msk [vmem:[#allocation3 + $0x3e0] sm:$0xff] %vm4988_vm2, %v21459_v46  ;;  %10388 = vst.msk [vmem:[#allocation3 + $0x3e8] sm:$0xff] %vm4988_vm2, %v21459_v46 }
 0x259   :  { %10389 = vst.msk [vmem:[#allocation3 + $0x3f0] sm:$0xff] %vm4988_vm2, %v21459_v46  ;;  %10390 = vst.msk [vmem:[#allocation3 + $0x3f8] sm:$0xff] %vm4988_vm2, %v21459_v46  ;;  %v18232_v33 = vpop.f32.mrb[0].mxu1 }
 0x25a   :  { %10391 = vst.msk [vmem:[#allocation3 + $0x400] sm:$0xff] %vm4988_vm2, %v21459_v46  ;;  %10392 = vst.msk [vmem:[#allocation3 + $0x408] sm:$0xff] %vm4988_vm2, %v21459_v46  ;;  %v1783_v61 = vpop.f32.mrb[1].mxu1 }
 0x25b   :  { %10393 = vst.msk [vmem:[#allocation3 + $0x410] sm:$0xff] %vm4988_vm2, %v21459_v46  ;;  %10394 = vst.msk [vmem:[#allocation3 + $0x418] sm:$0xff] %vm4988_vm2, %v21459_v46  ;;  %v18233_v47 = vpop.f32.mrb[2].mxu1 }
 0x25c   :  { %10395 = vst.msk [vmem:[#allocation3 + $0x420] sm:$0xff] %vm4988_vm2, %v21459_v46  ;;  %10396 = vst.msk [vmem:[#allocation3 + $0x428] sm:$0xff] %vm4988_vm2, %v21459_v46  ;;  %v1786_v60 = vpop.f32.mrb[3].mxu1 }
 0x25d   :  { %10397 = vst.msk [vmem:[#allocation3 + $0x430] sm:$0xff] %vm4988_vm2, %v21459_v46  ;;  %10398 = vst.msk [vmem:[#allocation3 + $0x438] sm:$0xff] %vm4988_vm2, %v21459_v46 }
 0x25e   :  { %10399 = vst.msk [vmem:[#allocation3 + $0x440] sm:$0xff] %vm4988_vm2, %v21459_v46  ;;  %10400 = vst.msk [vmem:[#allocation3 + $0x448] sm:$0xff] %vm4988_vm2, %v21459_v46 }
 0x25f   :  { %10401 = vst.msk [vmem:[#allocation3 + $0x450] sm:$0xff] %vm4988_vm2, %v21459_v46  ;;  %10402 = vst.msk [vmem:[#allocation3 + $0x458] sm:$0xff] %vm4988_vm2, %v21459_v46 }
 0x260   :  { %10403 = vst.msk [vmem:[#allocation3 + $0x460] sm:$0xff] %vm4988_vm2, %v21459_v46  ;;  %10404 = vst.msk [vmem:[#allocation3 + $0x468] sm:$0xff] %vm4988_vm2, %v21459_v46 }
 0x261   :  { %10405 = vst.msk [vmem:[#allocation3 + $0x470] sm:$0xff] %vm4988_vm2, %v21459_v46  ;;  %10406 = vst.msk [vmem:[#allocation3 + $0x478] sm:$0xff] %vm4988_vm2, %v21459_v46  ;;  %v18236_v28 = vpop.f32.mrb[4].mxu1 }
 0x262   :  { %v1799_v12 = vpop.f32.mrb[5].mxu1 }
 0x263   :  { %v18237_v13 = vpop.f32.mrb[6].mxu1 }
 0x264   :  { %v1802_v56 = vpop.f32.mrb[7].mxu1 }
 0x269   :  { %v23917_v37 = vpop.f32.mrb[8].mxu1 }
 0x26a   :  { %v23919_v17 = vpop.f32.mrb[9].mxu1 }
 0x26b   :  { %v23921_v19 = vpop.f32.mrb[10].mxu1 }
 0x26c   :  { %v23923_v34 = vpop.f32.mrb[11].mxu1 }
 0x271   :  { %v23925_v63 = vpop.f32.mrb[12].mxu1 }
 0x272   :  { %v23927_v59 = vpop.f32.mrb[13].mxu1 }
 0x273   :  { %v23929_v11 = vpop.f32.mrb[14].mxu1 }
 0x274   :  { %v23931_v36 = vpop.f32.mrb[15].mxu1 }
 0x279   :  { %v23933_v16 = vpop.f32.mrb[16].mxu1 }
 0x27a   :  { %v23935_v32 = vpop.f32.mrb[17].mxu1 }
 0x27b   :  { %v23937_v50 = vpop.f32.mrb[18].mxu1 }
 0x27c   :  { %v23939_v24 = vpop.f32.mrb[19].mxu1 }
 0x281   :  { %v23941_v35 = vpop.f32.mrb[20].mxu1 }
 0x282   :  { %v23943_v25 = vpop.f32.mrb[21].mxu1 }
 0x283   :  { %v23945_v27 = vpop.f32.mrb[22].mxu1 }
 0x284   :  { %v23947_v18 = vpop.f32.mrb[23].mxu1 }
 0x289   :  { %v23949_v49 = vpop.f32.mrb[24].mxu1 }
 0x28a   :  { %v23951_v53 = vpop.f32.mrb[25].mxu1 }
 0x28b   :  { %v23953_v7 = vpop.f32.mrb[26].mxu1 }
 0x28c   :  { %v23955_v42 = vpop.f32.mrb[27].mxu1 }
 0x291   :  { %v23957_v43 = vpop.f32.mrb[28].mxu1 }
 0x292   :  { %v23959_v6 = vpop.f32.mrb[29].mxu1 }
 0x293   :  { %v23961_v40 = vpop.f32.mrb[30].mxu1 }
 0x294   :  { %v23963_v9 = vpop.f32.mrb[31].mxu1 }
 0x29a   :  { %v18562_v45 = vpop.f32.mrb[0].mxu0 }
 0x29b   :  { %v19850_v8 = vadd.f32 %v18562_v45, %v18232_v33  ;;  %v4534_v44 = vpop.f32.mrb[1].mxu0 }
 0x29c   :  { %v19851_v55 = vadd.f32 %v4534_v44, %v1783_v61  ;;  %v18563_v10 = vpop.f32.mrb[2].mxu0 }
 0x29d   :  { %v23971_v21 = vadd.f32 %v19850_v8, %v23968_v30  ;;  %v19852_v38 = vadd.f32 %v18563_v10, %v18233_v47  ;;  %v4537_v46 = vpop.f32.mrb[3].mxu0  ;;  %v21401_v10 = vld [vmem:[%s26322_s3 + $0x8] sm:$0xff]  }
 0x29e   :  { %v23974_v57 = vadd.f32 %v19851_v55, %v23968_v30  ;;  %v19853_v51 = vadd.f32 %v4537_v46, %v1786_v60 }
 0x29f   :  { %26467 = vst [vmem:[#allocation7_spill] sm:$0xff] %v23971_v21  ;;  %v26368_v14 = vmax.f32 %v23971_v21, 0.0  ;;  %v23978_v29 = vadd.f32 %v19852_v38, %v23968_v30 }
 0x2a0   :  { %26468 = vst [vmem:[#allocation8_spill] sm:$0xff] %v23974_v57  ;;  %v26367_v39 = vmax.f32 %v23974_v57, 0.0  ;;  %v23982_v41 = vadd.f32 %v19853_v51, %v23968_v30 }
 0x2a1   :  { %26469 = vst [vmem:[#allocation9_spill] sm:$0xff] %v23978_v29  ;;  %5136 = vst.msk [vmem:[#allocation2 + $0x48] sm:$0xff] %vm4988_vm2, %v26368_v14  ;;  %v26366_v62 = vmax.f32 %v23978_v29, 0.0 }
 0x2a2   :  { %26470 = vst [vmem:[#allocation10_spill] sm:$0xff] %v23982_v41  ;;  %5134 = vst.msk [vmem:[#allocation2 + $0x28] sm:$0xff] %vm4988_vm2, %v26367_v39  ;;  %v26362_v23 = vmax.f32 %v23982_v41, 0.0  ;;  %v18566_v52 = vpop.f32.mrb[4].mxu0 }
 0x2a3   :  { %5137 = vst.msk [vmem:[#allocation2 + $0x50] sm:$0xff] %vm4988_vm2, %v26366_v62  ;;  %v19854_v58 = vadd.f32 %v18566_v52, %v18236_v28  ;;  %v4550_v54 = vpop.f32.mrb[5].mxu0 }
 0x2a4   :  { %5135 = vst.msk [vmem:[#allocation2 + $0x30] sm:$0xff] %vm4988_vm2, %v26362_v23  ;;  %v19855_v0 = vadd.f32 %v4550_v54, %v1799_v12  ;;  %v18567_v3 = vpop.f32.mrb[6].mxu0 }
 0x2a5   :  { %v23999_v2 = vadd.f32 %v19854_v58, %v23968_v30  ;;  %v19856_v31 = vadd.f32 %v18567_v3, %v18237_v13  ;;  %v4553_v15 = vpop.f32.mrb[7].mxu0 }
 0x2a6   :  { %v24002_v5 = vadd.f32 %v19855_v0, %v23968_v30  ;;  %v19857_v20 = vadd.f32 %v4553_v15, %v1802_v56 }
 0x2a7   :  { %26471 = vst [vmem:[#allocation11_spill] sm:$0xff] %v23999_v2  ;;  %v26360_v22 = vmax.f32 %v23999_v2, 0.0  ;;  %v24006_v4 = vadd.f32 %v19856_v31, %v23968_v30 }
 0x2a8   :  { %26472 = vst [vmem:[#allocation12_spill] sm:$0xff] %v24002_v5  ;;  %v26359_v26 = vmax.f32 %v24002_v5, 0.0  ;;  %v24010_v48 = vadd.f32 %v19857_v20, %v23968_v30  ;;  %v5302_v55 = vld [vmem:[#allocation2 + $0x48] sm:$0xff] }
 0x2a9   :  { %26473 = vst [vmem:[#allocation13_spill] sm:$0xff] %v24006_v4  ;;  %5140 = vst.msk [vmem:[#allocation2 + $0x88] sm:$0xff] %vm4988_vm2, %v26360_v22  ;;  %v26358_v33 = vmax.f32 %v24006_v4, 0.0  ;;  %v5300_v13 = vld [vmem:[#allocation2 + $0x28] sm:$0xff] }
 0x2aa   :  { %26474 = vst [vmem:[#allocation14_spill] sm:$0xff] %v24010_v48  ;;  %5138 = vst.msk [vmem:[#allocation2 + $0x68] sm:$0xff] %vm4988_vm2, %v26359_v26  ;;  %v26353_v61 = vmax.f32 %v24010_v48, 0.0  ;;  %v18570_v47 = vpop.f32.mrb[8].mxu0  ;;  %v5303_v60 = vld [vmem:[#allocation2 + $0x50] sm:$0xff] }
 0x2ab   :  { %5141 = vst.msk [vmem:[#allocation2 + $0x90] sm:$0xff] %vm4988_vm2, %v26358_v33  ;;  %v19858_v28 = vadd.f32 %v18570_v47, %v23917_v37  ;;  %v4566_v12 = vpop.f32.mrb[9].mxu0  ;;  %v5301_v56 = vld [vmem:[#allocation2 + $0x30] sm:$0xff]  ;;  %v5364_v51 = vpack.c.bf16 %v5303_v60, %v5302_v55 }
 0x2ac   :  { %5139 = vst.msk [vmem:[#allocation2 + $0x70] sm:$0xff] %vm4988_vm2, %v26353_v61  ;;  %v19859_v45 = vadd.f32 %v4566_v12, %v23919_v17  ;;  %v18571_v8 = vpop.f32.mrb[10].mxu0  ;;  %v5363_v44 = vpack.c.bf16 %v5301_v56, %v5300_v13 }
 0x2ad   :  { %v24032_v38 = vadd.f32 %v19858_v28, %v23968_v30  ;;  %v19860_v37 = vadd.f32 %v18571_v8, %v23921_v19  ;;  %v4569_v46 = vpop.f32.mrb[11].mxu0 }
 0x2ae   :  { %v24036_v52 = vadd.f32 %v19859_v45, %v23968_v30  ;;  %v19861_v58 = vadd.f32 %v4569_v46, %v23923_v34  ;;  %18629 = vmatmul.mubr.msk.bf16.vlgmr.msra.gmra.mrb[64].mxu1 %vm4988_vm2, %v5363_v44  ;;  %v24053_v34 = vld [vmem:[%s26322_s3 + $0x20] sm:$0xff]  }
 0x2af   :  { %26475 = vst [vmem:[#allocation15_spill] sm:$0xff] %v24032_v38  ;;  %v26352_v17 = vmax.f32 %v24032_v38, 0.0  ;;  %v24042_v54 = vadd.f32 %v19860_v37, %v23968_v30  ;;  %18632 = vmatprep.mubr.msk.bf16.mxu1 %vm4988_vm2, %v5364_v51  ;;  %18693 = vmatpush3.bf16.msra.mxu1 %v23898_v1 }
 0x2b0   :  { %26476 = vst [vmem:[#allocation16_spill] sm:$0xff] %v24036_v52  ;;  %v26351_v19 = vmax.f32 %v24036_v52, 0.0  ;;  %v24048_v0 = vadd.f32 %v19861_v58, %v23968_v30  ;;  %18694 = vmatprep.subr.bf16.mxu1 %v21401_v10  ;;  %v5306_v45 = vld [vmem:[#allocation2 + $0x88] sm:$0xff] }
 0x2b1   :  { %26477 = vst [vmem:[#allocation17_spill] sm:$0xff] %v24042_v54  ;;  %5144 = vst.msk [vmem:[#allocation2 + $0xc8] sm:$0xff] %vm4988_vm2, %v26352_v17  ;;  %v26350_v3 = vmax.f32 %v24042_v54, 0.0  ;;  %v5304_v60 = vld [vmem:[#allocation2 + $0x68] sm:$0xff] }
 0x2b2   :  { %26478 = vst [vmem:[#allocation18_spill] sm:$0xff] %v24048_v0  ;;  %5142 = vst.msk [vmem:[#allocation2 + $0xa8] sm:$0xff] %vm4988_vm2, %v26351_v19  ;;  %v26346_v1 = vmax.f32 %v24048_v0, 0.0  ;;  %v18574_v31 = vpop.f32.mrb[12].mxu0  ;;  %v5307_v15 = vld [vmem:[#allocation2 + $0x90] sm:$0xff] }
 0x2b3   :  { %5145 = vst.msk [vmem:[#allocation2 + $0xd0] sm:$0xff] %vm4988_vm2, %v26350_v3  ;;  %v19862_v20 = vadd.f32 %v18574_v31, %v23925_v63  ;;  %v4582_v47 = vpop.f32.mrb[13].mxu0  ;;  %v5305_v28 = vld [vmem:[#allocation2 + $0x70] sm:$0xff]  ;;  %18695 = vmatpush3.bf16.msra.mxu1 %v21401_v10  ;;  %v5366_v55 = vpack.c.bf16 %v5307_v15, %v5306_v45 }
 0x2b4   :  { %5143 = vst.msk [vmem:[#allocation2 + $0xb0] sm:$0xff] %vm4988_vm2, %v26346_v1  ;;  %v19863_v12 = vadd.f32 %v4582_v47, %v23927_v59  ;;  %v18575_v13 = vpop.f32.mrb[14].mxu0  ;;  %v5365_v56 = vpack.c.bf16 %v5305_v28, %v5304_v60  ;;  %18760 = vmatprep.subr.bf16.mxu1 %v24053_v34 }
 0x2b5   :  { %v24073_v8 = vadd.f32 %v19862_v20, %v23968_v30  ;;  %v19864_v63 = vadd.f32 %v18575_v13, %v23929_v11  ;;  %v4585_v44 = vpop.f32.mrb[15].mxu0 }
 0x2b6   :  { %v24077_v10 = vadd.f32 %v19863_v12, %v23968_v30  ;;  %v19865_v37 = vadd.f32 %v4585_v44, %v23931_v36  ;;  %18633 = vmatmul.mubr.msk.bf16.gmra.mrb[68].mxu1 %vm4988_vm2, %v5365_v56 }
 0x2b7   :  { %26479 = vst [vmem:[#allocation19_spill] sm:$0xff] %v24073_v8  ;;  %v26344_v59 = vmax.f32 %v24073_v8, 0.0  ;;  %v24083_v46 = vadd.f32 %v19864_v63, %v23968_v30  ;;  %18636 = vmatprep.mubr.msk.bf16.mxu1 %vm4988_vm2, %v5366_v55 }
 0x2b8   :  { %26480 = vst [vmem:[#allocation20_spill] sm:$0xff] %v24077_v10  ;;  %v26343_v51 = vmax.f32 %v24077_v10, 0.0  ;;  %v24088_v11 = vadd.f32 %v19865_v37, %v23968_v30  ;;  %v5310_v45 = vld [vmem:[#allocation2 + $0xc8] sm:$0xff] }
 0x2b9   :  { %26481 = vst [vmem:[#allocation21_spill] sm:$0xff] %v24083_v46  ;;  %5148 = vst.msk [vmem:[#allocation2 + $0x108] sm:$0xff] %vm4988_vm2, %v26344_v59  ;;  %v26342_v36 = vmax.f32 %v24083_v46, 0.0  ;;  %v5308_v60 = vld [vmem:[#allocation2 + $0xa8] sm:$0xff] }
 0x2ba   :  { %26482 = vst [vmem:[#allocation22_spill] sm:$0xff] %v24088_v11  ;;  %5146 = vst.msk [vmem:[#allocation2 + $0xe8] sm:$0xff] %vm4988_vm2, %v26343_v51  ;;  %v26327_v58 = vmax.f32 %v24088_v11, 0.0  ;;  %v18578_v31 = vpop.f32.mrb[16].mxu0  ;;  %v5311_v15 = vld [vmem:[#allocation2 + $0xd0] sm:$0xff] }
 0x2bb   :  { %5149 = vst.msk [vmem:[#allocation2 + $0x110] sm:$0xff] %vm4988_vm2, %v26342_v36  ;;  %v19866_v20 = vadd.f32 %v18578_v31, %v23933_v16  ;;  %v4598_v47 = vpop.f32.mrb[17].mxu0  ;;  %v5309_v28 = vld [vmem:[#allocation2 + $0xb0] sm:$0xff]  ;;  %v5368_v37 = vpack.c.bf16 %v5311_v15, %v5310_v45 }
 0x2bc   :  { %5147 = vst.msk [vmem:[#allocation2 + $0xf0] sm:$0xff] %vm4988_vm2, %v26327_v58  ;;  %v19867_v12 = vadd.f32 %v4598_v47, %v23935_v32  ;;  %v18579_v13 = vpop.f32.mrb[18].mxu0  ;;  %v5367_v56 = vpack.c.bf16 %v5309_v28, %v5308_v60 }
 0x2bd   :  { %v24107_v63 = vadd.f32 %v19866_v20, %v23968_v30  ;;  %v19868_v44 = vadd.f32 %v18579_v13, %v23937_v50  ;;  %v4601_v55 = vpop.f32.mrb[19].mxu0 }
 0x2be   :  { %v24111_v16 = vadd.f32 %v19867_v12, %v23968_v30  ;;  %v19869_v31 = vadd.f32 %v4601_v55, %v23939_v24  ;;  %18637 = vmatmul.mubr.msk.bf16.gmra.mrb[72].mxu1 %vm4988_vm2, %v5367_v56 }
 0x2bf   :  { %26483 = vst [vmem:[#allocation23_spill] sm:$0xff] %v24107_v63  ;;  %v26330_v58 = vmax.f32 %v24107_v63, 0.0  ;;  %v24117_v32 = vadd.f32 %v19868_v44, %v23968_v30  ;;  %18640 = vmatprep.mubr.msk.bf16.mxu1 %vm4988_vm2, %v5368_v37 }
 0x2c0   :  { %26484 = vst [vmem:[#allocation24_spill] sm:$0xff] %v24111_v16  ;;  %v26328_v20 = vmax.f32 %v24111_v16, 0.0  ;;  %v24122_v50 = vadd.f32 %v19869_v31, %v23968_v30  ;;  %v5314_v37 = vld [vmem:[#allocation2 + $0x108] sm:$0xff] }
 0x2c1   :  { %26485 = vst [vmem:[#allocation25_spill] sm:$0xff] %v24117_v32  ;;  %5152 = vst.msk [vmem:[#allocation2 + $0x148] sm:$0xff] %vm4988_vm2, %v26330_v58  ;;  %v26329_v24 = vmax.f32 %v24117_v32, 0.0  ;;  %v5312_v13 = vld [vmem:[#allocation2 + $0xe8] sm:$0xff] }
 0x2c2   :  { %26486 = vst [vmem:[#allocation26_spill] sm:$0xff] %v24122_v50  ;;  %5150 = vst.msk [vmem:[#allocation2 + $0x128] sm:$0xff] %vm4988_vm2, %v26328_v20  ;;  %v26331_v15 = vmax.f32 %v24122_v50, 0.0  ;;  %v18582_v47 = vpop.f32.mrb[20].mxu0  ;;  %v5315_v60 = vld [vmem:[#allocation2 + $0x110] sm:$0xff] }
 0x2c3   :  { %5153 = vst.msk [vmem:[#allocation2 + $0x150] sm:$0xff] %vm4988_vm2, %v26329_v24  ;;  %v19870_v28 = vadd.f32 %v18582_v47, %v23941_v35  ;;  %v4614_v12 = vpop.f32.mrb[21].mxu0  ;;  %v5313_v56 = vld [vmem:[#allocation2 + $0xf0] sm:$0xff]  ;;  %v5370_v58 = vpack.c.bf16 %v5315_v60, %v5314_v37 }
 0x2c4   :  { %5151 = vst.msk [vmem:[#allocation2 + $0x130] sm:$0xff] %vm4988_vm2, %v26331_v15  ;;  %v19871_v45 = vadd.f32 %v4614_v12, %v23943_v25  ;;  %v18583_v44 = vpop.f32.mrb[22].mxu0  ;;  %v5369_v55 = vpack.c.bf16 %v5313_v56, %v5312_v13 }
 0x2c5   :  { %v24141_v31 = vadd.f32 %v19870_v28, %v23968_v30  ;;  %v19872_v20 = vadd.f32 %v18583_v44, %v23945_v27  ;;  %v4617_v24 = vpop.f32.mrb[23].mxu0 }
 0x2c6   :  { %v24145_v35 = vadd.f32 %v19871_v45, %v23968_v30  ;;  %v19873_v47 = vadd.f32 %v4617_v24, %v23947_v18  ;;  %18641 = vmatmul.mubr.msk.bf16.gmra.mrb[76].mxu1 %vm4988_vm2, %v5369_v55 }
 0x2c7   :  { %26487 = vst [vmem:[#allocation27_spill] sm:$0xff] %v24141_v31  ;;  %v26334_v15 = vmax.f32 %v24141_v31, 0.0  ;;  %v24151_v25 = vadd.f32 %v19872_v20, %v23968_v30  ;;  %18644 = vmatprep.mubr.msk.bf16.mxu1 %vm4988_vm2, %v5370_v58  ;;  %v6206_v31 = vld [vmem:[#allocation2 + $0xd1] sm:$0xff] }
 0x2c8   :  { %26488 = vst [vmem:[#allocation28_spill] sm:$0xff] %v24145_v35  ;;  %v26332_v28 = vmax.f32 %v24145_v35, 0.0  ;;  %v24156_v27 = vadd.f32 %v19873_v47, %v23968_v30  ;;  %v5318_v37 = vld [vmem:[#allocation2 + $0x148] sm:$0xff] }
 0x2c9   :  { %26489 = vst [vmem:[#allocation29_spill] sm:$0xff] %v24151_v25  ;;  %5156 = vst.msk [vmem:[#allocation2 + $0x188] sm:$0xff] %vm4988_vm2, %v26334_v15  ;;  %v26333_v18 = vmax.f32 %v24151_v25, 0.0  ;;  %v5316_v13 = vld [vmem:[#allocation2 + $0x128] sm:$0xff]  ;;  %v21405_v25 = vld [vmem:[%s26322_s3 + $0x38] sm:$0xff]  }
 0x2ca   :  { %26490 = vst [vmem:[#allocation30_spill] sm:$0xff] %v24156_v27  ;;  %5154 = vst.msk [vmem:[#allocation2 + $0x168] sm:$0xff] %vm4988_vm2, %v26332_v28  ;;  %v26335_v20 = vmax.f32 %v24156_v27, 0.0  ;;  %v18586_v24 = vpop.f32.mrb[24].mxu0  ;;  %v5319_v60 = vld [vmem:[#allocation2 + $0x150] sm:$0xff] }
 0x2cb   :  { %5157 = vst.msk [vmem:[#allocation2 + $0x190] sm:$0xff] %vm4988_vm2, %v26333_v18  ;;  %v19874_v58 = vadd.f32 %v18586_v24, %v23949_v49  ;;  %v4630_v12 = vpop.f32.mrb[25].mxu0  ;;  %v5317_v56 = vld [vmem:[#allocation2 + $0x130] sm:$0xff]  ;;  %v5372_v15 = vpack.c.bf16 %v5319_v60, %v5318_v37 }
 0x2cc   :  { %5155 = vst.msk [vmem:[#allocation2 + $0x170] sm:$0xff] %vm4988_vm2, %v26335_v20  ;;  %v19875_v45 = vadd.f32 %v4630_v12, %v23951_v53  ;;  %v18587_v44 = vpop.f32.mrb[26].mxu0  ;;  %v5371_v55 = vpack.c.bf16 %v5317_v56, %v5316_v13 }
 0x2cd   :  { %v24175_v47 = vadd.f32 %v19874_v58, %v23968_v30  ;;  %v19876_v28 = vadd.f32 %v18587_v44, %v23953_v7  ;;  %v4633_v18 = vpop.f32.mrb[27].mxu0 }
 0x2ce   :  { %v24179_v49 = vadd.f32 %v19875_v45, %v23968_v30  ;;  %v19877_v24 = vadd.f32 %v4633_v18, %v23955_v42  ;;  %18645 = vmatmul.mubr.msk.bf16.gmra.mrb[80].mxu1 %vm4988_vm2, %v5371_v55 }
 0x2cf   :  { %26491 = vst [vmem:[#allocation31_spill] sm:$0xff] %v24175_v47  ;;  %v26338_v20 = vmax.f32 %v24175_v47, 0.0  ;;  %v24185_v53 = vadd.f32 %v19876_v28, %v23968_v30  ;;  %18648 = vmatprep.mubr.msk.bf16.mxu1 %vm4988_vm2, %v5372_v15 }
 0x2d0   :  { %26492 = vst [vmem:[#allocation32_spill] sm:$0xff] %v24179_v49  ;;  %v26336_v58 = vmax.f32 %v24179_v49, 0.0  ;;  %v24190_v7 = vadd.f32 %v19877_v24, %v23968_v30  ;;  %v5322_v37 = vld [vmem:[#allocation2 + $0x188] sm:$0xff] }
 0x2d1   :  { %26493 = vst [vmem:[#allocation33_spill] sm:$0xff] %v24185_v53  ;;  %5160 = vst.msk [vmem:[#allocation2 + $0x1c8] sm:$0xff] %vm4988_vm2, %v26338_v20  ;;  %v26337_v42 = vmax.f32 %v24185_v53, 0.0  ;;  %v5320_v13 = vld [vmem:[#allocation2 + $0x168] sm:$0xff] }
 0x2d2   :  { %26494 = vst [vmem:[#allocation34_spill] sm:$0xff] %v24190_v7  ;;  %5158 = vst.msk [vmem:[#allocation2 + $0x1a8] sm:$0xff] %vm4988_vm2, %v26336_v58  ;;  %v26339_v28 = vmax.f32 %v24190_v7, 0.0  ;;  %v18590_v18 = vpop.f32.mrb[28].mxu0  ;;  %v5323_v60 = vld [vmem:[#allocation2 + $0x190] sm:$0xff] }
 0x2d3   :  { %5161 = vst.msk [vmem:[#allocation2 + $0x1d0] sm:$0xff] %vm4988_vm2, %v26337_v42  ;;  %v19878_v15 = vadd.f32 %v18590_v18, %v23957_v43  ;;  %v4646_v12 = vpop.f32.mrb[29].mxu0  ;;  %v5321_v56 = vld [vmem:[#allocation2 + $0x170] sm:$0xff]  ;;  %v5374_v20 = vpack.c.bf16 %v5323_v60, %v5322_v37 }
 0x2d4   :  { %5159 = vst.msk [vmem:[#allocation2 + $0x1b0] sm:$0xff] %vm4988_vm2, %v26339_v28  ;;  %v19879_v45 = vadd.f32 %v4646_v12, %v23959_v6  ;;  %v18591_v44 = vpop.f32.mrb[30].mxu0  ;;  %v5373_v55 = vpack.c.bf16 %v5321_v56, %v5320_v13 }
 0x2d5   :  { %v24209_v24 = vadd.f32 %v19878_v15, %v23968_v30  ;;  %v19880_v58 = vadd.f32 %v18591_v44, %v23961_v40  ;;  %v4649_v42 = vpop.f32.mrb[31].mxu0 }
 0x2d6   :  { %v24213_v43 = vadd.f32 %v19879_v45, %v23968_v30  ;;  %v19881_v18 = vadd.f32 %v4649_v42, %v23963_v9  ;;  %18649 = vmatmul.mubr.msk.bf16.gmra.mrb[84].mxu1 %vm4988_vm2, %v5373_v55 }
 0x2d7   :  { %26495 = vst [vmem:[#allocation35_spill] sm:$0xff] %v24209_v24  ;;  %v26341_v28 = vmax.f32 %v24209_v24, 0.0  ;;  %v24219_v6 = vadd.f32 %v19880_v58, %v23968_v30  ;;  %18652 = vmatprep.mubr.msk.bf16.mxu1 %vm4988_vm2, %v5374_v20 }
 0x2d8   :  { %26496 = vst [vmem:[#allocation36_spill] sm:$0xff] %v24213_v43  ;;  %v26340_v15 = vmax.f32 %v24213_v43, 0.0  ;;  %v24224_v40 = vadd.f32 %v19881_v18, %v23968_v30 }
 0x2d9   :  { %26497 = vst [vmem:[#allocation37_spill] sm:$0xff] %v24219_v6  ;;  %5164 = vst.msk [vmem:[#allocation2 + $0x208] sm:$0xff] %vm4988_vm2, %v26341_v28  ;;  %v26345_v9 = vmax.f32 %v24219_v6, 0.0  ;;  %v18330_v42 = vpop.f32.mrb[32].mxu1  ;;  %v5324_v45 = vld [vmem:[#allocation2 + $0x1a8] sm:$0xff] }
 0x2da   :  { %26498 = vst [vmem:[#allocation38_spill] sm:$0xff] %v24224_v40  ;;  %5162 = vst.msk [vmem:[#allocation2 + $0x1e8] sm:$0xff] %vm4988_vm2, %v26340_v15  ;;  %v26347_v58 = vmax.f32 %v24224_v40, 0.0  ;;  %v18594_v60 = vpop.f32.mrb[32].mxu0  ;;  %v5327_v20 = vld [vmem:[#allocation2 + $0x1d0] sm:$0xff]  ;;  %v2461_v13 = vpop.f32.mrb[33].mxu1 }
 0x2db   :  { %5165 = vst.msk [vmem:[#allocation2 + $0x210] sm:$0xff] %vm4988_vm2, %v26345_v9  ;;  %v19882_v12 = vadd.f32 %v18594_v60, %v18330_v42  ;;  %v4662_v56 = vpop.f32.mrb[33].mxu0  ;;  %v5325_v44 = vld [vmem:[#allocation2 + $0x1b0] sm:$0xff]  ;;  %v18331_v37 = vpop.f32.mrb[34].mxu1  ;;  %v5326_v28 = vld [vmem:[#allocation2 + $0x1c8] sm:$0xff] }
 0x2dc   :  { %5163 = vst.msk [vmem:[#allocation2 + $0x1f0] sm:$0xff] %vm4988_vm2, %v26347_v58  ;;  %v19883_v55 = vadd.f32 %v4662_v56, %v2461_v13  ;;  %v18595_v18 = vpop.f32.mrb[34].mxu0  ;;  %v5375_v15 = vpack.c.bf16 %v5325_v44, %v5324_v45  ;;  %v2464_v59 = vpop.f32.mrb[35].mxu1  ;;  %v5376_v42 = vpack.c.bf16 %v5327_v20, %v5326_v28  ;;  %v5330_v45 = vld [vmem:[#allocation2 + $0x248] sm:$0xff]  ;;  %v5331_v28 = vld [vmem:[#allocation2 + $0x250] sm:$0xff] }
 0x2dd   :  { %v24241_v36 = vadd.f32 %v19882_v12, %v23968_v30  ;;  %v19884_v51 = vadd.f32 %v18595_v18, %v18331_v37  ;;  %v4665_v9 = vpop.f32.mrb[35].mxu0  ;;  %v5378_v18 = vpack.c.bf16 %v5331_v28, %v5330_v45 }
 0x2de   :  { %v24244_v60 = vadd.f32 %v19883_v55, %v23968_v30  ;;  %v19885_v1 = vadd.f32 %v4665_v9, %v2464_v59  ;;  %18653 = vmatmul.mubr.msk.bf16.gmra.mrb[88].mxu1 %vm4988_vm2, %v5375_v15 }
 0x2df   :  { %26499 = vst [vmem:[#allocation39_spill] sm:$0xff] %v24241_v36  ;;  %v26349_v58 = vmax.f32 %v24241_v36, 0.0  ;;  %v24249_v13 = vadd.f32 %v19884_v51, %v23968_v30  ;;  %18656 = vmatprep.mubr.msk.bf16.mxu1 %vm4988_vm2, %v5376_v42 }
 0x2e0   :  { %26500 = vst [vmem:[#allocation40_spill] sm:$0xff] %v24244_v60  ;;  %v26348_v12 = vmax.f32 %v24244_v60, 0.0  ;;  %v24254_v56 = vadd.f32 %v19885_v1, %v23968_v30 }
 0x2e1   :  { %26501 = vst [vmem:[#allocation41_spill] sm:$0xff] %v24249_v13  ;;  %5168 = vst.msk [vmem:[#allocation2 + $0x288] sm:$0xff] %vm4988_vm2, %v26349_v58  ;;  %v26354_v59 = vmax.f32 %v24249_v13, 0.0  ;;  %v18334_v15 = vpop.f32.mrb[36].mxu1  ;;  %v5328_v55 = vld [vmem:[#allocation2 + $0x1e8] sm:$0xff] }
 0x2e2   :  { %26502 = vst [vmem:[#allocation42_spill] sm:$0xff] %v24254_v56  ;;  %5166 = vst.msk [vmem:[#allocation2 + $0x268] sm:$0xff] %vm4988_vm2, %v26348_v12  ;;  %v26357_v51 = vmax.f32 %v24254_v56, 0.0  ;;  %v18598_v9 = vpop.f32.mrb[36].mxu0  ;;  %v2477_v20 = vpop.f32.mrb[37].mxu1 }
 0x2e3   :  { %5169 = vst.msk [vmem:[#allocation2 + $0x290] sm:$0xff] %vm4988_vm2, %v26354_v59  ;;  %v19886_v1 = vadd.f32 %v18598_v9, %v18334_v15  ;;  %v4678_v44 = vpop.f32.mrb[37].mxu0  ;;  %v5329_v37 = vld [vmem:[#allocation2 + $0x1f0] sm:$0xff]  ;;  %v18335_v12 = vpop.f32.mrb[38].mxu1 }
 0x2e4   :  { %5167 = vst.msk [vmem:[#allocation2 + $0x270] sm:$0xff] %vm4988_vm2, %v26357_v51  ;;  %v19887_v42 = vadd.f32 %v4678_v44, %v2477_v20  ;;  %v18599_v58 = vpop.f32.mrb[38].mxu0  ;;  %v5377_v3 = vpack.c.bf16 %v5329_v37, %v5328_v55  ;;  %v2480_v61 = vpop.f32.mrb[39].mxu1 }
 0x2e5   :  { %v24271_v19 = vadd.f32 %v19886_v1, %v23968_v30  ;;  %v19888_v17 = vadd.f32 %v18599_v58, %v18335_v12  ;;  %v4681_v59 = vpop.f32.mrb[39].mxu0 }
 0x2e6   :  { %v24274_v15 = vadd.f32 %v19887_v42, %v23968_v30  ;;  %v19889_v9 = vadd.f32 %v4681_v59, %v2480_v61  ;;  %18657 = vmatmul.mubr.msk.bf16.gmra.mrb[92].mxu1 %vm4988_vm2, %v5377_v3 }
 0x2e7   :  { %26503 = vst [vmem:[#allocation43_spill] sm:$0xff] %v24271_v19  ;;  %v26356_v45 = vmax.f32 %v24271_v19, 0.0  ;;  %v24279_v28 = vadd.f32 %v19888_v17, %v23968_v30  ;;  %18660 = vmatprep.mubr.msk.bf16.mxu1 %vm4988_vm2, %v5378_v18 }
 0x2e8   :  { %26504 = vst [vmem:[#allocation44_spill] sm:$0xff] %v24274_v15  ;;  %v26355_v20 = vmax.f32 %v24274_v15, 0.0  ;;  %v24284_v1 = vadd.f32 %v19889_v9, %v23968_v30  ;;  %v5334_v51 = vld [vmem:[#allocation2 + $0x288] sm:$0xff] }
 0x2e9   :  { %26505 = vst [vmem:[#allocation45_spill] sm:$0xff] %v24279_v28  ;;  %5172 = vst.msk [vmem:[#allocation2 + $0x2c8] sm:$0xff] %vm4988_vm2, %v26356_v45  ;;  %v26361_v61 = vmax.f32 %v24279_v28, 0.0  ;;  %v18338_v3 = vpop.f32.mrb[40].mxu1  ;;  %v5332_v37 = vld [vmem:[#allocation2 + $0x268] sm:$0xff] }
 0x2ea   :  { %26506 = vst [vmem:[#allocation46_spill] sm:$0xff] %v24284_v1  ;;  %5170 = vst.msk [vmem:[#allocation2 + $0x2a8] sm:$0xff] %vm4988_vm2, %v26355_v20  ;;  %v26363_v17 = vmax.f32 %v24284_v1, 0.0  ;;  %v18602_v58 = vpop.f32.mrb[40].mxu0  ;;  %v5335_v12 = vld [vmem:[#allocation2 + $0x290] sm:$0xff]  ;;  %v2493_v44 = vpop.f32.mrb[41].mxu1 }
 0x2eb   :  { %5173 = vst.msk [vmem:[#allocation2 + $0x2d0] sm:$0xff] %vm4988_vm2, %v26361_v61  ;;  %v19890_v59 = vadd.f32 %v18602_v58, %v18338_v3  ;;  %v4694_v55 = vpop.f32.mrb[41].mxu0  ;;  %v5333_v18 = vld [vmem:[#allocation2 + $0x270] sm:$0xff]  ;;  %v18339_v9 = vpop.f32.mrb[42].mxu1  ;;  %v5380_v3 = vpack.c.bf16 %v5335_v12, %v5334_v51  ;;  %v5234_v28 = vld [vmem:[#allocation2 + $0x287] sm:$0xff] }
 0x2ec   :  { %5171 = vst.msk [vmem:[#allocation2 + $0x2b0] sm:$0xff] %vm4988_vm2, %v26363_v17  ;;  %v19891_v42 = vadd.f32 %v4694_v55, %v2493_v44  ;;  %v18603_v20 = vpop.f32.mrb[42].mxu0  ;;  %v5379_v45 = vpack.c.bf16 %v5333_v18, %v5332_v37  ;;  %v2496_v22 = vpop.f32.mrb[43].mxu1 }
 0x2ed   :  { %v24301_v33 = vadd.f32 %v19890_v59, %v23968_v30  ;;  %v19892_v26 = vadd.f32 %v18603_v20, %v18339_v9  ;;  %v4697_v61 = vpop.f32.mrb[43].mxu0 }
 0x2ee   :  { %v24304_v58 = vadd.f32 %v19891_v42, %v23968_v30  ;;  %v19893_v23 = vadd.f32 %v4697_v61, %v2496_v22  ;;  %18661 = vmatmul.mubr.msk.bf16.gmra.mrb[96].mxu1 %vm4988_vm2, %v5379_v45 }
 0x2ef   :  { %26507 = vst [vmem:[#allocation47_spill] sm:$0xff] %v24301_v33  ;;  %v26365_v17 = vmax.f32 %v24301_v33, 0.0  ;;  %v24309_v44 = vadd.f32 %v19892_v26, %v23968_v30  ;;  %18664 = vmatprep.mubr.msk.bf16.mxu1 %vm4988_vm2, %v5380_v3 }
 0x2f0   :  { %26508 = vst [vmem:[#allocation48_spill] sm:$0xff] %v24304_v58  ;;  %v26364_v59 = vmax.f32 %v24304_v58, 0.0  ;;  %v24314_v20 = vadd.f32 %v19893_v23, %v23968_v30 }
 0x2f1   :  { %26509 = vst [vmem:[#allocation49_spill] sm:$0xff] %v24309_v44  ;;  %5176 = vst.msk [vmem:[#allocation2 + $0x308] sm:$0xff] %vm4988_vm2, %v26365_v17  ;;  %v26369_v22 = vmax.f32 %v24309_v44, 0.0  ;;  %v18342_v51 = vpop.f32.mrb[44].mxu1  ;;  %v5336_v37 = vld [vmem:[#allocation2 + $0x2a8] sm:$0xff] }
 0x2f2   :  { %26510 = vst [vmem:[#allocation50_spill] sm:$0xff] %v24314_v20  ;;  %5174 = vst.msk [vmem:[#allocation2 + $0x2e8] sm:$0xff] %vm4988_vm2, %v26364_v59  ;;  %v26371_v26 = vmax.f32 %v24314_v20, 0.0  ;;  %v18606_v45 = vpop.f32.mrb[44].mxu0  ;;  %v5339_v61 = vld [vmem:[#allocation2 + $0x2d0] sm:$0xff]  ;;  %v2509_v12 = vpop.f32.mrb[45].mxu1 }
 0x2f3   :  { %5177 = vst.msk [vmem:[#allocation2 + $0x310] sm:$0xff] %vm4988_vm2, %v26369_v22  ;;  %v19894_v23 = vadd.f32 %v18606_v45, %v18342_v51  ;;  %v4710_v55 = vpop.f32.mrb[45].mxu0  ;;  %v5337_v18 = vld [vmem:[#allocation2 + $0x2b0] sm:$0xff]  ;;  %v18343_v9 = vpop.f32.mrb[46].mxu1  ;;  %v5338_v17 = vld [vmem:[#allocation2 + $0x2c8] sm:$0xff] }
 0x2f4   :  { %5175 = vst.msk [vmem:[#allocation2 + $0x2f0] sm:$0xff] %vm4988_vm2, %v26371_v26  ;;  %v19895_v42 = vadd.f32 %v4710_v55, %v2509_v12  ;;  %v18607_v3 = vpop.f32.mrb[46].mxu0  ;;  %v5381_v59 = vpack.c.bf16 %v5337_v18, %v5336_v37  ;;  %v2512_v14 = vpop.f32.mrb[47].mxu1  ;;  %v5382_v51 = vpack.c.bf16 %v5339_v61, %v5338_v17 }
 0x2f5   :  { %v24331_v62 = vadd.f32 %v19894_v23, %v23968_v30  ;;  %v19896_v39 = vadd.f32 %v18607_v3, %v18343_v9  ;;  %v4713_v22 = vpop.f32.mrb[47].mxu0 }
 0x2f6   :  { %v24334_v45 = vadd.f32 %v19895_v42, %v23968_v30  ;;  %v19897_v44 = vadd.f32 %v4713_v22, %v2512_v14  ;;  %18665 = vmatmul.mubr.msk.bf16.gmra.mrb[100].mxu1 %vm4988_vm2, %v5381_v59 }
 0x2f7   :  { %26511 = vst [vmem:[#allocation51_spill] sm:$0xff] %v24331_v62  ;;  %v26373_v26 = vmax.f32 %v24331_v62, 0.0  ;;  %v24339_v12 = vadd.f32 %v19896_v39, %v23968_v30  ;;  %18668 = vmatprep.mubr.msk.bf16.mxu1 %vm4988_vm2, %v5382_v51 }
 0x2f8   :  { %26512 = vst [vmem:[#allocation52_spill] sm:$0xff] %v24334_v45  ;;  %v26372_v23 = vmax.f32 %v24334_v45, 0.0  ;;  %v24344_v55 = vadd.f32 %v19897_v44, %v23968_v30  ;;  %v5242_v56 = vld [vmem:[#allocation2 + $0x307] sm:$0xff] }
 0x2f9   :  { %26513 = vst [vmem:[#allocation53_spill] sm:$0xff] %v24339_v12  ;;  %5180 = vst.msk [vmem:[#allocation2 + $0x348] sm:$0xff] %vm4988_vm2, %v26373_v26  ;;  %v26377_v14 = vmax.f32 %v24339_v12, 0.0  ;;  %v18346_v17 = vpop.f32.mrb[48].mxu1  ;;  %v5340_v18 = vld [vmem:[#allocation2 + $0x2e8] sm:$0xff] }
 0x2fa   :  { %26514 = vst [vmem:[#allocation54_spill] sm:$0xff] %v24344_v55  ;;  %5178 = vst.msk [vmem:[#allocation2 + $0x328] sm:$0xff] %vm4988_vm2, %v26372_v23  ;;  %v26379_v39 = vmax.f32 %v24344_v55, 0.0  ;;  %v18610_v59 = vpop.f32.mrb[48].mxu0  ;;  %v5343_v22 = vld [vmem:[#allocation2 + $0x310] sm:$0xff]  ;;  %v2525_v61 = vpop.f32.mrb[49].mxu1 }
 0x2fb   :  { %5181 = vst.msk [vmem:[#allocation2 + $0x350] sm:$0xff] %vm4988_vm2, %v26377_v14  ;;  %v19898_v44 = vadd.f32 %v18610_v59, %v18346_v17  ;;  %v4726_v37 = vpop.f32.mrb[49].mxu0  ;;  %v5341_v42 = vld [vmem:[#allocation2 + $0x2f0] sm:$0xff]  ;;  %v18347_v3 = vpop.f32.mrb[50].mxu1  ;;  %v5342_v26 = vld [vmem:[#allocation2 + $0x308] sm:$0xff] }
 0x2fc   :  { %5179 = vst.msk [vmem:[#allocation2 + $0x330] sm:$0xff] %vm4988_vm2, %v26379_v39  ;;  %v19899_v9 = vadd.f32 %v4726_v37, %v2525_v61  ;;  %v18611_v51 = vpop.f32.mrb[50].mxu0  ;;  %v5383_v23 = vpack.c.bf16 %v5341_v42, %v5340_v18  ;;  %v2528_v62 = vpop.f32.mrb[51].mxu1  ;;  %v5384_v17 = vpack.c.bf16 %v5343_v22, %v5342_v26 }
 0x2fd   :  { %v24361_v45 = vadd.f32 %v19898_v44, %v23968_v30  ;;  %v19900_v12 = vadd.f32 %v18611_v51, %v18347_v3  ;;  %v4729_v14 = vpop.f32.mrb[51].mxu0 }
 0x2fe   :  { %v24364_v59 = vadd.f32 %v19899_v9, %v23968_v30  ;;  %v19901_v20 = vadd.f32 %v4729_v14, %v2528_v62  ;;  %18669 = vmatmul.mubr.msk.bf16.gmra.mrb[104].mxu1 %vm4988_vm2, %v5383_v23 }
 0x2ff   :  { %26515 = vst [vmem:[#allocation55_spill] sm:$0xff] %v24361_v45  ;;  %v26381_v39 = vmax.f32 %v24361_v45, 0.0  ;;  %v24369_v61 = vadd.f32 %v19900_v12, %v23968_v30  ;;  %18672 = vmatprep.mubr.msk.bf16.mxu1 %vm4988_vm2, %v5384_v17 }
 0x300   :  { %26516 = vst [vmem:[#allocation56_spill] sm:$0xff] %v24364_v59  ;;  %v26380_v44 = vmax.f32 %v24364_v59, 0.0  ;;  %v24374_v37 = vadd.f32 %v19901_v20, %v23968_v30  ;;  %v5246_v60 = vld [vmem:[#allocation2 + $0x347] sm:$0xff] }
 0x301   :  { %26517 = vst [vmem:[#allocation57_spill] sm:$0xff] %v24369_v61  ;;  %5184 = vst.msk [vmem:[#allocation2 + $0x388] sm:$0xff] %vm4988_vm2, %v26381_v39  ;;  %v26385_v62 = vmax.f32 %v24369_v61, 0.0  ;;  %v18350_v12 = vpop.f32.mrb[52].mxu1  ;;  %v5344_v42 = vld [vmem:[#allocation2 + $0x328] sm:$0xff] }
 0x302   :  { %26518 = vst [vmem:[#allocation58_spill] sm:$0xff] %v24374_v37  ;;  %5182 = vst.msk [vmem:[#allocation2 + $0x368] sm:$0xff] %vm4988_vm2, %v26380_v44  ;;  %v26387_v26 = vmax.f32 %v24374_v37, 0.0  ;;  %v18614_v23 = vpop.f32.mrb[52].mxu0  ;;  %v5347_v14 = vld [vmem:[#allocation2 + $0x350] sm:$0xff]  ;;  %v2541_v22 = vpop.f32.mrb[53].mxu1 }
 0x303   :  { %5185 = vst.msk [vmem:[#allocation2 + $0x390] sm:$0xff] %vm4988_vm2, %v26385_v62  ;;  %v19902_v20 = vadd.f32 %v18614_v23, %v18350_v12  ;;  %v4742_v18 = vpop.f32.mrb[53].mxu0  ;;  %v5345_v9 = vld [vmem:[#allocation2 + $0x330] sm:$0xff]  ;;  %v18351_v51 = vpop.f32.mrb[54].mxu1  ;;  %v5346_v39 = vld [vmem:[#allocation2 + $0x348] sm:$0xff] }
 0x304   :  { %5183 = vst.msk [vmem:[#allocation2 + $0x370] sm:$0xff] %vm4988_vm2, %v26387_v26  ;;  %v19903_v3 = vadd.f32 %v4742_v18, %v2541_v22  ;;  %v18615_v17 = vpop.f32.mrb[54].mxu0  ;;  %v5385_v44 = vpack.c.bf16 %v5345_v9, %v5344_v42  ;;  %v2544_v45 = vpop.f32.mrb[55].mxu1  ;;  %v5386_v12 = vpack.c.bf16 %v5347_v14, %v5346_v39 }
 0x305   :  { %v24391_v59 = vadd.f32 %v19902_v20, %v23968_v30  ;;  %v19904_v61 = vadd.f32 %v18615_v17, %v18351_v51  ;;  %v4745_v62 = vpop.f32.mrb[55].mxu0 }
 0x306   :  { %v24394_v23 = vadd.f32 %v19903_v3, %v23968_v30  ;;  %v19905_v55 = vadd.f32 %v4745_v62, %v2544_v45  ;;  %18673 = vmatmul.mubr.msk.bf16.gmra.mrb[108].mxu1 %vm4988_vm2, %v5385_v44 }
 0x307   :  { %26519 = vst [vmem:[#allocation59_spill] sm:$0xff] %v24391_v59  ;;  %v26389_v26 = vmax.f32 %v24391_v59, 0.0  ;;  %v24399_v22 = vadd.f32 %v19904_v61, %v23968_v30  ;;  %18676 = vmatprep.mubr.msk.bf16.mxu1 %vm4988_vm2, %v5386_v12 }
 0x308   :  { %26520 = vst [vmem:[#allocation60_spill] sm:$0xff] %v24394_v23  ;;  %v26388_v20 = vmax.f32 %v24394_v23, 0.0  ;;  %v24404_v18 = vadd.f32 %v19905_v55, %v23968_v30  ;;  %v5250_v40 = vld [vmem:[#allocation2 + $0x387] sm:$0xff] }
 0x309   :  { %26521 = vst [vmem:[#allocation61_spill] sm:$0xff] %v24399_v22  ;;  %5188 = vst.msk [vmem:[#allocation2 + $0x3c8] sm:$0xff] %vm4988_vm2, %v26389_v26  ;;  %v26393_v45 = vmax.f32 %v24399_v22, 0.0  ;;  %v18354_v61 = vpop.f32.mrb[56].mxu1  ;;  %v5348_v9 = vld [vmem:[#allocation2 + $0x368] sm:$0xff] }
 0x30a   :  { %26522 = vst [vmem:[#allocation62_spill] sm:$0xff] %v24404_v18  ;;  %5186 = vst.msk [vmem:[#allocation2 + $0x3a8] sm:$0xff] %vm4988_vm2, %v26388_v20  ;;  %v26395_v39 = vmax.f32 %v24404_v18, 0.0  ;;  %v18618_v44 = vpop.f32.mrb[56].mxu0  ;;  %v5351_v62 = vld [vmem:[#allocation2 + $0x390] sm:$0xff]  ;;  %v2557_v14 = vpop.f32.mrb[57].mxu1 }
 0x30b   :  { %5189 = vst.msk [vmem:[#allocation2 + $0x3d0] sm:$0xff] %vm4988_vm2, %v26393_v45  ;;  %v19906_v55 = vadd.f32 %v18618_v44, %v18354_v61  ;;  %v4758_v42 = vpop.f32.mrb[57].mxu0  ;;  %v5349_v3 = vld [vmem:[#allocation2 + $0x370] sm:$0xff]  ;;  %v18355_v17 = vpop.f32.mrb[58].mxu1  ;;  %v5350_v26 = vld [vmem:[#allocation2 + $0x388] sm:$0xff] }
 0x30c   :  { %5187 = vst.msk [vmem:[#allocation2 + $0x3b0] sm:$0xff] %vm4988_vm2, %v26395_v39  ;;  %v19907_v51 = vadd.f32 %v4758_v42, %v2557_v14  ;;  %v18619_v12 = vpop.f32.mrb[58].mxu0  ;;  %v5387_v20 = vpack.c.bf16 %v5349_v3, %v5348_v9  ;;  %v2560_v59 = vpop.f32.mrb[59].mxu1  ;;  %v5388_v61 = vpack.c.bf16 %v5351_v62, %v5350_v26 }
 0x30d   :  { %v24421_v23 = vadd.f32 %v19906_v55, %v23968_v30  ;;  %v19908_v22 = vadd.f32 %v18619_v12, %v18355_v17  ;;  %v4761_v45 = vpop.f32.mrb[59].mxu0 }
 0x30e   :  { %v24424_v44 = vadd.f32 %v19907_v51, %v23968_v30  ;;  %v19909_v37 = vadd.f32 %v4761_v45, %v2560_v59  ;;  %18677 = vmatmul.mubr.msk.bf16.gmra.mrb[112].mxu1 %vm4988_vm2, %v5387_v20 }
 0x30f   :  { %26523 = vst [vmem:[#allocation63_spill] sm:$0xff] %v24421_v23  ;;  %v26397_v39 = vmax.f32 %v24421_v23, 0.0  ;;  %v24429_v14 = vadd.f32 %v19908_v22, %v23968_v30  ;;  %18680 = vmatprep.mubr.msk.bf16.mxu1 %vm4988_vm2, %v5388_v61 }
 0x310   :  { %26524 = vst [vmem:[#allocation64_spill] sm:$0xff] %v24424_v44  ;;  %v26396_v55 = vmax.f32 %v24424_v44, 0.0  ;;  %v24434_v42 = vadd.f32 %v19909_v37, %v23968_v30  ;;  %v5254_v43 = vld [vmem:[#allocation2 + $0x3c7] sm:$0xff] }
 0x311   :  { %26525 = vst [vmem:[#allocation65_spill] sm:$0xff] %v24429_v14  ;;  %5192 = vst.msk [vmem:[#allocation2 + $0x408] sm:$0xff] %vm4988_vm2, %v26397_v39  ;;  %v26401_v59 = vmax.f32 %v24429_v14, 0.0  ;;  %v18358_v22 = vpop.f32.mrb[60].mxu1  ;;  %v5352_v3 = vld [vmem:[#allocation2 + $0x3a8] sm:$0xff] }
 0x312   :  { %26526 = vst [vmem:[#allocation66_spill] sm:$0xff] %v24434_v42  ;;  %5190 = vst.msk [vmem:[#allocation2 + $0x3e8] sm:$0xff] %vm4988_vm2, %v26396_v55  ;;  %v26403_v26 = vmax.f32 %v24434_v42, 0.0  ;;  %v18622_v20 = vpop.f32.mrb[60].mxu0  ;;  %v5355_v45 = vld [vmem:[#allocation2 + $0x3d0] sm:$0xff]  ;;  %v2573_v62 = vpop.f32.mrb[61].mxu1 }
 0x313   :  { %5193 = vst.msk [vmem:[#allocation2 + $0x410] sm:$0xff] %vm4988_vm2, %v26401_v59  ;;  %v19910_v37 = vadd.f32 %v18622_v20, %v18358_v22  ;;  %v4774_v9 = vpop.f32.mrb[61].mxu0  ;;  %v5353_v51 = vld [vmem:[#allocation2 + $0x3b0] sm:$0xff]  ;;  %v18359_v12 = vpop.f32.mrb[62].mxu1  ;;  %v5354_v39 = vld [vmem:[#allocation2 + $0x3c8] sm:$0xff] }
 0x314   :  { %5191 = vst.msk [vmem:[#allocation2 + $0x3f0] sm:$0xff] %vm4988_vm2, %v26403_v26  ;;  %v19911_v17 = vadd.f32 %v4774_v9, %v2573_v62  ;;  %v18623_v61 = vpop.f32.mrb[62].mxu0  ;;  %v5389_v55 = vpack.c.bf16 %v5353_v51, %v5352_v3  ;;  %v2576_v23 = vpop.f32.mrb[63].mxu1  ;;  %v5390_v22 = vpack.c.bf16 %v5355_v45, %v5354_v39  ;;  %v5198_v3 = vld [vmem:[#allocation2 + $0x7] sm:$0xff]  ;;  %v5199_v51 = vld [vmem:[#allocation2 + $0xf] sm:$0xff] }
 0x315   :  { %v24451_v44 = vadd.f32 %v19910_v37, %v23968_v30  ;;  %v19912_v14 = vadd.f32 %v18623_v61, %v18359_v12  ;;  %v4777_v59 = vpop.f32.mrb[63].mxu0  ;;  %v5262_v61 = vpack.c.bf16 %v5199_v51, %v5198_v3  ;;  %v5206_v3 = vld [vmem:[#allocation2 + $0x87] sm:$0xff] }
 0x316   :  { %v24454_v20 = vadd.f32 %v19911_v17, %v23968_v30  ;;  %v19913_v18 = vadd.f32 %v4777_v59, %v2576_v23  ;;  %18681 = vmatmul.mubr.msk.bf16.gmra.mrb[116].mxu1 %vm4988_vm2, %v5389_v55  ;;  %v5226_v42 = vld [vmem:[#allocation2 + $0x1c7] sm:$0xff] }
 0x317   :  { %26527 = vst [vmem:[#allocation67_spill] sm:$0xff] %v24451_v44  ;;  %v26407_v26 = vmax.f32 %v24451_v44, 0.0  ;;  %v24459_v62 = vadd.f32 %v19912_v14, %v23968_v30  ;;  %18684 = vmatprep.mubr.msk.bf16.mxu1 %vm4988_vm2, %v5390_v22 }
 0x318   :  { %26528 = vst [vmem:[#allocation68_spill] sm:$0xff] %v24454_v20  ;;  %v26405_v37 = vmax.f32 %v24454_v20, 0.0  ;;  %v24464_v9 = vadd.f32 %v19913_v18, %v23968_v30  ;;  %v5358_v59 = vld [vmem:[#allocation2 + $0x408] sm:$0xff] }
 0x319   :  { %26529 = vst [vmem:[#allocation69_spill] sm:$0xff] %v24459_v62  ;;  %5196 = vst.msk [vmem:[#allocation2 + $0x448] sm:$0xff] %vm4988_vm2, %v26407_v26  ;;  %v26404_v23 = vmax.f32 %v24459_v62, 0.0  ;;  %v5356_v55 = vld [vmem:[#allocation2 + $0x3e8] sm:$0xff] }
 0x31a   :  { %26530 = vst [vmem:[#allocation70_spill] sm:$0xff] %v24464_v9  ;;  %5194 = vst.msk [vmem:[#allocation2 + $0x428] sm:$0xff] %vm4988_vm2, %v26405_v37  ;;  %v26406_v39 = vmax.f32 %v24464_v9, 0.0  ;;  %v5359_v14 = vld [vmem:[#allocation2 + $0x410] sm:$0xff]  ;;  %v5218_v9 = vld [vmem:[#allocation2 + $0x147] sm:$0xff] }
 0x31b   :  { %5197 = vst.msk [vmem:[#allocation2 + $0x450] sm:$0xff] %vm4988_vm2, %v26404_v23  ;;  %v5357_v30 = vld [vmem:[#allocation2 + $0x3f0] sm:$0xff]  ;;  %v5392_v45 = vpack.c.bf16 %v5359_v14, %v5358_v59  ;;  %v5202_v14 = vld [vmem:[#allocation2 + $0x47] sm:$0xff] }
 0x31c   :  { %5195 = vst.msk [vmem:[#allocation2 + $0x430] sm:$0xff] %vm4988_vm2, %v26406_v39  ;;  %v5391_v18 = vpack.c.bf16 %v5357_v30, %v5356_v55  ;;  %v5201_v23 = vld [vmem:[#allocation2 + $0x2f] sm:$0xff]  ;;  %v5200_v39 = vld [vmem:[#allocation2 + $0x27] sm:$0xff] }
 0x31d   :  { %v5203_v37 = vld [vmem:[#allocation2 + $0x4f] sm:$0xff]  ;;  %v24484_v55 = vpack.c.bf16 %v5201_v23, %v5200_v39  ;;  %v21403_v30 = vld [vmem:[%s26322_s3 + $0x28] sm:$0xff]  }
 0x31e   :  { %18685 = vmatmul.mubr.msk.bf16.gmra.mrb[120].mxu1 %vm4988_vm2, %v5391_v18  ;;  %v24489_v18 = vpack.c.bf16 %v5203_v37, %v5202_v14  ;;  %v24499_v23 = vld [vmem:[%s26322_s3 + $0x30] sm:$0xff]  }
 0x31f   :  { %18688 = vmatprep.mubr.msk.bf16.mxu1 %vm4988_vm2, %v5392_v45  ;;  %v5205_v39 = vld [vmem:[#allocation2 + $0x6f] sm:$0xff]  ;;  %v5204_v45 = vld [vmem:[#allocation2 + $0x67] sm:$0xff] }
 0x320   :  { %v5207_v59 = vld [vmem:[#allocation2 + $0x8f] sm:$0xff]  ;;  %v24501_v37 = vpack.c.bf16 %v5205_v39, %v5204_v45  ;;  %v5222_v20 = vld [vmem:[#allocation2 + $0x187] sm:$0xff] }
 0x321   :  { %v5360_v17 = vld [vmem:[#allocation2 + $0x428] sm:$0xff]  ;;  %v24504_v51 = vpack.c.bf16 %v5207_v59, %v5206_v3 }
 0x322   :  { %v5215_v39 = vld [vmem:[#allocation2 + $0x10f] sm:$0xff]  ;;  %v5212_v59 = vld [vmem:[#allocation2 + $0xe7] sm:$0xff] }
 0x323   :  { %v5361_v12 = vld [vmem:[#allocation2 + $0x430] sm:$0xff]  ;;  %v5214_v3 = vld [vmem:[#allocation2 + $0x107] sm:$0xff] }
 0x324   :  { %v5393_v22 = vpack.c.bf16 %v5361_v12, %v5360_v17  ;;  %v5211_v17 = vld [vmem:[#allocation2 + $0xcf] sm:$0xff]  ;;  %v5208_v12 = vld [vmem:[#allocation2 + $0xa7] sm:$0xff]  ;;  %v24520_v26 = vpack.c.bf16 %v5215_v39, %v5214_v3 }
 0x325   :  { %v5223_v39 = vld [vmem:[#allocation2 + $0x18f] sm:$0xff]  ;;  %v5258_v7 = vld [vmem:[#allocation2 + $0x407] sm:$0xff] }
 0x326   :  { %18689 = vmatmul.mubr.msk.bf16.gmra.mrb[124].mxu1 %vm4988_vm2, %v5393_v22  ;;  %v5210_v22 = vld [vmem:[#allocation2 + $0xc7] sm:$0xff]  ;;  %v24536_v44 = vpack.c.bf16 %v5223_v39, %v5222_v20  ;;  %v5229_v39 = vld [vmem:[#allocation2 + $0x1ef] sm:$0xff] }
 0x327   :  { %18696 = vmatprep.mubr.msk.bf16.mxu1 %vm4988_vm2, %v5262_v61  ;;  %v24512_v14 = vpack.c.bf16 %v5211_v17, %v5210_v22  ;;  %v5219_v17 = vld [vmem:[#allocation2 + $0x14f] sm:$0xff]  ;;  %v5230_v20 = vld [vmem:[#allocation2 + $0x247] sm:$0xff] }
 0x328   :  { %v24528_v62 = vpack.c.bf16 %v5219_v17, %v5218_v9  ;;  %v5225_v9 = vld [vmem:[#allocation2 + $0x1af] sm:$0xff]  ;;  %v5224_v17 = vld [vmem:[#allocation2 + $0x1a7] sm:$0xff] }
 0x32e   :  { %18697 = vmatmul.mubr.msk.bf16.vlgmr.msra.gmra.mrb[64].mxu1 %vm4988_vm2, %v24484_v55 }
 0x32f   :  { %18700 = vmatprep.mubr.msk.bf16.mxu1 %vm4988_vm2, %v24489_v18  ;;  %18761 = vmatpush3.bf16.msra.mxu1 %v24053_v34  ;;  %v5209_v34 = vld [vmem:[#allocation2 + $0xaf] sm:$0xff] }
 0x330   :  { %18762 = vmatprep.subr.bf16.mxu1 %v21403_v30  ;;  %v24510_v61 = vpack.c.bf16 %v5209_v34, %v5208_v12  ;;  %v5217_v34 = vld [vmem:[#allocation2 + $0x12f] sm:$0xff]  ;;  %v5216_v12 = vld [vmem:[#allocation2 + $0x127] sm:$0xff] }
 0x331   :  { %v24526_v22 = vpack.c.bf16 %v5217_v34, %v5216_v12  ;;  %v5227_v34 = vld [vmem:[#allocation2 + $0x1cf] sm:$0xff]  ;;  %v24542_v12 = vpack.c.bf16 %v5225_v9, %v5224_v17 }
 0x332   :  { %v24544_v58 = vpack.c.bf16 %v5227_v34, %v5226_v42  ;;  %v5233_v42 = vld [vmem:[#allocation2 + $0x26f] sm:$0xff]  ;;  %v5232_v34 = vld [vmem:[#allocation2 + $0x267] sm:$0xff] }
 0x333   :  { %18763 = vmatpush3.bf16.msra.mxu1 %v21403_v30  ;;  %v5213_v30 = vld [vmem:[#allocation2 + $0xef] sm:$0xff]  ;;  %v24555_v17 = vpack.c.bf16 %v5233_v42, %v5232_v34 }
 0x334   :  { %18828 = vmatprep.subr.bf16.mxu1 %v24499_v23  ;;  %v24518_v45 = vpack.c.bf16 %v5213_v30, %v5212_v59  ;;  %v5221_v30 = vld [vmem:[#allocation2 + $0x16f] sm:$0xff]  ;;  %v5220_v59 = vld [vmem:[#allocation2 + $0x167] sm:$0xff] }
 0x335   :  { %v24534_v3 = vpack.c.bf16 %v5221_v30, %v5220_v59  ;;  %v5231_v30 = vld [vmem:[#allocation2 + $0x24f] sm:$0xff]  ;;  %v5228_v59 = vld [vmem:[#allocation2 + $0x1e7] sm:$0xff] }
 0x336   :  { %18701 = vmatmul.mubr.msk.bf16.gmra.mrb[68].mxu1 %vm4988_vm2, %v24501_v37  ;;  %v5278_v33 = vpack.c.bf16 %v5231_v30, %v5230_v20  ;;  %v24550_v1 = vpack.c.bf16 %v5229_v39, %v5228_v59  ;;  %v5235_v9 = vld [vmem:[#allocation2 + $0x28f] sm:$0xff]  ;;  %v5236_v39 = vld [vmem:[#allocation2 + $0x2a7] sm:$0xff] }
 0x337   :  { %18704 = vmatprep.mubr.msk.bf16.mxu1 %vm4988_vm2, %v24504_v51  ;;  %v24557_v15 = vpack.c.bf16 %v5235_v9, %v5234_v28  ;;  %v5237_v20 = vld [vmem:[#allocation2 + $0x2af] sm:$0xff]  ;;  %v5240_v9 = vld [vmem:[#allocation2 + $0x2e7] sm:$0xff] }
 0x338   :  { %v5239_v30 = vld [vmem:[#allocation2 + $0x2cf] sm:$0xff]  ;;  %v24563_v59 = vpack.c.bf16 %v5237_v20, %v5236_v39  ;;  %v5244_v39 = vld [vmem:[#allocation2 + $0x327] sm:$0xff] }
 0x339   :  { %v5241_v28 = vld [vmem:[#allocation2 + $0x2ef] sm:$0xff] }
 0x33a   :  { %v5243_v42 = vld [vmem:[#allocation2 + $0x30f] sm:$0xff]  ;;  %v24571_v34 = vpack.c.bf16 %v5241_v28, %v5240_v9 }
 0x33b   :  { %v24573_v13 = vpack.c.bf16 %v5243_v42, %v5242_v56  ;;  %v5245_v20 = vld [vmem:[#allocation2 + $0x32f] sm:$0xff]  ;;  %v5248_v42 = vld [vmem:[#allocation2 + $0x367] sm:$0xff] }
 0x33c   :  { %v5249_v56 = vld [vmem:[#allocation2 + $0x36f] sm:$0xff] }
 0x33d   :  { %v5251_v28 = vld [vmem:[#allocation2 + $0x38f] sm:$0xff]  ;;  %v24587_v9 = vpack.c.bf16 %v5249_v56, %v5248_v42 }
 0x33e   :  { %18705 = vmatmul.mubr.msk.bf16.gmra.mrb[72].mxu1 %vm4988_vm2, %v24510_v61  ;;  %v24589_v6 = vpack.c.bf16 %v5251_v28, %v5250_v40  ;;  %v5257_v40 = vld [vmem:[#allocation2 + $0x3ef] sm:$0xff]  ;;  %v5256_v28 = vld [vmem:[#allocation2 + $0x3e7] sm:$0xff] }
 0x33f   :  { %18708 = vmatprep.mubr.msk.bf16.mxu1 %vm4988_vm2, %v24512_v14  ;;  %v5259_v56 = vld [vmem:[#allocation2 + $0x40f] sm:$0xff]  ;;  %v24603_v42 = vpack.c.bf16 %v5257_v40, %v5256_v28 }
 0x340   :  { %v24605_v53 = vpack.c.bf16 %v5259_v56, %v5258_v7  ;;  %v6195_v7 = vld [vmem:[#allocation2 + $0x29] sm:$0xff]  ;;  %v6196_v40 = vld [vmem:[#allocation2 + $0x31] sm:$0xff] }
 0x341   :  { %v6197_v56 = vld [vmem:[#allocation2 + $0x49] sm:$0xff]  ;;  %v6198_v28 = vld [vmem:[#allocation2 + $0x51] sm:$0xff]  ;;  %v24616_v27 = vpack.c.bf16 %v6196_v40, %v6195_v7 }
 0x342   :  { %v24621_v35 = vpack.c.bf16 %v6198_v28, %v6197_v56  ;;  %v6204_v56 = vld [vmem:[#allocation2 + $0xb1] sm:$0xff]  ;;  %v6205_v28 = vld [vmem:[#allocation2 + $0xc9] sm:$0xff] }
 0x343   :  { %v24644_v32 = vpack.c.bf16 %v6206_v31, %v6205_v28  ;;  %v6211_v31 = vld [vmem:[#allocation2 + $0x129] sm:$0xff]  ;;  %v6214_v28 = vld [vmem:[#allocation2 + $0x151] sm:$0xff] }
 0x346   :  { %18709 = vmatmul.mubr.msk.bf16.gmra.mrb[76].mxu1 %vm4988_vm2, %v24518_v45 }
 0x347   :  { %18712 = vmatprep.mubr.msk.bf16.mxu1 %vm4988_vm2, %v24520_v26 }
 0x34e   :  { %18713 = vmatmul.mubr.msk.bf16.gmra.mrb[80].mxu1 %vm4988_vm2, %v24526_v22 }
 0x34f   :  { %18716 = vmatprep.mubr.msk.bf16.mxu1 %vm4988_vm2, %v24528_v62 }
 0x356   :  { %18717 = vmatmul.mubr.msk.bf16.gmra.mrb[84].mxu1 %vm4988_vm2, %v24534_v3 }
 0x357   :  { %18720 = vmatprep.mubr.msk.bf16.mxu1 %vm4988_vm2, %v24536_v44 }
 0x35e   :  { %18721 = vmatmul.mubr.msk.bf16.gmra.mrb[88].mxu1 %vm4988_vm2, %v24542_v12 }
 0x35f   :  { %18724 = vmatprep.mubr.msk.bf16.mxu1 %vm4988_vm2, %v24544_v58 }
 0x366   :  { %18725 = vmatmul.mubr.msk.bf16.gmra.mrb[92].mxu1 %vm4988_vm2, %v24550_v1 }
 0x367   :  { %18728 = vmatprep.mubr.msk.bf16.mxu1 %vm4988_vm2, %v5278_v33  ;;  %v5238_v33 = vld [vmem:[#allocation2 + $0x2c7] sm:$0xff] }
 0x368   :  { %v24565_v19 = vpack.c.bf16 %v5239_v30, %v5238_v33  ;;  %v5247_v30 = vld [vmem:[#allocation2 + $0x34f] sm:$0xff]  ;;  %v24579_v33 = vpack.c.bf16 %v5245_v20, %v5244_v39 }
 0x369   :  { %v24581_v36 = vpack.c.bf16 %v5247_v30, %v5246_v60  ;;  %v5253_v60 = vld [vmem:[#allocation2 + $0x3af] sm:$0xff]  ;;  %v5252_v30 = vld [vmem:[#allocation2 + $0x3a7] sm:$0xff] }
 0x36a   :  { %v5255_v20 = vld [vmem:[#allocation2 + $0x3cf] sm:$0xff]  ;;  %v24595_v39 = vpack.c.bf16 %v5253_v60, %v5252_v30  ;;  %v5260_v30 = vld [vmem:[#allocation2 + $0x427] sm:$0xff] }
 0x36b   :  { %v24597_v24 = vpack.c.bf16 %v5255_v20, %v5254_v43  ;;  %v6193_v43 = vld [vmem:[#allocation2 + $0x9] sm:$0xff]  ;;  %v6194_v60 = vld [vmem:[#allocation2 + $0x11] sm:$0xff] }
 0x36c   :  { %v5261_v20 = vld [vmem:[#allocation2 + $0x42f] sm:$0xff]  ;;  %v6257_v49 = vpack.c.bf16 %v6194_v60, %v6193_v43 }
 0x36d   :  { %v24611_v47 = vpack.c.bf16 %v5261_v20, %v5260_v30  ;;  %v6199_v43 = vld [vmem:[#allocation2 + $0x69] sm:$0xff]  ;;  %v6200_v60 = vld [vmem:[#allocation2 + $0x71] sm:$0xff] }
 0x36e   :  { %18729 = vmatmul.mubr.msk.bf16.gmra.mrb[96].mxu1 %vm4988_vm2, %v24555_v17  ;;  %v6201_v20 = vld [vmem:[#allocation2 + $0x89] sm:$0xff]  ;;  %v6202_v30 = vld [vmem:[#allocation2 + $0x91] sm:$0xff]  ;;  %v24633_v7 = vpack.c.bf16 %v6200_v60, %v6199_v43 }
 0x36f   :  { %18732 = vmatprep.mubr.msk.bf16.mxu1 %vm4988_vm2, %v24557_v15  ;;  %v24636_v40 = vpack.c.bf16 %v6202_v30, %v6201_v20  ;;  %v6208_v43 = vld [vmem:[#allocation2 + $0xf1] sm:$0xff]  ;;  %v6209_v60 = vld [vmem:[#allocation2 + $0x109] sm:$0xff] }
 0x370   :  { %v6210_v20 = vld [vmem:[#allocation2 + $0x111] sm:$0xff] }
 0x371   :  { %v24652_v16 = vpack.c.bf16 %v6210_v20, %v6209_v60  ;;  %v6217_v60 = vld [vmem:[#allocation2 + $0x189] sm:$0xff]  ;;  %v6218_v20 = vld [vmem:[#allocation2 + $0x191] sm:$0xff] }
 0x372   :  { %v24668_v10 = vpack.c.bf16 %v6218_v20, %v6217_v60  ;;  %v6223_v60 = vld [vmem:[#allocation2 + $0x1e9] sm:$0xff]  ;;  %v6224_v20 = vld [vmem:[#allocation2 + $0x1f1] sm:$0xff] }
 0x373   :  { %v24682_v52 = vpack.c.bf16 %v6224_v20, %v6223_v60  ;;  %v6233_v60 = vld [vmem:[#allocation2 + $0x2c9] sm:$0xff]  ;;  %v6234_v20 = vld [vmem:[#allocation2 + $0x2d1] sm:$0xff] }
 0x376   :  { %18733 = vmatmul.mubr.msk.bf16.gmra.mrb[100].mxu1 %vm4988_vm2, %v24563_v59 }
 0x377   :  { %18736 = vmatprep.mubr.msk.bf16.mxu1 %vm4988_vm2, %v24565_v19 }
 0x37e   :  { %18737 = vmatmul.mubr.msk.bf16.gmra.mrb[104].mxu1 %vm4988_vm2, %v24571_v34 }
 0x37f   :  { %18740 = vmatprep.mubr.msk.bf16.mxu1 %vm4988_vm2, %v24573_v13 }
 0x386   :  { %18741 = vmatmul.mubr.msk.bf16.gmra.mrb[108].mxu1 %vm4988_vm2, %v24579_v33 }
 0x387   :  { %18744 = vmatprep.mubr.msk.bf16.mxu1 %vm4988_vm2, %v24581_v36 }
 0x38e   :  { %18745 = vmatmul.mubr.msk.bf16.gmra.mrb[112].mxu1 %vm4988_vm2, %v24587_v9 }
 0x38f   :  { %18748 = vmatprep.mubr.msk.bf16.mxu1 %vm4988_vm2, %v24589_v6 }
 0x396   :  { %18749 = vmatmul.mubr.msk.bf16.gmra.mrb[116].mxu1 %vm4988_vm2, %v24595_v39 }
 0x397   :  { %18752 = vmatprep.mubr.msk.bf16.mxu1 %vm4988_vm2, %v24597_v24 }
 0x39e   :  { %18753 = vmatmul.mubr.msk.bf16.gmra.mrb[120].mxu1 %vm4988_vm2, %v24603_v42 }
 0x39f   :  { %18756 = vmatprep.mubr.msk.bf16.mxu1 %vm4988_vm2, %v24605_v53 }
 0x3a6   :  { %18757 = vmatmul.mubr.msk.bf16.gmra.mrb[124].mxu1 %vm4988_vm2, %v24611_v47 }
 0x3a7   :  { %18764 = vmatprep.mubr.msk.bf16.mxu1 %vm4988_vm2, %v6257_v49  ;;  %v24631_v49 = vld [vmem:[%s26322_s3 + $0x40] sm:$0xff]  }
 0x3ae   :  { %18765 = vmatmul.mubr.msk.bf16.vlgmr.msra.gmra.mrb[64].mxu1 %vm4988_vm2, %v24616_v27 }
 0x3af   :  { %18768 = vmatprep.mubr.msk.bf16.mxu1 %vm4988_vm2, %v24621_v35  ;;  %18829 = vmatpush3.bf16.msra.mxu1 %v24499_v23  ;;  %v6203_v23 = vld [vmem:[#allocation2 + $0xa9] sm:$0xff] }
 0x3b0   :  { %18830 = vmatprep.subr.bf16.mxu1 %v21405_v25  ;;  %v24642_v50 = vpack.c.bf16 %v6204_v56, %v6203_v23  ;;  %v6212_v23 = vld [vmem:[#allocation2 + $0x131] sm:$0xff]  ;;  %v6213_v56 = vld [vmem:[#allocation2 + $0x149] sm:$0xff] }
 0x3b1   :  { %v24658_v63 = vpack.c.bf16 %v6212_v23, %v6211_v31  ;;  %v24660_v11 = vpack.c.bf16 %v6214_v28, %v6213_v56  ;;  %v6219_v31 = vld [vmem:[#allocation2 + $0x1a9] sm:$0xff]  ;;  %v6220_v23 = vld [vmem:[#allocation2 + $0x1b1] sm:$0xff] }
 0x3b2   :  { %v6221_v56 = vld [vmem:[#allocation2 + $0x1c9] sm:$0xff]  ;;  %v6222_v28 = vld [vmem:[#allocation2 + $0x1d1] sm:$0xff]  ;;  %v24674_v8 = vpack.c.bf16 %v6220_v23, %v6219_v31 }
 0x3b3   :  { %18831 = vmatpush3.bf16.msra.mxu1 %v21405_v25  ;;  %v6207_v25 = vld [vmem:[#allocation2 + $0xe9] sm:$0xff]  ;;  %v24676_v0 = vpack.c.bf16 %v6222_v28, %v6221_v56  ;;  %v6228_v23 = vld [vmem:[#allocation2 + $0x271] sm:$0xff] }
 0x3b4   :  { %18896 = vmatprep.subr.bf16.mxu1 %v24631_v49  ;;  %v24650_v30 = vpack.c.bf16 %v6208_v43, %v6207_v25  ;;  %v6215_v25 = vld [vmem:[#allocation2 + $0x169] sm:$0xff]  ;;  %v6216_v43 = vld [vmem:[#allocation2 + $0x171] sm:$0xff] }
 0x3b5   :  { %v24666_v46 = vpack.c.bf16 %v6216_v43, %v6215_v25  ;;  %v6225_v25 = vld [vmem:[#allocation2 + $0x249] sm:$0xff]  ;;  %v6226_v43 = vld [vmem:[#allocation2 + $0x251] sm:$0xff] }
 0x3b6   :  { %18769 = vmatmul.mubr.msk.bf16.gmra.mrb[68].mxu1 %vm4988_vm2, %v24633_v7  ;;  %v6273_v54 = vpack.c.bf16 %v6226_v43, %v6225_v25  ;;  %v6227_v31 = vld [vmem:[#allocation2 + $0x269] sm:$0xff]  ;;  %v6230_v28 = vld [vmem:[#allocation2 + $0x291] sm:$0xff] }
 0x3b7   :  { %18772 = vmatprep.mubr.msk.bf16.mxu1 %vm4988_vm2, %v24636_v40  ;;  %v6229_v56 = vld [vmem:[#allocation2 + $0x289] sm:$0xff]  ;;  %v24687_v38 = vpack.c.bf16 %v6228_v23, %v6227_v31  ;;  %v6232_v43 = vld [vmem:[#allocation2 + $0x2b1] sm:$0xff] }
 0x3b8   :  { %v24689_v48 = vpack.c.bf16 %v6230_v28, %v6229_v56  ;;  %v6231_v25 = vld [vmem:[#allocation2 + $0x2a9] sm:$0xff]  ;;  %v6236_v23 = vld [vmem:[#allocation2 + $0x2f1] sm:$0xff] }
 0x3b9   :  { %v24695_v4 = vpack.c.bf16 %v6232_v43, %v6231_v25  ;;  %v6235_v31 = vld [vmem:[#allocation2 + $0x2e9] sm:$0xff]  ;;  %v6238_v28 = vld [vmem:[#allocation2 + $0x311] sm:$0xff] }
 0x3ba   :  { %v6237_v56 = vld [vmem:[#allocation2 + $0x309] sm:$0xff]  ;;  %v24703_v5 = vpack.c.bf16 %v6236_v23, %v6235_v31  ;;  %v6240_v43 = vld [vmem:[#allocation2 + $0x331] sm:$0xff] }
 0x3bb   :  { %v24705_v2 = vpack.c.bf16 %v6238_v28, %v6237_v56  ;;  %v6239_v25 = vld [vmem:[#allocation2 + $0x329] sm:$0xff]  ;;  %v6244_v23 = vld [vmem:[#allocation2 + $0x371] sm:$0xff] }
 0x3bc   :  { %v24711_v41 = vpack.c.bf16 %v6240_v43, %v6239_v25  ;;  %v6243_v31 = vld [vmem:[#allocation2 + $0x369] sm:$0xff]  ;;  %v6246_v28 = vld [vmem:[#allocation2 + $0x391] sm:$0xff] }
 0x3bd   :  { %v6245_v56 = vld [vmem:[#allocation2 + $0x389] sm:$0xff]  ;;  %v24719_v57 = vpack.c.bf16 %v6244_v23, %v6243_v31  ;;  %v6248_v43 = vld [vmem:[#allocation2 + $0x3b1] sm:$0xff] }
 0x3be   :  { %18773 = vmatmul.mubr.msk.bf16.gmra.mrb[72].mxu1 %vm4988_vm2, %v24642_v50  ;;  %26531 = vst [vmem:[#allocation71_spill] sm:$0xff] %v24711_v41  ;;  %v24721_v21 = vpack.c.bf16 %v6246_v28, %v6245_v56  ;;  %v6247_v25 = vld [vmem:[#allocation2 + $0x3a9] sm:$0xff]  ;;  %v6252_v23 = vld [vmem:[#allocation2 + $0x3f1] sm:$0xff] }
 0x3bf   :  { %18776 = vmatprep.mubr.msk.bf16.mxu1 %vm4988_vm2, %v24644_v32  ;;  %26533 = vst [vmem:[#allocation73_spill] sm:$0xff] %v24719_v57  ;;  %v6251_v31 = vld [vmem:[#allocation2 + $0x3e9] sm:$0xff]  ;;  %v6254_v28 = vld [vmem:[#allocation2 + $0x411] sm:$0xff] }
 0x3c0   :  { %26534 = vst [vmem:[#allocation74_spill] sm:$0xff] %v24721_v21  ;;  %v6253_v56 = vld [vmem:[#allocation2 + $0x409] sm:$0xff] }
 0x3c6   :  { %18777 = vmatmul.mubr.msk.bf16.gmra.mrb[76].mxu1 %vm4988_vm2, %v24650_v30 }
 0x3c7   :  { %18780 = vmatprep.mubr.msk.bf16.mxu1 %vm4988_vm2, %v24652_v16 }
 0x3ce   :  { %18781 = vmatmul.mubr.msk.bf16.gmra.mrb[80].mxu1 %vm4988_vm2, %v24658_v63 }
 0x3cf   :  { %18784 = vmatprep.mubr.msk.bf16.mxu1 %vm4988_vm2, %v24660_v11 }
 0x3d6   :  { %18785 = vmatmul.mubr.msk.bf16.gmra.mrb[84].mxu1 %vm4988_vm2, %v24666_v46 }
 0x3d7   :  { %18788 = vmatprep.mubr.msk.bf16.mxu1 %vm4988_vm2, %v24668_v10 }
 0x3de   :  { %18789 = vmatmul.mubr.msk.bf16.gmra.mrb[88].mxu1 %vm4988_vm2, %v24674_v8 }
 0x3df   :  { %18792 = vmatprep.mubr.msk.bf16.mxu1 %vm4988_vm2, %v24676_v0 }
 0x3e6   :  { %18793 = vmatmul.mubr.msk.bf16.gmra.mrb[92].mxu1 %vm4988_vm2, %v24682_v52 }
 0x3e7   :  { %18796 = vmatprep.mubr.msk.bf16.mxu1 %vm4988_vm2, %v6273_v54  ;;  %v24697_v54 = vpack.c.bf16 %v6234_v20, %v6233_v60  ;;  %v6241_v60 = vld [vmem:[#allocation2 + $0x349] sm:$0xff]  ;;  %v6242_v20 = vld [vmem:[#allocation2 + $0x351] sm:$0xff] }
 0x3e8   :  { %v24713_v29 = vpack.c.bf16 %v6242_v20, %v6241_v60  ;;  %v6249_v60 = vld [vmem:[#allocation2 + $0x3c9] sm:$0xff]  ;;  %v6250_v20 = vld [vmem:[#allocation2 + $0x3d1] sm:$0xff] }
 0x3ea   :  { %26532 = vst [vmem:[#allocation72_spill] sm:$0xff] %v24713_v29 }
 0x3ee   :  { %18797 = vmatmul.mubr.msk.bf16.gmra.mrb[96].mxu1 %vm4988_vm2, %v24687_v38 }
 0x3ef   :  { %18800 = vmatprep.mubr.msk.bf16.mxu1 %vm4988_vm2, %v24689_v48 }
 0x3f6   :  { %18801 = vmatmul.mubr.msk.bf16.gmra.mrb[100].mxu1 %vm4988_vm2, %v24695_v4 }
 0x3f7   :  { %18804 = vmatprep.mubr.msk.bf16.mxu1 %vm4988_vm2, %v24697_v54 }
 0x3fe   :  { %18805 = vmatmul.mubr.msk.bf16.gmra.mrb[104].mxu1 %vm4988_vm2, %v24703_v5 }
 0x3ff   :  { %18808 = vmatprep.mubr.msk.bf16.mxu1 %vm4988_vm2, %v24705_v2 }
 0x406   :  { %18809 = vmatmul.mubr.msk.bf16.gmra.mrb[108].mxu1 %vm4988_vm2, %v24711_v41  ;;  %v24727_v41 = vpack.c.bf16 %v6248_v43, %v6247_v25  ;;  %v6255_v25 = vld [vmem:[#allocation2 + $0x429] sm:$0xff]  ;;  %v6256_v43 = vld [vmem:[#allocation2 + $0x431] sm:$0xff] }
 0x407   :  { %18812 = vmatprep.mubr.msk.bf16.mxu1 %vm4988_vm2, %v24713_v29  ;;  %v24729_v29 = vpack.c.bf16 %v6250_v20, %v6249_v60  ;;  %v24743_v60 = vpack.c.bf16 %v6256_v43, %v6255_v25  ;;  %v21407_v20 = vld [vmem:[%s26322_s3 + $0x48] sm:$0xff]   ;;  %v7336_v43 = vld [vmem:[#allocation2 + $0x150] sm:$0xff] }
 0x40e   :  { %18813 = vmatmul.mubr.msk.bf16.gmra.mrb[112].mxu1 %vm4988_vm2, %v24719_v57  ;;  %v24735_v57 = vpack.c.bf16 %v6252_v23, %v6251_v31  ;;  %v21408_v31 = vld [vmem:[%s26322_s3 + $0x50] sm:$0xff]  }
 0x40f   :  { %18816 = vmatprep.mubr.msk.bf16.mxu1 %vm4988_vm2, %v24721_v21  ;;  %v24737_v21 = vpack.c.bf16 %v6254_v28, %v6253_v56  ;;  %v7331_v23 = vld [vmem:[#allocation2 + $0x108] sm:$0xff] }
 0x410   :  { %v7333_v28 = vld [vmem:[#allocation2 + $0x128] sm:$0xff] }
 0x416   :  { %18817 = vmatmul.mubr.msk.bf16.gmra.mrb[116].mxu1 %vm4988_vm2, %v24727_v41 }
 0x417   :  { %18820 = vmatprep.mubr.msk.bf16.mxu1 %vm4988_vm2, %v24729_v29 }
 0x41e   :  { %18821 = vmatmul.mubr.msk.bf16.gmra.mrb[120].mxu1 %vm4988_vm2, %v24735_v57 }
 0x41f   :  { %18824 = vmatprep.mubr.msk.bf16.mxu1 %vm4988_vm2, %v24737_v21 }
 0x426   :  { %18825 = vmatmul.mubr.msk.bf16.gmra.mrb[124].mxu1 %vm4988_vm2, %v24743_v60 }
 0x427   :  { %18832 = vmatprep.mubr.msk.bf16.mxu1 %vm4988_vm2, %v24484_v55  ;;  %v6785_v55 = vld [vmem:[#allocation2 + $0x207] sm:$0xff] }
 0x42e   :  { %18833 = vmatmul.mubr.msk.bf16.vlgmr.msra.gmra.mrb[64].mxu1 %vm4988_vm2, %v24489_v18 }
 0x42f   :  { %18836 = vmatprep.mubr.msk.bf16.mxu1 %vm4988_vm2, %v24501_v37  ;;  %18897 = vmatpush3.bf16.msra.mxu1 %v24631_v49  ;;  %v7334_v49 = vld [vmem:[#allocation2 + $0x130] sm:$0xff] }
 0x430   :  { %18898 = vmatprep.subr.bf16.mxu1 %v21407_v20  ;;  %v24858_v25 = vpack.c.bf16 %v7334_v49, %v7333_v28  ;;  %v7352_v49 = vld [vmem:[#allocation2 + $0x290] sm:$0xff]  ;;  %v7351_v28 = vld [vmem:[#allocation2 + $0x288] sm:$0xff] }
 0x433   :  { %18899 = vmatpush3.bf16.msra.mxu1 %v21407_v20  ;;  %v7338_v20 = vld [vmem:[#allocation2 + $0x170] sm:$0xff] }
 0x434   :  { %18964 = vmatprep.subr.bf16.mxu1 %v21408_v31 }
 0x436   :  { %18837 = vmatmul.mubr.msk.bf16.gmra.mrb[68].mxu1 %vm4988_vm2, %v24504_v51  ;;  %v24837_v51 = vld [vmem:[%s26322_s3 + $0x60] sm:$0xff]  }
 0x437   :  { %18840 = vmatprep.mubr.msk.bf16.mxu1 %vm4988_vm2, %v24510_v61  ;;  %v7324_v61 = vld [vmem:[#allocation2 + $0x90] sm:$0xff] }
 0x43e   :  { %18841 = vmatmul.mubr.msk.bf16.gmra.mrb[72].mxu1 %vm4988_vm2, %v24512_v14  ;;  %v7326_v14 = vld [vmem:[#allocation2 + $0xb0] sm:$0xff] }
 0x43f   :  { %18844 = vmatprep.mubr.msk.bf16.mxu1 %vm4988_vm2, %v24518_v45  ;;  %v7323_v45 = vld [vmem:[#allocation2 + $0x88] sm:$0xff] }
 0x446   :  { %18845 = vmatmul.mubr.msk.bf16.gmra.mrb[76].mxu1 %vm4988_vm2, %v24520_v26  ;;  %v6786_v26 = vld [vmem:[#allocation2 + $0x20f] sm:$0xff] }
 0x447   :  { %18848 = vmatprep.mubr.msk.bf16.mxu1 %vm4988_vm2, %v24526_v22  ;;  %v24784_v18 = vpack.c.bf16 %v6786_v26, %v6785_v55  ;;  %v24839_v22 = vpack.c.bf16 %v7324_v61, %v7323_v45  ;;  %v7337_v55 = vld [vmem:[#allocation2 + $0x168] sm:$0xff] }
 0x44e   :  { %18849 = vmatmul.mubr.msk.bf16.gmra.mrb[80].mxu1 %vm4988_vm2, %v24528_v62 }
 0x44f   :  { %18852 = vmatprep.mubr.msk.bf16.mxu1 %vm4988_vm2, %v24534_v3  ;;  %v7325_v3 = vld [vmem:[#allocation2 + $0xa8] sm:$0xff] }
 0x456   :  { %18853 = vmatmul.mubr.msk.bf16.gmra.mrb[84].mxu1 %vm4988_vm2, %v24536_v44  ;;  %v7319_v44 = vld [vmem:[#allocation2 + $0x48] sm:$0xff] }
 0x457   :  { %18856 = vmatprep.mubr.msk.bf16.mxu1 %vm4988_vm2, %v24542_v12  ;;  %v24842_v12 = vpack.c.bf16 %v7326_v14, %v7325_v3  ;;  %v7345_v14 = vld [vmem:[#allocation2 + $0x1e8] sm:$0xff]  ;;  %v7348_v3 = vld [vmem:[#allocation2 + $0x210] sm:$0xff] }
 0x45e   :  { %18857 = vmatmul.mubr.msk.bf16.gmra.mrb[88].mxu1 %vm4988_vm2, %v24544_v58  ;;  %v7322_v58 = vld [vmem:[#allocation2 + $0x70] sm:$0xff] }
 0x45f   :  { %18860 = vmatprep.mubr.msk.bf16.mxu1 %vm4988_vm2, %v24550_v1 }
 0x466   :  { %18861 = vmatmul.mubr.msk.bf16.gmra.mrb[92].mxu1 %vm4988_vm2, %v24784_v18 }
 0x467   :  { %18864 = vmatprep.mubr.msk.bf16.mxu1 %vm4988_vm2, %v24555_v17  ;;  %v7328_v17 = vld [vmem:[#allocation2 + $0xd0] sm:$0xff] }
 0x46e   :  { %18865 = vmatmul.mubr.msk.bf16.gmra.mrb[96].mxu1 %vm4988_vm2, %v24557_v15 }
 0x46f   :  { %18868 = vmatprep.mubr.msk.bf16.mxu1 %vm4988_vm2, %v24563_v59  ;;  %v7330_v59 = vld [vmem:[#allocation2 + $0xf0] sm:$0xff] }
 0x476   :  { %18869 = vmatmul.mubr.msk.bf16.gmra.mrb[100].mxu1 %vm4988_vm2, %v24565_v19  ;;  %v6818_v19 = vld [vmem:[#allocation2 + $0x44f] sm:$0xff] }
 0x477   :  { %18872 = vmatprep.mubr.msk.bf16.mxu1 %vm4988_vm2, %v24571_v34  ;;  %v7327_v34 = vld [vmem:[#allocation2 + $0xc8] sm:$0xff] }
 0x47e   :  { %18873 = vmatmul.mubr.msk.bf16.gmra.mrb[104].mxu1 %vm4988_vm2, %v24573_v13  ;;  %v6817_v13 = vld [vmem:[#allocation2 + $0x447] sm:$0xff] }
 0x47f   :  { %18876 = vmatprep.mubr.msk.bf16.mxu1 %vm4988_vm2, %v24579_v33  ;;  %v24818_v15 = vpack.c.bf16 %v6818_v19, %v6817_v13  ;;  %v24848_v33 = vpack.c.bf16 %v7328_v17, %v7327_v34  ;;  %v24866_v19 = vpack.c.bf16 %v7338_v20, %v7337_v55  ;;  %v7342_v13 = vld [vmem:[#allocation2 + $0x1b0] sm:$0xff]  ;;  %v7353_v20 = vld [vmem:[#allocation2 + $0x2a8] sm:$0xff] }
 0x480   :  { %v7350_v17 = vld [vmem:[#allocation2 + $0x270] sm:$0xff] }
 0x481   :  { %v7356_v55 = vld [vmem:[#allocation2 + $0x2d0] sm:$0xff] }
 0x486   :  { %18877 = vmatmul.mubr.msk.bf16.gmra.mrb[108].mxu1 %vm4988_vm2, %v24581_v36  ;;  %v7318_v36 = vld [vmem:[#allocation2 + $0x30] sm:$0xff] }
 0x487   :  { %18880 = vmatprep.mubr.msk.bf16.mxu1 %vm4988_vm2, %v24587_v9  ;;  %v7329_v9 = vld [vmem:[#allocation2 + $0xe8] sm:$0xff] }
 0x48e   :  { %18881 = vmatmul.mubr.msk.bf16.gmra.mrb[112].mxu1 %vm4988_vm2, %v24589_v6  ;;  %v7317_v6 = vld [vmem:[#allocation2 + $0x28] sm:$0xff] }
 0x48f   :  { %18884 = vmatprep.mubr.msk.bf16.mxu1 %vm4988_vm2, %v24595_v39  ;;  %v7381_v1 = vpack.c.bf16 %v7318_v36, %v7317_v6  ;;  %v24850_v39 = vpack.c.bf16 %v7330_v59, %v7329_v9  ;;  %v7340_v36 = vld [vmem:[#allocation2 + $0x190] sm:$0xff]  ;;  %v7339_v6 = vld [vmem:[#allocation2 + $0x188] sm:$0xff] }
 0x490   :  { %v7347_v59 = vld [vmem:[#allocation2 + $0x208] sm:$0xff] }
 0x491   :  { %v24888_v34 = vpack.c.bf16 %v7348_v3, %v7347_v59  ;;  %v7349_v9 = vld [vmem:[#allocation2 + $0x268] sm:$0xff] }
 0x496   :  { %18885 = vmatmul.mubr.msk.bf16.gmra.mrb[116].mxu1 %vm4988_vm2, %v24597_v24  ;;  %v7320_v24 = vld [vmem:[#allocation2 + $0x50] sm:$0xff] }
 0x497   :  { %18888 = vmatprep.mubr.msk.bf16.mxu1 %vm4988_vm2, %v24603_v42  ;;  %v24823_v62 = vpack.c.bf16 %v7320_v24, %v7319_v44  ;;  %v7332_v42 = vld [vmem:[#allocation2 + $0x110] sm:$0xff]  ;;  %v7341_v24 = vld [vmem:[#allocation2 + $0x1a8] sm:$0xff] }
 0x498   :  { %v24856_v56 = vpack.c.bf16 %v7332_v42, %v7331_v23  ;;  %v7344_v44 = vld [vmem:[#allocation2 + $0x1d0] sm:$0xff]  ;;  %v7397_v42 = vpack.c.bf16 %v7350_v17, %v7349_v9  ;;  %v7361_v17 = vld [vmem:[#allocation2 + $0x328] sm:$0xff] }
 0x499   :  { %v7354_v23 = vld [vmem:[#allocation2 + $0x2b0] sm:$0xff] }
 0x49a   :  { %v7364_v9 = vld [vmem:[#allocation2 + $0x350] sm:$0xff] }
 0x49e   :  { %18889 = vmatmul.mubr.msk.bf16.gmra.mrb[120].mxu1 %vm4988_vm2, %v24605_v53  ;;  %v7321_v53 = vld [vmem:[#allocation2 + $0x68] sm:$0xff] }
 0x49f   :  { %18892 = vmatprep.mubr.msk.bf16.mxu1 %vm4988_vm2, %v24611_v47  ;;  %v21409_v47 = vld [vmem:[%s26322_s3 + $0x58] sm:$0xff]   ;;  %v24828_v37 = vpack.c.bf16 %v7322_v58, %v7321_v53  ;;  %v24874_v58 = vpack.c.bf16 %v7342_v13, %v7341_v24  ;;  %v7355_v13 = vld [vmem:[#allocation2 + $0x2c8] sm:$0xff] }
 0x4a0   :  { %v7346_v53 = vld [vmem:[#allocation2 + $0x1f0] sm:$0xff]  ;;  %v7357_v24 = vld [vmem:[#allocation2 + $0x2e8] sm:$0xff] }
 0x4a1   :  { %v24882_v45 = vpack.c.bf16 %v7346_v53, %v7345_v14  ;;  %v7360_v53 = vld [vmem:[#allocation2 + $0x310] sm:$0xff]  ;;  %v7359_v14 = vld [vmem:[#allocation2 + $0x308] sm:$0xff] }
 0x4a2   :  { %v24909_v3 = vpack.c.bf16 %v7360_v53, %v7359_v14  ;;  %v7369_v53 = vld [vmem:[#allocation2 + $0x3a8] sm:$0xff]  ;;  %v7372_v14 = vld [vmem:[#allocation2 + $0x3d0] sm:$0xff] }
 0x4a6   :  { %18893 = vmatmul.mubr.msk.bf16.gmra.mrb[124].mxu1 %vm4988_vm2, %v24818_v15 }
 0x4a7   :  { %18900 = vmatprep.mubr.msk.bf16.mxu1 %vm4988_vm2, %v7381_v1  ;;  %v24872_v1 = vpack.c.bf16 %v7340_v36, %v7339_v6  ;;  %v7358_v36 = vld [vmem:[#allocation2 + $0x2f0] sm:$0xff]  ;;  %v24901_v6 = vpack.c.bf16 %v7356_v55, %v7355_v13  ;;  %v7367_v13 = vld [vmem:[#allocation2 + $0x388] sm:$0xff] }
 0x4a8   :  { %v7368_v55 = vld [vmem:[#allocation2 + $0x390] sm:$0xff] }
 0x4ae   :  { %18901 = vmatmul.mubr.msk.bf16.vlgmr.msra.gmra.mrb[64].mxu1 %vm4988_vm2, %v24823_v62 }
 0x4af   :  { %18904 = vmatprep.mubr.msk.bf16.mxu1 %vm4988_vm2, %v24828_v37  ;;  %18965 = vmatpush3.bf16.msra.mxu1 %v21408_v31  ;;  %v7335_v31 = vld [vmem:[#allocation2 + $0x148] sm:$0xff] }
 0x4b0   :  { %18966 = vmatprep.subr.bf16.mxu1 %v21409_v47  ;;  %v24864_v26 = vpack.c.bf16 %v7336_v43, %v7335_v31  ;;  %v24893_v43 = vpack.c.bf16 %v7352_v49, %v7351_v28  ;;  %v24895_v31 = vpack.c.bf16 %v7354_v23, %v7353_v20  ;;  %v7363_v49 = vld [vmem:[#allocation2 + $0x348] sm:$0xff] }
 0x4b1   :  { %v24917_v23 = vpack.c.bf16 %v7364_v9, %v7363_v49  ;;  %v7365_v28 = vld [vmem:[#allocation2 + $0x368] sm:$0xff] }
 0x4b2   :  { %v7371_v9 = vld [vmem:[#allocation2 + $0x3c8] sm:$0xff] }
 0x4b3   :  { %18967 = vmatpush3.bf16.msra.mxu1 %v21409_v47  ;;  %v7343_v47 = vld [vmem:[#allocation2 + $0x1c8] sm:$0xff] }
 0x4b4   :  { %19032 = vmatprep.subr.bf16.mxu1 %v24837_v51  ;;  %v24880_v61 = vpack.c.bf16 %v7344_v44, %v7343_v47  ;;  %v24903_v44 = vpack.c.bf16 %v7358_v36, %v7357_v24  ;;  %v7362_v47 = vld [vmem:[#allocation2 + $0x330] sm:$0xff]  ;;  %v24925_v24 = vpack.c.bf16 %v7368_v55, %v7367_v13  ;;  %v7373_v49 = vld [vmem:[#allocation2 + $0x3e8] sm:$0xff] }
 0x4b5   :  { %v24911_v59 = vpack.c.bf16 %v7362_v47, %v7361_v17  ;;  %v7370_v36 = vld [vmem:[#allocation2 + $0x3b0] sm:$0xff]  ;;  %v7375_v13 = vld [vmem:[#allocation2 + $0x408] sm:$0xff] }
 0x4b6   :  { %18905 = vmatmul.mubr.msk.bf16.gmra.mrb[68].mxu1 %vm4988_vm2, %v24839_v22  ;;  %26535 = vst [vmem:[#allocation75_spill] sm:$0xff] %v24925_v24  ;;  %v24927_v47 = vpack.c.bf16 %v7370_v36, %v7369_v53  ;;  %v7374_v17 = vld [vmem:[#allocation2 + $0x3f0] sm:$0xff] }
 0x4b7   :  { %18908 = vmatprep.mubr.msk.bf16.mxu1 %vm4988_vm2, %v24842_v12  ;;  %v7376_v55 = vld [vmem:[#allocation2 + $0x410] sm:$0xff] }
 0x4b8   :  { %26536 = vst [vmem:[#allocation76_spill] sm:$0xff] %v24927_v47  ;;  %v7378_v36 = vld [vmem:[#allocation2 + $0x430] sm:$0xff]  ;;  %v24941_v53 = vpack.c.bf16 %v7376_v55, %v7375_v13  ;;  %v8452_v13 = vld [vmem:[#allocation2 + $0xe7] sm:$0xff] }
 0x4b9   :  { %v8453_v55 = vld [vmem:[#allocation2 + $0xef] sm:$0xff] }
 0x4be   :  { %18909 = vmatmul.mubr.msk.bf16.gmra.mrb[72].mxu1 %vm4988_vm2, %v24848_v33 }
 0x4bf   :  { %18912 = vmatprep.mubr.msk.bf16.mxu1 %vm4988_vm2, %v24850_v39 }
 0x4c6   :  { %18913 = vmatmul.mubr.msk.bf16.gmra.mrb[76].mxu1 %vm4988_vm2, %v24856_v56 }
 0x4c7   :  { %18916 = vmatprep.mubr.msk.bf16.mxu1 %vm4988_vm2, %v24858_v25 }
 0x4ce   :  { %18917 = vmatmul.mubr.msk.bf16.gmra.mrb[80].mxu1 %vm4988_vm2, %v24864_v26 }
 0x4cf   :  { %18920 = vmatprep.mubr.msk.bf16.mxu1 %vm4988_vm2, %v24866_v19 }
 0x4d6   :  { %18921 = vmatmul.mubr.msk.bf16.gmra.mrb[84].mxu1 %vm4988_vm2, %v24872_v1 }
 0x4d7   :  { %18924 = vmatprep.mubr.msk.bf16.mxu1 %vm4988_vm2, %v24874_v58 }
 0x4de   :  { %18925 = vmatmul.mubr.msk.bf16.gmra.mrb[88].mxu1 %vm4988_vm2, %v24880_v61 }
 0x4df   :  { %18928 = vmatprep.mubr.msk.bf16.mxu1 %vm4988_vm2, %v24882_v45 }
 0x4e6   :  { %18929 = vmatmul.mubr.msk.bf16.gmra.mrb[92].mxu1 %vm4988_vm2, %v24888_v34 }
 0x4e7   :  { %18932 = vmatprep.mubr.msk.bf16.mxu1 %vm4988_vm2, %v7397_v42  ;;  %v7366_v42 = vld [vmem:[#allocation2 + $0x370] sm:$0xff] }
 0x4e8   :  { %v24919_v20 = vpack.c.bf16 %v7366_v42, %v7365_v28  ;;  %v24933_v42 = vpack.c.bf16 %v7372_v14, %v7371_v9  ;;  %v24935_v28 = vpack.c.bf16 %v7374_v17, %v7373_v49  ;;  %v7380_v14 = vld [vmem:[#allocation2 + $0x450] sm:$0xff]  ;;  %v7379_v17 = vld [vmem:[#allocation2 + $0x448] sm:$0xff] }
 0x4e9   :  { %v24949_v9 = vpack.c.bf16 %v7380_v14, %v7379_v17  ;;  %v21412_v49 = vld [vmem:[%s26322_s3 + $0x70] sm:$0xff]   ;;  %v8511_v14 = vpack.c.bf16 %v8453_v55, %v8452_v13 }
 0x4ea   :  { %v8454_v17 = vld [vmem:[#allocation2 + $0x107] sm:$0xff]  ;;  %v8477_v13 = vld [vmem:[#allocation2 + $0x2af] sm:$0xff] }
 0x4eb   :  { %v8474_v55 = vld [vmem:[#allocation2 + $0x287] sm:$0xff] }
 0x4ee   :  { %18933 = vmatmul.mubr.msk.bf16.gmra.mrb[96].mxu1 %vm4988_vm2, %v24893_v43 }
 0x4ef   :  { %18936 = vmatprep.mubr.msk.bf16.mxu1 %vm4988_vm2, %v24895_v31 }
 0x4f6   :  { %18937 = vmatmul.mubr.msk.bf16.gmra.mrb[100].mxu1 %vm4988_vm2, %v24901_v6 }
 0x4f7   :  { %18940 = vmatprep.mubr.msk.bf16.mxu1 %vm4988_vm2, %v24903_v44 }
 0x4fe   :  { %18941 = vmatmul.mubr.msk.bf16.gmra.mrb[104].mxu1 %vm4988_vm2, %v24909_v3 }
 0x4ff   :  { %18944 = vmatprep.mubr.msk.bf16.mxu1 %vm4988_vm2, %v24911_v59 }
 0x506   :  { %18945 = vmatmul.mubr.msk.bf16.gmra.mrb[108].mxu1 %vm4988_vm2, %v24917_v23 }
 0x507   :  { %18948 = vmatprep.mubr.msk.bf16.mxu1 %vm4988_vm2, %v24919_v20 }
 0x50e   :  { %18949 = vmatmul.mubr.msk.bf16.gmra.mrb[112].mxu1 %vm4988_vm2, %v24925_v24 }
 0x50f   :  { %18952 = vmatprep.mubr.msk.bf16.mxu1 %vm4988_vm2, %v24927_v47  ;;  %v7377_v47 = vld [vmem:[#allocation2 + $0x428] sm:$0xff] }
 0x510   :  { %v24943_v24 = vpack.c.bf16 %v7378_v36, %v7377_v47  ;;  %v21411_v47 = vld [vmem:[%s26322_s3 + $0x68] sm:$0xff]   ;;  %v8455_v36 = vld [vmem:[#allocation2 + $0x10f] sm:$0xff] }
 0x516   :  { %18953 = vmatmul.mubr.msk.bf16.gmra.mrb[116].mxu1 %vm4988_vm2, %v24933_v42 }
 0x517   :  { %18956 = vmatprep.mubr.msk.bf16.mxu1 %vm4988_vm2, %v24935_v28 }
 0x51e   :  { %18957 = vmatmul.mubr.msk.bf16.gmra.mrb[120].mxu1 %vm4988_vm2, %v24941_v53 }
 0x51f   :  { %18960 = vmatprep.mubr.msk.bf16.mxu1 %vm4988_vm2, %v24943_v24 }
 0x526   :  { %18961 = vmatmul.mubr.msk.bf16.gmra.mrb[124].mxu1 %vm4988_vm2, %v24949_v9 }
 0x527   :  { %18968 = vmatprep.mubr.msk.bf16.mxu1 %vm4988_vm2, %v24616_v27  ;;  %v25037_v27 = vld [vmem:[%s26322_s3 + $0x80] sm:$0xff]  }
 0x52e   :  { %18969 = vmatmul.mubr.msk.bf16.vlgmr.msra.gmra.mrb[64].mxu1 %vm4988_vm2, %v24621_v35 }
 0x52f   :  { %18972 = vmatprep.mubr.msk.bf16.mxu1 %vm4988_vm2, %v24633_v7  ;;  %19033 = vmatpush3.bf16.msra.mxu1 %v24837_v51  ;;  %v8449_v7 = vld [vmem:[#allocation2 + $0xaf] sm:$0xff] }
 0x530   :  { %19034 = vmatprep.subr.bf16.mxu1 %v21411_v47 }
 0x533   :  { %19035 = vmatpush3.bf16.msra.mxu1 %v21411_v47  ;;  %v8512_v47 = vpack.c.bf16 %v8455_v36, %v8454_v17  ;;  %v8476_v17 = vld [vmem:[#allocation2 + $0x2a7] sm:$0xff] }
 0x534   :  { %19100 = vmatprep.subr.bf16.mxu1 %v21412_v49 }
 0x536   :  { %18973 = vmatmul.mubr.msk.bf16.gmra.mrb[68].mxu1 %vm4988_vm2, %v24636_v40  ;;  %v8451_v40 = vld [vmem:[#allocation2 + $0xcf] sm:$0xff] }
 0x537   :  { %18976 = vmatprep.mubr.msk.bf16.mxu1 %vm4988_vm2, %v24642_v50  ;;  %v21413_v50 = vld [vmem:[%s26322_s3 + $0x78] sm:$0xff]  }
 0x53e   :  { %18977 = vmatmul.mubr.msk.bf16.gmra.mrb[72].mxu1 %vm4988_vm2, %v24644_v32 }
 0x53f   :  { %18980 = vmatprep.mubr.msk.bf16.mxu1 %vm4988_vm2, %v24650_v30  ;;  %v8448_v30 = vld [vmem:[#allocation2 + $0xa7] sm:$0xff] }
 0x546   :  { %18981 = vmatmul.mubr.msk.bf16.gmra.mrb[76].mxu1 %vm4988_vm2, %v24652_v16  ;;  %v7909_v16 = vld [vmem:[#allocation2 + $0x209] sm:$0xff] }
 0x547   :  { %18984 = vmatprep.mubr.msk.bf16.mxu1 %vm4988_vm2, %v24658_v63  ;;  %v7910_v63 = vld [vmem:[#allocation2 + $0x211] sm:$0xff] }
 0x548   :  { %v24990_v32 = vpack.c.bf16 %v7910_v63, %v7909_v16  ;;  %v8459_v16 = vld [vmem:[#allocation2 + $0x14f] sm:$0xff]  ;;  %v8456_v63 = vld [vmem:[#allocation2 + $0x127] sm:$0xff] }
 0x54e   :  { %18985 = vmatmul.mubr.msk.bf16.gmra.mrb[80].mxu1 %vm4988_vm2, %v24660_v11 }
 0x54f   :  { %18988 = vmatprep.mubr.msk.bf16.mxu1 %vm4988_vm2, %v24666_v46 }
 0x556   :  { %18989 = vmatmul.mubr.msk.bf16.gmra.mrb[84].mxu1 %vm4988_vm2, %v24668_v10  ;;  %v8442_v10 = vld [vmem:[#allocation2 + $0x47] sm:$0xff] }
 0x557   :  { %18992 = vmatprep.mubr.msk.bf16.mxu1 %vm4988_vm2, %v24674_v8 }
 0x55e   :  { %18993 = vmatmul.mubr.msk.bf16.gmra.mrb[88].mxu1 %vm4988_vm2, %v24676_v0  ;;  %v26538_v0 = vld [vmem:[#allocation72_spill] sm:$0xff] }
 0x55f   :  { %18996 = vmatprep.mubr.msk.bf16.mxu1 %vm4988_vm2, %v24682_v52  ;;  %v26537_v52 = vld [vmem:[#allocation71_spill] sm:$0xff] }
 0x566   :  { %18997 = vmatmul.mubr.msk.bf16.gmra.mrb[92].mxu1 %vm4988_vm2, %v24990_v32 }
 0x567   :  { %19000 = vmatprep.mubr.msk.bf16.mxu1 %vm4988_vm2, %v24687_v38  ;;  %v26539_v38 = vld [vmem:[#allocation73_spill] sm:$0xff] }
 0x56e   :  { %19001 = vmatmul.mubr.msk.bf16.gmra.mrb[96].mxu1 %vm4988_vm2, %v24689_v48  ;;  %v26540_v48 = vld [vmem:[#allocation74_spill] sm:$0xff] }
 0x56f   :  { %19004 = vmatprep.mubr.msk.bf16.mxu1 %vm4988_vm2, %v24695_v4  ;;  %v8443_v4 = vld [vmem:[#allocation2 + $0x4f] sm:$0xff] }
 0x570   :  { %v8506_v46 = vpack.c.bf16 %v8443_v4, %v8442_v10  ;;  %v8462_v10 = vld [vmem:[#allocation2 + $0x187] sm:$0xff] }
 0x576   :  { %19005 = vmatmul.mubr.msk.bf16.gmra.mrb[100].mxu1 %vm4988_vm2, %v24697_v54  ;;  %v8509_v54 = vpack.c.bf16 %v8449_v7, %v8448_v30  ;;  %v8468_v7 = vld [vmem:[#allocation2 + $0x1e7] sm:$0xff] }
 0x577   :  { %19008 = vmatprep.mubr.msk.bf16.mxu1 %vm4988_vm2, %v24703_v5  ;;  %v7942_v5 = vld [vmem:[#allocation2 + $0x451] sm:$0xff]  ;;  %v8472_v30 = vld [vmem:[#allocation2 + $0x227] sm:$0xff] }
 0x57e   :  { %19009 = vmatmul.mubr.msk.bf16.gmra.mrb[104].mxu1 %vm4988_vm2, %v24705_v2  ;;  %v7941_v2 = vld [vmem:[#allocation2 + $0x449] sm:$0xff] }
 0x57f   :  { %19012 = vmatprep.mubr.msk.bf16.mxu1 %vm4988_vm2, %v26537_v52  ;;  %v25024_v8 = vpack.c.bf16 %v7942_v5, %v7941_v2  ;;  %v8463_v2 = vld [vmem:[#allocation2 + $0x18f] sm:$0xff]  ;;  %v8460_v5 = vld [vmem:[#allocation2 + $0x167] sm:$0xff] }
 0x586   :  { %19013 = vmatmul.mubr.msk.bf16.gmra.mrb[108].mxu1 %vm4988_vm2, %v26538_v0  ;;  %v8458_v0 = vld [vmem:[#allocation2 + $0x147] sm:$0xff] }
 0x587   :  { %19016 = vmatprep.mubr.msk.bf16.mxu1 %vm4988_vm2, %v26539_v38  ;;  %v8514_v38 = vpack.c.bf16 %v8459_v16, %v8458_v0 }
 0x58e   :  { %19017 = vmatmul.mubr.msk.bf16.gmra.mrb[112].mxu1 %vm4988_vm2, %v26540_v48  ;;  %v8461_v48 = vld [vmem:[#allocation2 + $0x16f] sm:$0xff] }
 0x58f   :  { %19020 = vmatprep.mubr.msk.bf16.mxu1 %vm4988_vm2, %v24727_v41  ;;  %v8444_v41 = vld [vmem:[#allocation2 + $0x67] sm:$0xff]  ;;  %v8515_v4 = vpack.c.bf16 %v8461_v48, %v8460_v5  ;;  %v8487_v5 = vld [vmem:[#allocation2 + $0x34f] sm:$0xff] }
 0x596   :  { %19021 = vmatmul.mubr.msk.bf16.gmra.mrb[116].mxu1 %vm4988_vm2, %v24729_v29  ;;  %v8445_v29 = vld [vmem:[#allocation2 + $0x6f] sm:$0xff] }
 0x597   :  { %19024 = vmatprep.mubr.msk.bf16.mxu1 %vm4988_vm2, %v24735_v57  ;;  %v8447_v57 = vld [vmem:[#allocation2 + $0x8f] sm:$0xff]  ;;  %v8507_v11 = vpack.c.bf16 %v8445_v29, %v8444_v41  ;;  %v8464_v41 = vld [vmem:[#allocation2 + $0x1a7] sm:$0xff] }
 0x598   :  { %v8465_v29 = vld [vmem:[#allocation2 + $0x1af] sm:$0xff] }
 0x59e   :  { %19025 = vmatmul.mubr.msk.bf16.gmra.mrb[120].mxu1 %vm4988_vm2, %v24737_v21  ;;  %v8446_v21 = vld [vmem:[#allocation2 + $0x87] sm:$0xff] }
 0x59f   :  { %19028 = vmatprep.mubr.msk.bf16.mxu1 %vm4988_vm2, %v24743_v60  ;;  %v8508_v35 = vpack.c.bf16 %v8447_v57, %v8446_v21  ;;  %v8450_v60 = vld [vmem:[#allocation2 + $0xc7] sm:$0xff]  ;;  %v8467_v57 = vld [vmem:[#allocation2 + $0x1cf] sm:$0xff] }
 0x5a0   :  { %v8510_v51 = vpack.c.bf16 %v8451_v40, %v8450_v60  ;;  %v8466_v21 = vld [vmem:[#allocation2 + $0x1c7] sm:$0xff] }
 0x5a6   :  { %19029 = vmatmul.mubr.msk.bf16.gmra.mrb[124].mxu1 %vm4988_vm2, %v25024_v8 }
 0x5a7   :  { %19036 = vmatprep.mubr.msk.bf16.mxu1 %vm4988_vm2, %v8506_v46  ;;  %v8516_v46 = vpack.c.bf16 %v8463_v2, %v8462_v10  ;;  %v8485_v2 = vld [vmem:[#allocation2 + $0x32f] sm:$0xff] }
 0x5ae   :  { %19037 = vmatmul.mubr.msk.bf16.vlgmr.msra.gmra.mrb[64].mxu1 %vm4988_vm2, %v8507_v11  ;;  %v8517_v11 = vpack.c.bf16 %v8465_v29, %v8464_v41  ;;  %v8491_v41 = vld [vmem:[#allocation2 + $0x38f] sm:$0xff] }
 0x5af   :  { %19040 = vmatprep.mubr.msk.bf16.mxu1 %vm4988_vm2, %v8508_v35  ;;  %19101 = vmatpush3.bf16.msra.mxu1 %v21412_v49  ;;  %v8457_v49 = vld [vmem:[#allocation2 + $0x12f] sm:$0xff] }
 0x5b0   :  { %19102 = vmatprep.subr.bf16.mxu1 %v21413_v50  ;;  %v8513_v52 = vpack.c.bf16 %v8457_v49, %v8456_v63  ;;  %v8469_v35 = vld [vmem:[#allocation2 + $0x1ef] sm:$0xff]  ;;  %v8478_v49 = vld [vmem:[#allocation2 + $0x2c7] sm:$0xff] }
 0x5b1   :  { %v8519_v40 = vpack.c.bf16 %v8469_v35, %v8468_v7  ;;  %v8483_v63 = vld [vmem:[#allocation2 + $0x30f] sm:$0xff] }
 0x5b2   :  { %v8493_v7 = vld [vmem:[#allocation2 + $0x3af] sm:$0xff] }
 0x5b3   :  { %19103 = vmatpush3.bf16.msra.mxu1 %v21413_v50  ;;  %v8518_v50 = vpack.c.bf16 %v8467_v57, %v8466_v21  ;;  %v8489_v57 = vld [vmem:[#allocation2 + $0x36f] sm:$0xff] }
 0x5b4   :  { %19168 = vmatprep.subr.bf16.mxu1 %v25037_v27 }
 0x5b6   :  { %19041 = vmatmul.mubr.msk.bf16.gmra.mrb[68].mxu1 %vm4988_vm2, %v8509_v54  ;;  %v8473_v54 = vld [vmem:[#allocation2 + $0x22f] sm:$0xff] }
 0x5b7   :  { %19044 = vmatprep.mubr.msk.bf16.mxu1 %vm4988_vm2, %v8510_v51  ;;  %v8521_v60 = vpack.c.bf16 %v8473_v54, %v8472_v30  ;;  %v8475_v51 = vld [vmem:[#allocation2 + $0x28f] sm:$0xff]  ;;  %v8492_v30 = vld [vmem:[#allocation2 + $0x3a7] sm:$0xff] }
 0x5b8   :  { %v8522_v36 = vpack.c.bf16 %v8475_v51, %v8474_v55  ;;  %v8531_v54 = vpack.c.bf16 %v8493_v7, %v8492_v30  ;;  %v8497_v55 = vld [vmem:[#allocation2 + $0x3ef] sm:$0xff] }
 0x5b9   :  { %v9588_v7 = vld [vmem:[#allocation2 + $0x1a9] sm:$0xff] }
 0x5ba   :  { %v9590_v30 = vld [vmem:[#allocation2 + $0x1c9] sm:$0xff] }
 0x5be   :  { %19045 = vmatmul.mubr.msk.bf16.gmra.mrb[72].mxu1 %vm4988_vm2, %v8511_v14  ;;  %v8479_v14 = vld [vmem:[#allocation2 + $0x2cf] sm:$0xff] }
 0x5bf   :  { %19048 = vmatprep.mubr.msk.bf16.mxu1 %vm4988_vm2, %v8512_v47  ;;  %v8523_v47 = vpack.c.bf16 %v8477_v13, %v8476_v17  ;;  %v8524_v16 = vpack.c.bf16 %v8479_v14, %v8478_v49  ;;  %v8496_v13 = vld [vmem:[#allocation2 + $0x3e7] sm:$0xff]  ;;  %v8501_v49 = vld [vmem:[#allocation2 + $0x42f] sm:$0xff] }
 0x5c0   :  { %v8533_v14 = vpack.c.bf16 %v8497_v55, %v8496_v13  ;;  %v8498_v17 = vld [vmem:[#allocation2 + $0x407] sm:$0xff] }
 0x5c1   :  { %v9592_v55 = vld [vmem:[#allocation2 + $0x1e9] sm:$0xff] }
 0x5c6   :  { %19049 = vmatmul.mubr.msk.bf16.gmra.mrb[76].mxu1 %vm4988_vm2, %v8513_v52  ;;  %v8480_v52 = vld [vmem:[#allocation2 + $0x2e7] sm:$0xff] }
 0x5c7   :  { %19052 = vmatprep.mubr.msk.bf16.mxu1 %vm4988_vm2, %v8514_v38  ;;  %v8482_v38 = vld [vmem:[#allocation2 + $0x307] sm:$0xff] }
 0x5c8   :  { %v8526_v48 = vpack.c.bf16 %v8483_v63, %v8482_v38  ;;  %v8504_v63 = vld [vmem:[#allocation2 + $0x467] sm:$0xff] }
 0x5c9   :  { %v21415_v38 = vld [vmem:[%s26322_s3 + $0x88] sm:$0xff]  }
 0x5ce   :  { %19053 = vmatmul.mubr.msk.bf16.gmra.mrb[80].mxu1 %vm4988_vm2, %v8515_v4  ;;  %v8484_v4 = vld [vmem:[#allocation2 + $0x327] sm:$0xff] }
 0x5cf   :  { %19056 = vmatprep.mubr.msk.bf16.mxu1 %vm4988_vm2, %v8516_v46  ;;  %v8527_v10 = vpack.c.bf16 %v8485_v2, %v8484_v4  ;;  %v8486_v46 = vld [vmem:[#allocation2 + $0x347] sm:$0xff] }
 0x5d0   :  { %v8528_v29 = vpack.c.bf16 %v8487_v5, %v8486_v46  ;;  %v9580_v2 = vld [vmem:[#allocation2 + $0x129] sm:$0xff]  ;;  %v9581_v5 = vld [vmem:[#allocation2 + $0x131] sm:$0xff] }
 0x5d1   :  { %v9582_v4 = vld [vmem:[#allocation2 + $0x149] sm:$0xff]  ;;  %v9637_v46 = vpack.c.bf16 %v9581_v5, %v9580_v2 }
 0x5d2   :  { %v10572_v2 = vld [vmem:[#allocation3 + $0x8] sm:$0xff]  ;;  %v10573_v5 = vld [vmem:[#allocation3 + $0x10] sm:$0xff] }
 0x5d6   :  { %19057 = vmatmul.mubr.msk.bf16.gmra.mrb[84].mxu1 %vm4988_vm2, %v8517_v11  ;;  %v8488_v11 = vld [vmem:[#allocation2 + $0x367] sm:$0xff] }
 0x5d7   :  { %19060 = vmatprep.mubr.msk.bf16.mxu1 %vm4988_vm2, %v8518_v50  ;;  %v8529_v21 = vpack.c.bf16 %v8489_v57, %v8488_v11  ;;  %v8490_v50 = vld [vmem:[#allocation2 + $0x387] sm:$0xff] }
 0x5d8   :  { %v8530_v35 = vpack.c.bf16 %v8491_v41, %v8490_v50  ;;  %v9584_v57 = vld [vmem:[#allocation2 + $0x169] sm:$0xff]  ;;  %v9585_v41 = vld [vmem:[#allocation2 + $0x171] sm:$0xff] }
 0x5d9   :  { %v9586_v11 = vld [vmem:[#allocation2 + $0x189] sm:$0xff]  ;;  %v9639_v50 = vpack.c.bf16 %v9585_v41, %v9584_v57 }
 0x5da   :  { %v9628_v41 = vld [vmem:[#allocation2 + $0x469] sm:$0xff] }
 0x5de   :  { %19061 = vmatmul.mubr.msk.bf16.gmra.mrb[88].mxu1 %vm4988_vm2, %v8519_v40  ;;  %v8495_v40 = vld [vmem:[#allocation2 + $0x3cf] sm:$0xff] }
 0x5df   :  { %19064 = vmatprep.mubr.msk.bf16.mxu1 %vm4988_vm2, %v24784_v18  ;;  %v8481_v18 = vld [vmem:[#allocation2 + $0x2ef] sm:$0xff] }
 0x5e0   :  { %v8525_v0 = vpack.c.bf16 %v8481_v18, %v8480_v52  ;;  %v8505_v52 = vld [vmem:[#allocation2 + $0x46f] sm:$0xff] }
 0x5e6   :  { %19065 = vmatmul.mubr.msk.bf16.gmra.mrb[92].mxu1 %vm4988_vm2, %v8521_v60  ;;  %v8494_v60 = vld [vmem:[#allocation2 + $0x3c7] sm:$0xff] }
 0x5e7   :  { %19068 = vmatprep.mubr.msk.bf16.mxu1 %vm4988_vm2, %v8522_v36  ;;  %v8532_v51 = vpack.c.bf16 %v8495_v40, %v8494_v60  ;;  %v8499_v36 = vld [vmem:[#allocation2 + $0x40f] sm:$0xff] }
 0x5e8   :  { %v9589_v40 = vld [vmem:[#allocation2 + $0x1b1] sm:$0xff] }
 0x5e9   :  { %v9641_v60 = vpack.c.bf16 %v9589_v40, %v9588_v7 }
 0x5ee   :  { %19069 = vmatmul.mubr.msk.bf16.gmra.mrb[96].mxu1 %vm4988_vm2, %v8523_v47  ;;  %v8534_v47 = vpack.c.bf16 %v8499_v36, %v8498_v17  ;;  %v9593_v36 = vld [vmem:[#allocation2 + $0x1f1] sm:$0xff] }
 0x5ef   :  { %19072 = vmatprep.mubr.msk.bf16.mxu1 %vm4988_vm2, %v8524_v16  ;;  %v8500_v16 = vld [vmem:[#allocation2 + $0x427] sm:$0xff]  ;;  %v9643_v13 = vpack.c.bf16 %v9593_v36, %v9592_v55  ;;  %v9597_v17 = vld [vmem:[#allocation2 + $0x231] sm:$0xff] }
 0x5f0   :  { %v8535_v18 = vpack.c.bf16 %v8501_v49, %v8500_v16  ;;  %v9598_v49 = vld [vmem:[#allocation2 + $0x289] sm:$0xff]  ;;  %v9599_v16 = vld [vmem:[#allocation2 + $0x291] sm:$0xff] }
 0x5f6   :  { %19073 = vmatmul.mubr.msk.bf16.gmra.mrb[100].mxu1 %vm4988_vm2, %v8525_v0  ;;  %v8537_v0 = vpack.c.bf16 %v8505_v52, %v8504_v63  ;;  %v9600_v63 = vld [vmem:[#allocation2 + $0x2a9] sm:$0xff]  ;;  %v9601_v52 = vld [vmem:[#allocation2 + $0x2b1] sm:$0xff] }
 0x5f7   :  { %19076 = vmatprep.mubr.msk.bf16.mxu1 %vm4988_vm2, %v8526_v48 }
 0x5fe   :  { %19077 = vmatmul.mubr.msk.bf16.gmra.mrb[104].mxu1 %vm4988_vm2, %v8527_v10  ;;  %v9583_v10 = vld [vmem:[#allocation2 + $0x151] sm:$0xff] }
 0x5ff   :  { %19080 = vmatprep.mubr.msk.bf16.mxu1 %vm4988_vm2, %v8528_v29  ;;  %v9638_v29 = vpack.c.bf16 %v9583_v10, %v9582_v4  ;;  %v10636_v4 = vpack.c.bf16 %v10573_v5, %v10572_v2  ;;  %v21418_v10 = vld [vmem:[%s26324_s5] sm:$0xff]  }
 0x601   :  { %19240 = vmatprep.mubr.msk.bf16.mxu0 %vm4988_vm2, %v10636_v4 }
 0x606   :  { %19081 = vmatmul.mubr.msk.bf16.gmra.mrb[108].mxu1 %vm4988_vm2, %v8529_v21  ;;  %v9587_v21 = vld [vmem:[#allocation2 + $0x191] sm:$0xff] }
 0x607   :  { %19084 = vmatprep.mubr.msk.bf16.mxu1 %vm4988_vm2, %v8530_v35  ;;  %v9640_v35 = vpack.c.bf16 %v9587_v21, %v9586_v11  ;;  %v9629_v11 = vld [vmem:[#allocation2 + $0x471] sm:$0xff] }
 0x608   :  { %v9661_v21 = vpack.c.bf16 %v9629_v11, %v9628_v41 }
 0x60e   :  { %19085 = vmatmul.mubr.msk.bf16.gmra.mrb[112].mxu1 %vm4988_vm2, %v8531_v54  ;;  %v9591_v54 = vld [vmem:[#allocation2 + $0x1d1] sm:$0xff] }
 0x60f   :  { %19088 = vmatprep.mubr.msk.bf16.mxu1 %vm4988_vm2, %v8532_v51  ;;  %v9642_v51 = vpack.c.bf16 %v9591_v54, %v9590_v30 }
 0x616   :  { %19089 = vmatmul.mubr.msk.bf16.gmra.mrb[116].mxu1 %vm4988_vm2, %v8533_v14  ;;  %v9596_v14 = vld [vmem:[#allocation2 + $0x229] sm:$0xff] }
 0x617   :  { %19092 = vmatprep.mubr.msk.bf16.mxu1 %vm4988_vm2, %v8534_v47  ;;  %v9645_v47 = vpack.c.bf16 %v9597_v17, %v9596_v14 }
 0x61e   :  { %19093 = vmatmul.mubr.msk.bf16.gmra.mrb[120].mxu1 %vm4988_vm2, %v8535_v18  ;;  %v9646_v18 = vpack.c.bf16 %v9599_v16, %v9598_v49 }
 0x61f   :  { %19096 = vmatprep.mubr.msk.bf16.mxu1 %vm4988_vm2, %v24818_v15  ;;  %v9034_v15 = vld [vmem:[#allocation2 + $0x228] sm:$0xff] }
 0x626   :  { %19097 = vmatmul.mubr.msk.bf16.gmra.mrb[124].mxu1 %vm4988_vm2, %v8537_v0  ;;  %v9602_v0 = vld [vmem:[#allocation2 + $0x2c9] sm:$0xff] }
 0x627   :  { %19104 = vmatprep.mubr.msk.bf16.mxu1 %vm4988_vm2, %v24823_v62  ;;  %v9035_v62 = vld [vmem:[#allocation2 + $0x230] sm:$0xff] }
 0x62e   :  { %19105 = vmatmul.mubr.msk.bf16.vlgmr.msra.gmra.mrb[64].mxu1 %vm4988_vm2, %v24828_v37  ;;  %v9083_v37 = vpack.c.bf16 %v9035_v62, %v9034_v15  ;;  %v9647_v15 = vpack.c.bf16 %v9601_v52, %v9600_v63 }
 0x62f   :  { %19108 = vmatprep.mubr.msk.bf16.mxu1 %vm4988_vm2, %v24839_v22  ;;  %19169 = vmatpush3.bf16.msra.mxu1 %v25037_v27  ;;  %v26541_v22 = vld [vmem:[#allocation75_spill] sm:$0xff] }
 0x630   :  { %19170 = vmatprep.subr.bf16.mxu1 %v21415_v38 }
 0x633   :  { %19171 = vmatpush3.bf16.msra.mxu1 %v21415_v38  ;;  %v9603_v38 = vld [vmem:[#allocation2 + $0x2d1] sm:$0xff] }
 0x634   :  { %v9648_v62 = vpack.c.bf16 %v9603_v38, %v9602_v0 }
 0x636   :  { %19109 = vmatmul.mubr.msk.bf16.gmra.mrb[68].mxu1 %vm4988_vm2, %v24842_v12  ;;  %v26542_v12 = vld [vmem:[#allocation76_spill] sm:$0xff] }
 0x637   :  { %19112 = vmatprep.mubr.msk.bf16.mxu1 %vm4988_vm2, %v24848_v33  ;;  %v21416_v33 = vld [vmem:[%s26324_s5 + $0x10] sm:$0xff]  }
 0x638   :  { %19236 = vmatprep.subr.bf16.mxu0 %v21416_v33 }
 0x639   :  { %19237 = vmatpush3.bf16.msra.mxu0 %v21416_v33 }
 0x63e   :  { %19113 = vmatmul.mubr.msk.bf16.gmra.mrb[72].mxu1 %vm4988_vm2, %v24850_v39  ;;  %v9066_v39 = vld [vmem:[#allocation2 + $0x468] sm:$0xff] }
 0x63f   :  { %19116 = vmatprep.mubr.msk.bf16.mxu1 %vm4988_vm2, %v24856_v56  ;;  %v9067_v56 = vld [vmem:[#allocation2 + $0x470] sm:$0xff] }
 0x646   :  { %19117 = vmatmul.mubr.msk.bf16.gmra.mrb[76].mxu1 %vm4988_vm2, %v24858_v25  ;;  %v9099_v25 = vpack.c.bf16 %v9067_v56, %v9066_v39  ;;  %v9608_v56 = vld [vmem:[#allocation2 + $0x329] sm:$0xff] }
 0x647   :  { %19120 = vmatprep.mubr.msk.bf16.mxu1 %vm4988_vm2, %v24864_v26  ;;  %v9566_v26 = vld [vmem:[#allocation2 + $0x49] sm:$0xff] }
 0x64e   :  { %19121 = vmatmul.mubr.msk.bf16.gmra.mrb[80].mxu1 %vm4988_vm2, %v24866_v19  ;;  %v9567_v19 = vld [vmem:[#allocation2 + $0x51] sm:$0xff] }
 0x64f   :  { %19124 = vmatprep.mubr.msk.bf16.mxu1 %vm4988_vm2, %v24872_v1  ;;  %v9630_v1 = vpack.c.bf16 %v9567_v19, %v9566_v26  ;;  %v9610_v26 = vld [vmem:[#allocation2 + $0x349] sm:$0xff]  ;;  %v9611_v19 = vld [vmem:[#allocation2 + $0x351] sm:$0xff] }
 0x656   :  { %19125 = vmatmul.mubr.msk.bf16.gmra.mrb[84].mxu1 %vm4988_vm2, %v24874_v58  ;;  %v21417_v58 = vld [vmem:[%s26324_s5 + $0x18] sm:$0xff]  }
 0x657   :  { %19128 = vmatprep.mubr.msk.bf16.mxu1 %vm4988_vm2, %v24880_v61  ;;  %19238 = vmatprep.subr.bf16.mxu0 %v21417_v58  ;;  %v9568_v61 = vld [vmem:[#allocation2 + $0x69] sm:$0xff] }
 0x658   :  { %19239 = vmatpush3.bf16.msra.mxu0 %v21417_v58  ;;  %v9652_v58 = vpack.c.bf16 %v9611_v19, %v9610_v26 }
 0x659   :  { %19304 = vmatprep.subr.bf16.mxu0 %v21418_v10 }
 0x65e   :  { %19129 = vmatmul.mubr.msk.bf16.gmra.mrb[88].mxu1 %vm4988_vm2, %v24882_v45  ;;  %v9569_v45 = vld [vmem:[#allocation2 + $0x71] sm:$0xff] }
 0x65f   :  { %19132 = vmatprep.mubr.msk.bf16.mxu1 %vm4988_vm2, %v24888_v34  ;;  %v9570_v34 = vld [vmem:[#allocation2 + $0x89] sm:$0xff] }
 0x666   :  { %19133 = vmatmul.mubr.msk.bf16.gmra.mrb[92].mxu1 %vm4988_vm2, %v9083_v37  ;;  %v9605_v37 = vld [vmem:[#allocation2 + $0x2f1] sm:$0xff] }
 0x667   :  { %19136 = vmatprep.mubr.msk.bf16.mxu1 %vm4988_vm2, %v24893_v43  ;;  %v9571_v43 = vld [vmem:[#allocation2 + $0x91] sm:$0xff] }
 0x66e   :  { %19137 = vmatmul.mubr.msk.bf16.gmra.mrb[96].mxu1 %vm4988_vm2, %v24895_v31  ;;  %v9631_v31 = vpack.c.bf16 %v9569_v45, %v9568_v61  ;;  %v9612_v61 = vld [vmem:[#allocation2 + $0x369] sm:$0xff]  ;;  %v9613_v45 = vld [vmem:[#allocation2 + $0x371] sm:$0xff] }
 0x66f   :  { %19140 = vmatprep.mubr.msk.bf16.mxu1 %vm4988_vm2, %v24901_v6  ;;  %v9632_v6 = vpack.c.bf16 %v9571_v43, %v9570_v34  ;;  %v9614_v34 = vld [vmem:[#allocation2 + $0x389] sm:$0xff]  ;;  %v9615_v43 = vld [vmem:[#allocation2 + $0x391] sm:$0xff] }
 0x676   :  { %19141 = vmatmul.mubr.msk.bf16.gmra.mrb[100].mxu1 %vm4988_vm2, %v24903_v44  ;;  %v9572_v44 = vld [vmem:[#allocation2 + $0xa9] sm:$0xff] }
 0x677   :  { %19144 = vmatprep.mubr.msk.bf16.mxu1 %vm4988_vm2, %v24909_v3  ;;  %v9573_v3 = vld [vmem:[#allocation2 + $0xb1] sm:$0xff] }
 0x67e   :  { %19145 = vmatmul.mubr.msk.bf16.gmra.mrb[104].mxu1 %vm4988_vm2, %v24911_v59  ;;  %v9574_v59 = vld [vmem:[#allocation2 + $0xc9] sm:$0xff] }
 0x67f   :  { %19148 = vmatprep.mubr.msk.bf16.mxu1 %vm4988_vm2, %v24917_v23  ;;  %v9575_v23 = vld [vmem:[#allocation2 + $0xd1] sm:$0xff] }
 0x686   :  { %19149 = vmatmul.mubr.msk.bf16.gmra.mrb[108].mxu1 %vm4988_vm2, %v24919_v20  ;;  %v9633_v20 = vpack.c.bf16 %v9573_v3, %v9572_v44  ;;  %v9616_v44 = vld [vmem:[#allocation2 + $0x3a9] sm:$0xff]  ;;  %v9617_v3 = vld [vmem:[#allocation2 + $0x3b1] sm:$0xff] }
 0x687   :  { %19152 = vmatprep.mubr.msk.bf16.mxu1 %vm4988_vm2, %v26541_v22  ;;  %v9606_v22 = vld [vmem:[#allocation2 + $0x309] sm:$0xff] }
 0x68e   :  { %19153 = vmatmul.mubr.msk.bf16.gmra.mrb[112].mxu1 %vm4988_vm2, %v26542_v12  ;;  %v9607_v12 = vld [vmem:[#allocation2 + $0x311] sm:$0xff] }
 0x68f   :  { %19156 = vmatprep.mubr.msk.bf16.mxu1 %vm4988_vm2, %v24933_v42  ;;  %v9576_v42 = vld [vmem:[#allocation2 + $0xe9] sm:$0xff]  ;;  %v9650_v39 = vpack.c.bf16 %v9607_v12, %v9606_v22 }
 0x696   :  { %19157 = vmatmul.mubr.msk.bf16.gmra.mrb[116].mxu1 %vm4988_vm2, %v24935_v28  ;;  %v9577_v28 = vld [vmem:[#allocation2 + $0xf1] sm:$0xff] }
 0x697   :  { %19160 = vmatprep.mubr.msk.bf16.mxu1 %vm4988_vm2, %v24941_v53  ;;  %v9578_v53 = vld [vmem:[#allocation2 + $0x109] sm:$0xff]  ;;  %v9635_v27 = vpack.c.bf16 %v9577_v28, %v9576_v42  ;;  %v9621_v28 = vld [vmem:[#allocation2 + $0x3f1] sm:$0xff] }
 0x698   :  { %v9620_v42 = vld [vmem:[#allocation2 + $0x3e9] sm:$0xff] }
 0x69e   :  { %19161 = vmatmul.mubr.msk.bf16.gmra.mrb[120].mxu1 %vm4988_vm2, %v24943_v24  ;;  %v9634_v24 = vpack.c.bf16 %v9575_v23, %v9574_v59  ;;  %v9618_v59 = vld [vmem:[#allocation2 + $0x3c9] sm:$0xff]  ;;  %v9619_v23 = vld [vmem:[#allocation2 + $0x3d1] sm:$0xff] }
 0x69f   :  { %19164 = vmatprep.mubr.msk.bf16.mxu1 %vm4988_vm2, %v24949_v9  ;;  %v9579_v9 = vld [vmem:[#allocation2 + $0x111] sm:$0xff] }
 0x6a0   :  { %v9636_v48 = vpack.c.bf16 %v9579_v9, %v9578_v53  ;;  %v9622_v53 = vld [vmem:[#allocation2 + $0x409] sm:$0xff]  ;;  %v9623_v9 = vld [vmem:[#allocation2 + $0x411] sm:$0xff] }
 0x6a6   :  { %19165 = vmatmul.mubr.msk.bf16.gmra.mrb[124].mxu1 %vm4988_vm2, %v9099_v25  ;;  %v9609_v25 = vld [vmem:[#allocation2 + $0x331] sm:$0xff] }
 0x6a7   :  { %19172 = vmatprep.mubr.msk.bf16.mxu1 %vm4988_vm2, %v9630_v1  ;;  %v9651_v1 = vpack.c.bf16 %v9609_v25, %v9608_v56  ;;  %v21419_v25 = vld [vmem:[%s26324_s5 + $0x8] sm:$0xff]  }
 0x6ae   :  { %19173 = vmatmul.mubr.msk.bf16.vlgmr.msra.gmra.mrb[64].mxu1 %vm4988_vm2, %v9631_v31  ;;  %v9653_v31 = vpack.c.bf16 %v9613_v45, %v9612_v61 }
 0x6af   :  { %19176 = vmatprep.mubr.msk.bf16.mxu1 %vm4988_vm2, %v9632_v6  ;;  %v9654_v6 = vpack.c.bf16 %v9615_v43, %v9614_v34 }
 0x6b6   :  { %19177 = vmatmul.mubr.msk.bf16.gmra.mrb[68].mxu1 %vm4988_vm2, %v9633_v20  ;;  %v9655_v20 = vpack.c.bf16 %v9617_v3, %v9616_v44  ;;  %v25214_v44 = vld [vmem:[%s26324_s5 + $0x20] sm:$0xff]  }
 0x6b7   :  { %19180 = vmatprep.mubr.msk.bf16.mxu1 %vm4988_vm2, %v9634_v24  ;;  %v9656_v24 = vpack.c.bf16 %v9619_v23, %v9618_v59 }
 0x6be   :  { %19181 = vmatmul.mubr.msk.bf16.gmra.mrb[72].mxu1 %vm4988_vm2, %v9635_v27  ;;  %v9657_v27 = vpack.c.bf16 %v9621_v28, %v9620_v42 }
 0x6bf   :  { %19184 = vmatprep.mubr.msk.bf16.mxu1 %vm4988_vm2, %v9636_v48  ;;  %v9658_v48 = vpack.c.bf16 %v9623_v9, %v9622_v53 }
 0x6c6   :  { %19185 = vmatmul.mubr.msk.bf16.gmra.mrb[76].mxu1 %vm4988_vm2, %v9637_v46  ;;  %v9624_v46 = vld [vmem:[#allocation2 + $0x429] sm:$0xff] }
 0x6c7   :  { %19188 = vmatprep.mubr.msk.bf16.mxu1 %vm4988_vm2, %v9638_v29  ;;  %v9625_v29 = vld [vmem:[#allocation2 + $0x431] sm:$0xff] }
 0x6c8   :  { %v9659_v57 = vpack.c.bf16 %v9625_v29, %v9624_v46 }
 0x6ce   :  { %19189 = vmatmul.mubr.msk.bf16.gmra.mrb[80].mxu1 %vm4988_vm2, %v9639_v50  ;;  %v25184_v50 = vld [vmem:[%s26323_s4] ss:$0 sm:$0xff] }
 0x6cf   :  { %19192 = vmatprep.mubr.msk.bf16.mxu1 %vm4988_vm2, %v9640_v35 }
 0x6d6   :  { %19193 = vmatmul.mubr.msk.bf16.gmra.mrb[84].mxu1 %vm4988_vm2, %v9641_v60 }
 0x6d7   :  { %19196 = vmatprep.mubr.msk.bf16.mxu1 %vm4988_vm2, %v9642_v51 }
 0x6de   :  { %19197 = vmatmul.mubr.msk.bf16.gmra.mrb[88].mxu1 %vm4988_vm2, %v9643_v13 }
 0x6df   :  { %19200 = vmatprep.mubr.msk.bf16.mxu1 %vm4988_vm2, %v24990_v32  ;;  %v9604_v32 = vld [vmem:[#allocation2 + $0x2e9] sm:$0xff] }
 0x6e0   :  { %v9649_v33 = vpack.c.bf16 %v9605_v37, %v9604_v32 }
 0x6e6   :  { %19201 = vmatmul.mubr.msk.bf16.gmra.mrb[92].mxu1 %vm4988_vm2, %v9645_v47 }
 0x6e7   :  { %19204 = vmatprep.mubr.msk.bf16.mxu1 %vm4988_vm2, %v9646_v18 }
 0x6ee   :  { %19205 = vmatmul.mubr.msk.bf16.gmra.mrb[96].mxu1 %vm4988_vm2, %v9647_v15 }
 0x6ef   :  { %19208 = vmatprep.mubr.msk.bf16.mxu1 %vm4988_vm2, %v9648_v62 }
 0x6f6   :  { %19209 = vmatmul.mubr.msk.bf16.gmra.mrb[100].mxu1 %vm4988_vm2, %v9649_v33 }
 0x6f7   :  { %19212 = vmatprep.mubr.msk.bf16.mxu1 %vm4988_vm2, %v9650_v39 }
 0x6fe   :  { %19213 = vmatmul.mubr.msk.bf16.gmra.mrb[104].mxu1 %vm4988_vm2, %v9651_v1 }
 0x6ff   :  { %19216 = vmatprep.mubr.msk.bf16.mxu1 %vm4988_vm2, %v9652_v58 }
 0x706   :  { %19217 = vmatmul.mubr.msk.bf16.gmra.mrb[108].mxu1 %vm4988_vm2, %v9653_v31 }
 0x707   :  { %19220 = vmatprep.mubr.msk.bf16.mxu1 %vm4988_vm2, %v9654_v6 }
 0x70e   :  { %19221 = vmatmul.mubr.msk.bf16.gmra.mrb[112].mxu1 %vm4988_vm2, %v9655_v20 }
 0x70f   :  { %19224 = vmatprep.mubr.msk.bf16.mxu1 %vm4988_vm2, %v9656_v24 }
 0x716   :  { %19225 = vmatmul.mubr.msk.bf16.gmra.mrb[116].mxu1 %vm4988_vm2, %v9657_v27 }
 0x717   :  { %19228 = vmatprep.mubr.msk.bf16.mxu1 %vm4988_vm2, %v9658_v48 }
 0x71e   :  { %19229 = vmatmul.mubr.msk.bf16.gmra.mrb[120].mxu1 %vm4988_vm2, %v9659_v57 }
 0x71f   :  { %19232 = vmatprep.mubr.msk.bf16.mxu1 %vm4988_vm2, %v25024_v8 }
 0x726   :  { %19233 = vmatmul.mubr.msk.bf16.gmra.mrb[124].mxu1 %vm4988_vm2, %v9661_v21 }
 0x781   :  { %v19174_v35 = vpop.f32.mrb[64].mxu1 }
 0x782   :  { %v10137_v7 = vadd.f32 %v19174_v35, %v25184_v50  ;;  %v9809_v40 = vpop.f32.mrb[65].mxu1 }
 0x783   :  { %v10135_v30 = vadd.f32 %v25184_v50, %v9809_v40  ;;  %v19175_v54 = vpop.f32.mrb[66].mxu1 }
 0x784   :  { %v10201_v60 = vmax.f32 %v10137_v7, 0.0  ;;  %v10138_v8 = vadd.f32 %v19175_v54, %v25184_v50  ;;  %v9812_v51 = vpop.f32.mrb[67].mxu1 }
 0x785   :  { %v10199_v55 = vmax.f32 %v10135_v30, 0.0  ;;  %v10136_v36 = vadd.f32 %v25184_v50, %v9812_v51 }
 0x786   :  { %10410 = vst.msk [vmem:[#allocation3 + $0x48] sm:$0xff] %vm4988_vm2, %v10201_v60  ;;  %v10202_v13 = vmax.f32 %v10138_v8, 0.0 }
 0x787   :  { %10408 = vst.msk [vmem:[#allocation3 + $0x28] sm:$0xff] %vm4988_vm2, %v10199_v55  ;;  %v10200_v14 = vmax.f32 %v10136_v36, 0.0 }
 0x788   :  { %10411 = vst.msk [vmem:[#allocation3 + $0x50] sm:$0xff] %vm4988_vm2, %v10202_v13 }
 0x789   :  { %10409 = vst.msk [vmem:[#allocation3 + $0x30] sm:$0xff] %vm4988_vm2, %v10200_v14  ;;  %v19178_v17 = vpop.f32.mrb[68].mxu1 }
 0x78a   :  { %v10141_v47 = vadd.f32 %v19178_v17, %v25184_v50  ;;  %v9825_v49 = vpop.f32.mrb[69].mxu1 }
 0x78b   :  { %v10139_v16 = vadd.f32 %v25184_v50, %v9825_v49  ;;  %v19179_v18 = vpop.f32.mrb[70].mxu1 }
 0x78c   :  { %v10205_v63 = vmax.f32 %v10141_v47, 0.0  ;;  %v10142_v52 = vadd.f32 %v19179_v18, %v25184_v50  ;;  %v9828_v0 = vpop.f32.mrb[71].mxu1 }
 0x78d   :  { %v10203_v38 = vmax.f32 %v10139_v16, 0.0  ;;  %v10140_v15 = vadd.f32 %v25184_v50, %v9828_v0  ;;  %v10576_v56 = vld [vmem:[#allocation3 + $0x48] sm:$0xff] }
 0x78e   :  { %10414 = vst.msk [vmem:[#allocation3 + $0x88] sm:$0xff] %vm4988_vm2, %v10205_v63  ;;  %v10206_v62 = vmax.f32 %v10142_v52, 0.0  ;;  %v10574_v22 = vld [vmem:[#allocation3 + $0x28] sm:$0xff] }
 0x78f   :  { %10412 = vst.msk [vmem:[#allocation3 + $0x68] sm:$0xff] %vm4988_vm2, %v10203_v38  ;;  %v10204_v32 = vmax.f32 %v10140_v15, 0.0  ;;  %v10577_v37 = vld [vmem:[#allocation3 + $0x50] sm:$0xff] }
 0x790   :  { %10415 = vst.msk [vmem:[#allocation3 + $0x90] sm:$0xff] %vm4988_vm2, %v10206_v62  ;;  %v10575_v12 = vld [vmem:[#allocation3 + $0x30] sm:$0xff]  ;;  %v10638_v1 = vpack.c.bf16 %v10577_v37, %v10576_v56 }
 0x791   :  { %10413 = vst.msk [vmem:[#allocation3 + $0x70] sm:$0xff] %vm4988_vm2, %v10204_v32  ;;  %v19182_v33 = vpop.f32.mrb[72].mxu1  ;;  %v10637_v39 = vpack.c.bf16 %v10575_v12, %v10574_v22 }
 0x792   :  { %v10145_v26 = vadd.f32 %v19182_v33, %v25184_v50  ;;  %v9841_v19 = vpop.f32.mrb[73].mxu1 }
 0x793   :  { %v10143_v58 = vadd.f32 %v25184_v50, %v9841_v19  ;;  %v19183_v61 = vpop.f32.mrb[74].mxu1  ;;  %19241 = vmatmul.mubr.msk.bf16.vlgmr.msra.gmra.mrb[64].mxu0 %vm4988_vm2, %v10637_v39 }
 0x794   :  { %v10209_v45 = vmax.f32 %v10145_v26, 0.0  ;;  %v10146_v34 = vadd.f32 %v19183_v61, %v25184_v50  ;;  %v9844_v43 = vpop.f32.mrb[75].mxu1  ;;  %19244 = vmatprep.mubr.msk.bf16.mxu0 %vm4988_vm2, %v10638_v1  ;;  %19305 = vmatpush3.bf16.msra.mxu0 %v21418_v10 }
 0x795   :  { %v10207_v31 = vmax.f32 %v10143_v58, 0.0  ;;  %v10144_v6 = vadd.f32 %v25184_v50, %v9844_v43  ;;  %19306 = vmatprep.subr.bf16.mxu0 %v21419_v25  ;;  %v10580_v53 = vld [vmem:[#allocation3 + $0x88] sm:$0xff] }
 0x796   :  { %10418 = vst.msk [vmem:[#allocation3 + $0xc8] sm:$0xff] %vm4988_vm2, %v10209_v45  ;;  %v10210_v3 = vmax.f32 %v10146_v34, 0.0  ;;  %v10578_v20 = vld [vmem:[#allocation3 + $0x68] sm:$0xff] }
 0x797   :  { %10416 = vst.msk [vmem:[#allocation3 + $0xa8] sm:$0xff] %vm4988_vm2, %v10207_v31  ;;  %v10208_v59 = vmax.f32 %v10144_v6, 0.0  ;;  %v10581_v23 = vld [vmem:[#allocation3 + $0x90] sm:$0xff] }
 0x798   :  { %10419 = vst.msk [vmem:[#allocation3 + $0xd0] sm:$0xff] %vm4988_vm2, %v10210_v3  ;;  %v10579_v24 = vld [vmem:[#allocation3 + $0x70] sm:$0xff]  ;;  %19307 = vmatpush3.bf16.msra.mxu0 %v21419_v25  ;;  %v10640_v48 = vpack.c.bf16 %v10581_v23, %v10580_v53 }
 0x799   :  { %10417 = vst.msk [vmem:[#allocation3 + $0xb0] sm:$0xff] %vm4988_vm2, %v10208_v59  ;;  %v19186_v42 = vpop.f32.mrb[76].mxu1  ;;  %v10639_v28 = vpack.c.bf16 %v10579_v24, %v10578_v20  ;;  %19372 = vmatprep.subr.bf16.mxu0 %v25214_v44 }
 0x79a   :  { %v10149_v9 = vadd.f32 %v19186_v42, %v25184_v50  ;;  %v9857_v27 = vpop.f32.mrb[77].mxu1 }
 0x79b   :  { %v10147_v2 = vadd.f32 %v25184_v50, %v9857_v27  ;;  %v19187_v5 = vpop.f32.mrb[78].mxu1  ;;  %19245 = vmatmul.mubr.msk.bf16.gmra.mrb[68].mxu0 %vm4988_vm2, %v10639_v28 }
 0x79c   :  { %v10213_v4 = vmax.f32 %v10149_v9, 0.0  ;;  %v10150_v10 = vadd.f32 %v19187_v5, %v25184_v50  ;;  %v9860_v46 = vpop.f32.mrb[79].mxu1  ;;  %19248 = vmatprep.mubr.msk.bf16.mxu0 %vm4988_vm2, %v10640_v48 }
 0x79d   :  { %v10211_v29 = vmax.f32 %v10147_v2, 0.0  ;;  %v10148_v57 = vadd.f32 %v25184_v50, %v9860_v46  ;;  %v10584_v54 = vld [vmem:[#allocation3 + $0xc8] sm:$0xff] }
 0x79e   :  { %10422 = vst.msk [vmem:[#allocation3 + $0x108] sm:$0xff] %vm4988_vm2, %v10213_v4  ;;  %v10214_v41 = vmax.f32 %v10150_v10, 0.0  ;;  %v10582_v35 = vld [vmem:[#allocation3 + $0xa8] sm:$0xff] }
 0x79f   :  { %10420 = vst.msk [vmem:[#allocation3 + $0xe8] sm:$0xff] %vm4988_vm2, %v10211_v29  ;;  %v10212_v11 = vmax.f32 %v10148_v57, 0.0  ;;  %v10585_v21 = vld [vmem:[#allocation3 + $0xd0] sm:$0xff] }
 0x7a0   :  { %10423 = vst.msk [vmem:[#allocation3 + $0x110] sm:$0xff] %vm4988_vm2, %v10214_v41  ;;  %v10583_v7 = vld [vmem:[#allocation3 + $0xb0] sm:$0xff]  ;;  %v10642_v51 = vpack.c.bf16 %v10585_v21, %v10584_v54 }
 0x7a1   :  { %10421 = vst.msk [vmem:[#allocation3 + $0xf0] sm:$0xff] %vm4988_vm2, %v10212_v11  ;;  %v19190_v40 = vpop.f32.mrb[80].mxu1  ;;  %v10641_v30 = vpack.c.bf16 %v10583_v7, %v10582_v35 }
 0x7a2   :  { %v10153_v60 = vadd.f32 %v19190_v40, %v25184_v50  ;;  %v9873_v8 = vpop.f32.mrb[81].mxu1 }
 0x7a3   :  { %v10151_v55 = vadd.f32 %v25184_v50, %v9873_v8  ;;  %v19191_v36 = vpop.f32.mrb[82].mxu1  ;;  %19249 = vmatmul.mubr.msk.bf16.gmra.mrb[72].mxu0 %vm4988_vm2, %v10641_v30 }
 0x7a4   :  { %v10217_v13 = vmax.f32 %v10153_v60, 0.0  ;;  %v10154_v14 = vadd.f32 %v19191_v36, %v25184_v50  ;;  %v9876_v17 = vpop.f32.mrb[83].mxu1  ;;  %19252 = vmatprep.mubr.msk.bf16.mxu0 %vm4988_vm2, %v10642_v51 }
 0x7a5   :  { %v10215_v47 = vmax.f32 %v10151_v55, 0.0  ;;  %v10152_v49 = vadd.f32 %v25184_v50, %v9876_v17  ;;  %v10588_v62 = vld [vmem:[#allocation3 + $0x108] sm:$0xff] }
 0x7a6   :  { %10426 = vst.msk [vmem:[#allocation3 + $0x148] sm:$0xff] %vm4988_vm2, %v10217_v13  ;;  %v10218_v16 = vmax.f32 %v10154_v14, 0.0  ;;  %v10586_v52 = vld [vmem:[#allocation3 + $0xe8] sm:$0xff] }
 0x7a7   :  { %10424 = vst.msk [vmem:[#allocation3 + $0x128] sm:$0xff] %vm4988_vm2, %v10215_v47  ;;  %v10216_v18 = vmax.f32 %v10152_v49, 0.0  ;;  %v10589_v63 = vld [vmem:[#allocation3 + $0x110] sm:$0xff] }
 0x7a8   :  { %10427 = vst.msk [vmem:[#allocation3 + $0x150] sm:$0xff] %vm4988_vm2, %v10218_v16  ;;  %v10587_v0 = vld [vmem:[#allocation3 + $0xf0] sm:$0xff]  ;;  %v10644_v22 = vpack.c.bf16 %v10589_v63, %v10588_v62 }
 0x7a9   :  { %10425 = vst.msk [vmem:[#allocation3 + $0x130] sm:$0xff] %vm4988_vm2, %v10216_v18  ;;  %v19194_v38 = vpop.f32.mrb[84].mxu1  ;;  %v10643_v15 = vpack.c.bf16 %v10587_v0, %v10586_v52 }
 0x7aa   :  { %v10157_v32 = vadd.f32 %v19194_v38, %v25184_v50  ;;  %v9889_v37 = vpop.f32.mrb[85].mxu1 }
 0x7ab   :  { %v10155_v12 = vadd.f32 %v25184_v50, %v9889_v37  ;;  %v19195_v33 = vpop.f32.mrb[86].mxu1  ;;  %19253 = vmatmul.mubr.msk.bf16.gmra.mrb[76].mxu0 %vm4988_vm2, %v10643_v15 }
 0x7ac   :  { %v10221_v39 = vmax.f32 %v10157_v32, 0.0  ;;  %v10158_v56 = vadd.f32 %v19195_v33, %v25184_v50  ;;  %v9892_v25 = vpop.f32.mrb[87].mxu1  ;;  %19256 = vmatprep.mubr.msk.bf16.mxu0 %vm4988_vm2, %v10644_v22  ;;  %v10604_v22 = vld [vmem:[#allocation3 + $0x248] sm:$0xff] }
 0x7ad   :  { %v10219_v26 = vmax.f32 %v10155_v12, 0.0  ;;  %v10156_v19 = vadd.f32 %v25184_v50, %v9892_v25  ;;  %v10592_v6 = vld [vmem:[#allocation3 + $0x148] sm:$0xff]  ;;  %v10605_v12 = vld [vmem:[#allocation3 + $0x250] sm:$0xff] }
 0x7ae   :  { %10430 = vst.msk [vmem:[#allocation3 + $0x188] sm:$0xff] %vm4988_vm2, %v10221_v39  ;;  %v10222_v1 = vmax.f32 %v10158_v56, 0.0  ;;  %v10590_v45 = vld [vmem:[#allocation3 + $0x128] sm:$0xff] }
 0x7af   :  { %10428 = vst.msk [vmem:[#allocation3 + $0x168] sm:$0xff] %vm4988_vm2, %v10219_v26  ;;  %v10220_v58 = vmax.f32 %v10156_v19, 0.0  ;;  %v10593_v61 = vld [vmem:[#allocation3 + $0x150] sm:$0xff]  ;;  %v10652_v26 = vpack.c.bf16 %v10605_v12, %v10604_v22 }
 0x7b0   :  { %10431 = vst.msk [vmem:[#allocation3 + $0x190] sm:$0xff] %vm4988_vm2, %v10222_v1  ;;  %v10591_v34 = vld [vmem:[#allocation3 + $0x130] sm:$0xff]  ;;  %v10646_v23 = vpack.c.bf16 %v10593_v61, %v10592_v6 }
 0x7b1   :  { %10429 = vst.msk [vmem:[#allocation3 + $0x170] sm:$0xff] %vm4988_vm2, %v10220_v58  ;;  %v19198_v43 = vpop.f32.mrb[88].mxu1  ;;  %v10645_v31 = vpack.c.bf16 %v10591_v34, %v10590_v45 }
 0x7b2   :  { %v10161_v3 = vadd.f32 %v19198_v43, %v25184_v50  ;;  %v9905_v59 = vpop.f32.mrb[89].mxu1 }
 0x7b3   :  { %v10159_v20 = vadd.f32 %v25184_v50, %v9905_v59  ;;  %v19199_v24 = vpop.f32.mrb[90].mxu1  ;;  %19257 = vmatmul.mubr.msk.bf16.gmra.mrb[80].mxu0 %vm4988_vm2, %v10645_v31 }
 0x7b4   :  { %v10225_v42 = vmax.f32 %v10161_v3, 0.0  ;;  %v10162_v28 = vadd.f32 %v19199_v24, %v25184_v50  ;;  %v9908_v53 = vpop.f32.mrb[91].mxu1  ;;  %19260 = vmatprep.mubr.msk.bf16.mxu0 %vm4988_vm2, %v10646_v23 }
 0x7b5   :  { %v10223_v9 = vmax.f32 %v10159_v20, 0.0  ;;  %v10160_v27 = vadd.f32 %v25184_v50, %v9908_v53  ;;  %v10596_v57 = vld [vmem:[#allocation3 + $0x188] sm:$0xff] }
 0x7b6   :  { %10434 = vst.msk [vmem:[#allocation3 + $0x1c8] sm:$0xff] %vm4988_vm2, %v10225_v42  ;;  %v10226_v48 = vmax.f32 %v10162_v28, 0.0  ;;  %v10594_v4 = vld [vmem:[#allocation3 + $0x168] sm:$0xff] }
 0x7b7   :  { %10432 = vst.msk [vmem:[#allocation3 + $0x1a8] sm:$0xff] %vm4988_vm2, %v10223_v9  ;;  %v10224_v2 = vmax.f32 %v10160_v27, 0.0  ;;  %v10597_v5 = vld [vmem:[#allocation3 + $0x190] sm:$0xff] }
 0x7b8   :  { %10435 = vst.msk [vmem:[#allocation3 + $0x1d0] sm:$0xff] %vm4988_vm2, %v10226_v48  ;;  %v10595_v10 = vld [vmem:[#allocation3 + $0x170] sm:$0xff]  ;;  %v10648_v21 = vpack.c.bf16 %v10597_v5, %v10596_v57 }
 0x7b9   :  { %10433 = vst.msk [vmem:[#allocation3 + $0x1b0] sm:$0xff] %vm4988_vm2, %v10224_v2  ;;  %v19202_v46 = vpop.f32.mrb[92].mxu1  ;;  %v10647_v29 = vpack.c.bf16 %v10595_v10, %v10594_v4 }
 0x7ba   :  { %v10165_v41 = vadd.f32 %v19202_v46, %v25184_v50  ;;  %v9921_v11 = vpop.f32.mrb[93].mxu1 }
 0x7bb   :  { %v10163_v35 = vadd.f32 %v25184_v50, %v9921_v11  ;;  %v19203_v7 = vpop.f32.mrb[94].mxu1  ;;  %19261 = vmatmul.mubr.msk.bf16.gmra.mrb[84].mxu0 %vm4988_vm2, %v10647_v29 }
 0x7bc   :  { %v10229_v40 = vmax.f32 %v10165_v41, 0.0  ;;  %v10166_v30 = vadd.f32 %v19203_v7, %v25184_v50  ;;  %v9924_v54 = vpop.f32.mrb[95].mxu1  ;;  %19264 = vmatprep.mubr.msk.bf16.mxu0 %vm4988_vm2, %v10648_v21 }
 0x7bd   :  { %v10227_v60 = vmax.f32 %v10163_v35, 0.0  ;;  %v10164_v8 = vadd.f32 %v25184_v50, %v9924_v54  ;;  %v10600_v49 = vld [vmem:[#allocation3 + $0x1c8] sm:$0xff] }
 0x7be   :  { %10438 = vst.msk [vmem:[#allocation3 + $0x208] sm:$0xff] %vm4988_vm2, %v10229_v40  ;;  %v10230_v51 = vmax.f32 %v10166_v30, 0.0  ;;  %v10598_v13 = vld [vmem:[#allocation3 + $0x1a8] sm:$0xff] }
 0x7bf   :  { %10436 = vst.msk [vmem:[#allocation3 + $0x1e8] sm:$0xff] %vm4988_vm2, %v10227_v60  ;;  %v10228_v55 = vmax.f32 %v10164_v8, 0.0  ;;  %v10601_v36 = vld [vmem:[#allocation3 + $0x1d0] sm:$0xff] }
 0x7c0   :  { %10439 = vst.msk [vmem:[#allocation3 + $0x210] sm:$0xff] %vm4988_vm2, %v10230_v51  ;;  %v10599_v14 = vld [vmem:[#allocation3 + $0x1b0] sm:$0xff]  ;;  %v10650_v63 = vpack.c.bf16 %v10601_v36, %v10600_v49 }
 0x7c1   :  { %10437 = vst.msk [vmem:[#allocation3 + $0x1f0] sm:$0xff] %vm4988_vm2, %v10228_v55  ;;  %v19206_v17 = vpop.f32.mrb[96].mxu1  ;;  %v10649_v47 = vpack.c.bf16 %v10599_v14, %v10598_v13 }
 0x7c2   :  { %v10169_v16 = vadd.f32 %v19206_v17, %v25184_v50  ;;  %v9937_v18 = vpop.f32.mrb[97].mxu1 }
 0x7c3   :  { %v10167_v52 = vadd.f32 %v25184_v50, %v9937_v18  ;;  %v19207_v0 = vpop.f32.mrb[98].mxu1  ;;  %19265 = vmatmul.mubr.msk.bf16.gmra.mrb[88].mxu0 %vm4988_vm2, %v10649_v47 }
 0x7c4   :  { %v10233_v38 = vmax.f32 %v10169_v16, 0.0  ;;  %v10170_v15 = vadd.f32 %v19207_v0, %v25184_v50  ;;  %v9940_v62 = vpop.f32.mrb[99].mxu1  ;;  %19268 = vmatprep.mubr.msk.bf16.mxu0 %vm4988_vm2, %v10650_v63 }
 0x7c5   :  { %v10231_v32 = vmax.f32 %v10167_v52, 0.0  ;;  %v10168_v37 = vadd.f32 %v25184_v50, %v9940_v62 }
 0x7c6   :  { %10442 = vst.msk [vmem:[#allocation3 + $0x288] sm:$0xff] %vm4988_vm2, %v10233_v38  ;;  %v10234_v33 = vmax.f32 %v10170_v15, 0.0  ;;  %v10602_v56 = vld [vmem:[#allocation3 + $0x1e8] sm:$0xff] }
 0x7c7   :  { %10440 = vst.msk [vmem:[#allocation3 + $0x268] sm:$0xff] %vm4988_vm2, %v10231_v32  ;;  %v10232_v39 = vmax.f32 %v10168_v37, 0.0 }
 0x7c8   :  { %10443 = vst.msk [vmem:[#allocation3 + $0x290] sm:$0xff] %vm4988_vm2, %v10234_v33  ;;  %v10603_v25 = vld [vmem:[#allocation3 + $0x1f0] sm:$0xff] }
 0x7c9   :  { %10441 = vst.msk [vmem:[#allocation3 + $0x270] sm:$0xff] %vm4988_vm2, %v10232_v39  ;;  %v19210_v19 = vpop.f32.mrb[100].mxu1  ;;  %v10651_v1 = vpack.c.bf16 %v10603_v25, %v10602_v56 }
 0x7ca   :  { %v10173_v58 = vadd.f32 %v19210_v19, %v25184_v50  ;;  %v9953_v61 = vpop.f32.mrb[101].mxu1 }
 0x7cb   :  { %v10171_v45 = vadd.f32 %v25184_v50, %v9953_v61  ;;  %v19211_v34 = vpop.f32.mrb[102].mxu1  ;;  %19269 = vmatmul.mubr.msk.bf16.gmra.mrb[92].mxu0 %vm4988_vm2, %v10651_v1 }
 0x7cc   :  { %v10237_v43 = vmax.f32 %v10173_v58, 0.0  ;;  %v10174_v31 = vadd.f32 %v19211_v34, %v25184_v50  ;;  %v9956_v6 = vpop.f32.mrb[103].mxu1  ;;  %19272 = vmatprep.mubr.msk.bf16.mxu0 %vm4988_vm2, %v10652_v26 }
 0x7cd   :  { %v10235_v3 = vmax.f32 %v10171_v45, 0.0  ;;  %v10172_v59 = vadd.f32 %v25184_v50, %v9956_v6  ;;  %v10608_v27 = vld [vmem:[#allocation3 + $0x288] sm:$0xff] }
 0x7ce   :  { %10446 = vst.msk [vmem:[#allocation3 + $0x2c8] sm:$0xff] %vm4988_vm2, %v10237_v43  ;;  %v10238_v23 = vmax.f32 %v10174_v31, 0.0  ;;  %v10606_v42 = vld [vmem:[#allocation3 + $0x268] sm:$0xff] }
 0x7cf   :  { %10444 = vst.msk [vmem:[#allocation3 + $0x2a8] sm:$0xff] %vm4988_vm2, %v10235_v3  ;;  %v10236_v20 = vmax.f32 %v10172_v59, 0.0  ;;  %v10609_v24 = vld [vmem:[#allocation3 + $0x290] sm:$0xff] }
 0x7d0   :  { %10447 = vst.msk [vmem:[#allocation3 + $0x2d0] sm:$0xff] %vm4988_vm2, %v10238_v23  ;;  %v10607_v28 = vld [vmem:[#allocation3 + $0x270] sm:$0xff]  ;;  %v10654_v5 = vpack.c.bf16 %v10609_v24, %v10608_v27 }
 0x7d1   :  { %10445 = vst.msk [vmem:[#allocation3 + $0x2b0] sm:$0xff] %vm4988_vm2, %v10236_v20  ;;  %v19214_v53 = vpop.f32.mrb[104].mxu1  ;;  %v10653_v9 = vpack.c.bf16 %v10607_v28, %v10606_v42 }
 0x7d2   :  { %v10177_v48 = vadd.f32 %v19214_v53, %v25184_v50  ;;  %v9969_v2 = vpop.f32.mrb[105].mxu1 }
 0x7d3   :  { %v10175_v4 = vadd.f32 %v25184_v50, %v9969_v2  ;;  %v19215_v10 = vpop.f32.mrb[106].mxu1  ;;  %19273 = vmatmul.mubr.msk.bf16.gmra.mrb[96].mxu0 %vm4988_vm2, %v10653_v9 }
 0x7d4   :  { %v10241_v46 = vmax.f32 %v10177_v48, 0.0  ;;  %v10178_v29 = vadd.f32 %v19215_v10, %v25184_v50  ;;  %v9972_v57 = vpop.f32.mrb[107].mxu1  ;;  %19276 = vmatprep.mubr.msk.bf16.mxu0 %vm4988_vm2, %v10654_v5 }
 0x7d5   :  { %v10239_v41 = vmax.f32 %v10175_v4, 0.0  ;;  %v10176_v11 = vadd.f32 %v25184_v50, %v9972_v57  ;;  %v10612_v8 = vld [vmem:[#allocation3 + $0x2c8] sm:$0xff] }
 0x7d6   :  { %10450 = vst.msk [vmem:[#allocation3 + $0x308] sm:$0xff] %vm4988_vm2, %v10241_v46  ;;  %v10242_v21 = vmax.f32 %v10178_v29, 0.0  ;;  %v10610_v40 = vld [vmem:[#allocation3 + $0x2a8] sm:$0xff] }
 0x7d7   :  { %10448 = vst.msk [vmem:[#allocation3 + $0x2e8] sm:$0xff] %vm4988_vm2, %v10239_v41  ;;  %v10240_v35 = vmax.f32 %v10176_v11, 0.0  ;;  %v10613_v7 = vld [vmem:[#allocation3 + $0x2d0] sm:$0xff] }
 0x7d8   :  { %10451 = vst.msk [vmem:[#allocation3 + $0x310] sm:$0xff] %vm4988_vm2, %v10242_v21  ;;  %v10611_v30 = vld [vmem:[#allocation3 + $0x2b0] sm:$0xff]  ;;  %v10656_v36 = vpack.c.bf16 %v10613_v7, %v10612_v8 }
 0x7d9   :  { %10449 = vst.msk [vmem:[#allocation3 + $0x2f0] sm:$0xff] %vm4988_vm2, %v10240_v35  ;;  %v19218_v54 = vpop.f32.mrb[108].mxu1  ;;  %v10655_v60 = vpack.c.bf16 %v10611_v30, %v10610_v40 }
 0x7da   :  { %v10181_v51 = vadd.f32 %v19218_v54, %v25184_v50  ;;  %v9985_v55 = vpop.f32.mrb[109].mxu1 }
 0x7db   :  { %v10179_v13 = vadd.f32 %v25184_v50, %v9985_v55  ;;  %v19219_v14 = vpop.f32.mrb[110].mxu1  ;;  %19277 = vmatmul.mubr.msk.bf16.gmra.mrb[100].mxu0 %vm4988_vm2, %v10655_v60 }
 0x7dc   :  { %v10245_v17 = vmax.f32 %v10181_v51, 0.0  ;;  %v10182_v47 = vadd.f32 %v19219_v14, %v25184_v50  ;;  %v9988_v49 = vpop.f32.mrb[111].mxu1  ;;  %19280 = vmatprep.mubr.msk.bf16.mxu0 %vm4988_vm2, %v10656_v36 }
 0x7dd   :  { %v10243_v16 = vmax.f32 %v10179_v13, 0.0  ;;  %v10180_v18 = vadd.f32 %v25184_v50, %v9988_v49  ;;  %v10616_v37 = vld [vmem:[#allocation3 + $0x308] sm:$0xff] }
 0x7de   :  { %10454 = vst.msk [vmem:[#allocation3 + $0x348] sm:$0xff] %vm4988_vm2, %v10245_v17  ;;  %v10246_v63 = vmax.f32 %v10182_v47, 0.0  ;;  %v10614_v38 = vld [vmem:[#allocation3 + $0x2e8] sm:$0xff] }
 0x7df   :  { %10452 = vst.msk [vmem:[#allocation3 + $0x328] sm:$0xff] %vm4988_vm2, %v10243_v16  ;;  %v10244_v52 = vmax.f32 %v10180_v18, 0.0  ;;  %v10617_v0 = vld [vmem:[#allocation3 + $0x310] sm:$0xff] }
 0x7e0   :  { %10455 = vst.msk [vmem:[#allocation3 + $0x350] sm:$0xff] %vm4988_vm2, %v10246_v63  ;;  %v10615_v15 = vld [vmem:[#allocation3 + $0x2f0] sm:$0xff]  ;;  %v10658_v33 = vpack.c.bf16 %v10617_v0, %v10616_v37 }
 0x7e1   :  { %10453 = vst.msk [vmem:[#allocation3 + $0x330] sm:$0xff] %vm4988_vm2, %v10244_v52  ;;  %v19222_v62 = vpop.f32.mrb[112].mxu1  ;;  %v10657_v32 = vpack.c.bf16 %v10615_v15, %v10614_v38 }
 0x7e2   :  { %v10185_v22 = vadd.f32 %v19222_v62, %v25184_v50  ;;  %v10001_v12 = vpop.f32.mrb[113].mxu1 }
 0x7e3   :  { %v10183_v39 = vadd.f32 %v25184_v50, %v10001_v12  ;;  %v19223_v56 = vpop.f32.mrb[114].mxu1  ;;  %19281 = vmatmul.mubr.msk.bf16.gmra.mrb[104].mxu0 %vm4988_vm2, %v10657_v32 }
 0x7e4   :  { %v10249_v25 = vmax.f32 %v10185_v22, 0.0  ;;  %v10186_v26 = vadd.f32 %v19223_v56, %v25184_v50  ;;  %v10004_v19 = vpop.f32.mrb[115].mxu1  ;;  %19284 = vmatprep.mubr.msk.bf16.mxu0 %vm4988_vm2, %v10658_v33 }
 0x7e5   :  { %v10247_v1 = vmax.f32 %v10183_v39, 0.0  ;;  %v10184_v58 = vadd.f32 %v25184_v50, %v10004_v19  ;;  %v10620_v59 = vld [vmem:[#allocation3 + $0x348] sm:$0xff] }
 0x7e6   :  { %10458 = vst.msk [vmem:[#allocation3 + $0x388] sm:$0xff] %vm4988_vm2, %v10249_v25  ;;  %v10250_v61 = vmax.f32 %v10186_v26, 0.0  ;;  %v10618_v43 = vld [vmem:[#allocation3 + $0x328] sm:$0xff] }
 0x7e7   :  { %10456 = vst.msk [vmem:[#allocation3 + $0x368] sm:$0xff] %vm4988_vm2, %v10247_v1  ;;  %v10248_v45 = vmax.f32 %v10184_v58, 0.0  ;;  %v10621_v34 = vld [vmem:[#allocation3 + $0x350] sm:$0xff] }
 0x7e8   :  { %10459 = vst.msk [vmem:[#allocation3 + $0x390] sm:$0xff] %vm4988_vm2, %v10250_v61  ;;  %v10619_v31 = vld [vmem:[#allocation3 + $0x330] sm:$0xff]  ;;  %v10660_v24 = vpack.c.bf16 %v10621_v34, %v10620_v59  ;;  %v10474_v59 = vld [vmem:[#allocation3 + $0x27] sm:$0xff] }
 0x7e9   :  { %10457 = vst.msk [vmem:[#allocation3 + $0x370] sm:$0xff] %vm4988_vm2, %v10248_v45  ;;  %v19226_v6 = vpop.f32.mrb[116].mxu1  ;;  %v10659_v3 = vpack.c.bf16 %v10619_v31, %v10618_v43  ;;  %v10473_v61 = vld [vmem:[#allocation3 + $0xf] sm:$0xff] }
 0x7ea   :  { %v10189_v23 = vadd.f32 %v19226_v6, %v25184_v50  ;;  %v10017_v20 = vpop.f32.mrb[117].mxu1  ;;  %v10475_v6 = vld [vmem:[#allocation3 + $0x2f] sm:$0xff] }
 0x7eb   :  { %v10187_v42 = vadd.f32 %v25184_v50, %v10017_v20  ;;  %v19227_v28 = vpop.f32.mrb[118].mxu1  ;;  %19285 = vmatmul.mubr.msk.bf16.gmra.mrb[108].mxu0 %vm4988_vm2, %v10659_v3  ;;  %v10477_v3 = vld [vmem:[#allocation3 + $0x4f] sm:$0xff]  ;;  %v10476_v20 = vld [vmem:[#allocation3 + $0x47] sm:$0xff] }
 0x7ec   :  { %v10253_v53 = vmax.f32 %v10189_v23, 0.0  ;;  %v10190_v9 = vadd.f32 %v19227_v28, %v25184_v50  ;;  %v10020_v27 = vpop.f32.mrb[119].mxu1  ;;  %19288 = vmatprep.mubr.msk.bf16.mxu0 %vm4988_vm2, %v10660_v24  ;;  %v25355_v23 = vpack.c.bf16 %v10475_v6, %v10474_v59  ;;  %v21421_v24 = vld [vmem:[%s26324_s5 + $0x28] sm:$0xff]   ;;  %v25370_v28 = vld [vmem:[%s26324_s5 + $0x30] sm:$0xff]  }
 0x7ed   :  { %v10251_v48 = vmax.f32 %v10187_v42, 0.0  ;;  %v10188_v2 = vadd.f32 %v25184_v50, %v10020_v27  ;;  %v10624_v11 = vld [vmem:[#allocation3 + $0x388] sm:$0xff]  ;;  %v25360_v42 = vpack.c.bf16 %v10477_v3, %v10476_v20 }
 0x7ee   :  { %10462 = vst.msk [vmem:[#allocation3 + $0x3c8] sm:$0xff] %vm4988_vm2, %v10253_v53  ;;  %v10254_v5 = vmax.f32 %v10190_v9, 0.0  ;;  %v10622_v46 = vld [vmem:[#allocation3 + $0x368] sm:$0xff] }
 0x7ef   :  { %10460 = vst.msk [vmem:[#allocation3 + $0x3a8] sm:$0xff] %vm4988_vm2, %v10251_v48  ;;  %v10252_v4 = vmax.f32 %v10188_v2, 0.0  ;;  %v10625_v10 = vld [vmem:[#allocation3 + $0x390] sm:$0xff]  ;;  %v10478_v27 = vld [vmem:[#allocation3 + $0x67] sm:$0xff] }
 0x7f0   :  { %10463 = vst.msk [vmem:[#allocation3 + $0x3d0] sm:$0xff] %vm4988_vm2, %v10254_v5  ;;  %v10623_v29 = vld [vmem:[#allocation3 + $0x370] sm:$0xff]  ;;  %v10662_v7 = vpack.c.bf16 %v10625_v10, %v10624_v11  ;;  %v10480_v2 = vld [vmem:[#allocation3 + $0x87] sm:$0xff] }
 0x7f1   :  { %10461 = vst.msk [vmem:[#allocation3 + $0x3b0] sm:$0xff] %vm4988_vm2, %v10252_v4  ;;  %v19230_v57 = vpop.f32.mrb[120].mxu1  ;;  %v10661_v41 = vpack.c.bf16 %v10623_v29, %v10622_v46  ;;  %v10479_v53 = vld [vmem:[#allocation3 + $0x6f] sm:$0xff]  ;;  %v10482_v10 = vld [vmem:[#allocation3 + $0xa7] sm:$0xff] }
 0x7f2   :  { %v10193_v21 = vadd.f32 %v19230_v57, %v25184_v50  ;;  %v10033_v35 = vpop.f32.mrb[121].mxu1  ;;  %v10481_v9 = vld [vmem:[#allocation3 + $0x8f] sm:$0xff]  ;;  %v25372_v48 = vpack.c.bf16 %v10479_v53, %v10478_v27  ;;  %v10484_v29 = vld [vmem:[#allocation3 + $0xc7] sm:$0xff] }
 0x7f3   :  { %v10191_v40 = vadd.f32 %v25184_v50, %v10033_v35  ;;  %v19231_v30 = vpop.f32.mrb[122].mxu1  ;;  %19289 = vmatmul.mubr.msk.bf16.gmra.mrb[112].mxu0 %vm4988_vm2, %v10661_v41  ;;  %v25375_v5 = vpack.c.bf16 %v10481_v9, %v10480_v2  ;;  %v10485_v4 = vld [vmem:[#allocation3 + $0xcf] sm:$0xff]  ;;  %v10514_v6 = vld [vmem:[#allocation3 + $0x2e7] sm:$0xff] }
 0x7f4   :  { %v10257_v54 = vmax.f32 %v10193_v21, 0.0  ;;  %v10194_v60 = vadd.f32 %v19231_v30, %v25184_v50  ;;  %v10036_v8 = vpop.f32.mrb[123].mxu1  ;;  %19292 = vmatprep.mubr.msk.bf16.mxu0 %vm4988_vm2, %v10662_v7  ;;  %v25383_v57 = vpack.c.bf16 %v10485_v4, %v10484_v29  ;;  %v10487_v41 = vld [vmem:[#allocation3 + $0xef] sm:$0xff]  ;;  %v10486_v21 = vld [vmem:[#allocation3 + $0xe7] sm:$0xff] }
 0x7f5   :  { %v10255_v51 = vmax.f32 %v10191_v40, 0.0  ;;  %v10192_v55 = vadd.f32 %v25184_v50, %v10036_v8  ;;  %v10628_v18 = vld [vmem:[#allocation3 + $0x3c8] sm:$0xff]  ;;  %v25389_v35 = vpack.c.bf16 %v10487_v41, %v10486_v21 }
 0x7f6   :  { %10466 = vst.msk [vmem:[#allocation3 + $0x408] sm:$0xff] %vm4988_vm2, %v10257_v54  ;;  %v10258_v36 = vmax.f32 %v10194_v60, 0.0  ;;  %v10626_v17 = vld [vmem:[#allocation3 + $0x3a8] sm:$0xff] }
 0x7f7   :  { %10464 = vst.msk [vmem:[#allocation3 + $0x3e8] sm:$0xff] %vm4988_vm2, %v10255_v51  ;;  %v10256_v13 = vmax.f32 %v10192_v55, 0.0  ;;  %v10629_v14 = vld [vmem:[#allocation3 + $0x3d0] sm:$0xff]  ;;  %v10488_v7 = vld [vmem:[#allocation3 + $0x107] sm:$0xff] }
 0x7f8   :  { %10467 = vst.msk [vmem:[#allocation3 + $0x410] sm:$0xff] %vm4988_vm2, %v10258_v36  ;;  %v10627_v47 = vld [vmem:[#allocation3 + $0x3b0] sm:$0xff]  ;;  %v10664_v0 = vpack.c.bf16 %v10629_v14, %v10628_v18  ;;  %v10490_v60 = vld [vmem:[#allocation3 + $0x127] sm:$0xff] }
 0x7f9   :  { %10465 = vst.msk [vmem:[#allocation3 + $0x3f0] sm:$0xff] %vm4988_vm2, %v10256_v13  ;;  %v19234_v49 = vpop.f32.mrb[124].mxu1  ;;  %v10663_v16 = vpack.c.bf16 %v10627_v47, %v10626_v17  ;;  %v10489_v11 = vld [vmem:[#allocation3 + $0x10f] sm:$0xff]  ;;  %v10492_v51 = vld [vmem:[#allocation3 + $0x147] sm:$0xff] }
 0x7fa   :  { %v10197_v63 = vadd.f32 %v19234_v49, %v25184_v50  ;;  %v10049_v52 = vpop.f32.mrb[125].mxu1  ;;  %v25391_v40 = vpack.c.bf16 %v10489_v11, %v10488_v7  ;;  %v10491_v30 = vld [vmem:[#allocation3 + $0x12f] sm:$0xff]  ;;  %v10494_v14 = vld [vmem:[#allocation3 + $0x167] sm:$0xff] }
 0x7fb   :  { %v10195_v38 = vadd.f32 %v25184_v50, %v10049_v52  ;;  %v19235_v15 = vpop.f32.mrb[126].mxu1  ;;  %19293 = vmatmul.mubr.msk.bf16.gmra.mrb[116].mxu0 %vm4988_vm2, %v10663_v16  ;;  %v10493_v54 = vld [vmem:[#allocation3 + $0x14f] sm:$0xff]  ;;  %v25397_v8 = vpack.c.bf16 %v10491_v30, %v10490_v60  ;;  %v10496_v47 = vld [vmem:[#allocation3 + $0x187] sm:$0xff] }
 0x7fc   :  { %v10261_v62 = vmax.f32 %v10197_v63, 0.0  ;;  %v10198_v32 = vadd.f32 %v19235_v15, %v25184_v50  ;;  %v10052_v37 = vpop.f32.mrb[127].mxu1  ;;  %19296 = vmatprep.mubr.msk.bf16.mxu0 %vm4988_vm2, %v10664_v0  ;;  %v25399_v55 = vpack.c.bf16 %v10493_v54, %v10492_v51  ;;  %v10495_v36 = vld [vmem:[#allocation3 + $0x16f] sm:$0xff]  ;;  %v10498_v63 = vld [vmem:[#allocation3 + $0x1a7] sm:$0xff] }
 0x7fd   :  { %v10259_v22 = vmax.f32 %v10195_v38, 0.0  ;;  %v10196_v12 = vadd.f32 %v25184_v50, %v10052_v37  ;;  %v10632_v1 = vld [vmem:[#allocation3 + $0x408] sm:$0xff]  ;;  %v25405_v17 = vpack.c.bf16 %v10495_v36, %v10494_v14 }
 0x7fe   :  { %10470 = vst.msk [vmem:[#allocation3 + $0x448] sm:$0xff] %vm4988_vm2, %v10261_v62  ;;  %v10262_v33 = vmax.f32 %v10198_v32, 0.0  ;;  %v10630_v25 = vld [vmem:[#allocation3 + $0x3e8] sm:$0xff] }
 0x7ff   :  { %10468 = vst.msk [vmem:[#allocation3 + $0x428] sm:$0xff] %vm4988_vm2, %v10259_v22  ;;  %v10260_v39 = vmax.f32 %v10196_v12, 0.0  ;;  %v10633_v56 = vld [vmem:[#allocation3 + $0x410] sm:$0xff]  ;;  %v10472_v50 = vld [vmem:[#allocation3 + $0x7] sm:$0xff] }
 0x800   :  { %10471 = vst.msk [vmem:[#allocation3 + $0x450] sm:$0xff] %vm4988_vm2, %v10262_v33  ;;  %v10631_v26 = vld [vmem:[#allocation3 + $0x3f0] sm:$0xff]  ;;  %v10666_v58 = vpack.c.bf16 %v10633_v56, %v10632_v1  ;;  %v10536_v43 = vpack.c.bf16 %v10473_v61, %v10472_v50  ;;  %v10500_v0 = vld [vmem:[#allocation3 + $0x1c7] sm:$0xff] }
 0x801   :  { %10469 = vst.msk [vmem:[#allocation3 + $0x430] sm:$0xff] %vm4988_vm2, %v10260_v39  ;;  %v10665_v19 = vpack.c.bf16 %v10631_v26, %v10630_v25  ;;  %v10497_v13 = vld [vmem:[#allocation3 + $0x18f] sm:$0xff]  ;;  %v10504_v15 = vld [vmem:[#allocation3 + $0x247] sm:$0xff] }
 0x802   :  { %v25407_v49 = vpack.c.bf16 %v10497_v13, %v10496_v47  ;;  %v10499_v16 = vld [vmem:[#allocation3 + $0x1af] sm:$0xff]  ;;  %v10502_v37 = vld [vmem:[#allocation3 + $0x1e7] sm:$0xff] }
 0x803   :  { %19297 = vmatmul.mubr.msk.bf16.gmra.mrb[120].mxu0 %vm4988_vm2, %v10665_v19  ;;  %v10501_v18 = vld [vmem:[#allocation3 + $0x1cf] sm:$0xff]  ;;  %v25413_v52 = vpack.c.bf16 %v10499_v16, %v10498_v63  ;;  %v10506_v56 = vld [vmem:[#allocation3 + $0x267] sm:$0xff] }
 0x804   :  { %19300 = vmatprep.mubr.msk.bf16.mxu0 %vm4988_vm2, %v10666_v58  ;;  %v25415_v38 = vpack.c.bf16 %v10501_v18, %v10500_v0  ;;  %v10505_v62 = vld [vmem:[#allocation3 + $0x24f] sm:$0xff]  ;;  %v10508_v26 = vld [vmem:[#allocation3 + $0x287] sm:$0xff] }
 0x805   :  { %v10503_v32 = vld [vmem:[#allocation3 + $0x1ef] sm:$0xff]  ;;  %v10552_v22 = vpack.c.bf16 %v10505_v62, %v10504_v15  ;;  %v10510_v50 = vld [vmem:[#allocation3 + $0x2a7] sm:$0xff] }
 0x806   :  { %v10634_v45 = vld [vmem:[#allocation3 + $0x428] sm:$0xff]  ;;  %v25421_v12 = vpack.c.bf16 %v10503_v32, %v10502_v37  ;;  %v11468_v15 = vld [vmem:[#allocation3 + $0x11] sm:$0xff] }
 0x807   :  { %v10507_v33 = vld [vmem:[#allocation3 + $0x26f] sm:$0xff]  ;;  %v10516_v59 = vld [vmem:[#allocation3 + $0x307] sm:$0xff] }
 0x808   :  { %v10635_v34 = vld [vmem:[#allocation3 + $0x430] sm:$0xff]  ;;  %v25426_v25 = vpack.c.bf16 %v10507_v33, %v10506_v56  ;;  %v10518_v9 = vld [vmem:[#allocation3 + $0x327] sm:$0xff] }
 0x809   :  { %v10667_v31 = vpack.c.bf16 %v10635_v34, %v10634_v45  ;;  %v10509_v39 = vld [vmem:[#allocation3 + $0x28f] sm:$0xff]  ;;  %v10512_v45 = vld [vmem:[#allocation3 + $0x2c7] sm:$0xff] }
 0x80a   :  { %v25428_v19 = vpack.c.bf16 %v10509_v39, %v10508_v26  ;;  %v10511_v1 = vld [vmem:[#allocation3 + $0x2af] sm:$0xff]  ;;  %v10520_v2 = vld [vmem:[#allocation3 + $0x347] sm:$0xff] }
 0x80b   :  { %19301 = vmatmul.mubr.msk.bf16.gmra.mrb[124].mxu0 %vm4988_vm2, %v10667_v31  ;;  %v10513_v58 = vld [vmem:[#allocation3 + $0x2cf] sm:$0xff]  ;;  %v25434_v61 = vpack.c.bf16 %v10511_v1, %v10510_v50  ;;  %v10522_v29 = vld [vmem:[#allocation3 + $0x367] sm:$0xff] }
 0x80c   :  { %19308 = vmatprep.mubr.msk.bf16.mxu0 %vm4988_vm2, %v10536_v43  ;;  %v25436_v34 = vpack.c.bf16 %v10513_v58, %v10512_v45  ;;  %v10515_v43 = vld [vmem:[#allocation3 + $0x2ef] sm:$0xff]  ;;  %v10524_v11 = vld [vmem:[#allocation3 + $0x387] sm:$0xff]  ;;  %v25502_v45 = vld [vmem:[%s26324_s5 + $0x40] sm:$0xff]  }
 0x80d   :  { %v10517_v31 = vld [vmem:[#allocation3 + $0x30f] sm:$0xff]  ;;  %v25442_v3 = vpack.c.bf16 %v10515_v43, %v10514_v6  ;;  %v10526_v54 = vld [vmem:[#allocation3 + $0x3a7] sm:$0xff] }
 0x80e   :  { %v25444_v20 = vpack.c.bf16 %v10517_v31, %v10516_v59  ;;  %v10521_v53 = vld [vmem:[#allocation3 + $0x34f] sm:$0xff]  ;;  %v10528_v51 = vld [vmem:[#allocation3 + $0x3c7] sm:$0xff] }
 0x80f   :  { %v10523_v4 = vld [vmem:[#allocation3 + $0x36f] sm:$0xff]  ;;  %v10530_v47 = vld [vmem:[#allocation3 + $0x3e7] sm:$0xff] }
 0x810   :  { %v25458_v41 = vpack.c.bf16 %v10523_v4, %v10522_v29  ;;  %v10527_v7 = vld [vmem:[#allocation3 + $0x3af] sm:$0xff]  ;;  %v10532_v18 = vld [vmem:[#allocation3 + $0x407] sm:$0xff] }
 0x811   :  { %v10529_v30 = vld [vmem:[#allocation3 + $0x3cf] sm:$0xff]  ;;  %v25466_v60 = vpack.c.bf16 %v10527_v7, %v10526_v54  ;;  %v10534_v32 = vld [vmem:[#allocation3 + $0x427] sm:$0xff] }
 0x812   :  { %v25468_v36 = vpack.c.bf16 %v10529_v30, %v10528_v51  ;;  %v10531_v13 = vld [vmem:[#allocation3 + $0x3ef] sm:$0xff] }
 0x813   :  { %19309 = vmatmul.mubr.msk.bf16.vlgmr.msra.gmra.mrb[64].mxu0 %vm4988_vm2, %v25355_v23  ;;  %v10533_v14 = vld [vmem:[#allocation3 + $0x40f] sm:$0xff]  ;;  %v25474_v16 = vpack.c.bf16 %v10531_v13, %v10530_v47 }
 0x814   :  { %19312 = vmatprep.mubr.msk.bf16.mxu0 %vm4988_vm2, %v25360_v42  ;;  %19373 = vmatpush3.bf16.msra.mxu0 %v25214_v44  ;;  %v10483_v44 = vld [vmem:[#allocation3 + $0xaf] sm:$0xff]  ;;  %v25476_v63 = vpack.c.bf16 %v10533_v14, %v10532_v18 }
 0x815   :  { %19374 = vmatprep.subr.bf16.mxu0 %v21421_v24  ;;  %v25381_v46 = vpack.c.bf16 %v10483_v44, %v10482_v10  ;;  %v25452_v44 = vpack.c.bf16 %v10521_v53, %v10520_v2  ;;  %v10525_v10 = vld [vmem:[#allocation3 + $0x38f] sm:$0xff] }
 0x816   :  { %v25460_v21 = vpack.c.bf16 %v10525_v10, %v10524_v11  ;;  %v11467_v0 = vld [vmem:[#allocation3 + $0x9] sm:$0xff]  ;;  %v11470_v39 = vld [vmem:[#allocation3 + $0x31] sm:$0xff] }
 0x817   :  { %v10535_v62 = vld [vmem:[#allocation3 + $0x42f] sm:$0xff]  ;;  %v11531_v37 = vpack.c.bf16 %v11468_v15, %v11467_v0 }
 0x818   :  { %19375 = vmatpush3.bf16.msra.mxu0 %v21421_v24  ;;  %v10519_v24 = vld [vmem:[#allocation3 + $0x32f] sm:$0xff] }
 0x819   :  { %19440 = vmatprep.subr.bf16.mxu0 %v25370_v28  ;;  %v25450_v27 = vpack.c.bf16 %v10519_v24, %v10518_v9  ;;  %v11469_v33 = vld [vmem:[#allocation3 + $0x29] sm:$0xff]  ;;  %v11472_v26 = vld [vmem:[#allocation3 + $0x51] sm:$0xff] }
 0x81a   :  { %v11471_v56 = vld [vmem:[#allocation3 + $0x49] sm:$0xff]  ;;  %v25487_v1 = vpack.c.bf16 %v11470_v39, %v11469_v33  ;;  %v11474_v31 = vld [vmem:[#allocation3 + $0x71] sm:$0xff] }
 0x81b   :  { %19313 = vmatmul.mubr.msk.bf16.gmra.mrb[68].mxu0 %vm4988_vm2, %v25372_v48  ;;  %v21423_v58 = vld [vmem:[%s26324_s5 + $0x38] sm:$0xff]   ;;  %v25492_v50 = vpack.c.bf16 %v11472_v26, %v11471_v56 }
 0x81c   :  { %19316 = vmatprep.mubr.msk.bf16.mxu0 %vm4988_vm2, %v25375_v5  ;;  %v11473_v43 = vld [vmem:[#allocation3 + $0x69] sm:$0xff]  ;;  %v11476_v59 = vld [vmem:[#allocation3 + $0x91] sm:$0xff] }
 0x81d   :  { %v11475_v6 = vld [vmem:[#allocation3 + $0x89] sm:$0xff]  ;;  %v25504_v24 = vpack.c.bf16 %v11474_v31, %v11473_v43  ;;  %v11478_v9 = vld [vmem:[#allocation3 + $0xb1] sm:$0xff] }
 0x81e   :  { %v25507_v53 = vpack.c.bf16 %v11476_v59, %v11475_v6  ;;  %v11479_v2 = vld [vmem:[#allocation3 + $0xc9] sm:$0xff]  ;;  %v11480_v4 = vld [vmem:[#allocation3 + $0xd1] sm:$0xff] }
 0x81f   :  { %v25515_v29 = vpack.c.bf16 %v11480_v4, %v11479_v2  ;;  %v11481_v11 = vld [vmem:[#allocation3 + $0xe9] sm:$0xff]  ;;  %v11482_v7 = vld [vmem:[#allocation3 + $0xf1] sm:$0xff] }
 0x820   :  { %v11483_v30 = vld [vmem:[#allocation3 + $0x109] sm:$0xff]  ;;  %v11484_v54 = vld [vmem:[#allocation3 + $0x111] sm:$0xff]  ;;  %v25521_v51 = vpack.c.bf16 %v11482_v7, %v11481_v11 }
 0x821   :  { %v25523_v13 = vpack.c.bf16 %v11484_v54, %v11483_v30  ;;  %v11485_v14 = vld [vmem:[#allocation3 + $0x129] sm:$0xff]  ;;  %v11486_v47 = vld [vmem:[#allocation3 + $0x131] sm:$0xff] }
 0x822   :  { %v11487_v18 = vld [vmem:[#allocation3 + $0x149] sm:$0xff]  ;;  %v11488_v0 = vld [vmem:[#allocation3 + $0x151] sm:$0xff]  ;;  %v25529_v15 = vpack.c.bf16 %v11486_v47, %v11485_v14 }
 0x823   :  { %19317 = vmatmul.mubr.msk.bf16.gmra.mrb[72].mxu0 %vm4988_vm2, %v25381_v46  ;;  %v11491_v33 = vld [vmem:[#allocation3 + $0x189] sm:$0xff]  ;;  %v11492_v39 = vld [vmem:[#allocation3 + $0x191] sm:$0xff] }
 0x824   :  { %19320 = vmatprep.mubr.msk.bf16.mxu0 %vm4988_vm2, %v25383_v57  ;;  %v25539_v26 = vpack.c.bf16 %v11492_v39, %v11491_v33  ;;  %v11494_v43 = vld [vmem:[#allocation3 + $0x1b1] sm:$0xff]  ;;  %v11495_v31 = vld [vmem:[#allocation3 + $0x1c9] sm:$0xff] }
 0x825   :  { %v11496_v6 = vld [vmem:[#allocation3 + $0x1d1] sm:$0xff]  ;;  %v11497_v4 = vld [vmem:[#allocation3 + $0x1e9] sm:$0xff] }
 0x826   :  { %v11500_v2 = vld [vmem:[#allocation3 + $0x251] sm:$0xff]  ;;  %v11501_v54 = vld [vmem:[#allocation3 + $0x269] sm:$0xff] }
 0x827   :  { %v11498_v11 = vld [vmem:[#allocation3 + $0x1f1] sm:$0xff]  ;;  %v11503_v47 = vld [vmem:[#allocation3 + $0x289] sm:$0xff] }
 0x828   :  { %v25553_v30 = vpack.c.bf16 %v11498_v11, %v11497_v4  ;;  %v11502_v14 = vld [vmem:[#allocation3 + $0x271] sm:$0xff]  ;;  %v11507_v39 = vld [vmem:[#allocation3 + $0x2c9] sm:$0xff] }
 0x829   :  { %v11506_v33 = vld [vmem:[#allocation3 + $0x2b1] sm:$0xff] }
 0x82a   :  { %v11512_v4 = vld [vmem:[#allocation3 + $0x311] sm:$0xff] }
 0x82b   :  { %19321 = vmatmul.mubr.msk.bf16.gmra.mrb[76].mxu0 %vm4988_vm2, %v25389_v35 }
 0x82c   :  { %19324 = vmatprep.mubr.msk.bf16.mxu0 %vm4988_vm2, %v25391_v40 }
 0x833   :  { %19325 = vmatmul.mubr.msk.bf16.gmra.mrb[80].mxu0 %vm4988_vm2, %v25397_v8 }
 0x834   :  { %19328 = vmatprep.mubr.msk.bf16.mxu0 %vm4988_vm2, %v25399_v55 }
 0x83b   :  { %19329 = vmatmul.mubr.msk.bf16.gmra.mrb[84].mxu0 %vm4988_vm2, %v25405_v17 }
 0x83c   :  { %19332 = vmatprep.mubr.msk.bf16.mxu0 %vm4988_vm2, %v25407_v49 }
 0x843   :  { %19333 = vmatmul.mubr.msk.bf16.gmra.mrb[88].mxu0 %vm4988_vm2, %v25413_v52 }
 0x844   :  { %19336 = vmatprep.mubr.msk.bf16.mxu0 %vm4988_vm2, %v25415_v38 }
 0x84b   :  { %19337 = vmatmul.mubr.msk.bf16.gmra.mrb[92].mxu0 %vm4988_vm2, %v25421_v12 }
 0x84c   :  { %19340 = vmatprep.mubr.msk.bf16.mxu0 %vm4988_vm2, %v10552_v22  ;;  %v25482_v22 = vpack.c.bf16 %v10535_v62, %v10534_v32  ;;  %v25531_v62 = vpack.c.bf16 %v11488_v0, %v11487_v18  ;;  %v11489_v32 = vld [vmem:[#allocation3 + $0x169] sm:$0xff]  ;;  %v11504_v18 = vld [vmem:[#allocation3 + $0x291] sm:$0xff]  ;;  %v25558_v0 = vpack.c.bf16 %v11502_v14, %v11501_v54 }
 0x84d   :  { %v11513_v54 = vld [vmem:[#allocation3 + $0x329] sm:$0xff]  ;;  %v11514_v14 = vld [vmem:[#allocation3 + $0x331] sm:$0xff] }
 0x853   :  { %19341 = vmatmul.mubr.msk.bf16.gmra.mrb[96].mxu0 %vm4988_vm2, %v25426_v25 }
 0x854   :  { %19344 = vmatprep.mubr.msk.bf16.mxu0 %vm4988_vm2, %v25428_v19 }
 0x85b   :  { %19345 = vmatmul.mubr.msk.bf16.gmra.mrb[100].mxu0 %vm4988_vm2, %v25434_v61 }
 0x85c   :  { %19348 = vmatprep.mubr.msk.bf16.mxu0 %vm4988_vm2, %v25436_v34 }
 0x863   :  { %19349 = vmatmul.mubr.msk.bf16.gmra.mrb[104].mxu0 %vm4988_vm2, %v25442_v3 }
 0x864   :  { %19352 = vmatprep.mubr.msk.bf16.mxu0 %vm4988_vm2, %v25444_v20 }
 0x86b   :  { %19353 = vmatmul.mubr.msk.bf16.gmra.mrb[108].mxu0 %vm4988_vm2, %v25450_v27 }
 0x86c   :  { %19356 = vmatprep.mubr.msk.bf16.mxu0 %vm4988_vm2, %v25452_v44 }
 0x873   :  { %19357 = vmatmul.mubr.msk.bf16.gmra.mrb[112].mxu0 %vm4988_vm2, %v25458_v41 }
 0x874   :  { %19360 = vmatprep.mubr.msk.bf16.mxu0 %vm4988_vm2, %v25460_v21 }
 0x87b   :  { %19361 = vmatmul.mubr.msk.bf16.gmra.mrb[116].mxu0 %vm4988_vm2, %v25466_v60 }
 0x87c   :  { %19364 = vmatprep.mubr.msk.bf16.mxu0 %vm4988_vm2, %v25468_v36 }
 0x883   :  { %19365 = vmatmul.mubr.msk.bf16.gmra.mrb[120].mxu0 %vm4988_vm2, %v25474_v16 }
 0x884   :  { %19368 = vmatprep.mubr.msk.bf16.mxu0 %vm4988_vm2, %v25476_v63 }
 0x88b   :  { %19369 = vmatmul.mubr.msk.bf16.gmra.mrb[124].mxu0 %vm4988_vm2, %v25482_v22 }
 0x88c   :  { %19376 = vmatprep.mubr.msk.bf16.mxu0 %vm4988_vm2, %v11531_v37  ;;  %v11490_v37 = vld [vmem:[#allocation3 + $0x171] sm:$0xff] }
 0x88d   :  { %v25537_v56 = vpack.c.bf16 %v11490_v37, %v11489_v32  ;;  %v25560_v32 = vpack.c.bf16 %v11504_v18, %v11503_v47  ;;  %v11505_v37 = vld [vmem:[#allocation3 + $0x2a9] sm:$0xff]  ;;  %v11516_v18 = vld [vmem:[#allocation3 + $0x351] sm:$0xff] }
 0x88e   :  { %v11515_v47 = vld [vmem:[#allocation3 + $0x349] sm:$0xff] }
 0x893   :  { %19377 = vmatmul.mubr.msk.bf16.vlgmr.msra.gmra.mrb[64].mxu0 %vm4988_vm2, %v25487_v1 }
 0x894   :  { %19380 = vmatprep.mubr.msk.bf16.mxu0 %vm4988_vm2, %v25492_v50  ;;  %19441 = vmatpush3.bf16.msra.mxu0 %v25370_v28  ;;  %v11477_v28 = vld [vmem:[#allocation3 + $0xa9] sm:$0xff] }
 0x895   :  { %19442 = vmatprep.subr.bf16.mxu0 %v21423_v58  ;;  %v25513_v10 = vpack.c.bf16 %v11478_v9, %v11477_v28  ;;  %v25547_v28 = vpack.c.bf16 %v11496_v6, %v11495_v31  ;;  %v11499_v9 = vld [vmem:[#allocation3 + $0x249] sm:$0xff] }
 0x896   :  { %v11547_v7 = vpack.c.bf16 %v11500_v2, %v11499_v9  ;;  %v11509_v6 = vld [vmem:[#allocation3 + $0x2e9] sm:$0xff]  ;;  %v11510_v9 = vld [vmem:[#allocation3 + $0x2f1] sm:$0xff] }
 0x897   :  { %v11511_v2 = vld [vmem:[#allocation3 + $0x309] sm:$0xff]  ;;  %v25574_v11 = vpack.c.bf16 %v11510_v9, %v11509_v6  ;;  %v11520_v9 = vld [vmem:[#allocation3 + $0x391] sm:$0xff] }
 0x898   :  { %19443 = vmatpush3.bf16.msra.mxu0 %v21423_v58  ;;  %v11493_v58 = vld [vmem:[#allocation3 + $0x1a9] sm:$0xff] }
 0x899   :  { %19508 = vmatprep.subr.bf16.mxu0 %v25502_v45  ;;  %v25545_v59 = vpack.c.bf16 %v11494_v43, %v11493_v58  ;;  %v11508_v58 = vld [vmem:[#allocation3 + $0x2d1] sm:$0xff]  ;;  %v25566_v43 = vpack.c.bf16 %v11506_v33, %v11505_v37  ;;  %v25582_v37 = vpack.c.bf16 %v11514_v14, %v11513_v54  ;;  %v25584_v33 = vpack.c.bf16 %v11516_v18, %v11515_v47  ;;  %v11519_v6 = vld [vmem:[#allocation3 + $0x389] sm:$0xff] }
 0x89a   :  { %v25568_v31 = vpack.c.bf16 %v11508_v58, %v11507_v39  ;;  %v11517_v39 = vld [vmem:[#allocation3 + $0x369] sm:$0xff]  ;;  %v11518_v58 = vld [vmem:[#allocation3 + $0x371] sm:$0xff] }
 0x89b   :  { %19381 = vmatmul.mubr.msk.bf16.gmra.mrb[68].mxu0 %vm4988_vm2, %v25504_v24  ;;  %26543 = vst [vmem:[#allocation71_spill] sm:$0xff] %v25582_v37  ;;  %26544 = vst [vmem:[#allocation72_spill] sm:$0xff] %v25584_v33  ;;  %v11521_v54 = vld [vmem:[#allocation3 + $0x3a9] sm:$0xff]  ;;  %v11522_v14 = vld [vmem:[#allocation3 + $0x3b1] sm:$0xff] }
 0x89c   :  { %19384 = vmatprep.mubr.msk.bf16.mxu0 %vm4988_vm2, %v25507_v53  ;;  %v11523_v47 = vld [vmem:[#allocation3 + $0x3c9] sm:$0xff]  ;;  %v11524_v18 = vld [vmem:[#allocation3 + $0x3d1] sm:$0xff] }
 0x8a3   :  { %19385 = vmatmul.mubr.msk.bf16.gmra.mrb[72].mxu0 %vm4988_vm2, %v25513_v10 }
 0x8a4   :  { %19388 = vmatprep.mubr.msk.bf16.mxu0 %vm4988_vm2, %v25515_v29 }
 0x8ab   :  { %19389 = vmatmul.mubr.msk.bf16.gmra.mrb[76].mxu0 %vm4988_vm2, %v25521_v51 }
 0x8ac   :  { %19392 = vmatprep.mubr.msk.bf16.mxu0 %vm4988_vm2, %v25523_v13 }
 0x8b3   :  { %19393 = vmatmul.mubr.msk.bf16.gmra.mrb[80].mxu0 %vm4988_vm2, %v25529_v15 }
 0x8b4   :  { %19396 = vmatprep.mubr.msk.bf16.mxu0 %vm4988_vm2, %v25531_v62 }
 0x8bb   :  { %19397 = vmatmul.mubr.msk.bf16.gmra.mrb[84].mxu0 %vm4988_vm2, %v25537_v56 }
 0x8bc   :  { %19400 = vmatprep.mubr.msk.bf16.mxu0 %vm4988_vm2, %v25539_v26 }
 0x8c3   :  { %19401 = vmatmul.mubr.msk.bf16.gmra.mrb[88].mxu0 %vm4988_vm2, %v25545_v59 }
 0x8c4   :  { %19404 = vmatprep.mubr.msk.bf16.mxu0 %vm4988_vm2, %v25547_v28 }
 0x8cb   :  { %19405 = vmatmul.mubr.msk.bf16.gmra.mrb[92].mxu0 %vm4988_vm2, %v25553_v30 }
 0x8cc   :  { %19408 = vmatprep.mubr.msk.bf16.mxu0 %vm4988_vm2, %v11547_v7  ;;  %v25576_v7 = vpack.c.bf16 %v11512_v4, %v11511_v2  ;;  %v25590_v2 = vpack.c.bf16 %v11518_v58, %v11517_v39  ;;  %v25592_v4 = vpack.c.bf16 %v11520_v9, %v11519_v6  ;;  %v11525_v39 = vld [vmem:[#allocation3 + $0x3e9] sm:$0xff]  ;;  %v11526_v58 = vld [vmem:[#allocation3 + $0x3f1] sm:$0xff] }
 0x8cd   :  { %v11527_v6 = vld [vmem:[#allocation3 + $0x409] sm:$0xff]  ;;  %v11528_v9 = vld [vmem:[#allocation3 + $0x411] sm:$0xff] }
 0x8ce   :  { %26545 = vst [vmem:[#allocation73_spill] sm:$0xff] %v25590_v2  ;;  %26546 = vst [vmem:[#allocation74_spill] sm:$0xff] %v25592_v4 }
 0x8d3   :  { %19409 = vmatmul.mubr.msk.bf16.gmra.mrb[96].mxu0 %vm4988_vm2, %v25558_v0 }
 0x8d4   :  { %19412 = vmatprep.mubr.msk.bf16.mxu0 %vm4988_vm2, %v25560_v32 }
 0x8db   :  { %19413 = vmatmul.mubr.msk.bf16.gmra.mrb[100].mxu0 %vm4988_vm2, %v25566_v43 }
 0x8dc   :  { %19416 = vmatprep.mubr.msk.bf16.mxu0 %vm4988_vm2, %v25568_v31 }
 0x8e3   :  { %19417 = vmatmul.mubr.msk.bf16.gmra.mrb[104].mxu0 %vm4988_vm2, %v25574_v11 }
 0x8e4   :  { %19420 = vmatprep.mubr.msk.bf16.mxu0 %vm4988_vm2, %v25576_v7 }
 0x8eb   :  { %19421 = vmatmul.mubr.msk.bf16.gmra.mrb[108].mxu0 %vm4988_vm2, %v25582_v37  ;;  %v25598_v37 = vpack.c.bf16 %v11522_v14, %v11521_v54  ;;  %v11529_v54 = vld [vmem:[#allocation3 + $0x429] sm:$0xff]  ;;  %v11530_v14 = vld [vmem:[#allocation3 + $0x431] sm:$0xff] }
 0x8ec   :  { %19424 = vmatprep.mubr.msk.bf16.mxu0 %vm4988_vm2, %v25584_v33  ;;  %v25600_v33 = vpack.c.bf16 %v11524_v18, %v11523_v47  ;;  %v25614_v47 = vpack.c.bf16 %v11530_v14, %v11529_v54  ;;  %v21425_v18 = vld [vmem:[%s26324_s5 + $0x48] sm:$0xff]   ;;  %v12610_v14 = vld [vmem:[#allocation3 + $0x150] sm:$0xff] }
 0x8f3   :  { %19425 = vmatmul.mubr.msk.bf16.gmra.mrb[112].mxu0 %vm4988_vm2, %v25590_v2  ;;  %v25606_v2 = vpack.c.bf16 %v11526_v58, %v11525_v39  ;;  %v21426_v39 = vld [vmem:[%s26324_s5 + $0x50] sm:$0xff]  }
 0x8f4   :  { %19428 = vmatprep.mubr.msk.bf16.mxu0 %vm4988_vm2, %v25592_v4  ;;  %v25608_v4 = vpack.c.bf16 %v11528_v9, %v11527_v6  ;;  %v12605_v58 = vld [vmem:[#allocation3 + $0x108] sm:$0xff] }
 0x8f5   :  { %v12607_v9 = vld [vmem:[#allocation3 + $0x128] sm:$0xff] }
 0x8fb   :  { %19429 = vmatmul.mubr.msk.bf16.gmra.mrb[116].mxu0 %vm4988_vm2, %v25598_v37 }
 0x8fc   :  { %19432 = vmatprep.mubr.msk.bf16.mxu0 %vm4988_vm2, %v25600_v33 }
 0x903   :  { %19433 = vmatmul.mubr.msk.bf16.gmra.mrb[120].mxu0 %vm4988_vm2, %v25606_v2 }
 0x904   :  { %19436 = vmatprep.mubr.msk.bf16.mxu0 %vm4988_vm2, %v25608_v4 }
 0x90b   :  { %19437 = vmatmul.mubr.msk.bf16.gmra.mrb[124].mxu0 %vm4988_vm2, %v25614_v47 }
 0x90c   :  { %19444 = vmatprep.mubr.msk.bf16.mxu0 %vm4988_vm2, %v25355_v23  ;;  %v12060_v23 = vld [vmem:[#allocation3 + $0x20f] sm:$0xff] }
 0x913   :  { %19445 = vmatmul.mubr.msk.bf16.vlgmr.msra.gmra.mrb[64].mxu0 %vm4988_vm2, %v25360_v42  ;;  %v12059_v42 = vld [vmem:[#allocation3 + $0x207] sm:$0xff] }
 0x914   :  { %19448 = vmatprep.mubr.msk.bf16.mxu0 %vm4988_vm2, %v25372_v48  ;;  %19509 = vmatpush3.bf16.msra.mxu0 %v25502_v45  ;;  %v25655_v48 = vpack.c.bf16 %v12060_v23, %v12059_v42  ;;  %v12608_v45 = vld [vmem:[#allocation3 + $0x130] sm:$0xff]  ;;  %v12611_v42 = vld [vmem:[#allocation3 + $0x168] sm:$0xff] }
 0x915   :  { %19510 = vmatprep.subr.bf16.mxu0 %v21425_v18  ;;  %v25729_v54 = vpack.c.bf16 %v12608_v45, %v12607_v9  ;;  %v12626_v45 = vld [vmem:[#allocation3 + $0x290] sm:$0xff]  ;;  %v12625_v9 = vld [vmem:[#allocation3 + $0x288] sm:$0xff] }
 0x918   :  { %19511 = vmatpush3.bf16.msra.mxu0 %v21425_v18  ;;  %v12612_v18 = vld [vmem:[#allocation3 + $0x170] sm:$0xff] }
 0x919   :  { %19576 = vmatprep.subr.bf16.mxu0 %v21426_v39 }
 0x91b   :  { %19449 = vmatmul.mubr.msk.bf16.gmra.mrb[68].mxu0 %vm4988_vm2, %v25375_v5  ;;  %v12092_v5 = vld [vmem:[#allocation3 + $0x44f] sm:$0xff] }
 0x91c   :  { %19452 = vmatprep.mubr.msk.bf16.mxu0 %vm4988_vm2, %v25381_v46  ;;  %v12592_v46 = vld [vmem:[#allocation3 + $0x30] sm:$0xff] }
 0x923   :  { %19453 = vmatmul.mubr.msk.bf16.gmra.mrb[72].mxu0 %vm4988_vm2, %v25383_v57  ;;  %v12091_v57 = vld [vmem:[#allocation3 + $0x447] sm:$0xff] }
 0x924   :  { %19456 = vmatprep.mubr.msk.bf16.mxu0 %vm4988_vm2, %v25389_v35  ;;  %v25689_v35 = vpack.c.bf16 %v12092_v5, %v12091_v57  ;;  %v25737_v5 = vpack.c.bf16 %v12612_v18, %v12611_v42  ;;  %v12616_v57 = vld [vmem:[#allocation3 + $0x1b0] sm:$0xff]  ;;  %v12627_v18 = vld [vmem:[#allocation3 + $0x2a8] sm:$0xff] }
 0x925   :  { %v12630_v42 = vld [vmem:[#allocation3 + $0x2d0] sm:$0xff] }
 0x92b   :  { %19457 = vmatmul.mubr.msk.bf16.gmra.mrb[76].mxu0 %vm4988_vm2, %v25391_v40  ;;  %v12591_v40 = vld [vmem:[#allocation3 + $0x28] sm:$0xff] }
 0x92c   :  { %19460 = vmatprep.mubr.msk.bf16.mxu0 %vm4988_vm2, %v25397_v8  ;;  %v12655_v8 = vpack.c.bf16 %v12592_v46, %v12591_v40  ;;  %v12614_v46 = vld [vmem:[#allocation3 + $0x190] sm:$0xff]  ;;  %v12613_v40 = vld [vmem:[#allocation3 + $0x188] sm:$0xff] }
 0x933   :  { %19461 = vmatmul.mubr.msk.bf16.gmra.mrb[80].mxu0 %vm4988_vm2, %v25399_v55  ;;  %v12594_v55 = vld [vmem:[#allocation3 + $0x50] sm:$0xff] }
 0x934   :  { %19464 = vmatprep.mubr.msk.bf16.mxu0 %vm4988_vm2, %v25405_v17  ;;  %v12596_v17 = vld [vmem:[#allocation3 + $0x70] sm:$0xff] }
 0x93b   :  { %19465 = vmatmul.mubr.msk.bf16.gmra.mrb[84].mxu0 %vm4988_vm2, %v25407_v49  ;;  %v12593_v49 = vld [vmem:[#allocation3 + $0x48] sm:$0xff] }
 0x93c   :  { %19468 = vmatprep.mubr.msk.bf16.mxu0 %vm4988_vm2, %v25413_v52  ;;  %v25694_v52 = vpack.c.bf16 %v12594_v55, %v12593_v49  ;;  %v12615_v55 = vld [vmem:[#allocation3 + $0x1a8] sm:$0xff]  ;;  %v12618_v49 = vld [vmem:[#allocation3 + $0x1d0] sm:$0xff] }
 0x943   :  { %19469 = vmatmul.mubr.msk.bf16.gmra.mrb[88].mxu0 %vm4988_vm2, %v25415_v38  ;;  %v12595_v38 = vld [vmem:[#allocation3 + $0x68] sm:$0xff] }
 0x944   :  { %19472 = vmatprep.mubr.msk.bf16.mxu0 %vm4988_vm2, %v25421_v12  ;;  %v21427_v12 = vld [vmem:[%s26324_s5 + $0x58] sm:$0xff]  }
 0x94b   :  { %19473 = vmatmul.mubr.msk.bf16.gmra.mrb[92].mxu0 %vm4988_vm2, %v25655_v48 }
 0x94c   :  { %19476 = vmatprep.mubr.msk.bf16.mxu0 %vm4988_vm2, %v25426_v25  ;;  %v25699_v25 = vpack.c.bf16 %v12596_v17, %v12595_v38  ;;  %v25745_v17 = vpack.c.bf16 %v12616_v57, %v12615_v55  ;;  %v12620_v38 = vld [vmem:[#allocation3 + $0x1f0] sm:$0xff]  ;;  %v12629_v57 = vld [vmem:[#allocation3 + $0x2c8] sm:$0xff] }
 0x94d   :  { %v12631_v55 = vld [vmem:[#allocation3 + $0x2e8] sm:$0xff] }
 0x953   :  { %19477 = vmatmul.mubr.msk.bf16.gmra.mrb[96].mxu0 %vm4988_vm2, %v25428_v19  ;;  %v25708_v19 = vld [vmem:[%s26324_s5 + $0x60] sm:$0xff]  }
 0x954   :  { %19480 = vmatprep.mubr.msk.bf16.mxu0 %vm4988_vm2, %v25434_v61  ;;  %v12598_v61 = vld [vmem:[#allocation3 + $0x90] sm:$0xff] }
 0x95b   :  { %19481 = vmatmul.mubr.msk.bf16.gmra.mrb[100].mxu0 %vm4988_vm2, %v25436_v34  ;;  %v12600_v34 = vld [vmem:[#allocation3 + $0xb0] sm:$0xff] }
 0x95c   :  { %19484 = vmatprep.mubr.msk.bf16.mxu0 %vm4988_vm2, %v25442_v3  ;;  %v12597_v3 = vld [vmem:[#allocation3 + $0x88] sm:$0xff] }
 0x963   :  { %19485 = vmatmul.mubr.msk.bf16.gmra.mrb[104].mxu0 %vm4988_vm2, %v25444_v20  ;;  %v25710_v20 = vpack.c.bf16 %v12598_v61, %v12597_v3 }
 0x964   :  { %19488 = vmatprep.mubr.msk.bf16.mxu0 %vm4988_vm2, %v25450_v27  ;;  %v12599_v27 = vld [vmem:[#allocation3 + $0xa8] sm:$0xff] }
 0x96b   :  { %19489 = vmatmul.mubr.msk.bf16.gmra.mrb[108].mxu0 %vm4988_vm2, %v25452_v44  ;;  %v25713_v44 = vpack.c.bf16 %v12600_v34, %v12599_v27  ;;  %v12619_v34 = vld [vmem:[#allocation3 + $0x1e8] sm:$0xff]  ;;  %v12622_v27 = vld [vmem:[#allocation3 + $0x210] sm:$0xff] }
 0x96c   :  { %19492 = vmatprep.mubr.msk.bf16.mxu0 %vm4988_vm2, %v25458_v41  ;;  %v12602_v41 = vld [vmem:[#allocation3 + $0xd0] sm:$0xff]  ;;  %v25753_v3 = vpack.c.bf16 %v12620_v38, %v12619_v34  ;;  %v12633_v34 = vld [vmem:[#allocation3 + $0x308] sm:$0xff] }
 0x96d   :  { %v12634_v38 = vld [vmem:[#allocation3 + $0x310] sm:$0xff] }
 0x973   :  { %19493 = vmatmul.mubr.msk.bf16.gmra.mrb[112].mxu0 %vm4988_vm2, %v25460_v21  ;;  %v12604_v21 = vld [vmem:[#allocation3 + $0xf0] sm:$0xff] }
 0x974   :  { %19496 = vmatprep.mubr.msk.bf16.mxu0 %vm4988_vm2, %v25466_v60  ;;  %v12601_v60 = vld [vmem:[#allocation3 + $0xc8] sm:$0xff] }
 0x97b   :  { %19497 = vmatmul.mubr.msk.bf16.gmra.mrb[116].mxu0 %vm4988_vm2, %v25468_v36  ;;  %v25719_v36 = vpack.c.bf16 %v12602_v41, %v12601_v60  ;;  %v12624_v41 = vld [vmem:[#allocation3 + $0x270] sm:$0xff] }
 0x97c   :  { %19500 = vmatprep.mubr.msk.bf16.mxu0 %vm4988_vm2, %v25474_v16  ;;  %v12603_v16 = vld [vmem:[#allocation3 + $0xe8] sm:$0xff] }
 0x983   :  { %19501 = vmatmul.mubr.msk.bf16.gmra.mrb[120].mxu0 %vm4988_vm2, %v25476_v63  ;;  %v25721_v63 = vpack.c.bf16 %v12604_v21, %v12603_v16  ;;  %v12621_v21 = vld [vmem:[#allocation3 + $0x208] sm:$0xff] }
 0x984   :  { %19504 = vmatprep.mubr.msk.bf16.mxu0 %vm4988_vm2, %v25482_v22  ;;  %v12606_v22 = vld [vmem:[#allocation3 + $0x110] sm:$0xff]  ;;  %v25759_v60 = vpack.c.bf16 %v12622_v27, %v12621_v21  ;;  %v12623_v16 = vld [vmem:[#allocation3 + $0x268] sm:$0xff]  ;;  %v25780_v27 = vpack.c.bf16 %v12634_v38, %v12633_v34 }
 0x985   :  { %v25727_v6 = vpack.c.bf16 %v12606_v22, %v12605_v58  ;;  %v12671_v22 = vpack.c.bf16 %v12624_v41, %v12623_v16  ;;  %v12628_v58 = vld [vmem:[#allocation3 + $0x2b0] sm:$0xff]  ;;  %v12635_v41 = vld [vmem:[#allocation3 + $0x328] sm:$0xff] }
 0x986   :  { %v12638_v16 = vld [vmem:[#allocation3 + $0x350] sm:$0xff]  ;;  %v12643_v38 = vld [vmem:[#allocation3 + $0x3a8] sm:$0xff] }
 0x987   :  { %v12646_v34 = vld [vmem:[#allocation3 + $0x3d0] sm:$0xff] }
 0x98b   :  { %19505 = vmatmul.mubr.msk.bf16.gmra.mrb[124].mxu0 %vm4988_vm2, %v25689_v35 }
 0x98c   :  { %19512 = vmatprep.mubr.msk.bf16.mxu0 %vm4988_vm2, %v12655_v8  ;;  %v25743_v8 = vpack.c.bf16 %v12614_v46, %v12613_v40  ;;  %v12632_v46 = vld [vmem:[#allocation3 + $0x2f0] sm:$0xff]  ;;  %v25772_v40 = vpack.c.bf16 %v12630_v42, %v12629_v57  ;;  %v12641_v57 = vld [vmem:[#allocation3 + $0x388] sm:$0xff] }
 0x98d   :  { %v12642_v42 = vld [vmem:[#allocation3 + $0x390] sm:$0xff] }
 0x993   :  { %19513 = vmatmul.mubr.msk.bf16.vlgmr.msra.gmra.mrb[64].mxu0 %vm4988_vm2, %v25694_v52 }
 0x994   :  { %19516 = vmatprep.mubr.msk.bf16.mxu0 %vm4988_vm2, %v25699_v25  ;;  %19577 = vmatpush3.bf16.msra.mxu0 %v21426_v39  ;;  %v12609_v39 = vld [vmem:[#allocation3 + $0x148] sm:$0xff] }
 0x995   :  { %19578 = vmatprep.subr.bf16.mxu0 %v21427_v12  ;;  %v25735_v23 = vpack.c.bf16 %v12610_v14, %v12609_v39  ;;  %v25764_v14 = vpack.c.bf16 %v12626_v45, %v12625_v9  ;;  %v25766_v39 = vpack.c.bf16 %v12628_v58, %v12627_v18  ;;  %v12637_v45 = vld [vmem:[#allocation3 + $0x348] sm:$0xff] }
 0x996   :  { %v25788_v58 = vpack.c.bf16 %v12638_v16, %v12637_v45  ;;  %v12639_v9 = vld [vmem:[#allocation3 + $0x368] sm:$0xff] }
 0x997   :  { %v12645_v16 = vld [vmem:[#allocation3 + $0x3c8] sm:$0xff] }
 0x998   :  { %19579 = vmatpush3.bf16.msra.mxu0 %v21427_v12  ;;  %v12617_v12 = vld [vmem:[#allocation3 + $0x1c8] sm:$0xff] }
 0x999   :  { %19644 = vmatprep.subr.bf16.mxu0 %v25708_v19  ;;  %v25751_v61 = vpack.c.bf16 %v12618_v49, %v12617_v12  ;;  %v25774_v49 = vpack.c.bf16 %v12632_v46, %v12631_v55  ;;  %v12636_v12 = vld [vmem:[#allocation3 + $0x330] sm:$0xff]  ;;  %v25796_v55 = vpack.c.bf16 %v12642_v42, %v12641_v57  ;;  %v12647_v45 = vld [vmem:[#allocation3 + $0x3e8] sm:$0xff] }
 0x99a   :  { %v25782_v21 = vpack.c.bf16 %v12636_v12, %v12635_v41  ;;  %v12644_v46 = vld [vmem:[#allocation3 + $0x3b0] sm:$0xff]  ;;  %v12649_v57 = vld [vmem:[#allocation3 + $0x408] sm:$0xff] }
 0x99b   :  { %19517 = vmatmul.mubr.msk.bf16.gmra.mrb[68].mxu0 %vm4988_vm2, %v25710_v20  ;;  %26547 = vst [vmem:[#allocation75_spill] sm:$0xff] %v25796_v55  ;;  %v25798_v12 = vpack.c.bf16 %v12644_v46, %v12643_v38  ;;  %v12648_v41 = vld [vmem:[#allocation3 + $0x3f0] sm:$0xff] }
 0x99c   :  { %19520 = vmatprep.mubr.msk.bf16.mxu0 %vm4988_vm2, %v25713_v44  ;;  %v12650_v42 = vld [vmem:[#allocation3 + $0x410] sm:$0xff] }
 0x99d   :  { %26548 = vst [vmem:[#allocation76_spill] sm:$0xff] %v25798_v12  ;;  %v12652_v46 = vld [vmem:[#allocation3 + $0x430] sm:$0xff]  ;;  %v25812_v38 = vpack.c.bf16 %v12650_v42, %v12649_v57  ;;  %v13726_v57 = vld [vmem:[#allocation3 + $0xe7] sm:$0xff] }
 0x99e   :  { %v13727_v42 = vld [vmem:[#allocation3 + $0xef] sm:$0xff] }
 0x9a3   :  { %19521 = vmatmul.mubr.msk.bf16.gmra.mrb[72].mxu0 %vm4988_vm2, %v25719_v36 }
 0x9a4   :  { %19524 = vmatprep.mubr.msk.bf16.mxu0 %vm4988_vm2, %v25721_v63 }
 0x9ab   :  { %19525 = vmatmul.mubr.msk.bf16.gmra.mrb[76].mxu0 %vm4988_vm2, %v25727_v6 }
 0x9ac   :  { %19528 = vmatprep.mubr.msk.bf16.mxu0 %vm4988_vm2, %v25729_v54 }
 0x9b3   :  { %19529 = vmatmul.mubr.msk.bf16.gmra.mrb[80].mxu0 %vm4988_vm2, %v25735_v23 }
 0x9b4   :  { %19532 = vmatprep.mubr.msk.bf16.mxu0 %vm4988_vm2, %v25737_v5 }
 0x9bb   :  { %19533 = vmatmul.mubr.msk.bf16.gmra.mrb[84].mxu0 %vm4988_vm2, %v25743_v8 }
 0x9bc   :  { %19536 = vmatprep.mubr.msk.bf16.mxu0 %vm4988_vm2, %v25745_v17 }
 0x9c3   :  { %19537 = vmatmul.mubr.msk.bf16.gmra.mrb[88].mxu0 %vm4988_vm2, %v25751_v61 }
 0x9c4   :  { %19540 = vmatprep.mubr.msk.bf16.mxu0 %vm4988_vm2, %v25753_v3 }
 0x9cb   :  { %19541 = vmatmul.mubr.msk.bf16.gmra.mrb[92].mxu0 %vm4988_vm2, %v25759_v60 }
 0x9cc   :  { %19544 = vmatprep.mubr.msk.bf16.mxu0 %vm4988_vm2, %v12671_v22  ;;  %v12640_v22 = vld [vmem:[#allocation3 + $0x370] sm:$0xff] }
 0x9cd   :  { %v25790_v18 = vpack.c.bf16 %v12640_v22, %v12639_v9  ;;  %v25804_v22 = vpack.c.bf16 %v12646_v34, %v12645_v16  ;;  %v25806_v9 = vpack.c.bf16 %v12648_v41, %v12647_v45  ;;  %v12654_v34 = vld [vmem:[#allocation3 + $0x450] sm:$0xff]  ;;  %v12653_v41 = vld [vmem:[#allocation3 + $0x448] sm:$0xff] }
 0x9ce   :  { %v25820_v16 = vpack.c.bf16 %v12654_v34, %v12653_v41  ;;  %v21430_v45 = vld [vmem:[%s26324_s5 + $0x70] sm:$0xff]   ;;  %v13785_v34 = vpack.c.bf16 %v13727_v42, %v13726_v57 }
 0x9cf   :  { %v13728_v41 = vld [vmem:[#allocation3 + $0x107] sm:$0xff]  ;;  %v13751_v57 = vld [vmem:[#allocation3 + $0x2af] sm:$0xff] }
 0x9d0   :  { %v13748_v42 = vld [vmem:[#allocation3 + $0x287] sm:$0xff] }
 0x9d3   :  { %19545 = vmatmul.mubr.msk.bf16.gmra.mrb[96].mxu0 %vm4988_vm2, %v25764_v14 }
 0x9d4   :  { %19548 = vmatprep.mubr.msk.bf16.mxu0 %vm4988_vm2, %v25766_v39 }
 0x9db   :  { %19549 = vmatmul.mubr.msk.bf16.gmra.mrb[100].mxu0 %vm4988_vm2, %v25772_v40 }
 0x9dc   :  { %19552 = vmatprep.mubr.msk.bf16.mxu0 %vm4988_vm2, %v25774_v49 }
 0x9e3   :  { %19553 = vmatmul.mubr.msk.bf16.gmra.mrb[104].mxu0 %vm4988_vm2, %v25780_v27 }
 0x9e4   :  { %19556 = vmatprep.mubr.msk.bf16.mxu0 %vm4988_vm2, %v25782_v21 }
 0x9eb   :  { %19557 = vmatmul.mubr.msk.bf16.gmra.mrb[108].mxu0 %vm4988_vm2, %v25788_v58 }
 0x9ec   :  { %19560 = vmatprep.mubr.msk.bf16.mxu0 %vm4988_vm2, %v25790_v18 }
 0x9f3   :  { %19561 = vmatmul.mubr.msk.bf16.gmra.mrb[112].mxu0 %vm4988_vm2, %v25796_v55 }
 0x9f4   :  { %19564 = vmatprep.mubr.msk.bf16.mxu0 %vm4988_vm2, %v25798_v12  ;;  %v12651_v12 = vld [vmem:[#allocation3 + $0x428] sm:$0xff] }
 0x9f5   :  { %v25814_v55 = vpack.c.bf16 %v12652_v46, %v12651_v12  ;;  %v21429_v12 = vld [vmem:[%s26324_s5 + $0x68] sm:$0xff]   ;;  %v13729_v46 = vld [vmem:[#allocation3 + $0x10f] sm:$0xff] }
 0x9fb   :  { %19565 = vmatmul.mubr.msk.bf16.gmra.mrb[116].mxu0 %vm4988_vm2, %v25804_v22 }
 0x9fc   :  { %19568 = vmatprep.mubr.msk.bf16.mxu0 %vm4988_vm2, %v25806_v9 }
 0xa03   :  { %19569 = vmatmul.mubr.msk.bf16.gmra.mrb[120].mxu0 %vm4988_vm2, %v25812_v38 }
 0xa04   :  { %19572 = vmatprep.mubr.msk.bf16.mxu0 %vm4988_vm2, %v25814_v55 }
 0xa0b   :  { %19573 = vmatmul.mubr.msk.bf16.gmra.mrb[124].mxu0 %vm4988_vm2, %v25820_v16 }
 0xa0c   :  { %19580 = vmatprep.mubr.msk.bf16.mxu0 %vm4988_vm2, %v25487_v1  ;;  %v13183_v1 = vld [vmem:[#allocation3 + $0x209] sm:$0xff] }
 0xa13   :  { %19581 = vmatmul.mubr.msk.bf16.vlgmr.msra.gmra.mrb[64].mxu0 %vm4988_vm2, %v25492_v50  ;;  %v13184_v50 = vld [vmem:[#allocation3 + $0x211] sm:$0xff] }
 0xa14   :  { %19584 = vmatprep.mubr.msk.bf16.mxu0 %vm4988_vm2, %v25504_v24  ;;  %19645 = vmatpush3.bf16.msra.mxu0 %v25708_v19  ;;  %v25861_v24 = vpack.c.bf16 %v13184_v50, %v13183_v1  ;;  %v13733_v1 = vld [vmem:[#allocation3 + $0x14f] sm:$0xff]  ;;  %v13730_v50 = vld [vmem:[#allocation3 + $0x127] sm:$0xff] }
 0xa15   :  { %19646 = vmatprep.subr.bf16.mxu0 %v21429_v12 }
 0xa18   :  { %19647 = vmatpush3.bf16.msra.mxu0 %v21429_v12  ;;  %v13786_v12 = vpack.c.bf16 %v13729_v46, %v13728_v41  ;;  %v13750_v41 = vld [vmem:[#allocation3 + $0x2a7] sm:$0xff] }
 0xa19   :  { %19712 = vmatprep.subr.bf16.mxu0 %v21430_v45 }
 0xa1b   :  { %19585 = vmatmul.mubr.msk.bf16.gmra.mrb[68].mxu0 %vm4988_vm2, %v25507_v53  ;;  %v26549_v53 = vld [vmem:[#allocation71_spill] sm:$0xff] }
 0xa1c   :  { %19588 = vmatprep.mubr.msk.bf16.mxu0 %vm4988_vm2, %v25513_v10  ;;  %v26550_v10 = vld [vmem:[#allocation72_spill] sm:$0xff] }
 0xa23   :  { %19589 = vmatmul.mubr.msk.bf16.gmra.mrb[72].mxu0 %vm4988_vm2, %v25515_v29  ;;  %v26551_v29 = vld [vmem:[#allocation73_spill] sm:$0xff] }
 0xa24   :  { %19592 = vmatprep.mubr.msk.bf16.mxu0 %vm4988_vm2, %v25521_v51  ;;  %v26552_v51 = vld [vmem:[#allocation74_spill] sm:$0xff] }
 0xa2b   :  { %19593 = vmatmul.mubr.msk.bf16.gmra.mrb[76].mxu0 %vm4988_vm2, %v25523_v13  ;;  %v13215_v13 = vld [vmem:[#allocation3 + $0x449] sm:$0xff] }
 0xa2c   :  { %19596 = vmatprep.mubr.msk.bf16.mxu0 %vm4988_vm2, %v25529_v15  ;;  %v13216_v15 = vld [vmem:[#allocation3 + $0x451] sm:$0xff] }
 0xa33   :  { %19597 = vmatmul.mubr.msk.bf16.gmra.mrb[80].mxu0 %vm4988_vm2, %v25531_v62  ;;  %v13717_v62 = vld [vmem:[#allocation3 + $0x4f] sm:$0xff] }
 0xa34   :  { %19600 = vmatprep.mubr.msk.bf16.mxu0 %vm4988_vm2, %v25537_v56  ;;  %v25895_v56 = vpack.c.bf16 %v13216_v15, %v13215_v13  ;;  %v13737_v13 = vld [vmem:[#allocation3 + $0x18f] sm:$0xff]  ;;  %v13734_v15 = vld [vmem:[#allocation3 + $0x167] sm:$0xff] }
 0xa3b   :  { %19601 = vmatmul.mubr.msk.bf16.gmra.mrb[84].mxu0 %vm4988_vm2, %v25539_v26  ;;  %v13716_v26 = vld [vmem:[#allocation3 + $0x47] sm:$0xff] }
 0xa3c   :  { %19604 = vmatprep.mubr.msk.bf16.mxu0 %vm4988_vm2, %v25545_v59  ;;  %v13780_v59 = vpack.c.bf16 %v13717_v62, %v13716_v26  ;;  %v13736_v26 = vld [vmem:[#allocation3 + $0x187] sm:$0xff] }
 0xa43   :  { %19605 = vmatmul.mubr.msk.bf16.gmra.mrb[88].mxu0 %vm4988_vm2, %v25547_v28  ;;  %v13719_v28 = vld [vmem:[#allocation3 + $0x6f] sm:$0xff] }
 0xa44   :  { %19608 = vmatprep.mubr.msk.bf16.mxu0 %vm4988_vm2, %v25553_v30  ;;  %v13721_v30 = vld [vmem:[#allocation3 + $0x8f] sm:$0xff] }
 0xa4b   :  { %19609 = vmatmul.mubr.msk.bf16.gmra.mrb[92].mxu0 %vm4988_vm2, %v25861_v24 }
 0xa4c   :  { %19612 = vmatprep.mubr.msk.bf16.mxu0 %vm4988_vm2, %v25558_v0  ;;  %v13718_v0 = vld [vmem:[#allocation3 + $0x67] sm:$0xff] }
 0xa53   :  { %19613 = vmatmul.mubr.msk.bf16.gmra.mrb[96].mxu0 %vm4988_vm2, %v25560_v32  ;;  %v13781_v32 = vpack.c.bf16 %v13719_v28, %v13718_v0  ;;  %v13739_v28 = vld [vmem:[#allocation3 + $0x1af] sm:$0xff]  ;;  %v13738_v0 = vld [vmem:[#allocation3 + $0x1a7] sm:$0xff] }
 0xa54   :  { %19616 = vmatprep.mubr.msk.bf16.mxu0 %vm4988_vm2, %v25566_v43  ;;  %v13720_v43 = vld [vmem:[#allocation3 + $0x87] sm:$0xff] }
 0xa5b   :  { %19617 = vmatmul.mubr.msk.bf16.gmra.mrb[100].mxu0 %vm4988_vm2, %v25568_v31  ;;  %v21431_v31 = vld [vmem:[%s26324_s5 + $0x78] sm:$0xff]  }
 0xa5c   :  { %19620 = vmatprep.mubr.msk.bf16.mxu0 %vm4988_vm2, %v25574_v11  ;;  %v13782_v11 = vpack.c.bf16 %v13721_v30, %v13720_v43  ;;  %v13741_v30 = vld [vmem:[#allocation3 + $0x1cf] sm:$0xff]  ;;  %v13740_v43 = vld [vmem:[#allocation3 + $0x1c7] sm:$0xff] }
 0xa63   :  { %19621 = vmatmul.mubr.msk.bf16.gmra.mrb[104].mxu0 %vm4988_vm2, %v25576_v7  ;;  %v25908_v7 = vld [vmem:[%s26324_s5 + $0x80] sm:$0xff]  }
 0xa64   :  { %19624 = vmatprep.mubr.msk.bf16.mxu0 %vm4988_vm2, %v26549_v53 }
 0xa6b   :  { %19625 = vmatmul.mubr.msk.bf16.gmra.mrb[108].mxu0 %vm4988_vm2, %v26550_v10  ;;  %v13732_v10 = vld [vmem:[#allocation3 + $0x147] sm:$0xff] }
 0xa6c   :  { %19628 = vmatprep.mubr.msk.bf16.mxu0 %vm4988_vm2, %v26551_v29  ;;  %v13788_v29 = vpack.c.bf16 %v13733_v1, %v13732_v10 }
 0xa73   :  { %19629 = vmatmul.mubr.msk.bf16.gmra.mrb[112].mxu0 %vm4988_vm2, %v26552_v51  ;;  %v13735_v51 = vld [vmem:[#allocation3 + $0x16f] sm:$0xff] }
 0xa74   :  { %19632 = vmatprep.mubr.msk.bf16.mxu0 %vm4988_vm2, %v25598_v37  ;;  %v13723_v37 = vld [vmem:[#allocation3 + $0xaf] sm:$0xff]  ;;  %v13789_v62 = vpack.c.bf16 %v13735_v51, %v13734_v15 }
 0xa75   :  { %v13761_v15 = vld [vmem:[#allocation3 + $0x34f] sm:$0xff] }
 0xa7b   :  { %19633 = vmatmul.mubr.msk.bf16.gmra.mrb[116].mxu0 %vm4988_vm2, %v25600_v33  ;;  %v13725_v33 = vld [vmem:[#allocation3 + $0xcf] sm:$0xff] }
 0xa7c   :  { %19636 = vmatprep.mubr.msk.bf16.mxu0 %vm4988_vm2, %v25606_v2  ;;  %v13722_v2 = vld [vmem:[#allocation3 + $0xa7] sm:$0xff] }
 0xa83   :  { %19637 = vmatmul.mubr.msk.bf16.gmra.mrb[120].mxu0 %vm4988_vm2, %v25608_v4  ;;  %v13783_v4 = vpack.c.bf16 %v13723_v37, %v13722_v2  ;;  %v13742_v37 = vld [vmem:[#allocation3 + $0x1e7] sm:$0xff] }
 0xa84   :  { %19640 = vmatprep.mubr.msk.bf16.mxu0 %vm4988_vm2, %v25614_v47  ;;  %v13724_v47 = vld [vmem:[#allocation3 + $0xc7] sm:$0xff] }
 0xa85   :  { %v13784_v19 = vpack.c.bf16 %v13725_v33, %v13724_v47  ;;  %v13746_v2 = vld [vmem:[#allocation3 + $0x227] sm:$0xff] }
 0xa8b   :  { %19641 = vmatmul.mubr.msk.bf16.gmra.mrb[124].mxu0 %vm4988_vm2, %v25895_v56 }
 0xa8c   :  { %19648 = vmatprep.mubr.msk.bf16.mxu0 %vm4988_vm2, %v13780_v59  ;;  %v13790_v59 = vpack.c.bf16 %v13737_v13, %v13736_v26  ;;  %v13759_v13 = vld [vmem:[#allocation3 + $0x32f] sm:$0xff] }
 0xa93   :  { %19649 = vmatmul.mubr.msk.bf16.vlgmr.msra.gmra.mrb[64].mxu0 %vm4988_vm2, %v13781_v32  ;;  %v13791_v32 = vpack.c.bf16 %v13739_v28, %v13738_v0  ;;  %v13765_v0 = vld [vmem:[#allocation3 + $0x38f] sm:$0xff] }
 0xa94   :  { %19652 = vmatprep.mubr.msk.bf16.mxu0 %vm4988_vm2, %v13782_v11  ;;  %19713 = vmatpush3.bf16.msra.mxu0 %v21430_v45  ;;  %v13731_v45 = vld [vmem:[#allocation3 + $0x12f] sm:$0xff] }
 0xa95   :  { %19714 = vmatprep.subr.bf16.mxu0 %v21431_v31  ;;  %v13787_v53 = vpack.c.bf16 %v13731_v45, %v13730_v50  ;;  %v13743_v11 = vld [vmem:[#allocation3 + $0x1ef] sm:$0xff]  ;;  %v13752_v45 = vld [vmem:[#allocation3 + $0x2c7] sm:$0xff] }
 0xa96   :  { %v13793_v33 = vpack.c.bf16 %v13743_v11, %v13742_v37  ;;  %v13757_v50 = vld [vmem:[#allocation3 + $0x30f] sm:$0xff] }
 0xa97   :  { %v13767_v37 = vld [vmem:[#allocation3 + $0x3af] sm:$0xff] }
 0xa98   :  { %19715 = vmatpush3.bf16.msra.mxu0 %v21431_v31  ;;  %v13792_v31 = vpack.c.bf16 %v13741_v30, %v13740_v43  ;;  %v13763_v30 = vld [vmem:[#allocation3 + $0x36f] sm:$0xff] }
 0xa99   :  { %19780 = vmatprep.subr.bf16.mxu0 %v25908_v7 }
 0xa9b   :  { %19653 = vmatmul.mubr.msk.bf16.gmra.mrb[68].mxu0 %vm4988_vm2, %v13783_v4  ;;  %v13747_v4 = vld [vmem:[#allocation3 + $0x22f] sm:$0xff] }
 0xa9c   :  { %19656 = vmatprep.mubr.msk.bf16.mxu0 %vm4988_vm2, %v13784_v19  ;;  %v13795_v47 = vpack.c.bf16 %v13747_v4, %v13746_v2  ;;  %v13749_v19 = vld [vmem:[#allocation3 + $0x28f] sm:$0xff]  ;;  %v13766_v2 = vld [vmem:[#allocation3 + $0x3a7] sm:$0xff] }
 0xa9d   :  { %v13796_v46 = vpack.c.bf16 %v13749_v19, %v13748_v42  ;;  %v13805_v4 = vpack.c.bf16 %v13767_v37, %v13766_v2  ;;  %v13771_v42 = vld [vmem:[#allocation3 + $0x3ef] sm:$0xff] }
 0xa9e   :  { %v14864_v37 = vld [vmem:[#allocation3 + $0x1c9] sm:$0xff] }
 0xaa3   :  { %19657 = vmatmul.mubr.msk.bf16.gmra.mrb[72].mxu0 %vm4988_vm2, %v13785_v34  ;;  %v13753_v34 = vld [vmem:[#allocation3 + $0x2cf] sm:$0xff] }
 0xaa4   :  { %19660 = vmatprep.mubr.msk.bf16.mxu0 %vm4988_vm2, %v13786_v12  ;;  %v13797_v12 = vpack.c.bf16 %v13751_v57, %v13750_v41  ;;  %v13798_v1 = vpack.c.bf16 %v13753_v34, %v13752_v45  ;;  %v13770_v57 = vld [vmem:[#allocation3 + $0x3e7] sm:$0xff]  ;;  %v13775_v45 = vld [vmem:[#allocation3 + $0x42f] sm:$0xff] }
 0xaa5   :  { %v13807_v34 = vpack.c.bf16 %v13771_v42, %v13770_v57  ;;  %v13772_v41 = vld [vmem:[#allocation3 + $0x407] sm:$0xff]  ;;  %v14871_v57 = vld [vmem:[#allocation3 + $0x231] sm:$0xff] }
 0xaab   :  { %19661 = vmatmul.mubr.msk.bf16.gmra.mrb[76].mxu0 %vm4988_vm2, %v13787_v53  ;;  %v13754_v53 = vld [vmem:[#allocation3 + $0x2e7] sm:$0xff] }
 0xaac   :  { %19664 = vmatprep.mubr.msk.bf16.mxu0 %vm4988_vm2, %v13788_v29  ;;  %v13756_v29 = vld [vmem:[#allocation3 + $0x307] sm:$0xff] }
 0xaad   :  { %v13800_v51 = vpack.c.bf16 %v13757_v50, %v13756_v29  ;;  %v13778_v50 = vld [vmem:[#allocation3 + $0x467] sm:$0xff] }
 0xaae   :  { %v21433_v29 = vld [vmem:[%s26324_s5 + $0x88] sm:$0xff]  }
 0xab3   :  { %19665 = vmatmul.mubr.msk.bf16.gmra.mrb[80].mxu0 %vm4988_vm2, %v13789_v62  ;;  %v13758_v62 = vld [vmem:[#allocation3 + $0x327] sm:$0xff] }
 0xab4   :  { %19668 = vmatprep.mubr.msk.bf16.mxu0 %vm4988_vm2, %v13790_v59  ;;  %v13801_v26 = vpack.c.bf16 %v13759_v13, %v13758_v62  ;;  %v13760_v59 = vld [vmem:[#allocation3 + $0x347] sm:$0xff] }
 0xab5   :  { %v13802_v28 = vpack.c.bf16 %v13761_v15, %v13760_v59  ;;  %v14856_v13 = vld [vmem:[#allocation3 + $0x149] sm:$0xff]  ;;  %v14857_v15 = vld [vmem:[#allocation3 + $0x151] sm:$0xff] }
 0xab6   :  { %v14858_v59 = vld [vmem:[#allocation3 + $0x169] sm:$0xff] }
 0xabb   :  { %19669 = vmatmul.mubr.msk.bf16.gmra.mrb[84].mxu0 %vm4988_vm2, %v13791_v32  ;;  %v13762_v32 = vld [vmem:[#allocation3 + $0x367] sm:$0xff] }
 0xabc   :  { %19672 = vmatprep.mubr.msk.bf16.mxu0 %vm4988_vm2, %v13792_v31  ;;  %v13803_v43 = vpack.c.bf16 %v13763_v30, %v13762_v32  ;;  %v13764_v31 = vld [vmem:[#allocation3 + $0x387] sm:$0xff] }
 0xabd   :  { %v13804_v11 = vpack.c.bf16 %v13765_v0, %v13764_v31  ;;  %v14860_v30 = vld [vmem:[#allocation3 + $0x189] sm:$0xff]  ;;  %v14861_v0 = vld [vmem:[#allocation3 + $0x191] sm:$0xff] }
 0xabe   :  { %v14862_v31 = vld [vmem:[#allocation3 + $0x1a9] sm:$0xff] }
 0xac3   :  { %19673 = vmatmul.mubr.msk.bf16.gmra.mrb[88].mxu0 %vm4988_vm2, %v13793_v33  ;;  %v13769_v33 = vld [vmem:[#allocation3 + $0x3cf] sm:$0xff] }
 0xac4   :  { %19676 = vmatprep.mubr.msk.bf16.mxu0 %vm4988_vm2, %v25655_v48  ;;  %v13755_v48 = vld [vmem:[#allocation3 + $0x2ef] sm:$0xff] }
 0xac5   :  { %v13799_v10 = vpack.c.bf16 %v13755_v48, %v13754_v53  ;;  %v13779_v53 = vld [vmem:[#allocation3 + $0x46f] sm:$0xff] }
 0xacb   :  { %19677 = vmatmul.mubr.msk.bf16.gmra.mrb[92].mxu0 %vm4988_vm2, %v13795_v47  ;;  %v13768_v47 = vld [vmem:[#allocation3 + $0x3c7] sm:$0xff] }
 0xacc   :  { %19680 = vmatprep.mubr.msk.bf16.mxu0 %vm4988_vm2, %v13796_v46  ;;  %v13806_v19 = vpack.c.bf16 %v13769_v33, %v13768_v47  ;;  %v13773_v46 = vld [vmem:[#allocation3 + $0x40f] sm:$0xff] }
 0xacd   :  { %v14865_v33 = vld [vmem:[#allocation3 + $0x1d1] sm:$0xff]  ;;  %v14866_v47 = vld [vmem:[#allocation3 + $0x1e9] sm:$0xff] }
 0xad3   :  { %19681 = vmatmul.mubr.msk.bf16.gmra.mrb[96].mxu0 %vm4988_vm2, %v13797_v12  ;;  %v13808_v12 = vpack.c.bf16 %v13773_v46, %v13772_v41  ;;  %v14870_v46 = vld [vmem:[#allocation3 + $0x229] sm:$0xff] }
 0xad4   :  { %19684 = vmatprep.mubr.msk.bf16.mxu0 %vm4988_vm2, %v13798_v1  ;;  %v13774_v1 = vld [vmem:[#allocation3 + $0x427] sm:$0xff] }
 0xad5   :  { %v13809_v48 = vpack.c.bf16 %v13775_v45, %v13774_v1  ;;  %v14872_v41 = vld [vmem:[#allocation3 + $0x289] sm:$0xff] }
 0xad6   :  { %v14874_v1 = vld [vmem:[#allocation3 + $0x2a9] sm:$0xff] }
 0xadb   :  { %19685 = vmatmul.mubr.msk.bf16.gmra.mrb[100].mxu0 %vm4988_vm2, %v13799_v10  ;;  %v13811_v10 = vpack.c.bf16 %v13779_v53, %v13778_v50  ;;  %v14876_v50 = vld [vmem:[#allocation3 + $0x2c9] sm:$0xff]  ;;  %v14877_v53 = vld [vmem:[#allocation3 + $0x2d1] sm:$0xff] }
 0xadc   :  { %19688 = vmatprep.mubr.msk.bf16.mxu0 %vm4988_vm2, %v13800_v51  ;;  %v14855_v51 = vld [vmem:[#allocation3 + $0x131] sm:$0xff] }
 0xae3   :  { %19689 = vmatmul.mubr.msk.bf16.gmra.mrb[104].mxu0 %vm4988_vm2, %v13801_v26  ;;  %v14912_v26 = vpack.c.bf16 %v14857_v15, %v14856_v13  ;;  %v14902_v15 = vld [vmem:[#allocation3 + $0x469] sm:$0xff] }
 0xae4   :  { %19692 = vmatprep.mubr.msk.bf16.mxu0 %vm4988_vm2, %v13802_v28  ;;  %v14859_v28 = vld [vmem:[#allocation3 + $0x171] sm:$0xff] }
 0xae5   :  { %v14913_v32 = vpack.c.bf16 %v14859_v28, %v14858_v59  ;;  %v26045_v59 = vld [vmem:[%s26325_s6] ss:$0 sm:$0xff]  ;;  %s21460_s6 = smov [#allocation4]  }
 0xae6   :  { %s15754_s9 = sshll.u32 %s21460_s6, 4  ;;  %s15755_s9 = int_to_ptr.vmem [resolvable:$true] %s15754_s9 }
 0xae7   :  { %s21435_s10 = scalar_lea.vmem %s15755_s9, 32  ;;  %p21440_p1 = scmp.lt.s32.totalorder %s15755_s9, %s15755_s9 }
 0xae8   :  { %p21436_p0 = scmp.ne.s32.totalorder %s15755_s9, %s21435_s10  ;;  %p21441_p2 = scmp.lt.s32.totalorder %s21435_s10, %s21435_s10 }
 0xaea   :  { %p21442_p3 = por %p21441_p2, %p21440_p1 }
 0xaeb   :  { %19693 = vmatmul.mubr.msk.bf16.gmra.mrb[108].mxu0 %vm4988_vm2, %v13803_v43  ;;  %v14914_v43 = vpack.c.bf16 %v14861_v0, %v14860_v30 }
 0xaec   :  { %19696 = vmatprep.mubr.msk.bf16.mxu0 %vm4988_vm2, %v13804_v11  ;;  %v14863_v11 = vld [vmem:[#allocation3 + $0x1b1] sm:$0xff]  ;;  %p21443_p4 = pnand %p21442_p3, %p21436_p0 }
 0xaed   :  { %v14915_v2 = vpack.c.bf16 %v14863_v11, %v14862_v31  ;;  %v26555_v11 = vld [vmem:[#allocation7_spill] sm:$0xff] }
 0xaf3   :  { %19697 = vmatmul.mubr.msk.bf16.gmra.mrb[112].mxu0 %vm4988_vm2, %v13805_v4  ;;  %v14916_v4 = vpack.c.bf16 %v14865_v33, %v14864_v37  ;;  %v26556_v37 = vmax.f32 %v26555_v11, 0.0  ;;  %v26573_v11 = vld [vmem:[#allocation16_spill] sm:$0xff] }
 0xaf4   :  { %19700 = vmatprep.mubr.msk.bf16.mxu0 %vm4988_vm2, %v13806_v19  ;;  %v14867_v19 = vld [vmem:[#allocation3 + $0x1f1] sm:$0xff] }
 0xaf5   :  { %v14917_v42 = vpack.c.bf16 %v14867_v19, %v14866_v47 }
 0xafb   :  { %19701 = vmatmul.mubr.msk.bf16.gmra.mrb[116].mxu0 %vm4988_vm2, %v13807_v34  ;;  %v14919_v34 = vpack.c.bf16 %v14871_v57, %v14870_v46  ;;  %v26559_v46 = vld [vmem:[#allocation9_spill] sm:$0xff] }
 0xafc   :  { %19704 = vmatprep.mubr.msk.bf16.mxu0 %vm4988_vm2, %v13808_v12  ;;  %v14873_v12 = vld [vmem:[#allocation3 + $0x291] sm:$0xff]  ;;  %v26560_v57 = vmax.f32 %v26559_v46, 0.0 }
 0xafd   :  { %v14920_v45 = vpack.c.bf16 %v14873_v12, %v14872_v41  ;;  %v26561_v41 = vld [vmem:[#allocation10_spill] sm:$0xff] }
 0xafe   :  { %v26562_v12 = vmax.f32 %v26561_v41, 0.0 }
 0xb03   :  { %19705 = vmatmul.mubr.msk.bf16.gmra.mrb[120].mxu0 %vm4988_vm2, %v13809_v48  ;;  %v14875_v48 = vld [vmem:[#allocation3 + $0x2b1] sm:$0xff] }
 0xb04   :  { %19708 = vmatprep.mubr.msk.bf16.mxu0 %vm4988_vm2, %v25689_v35  ;;  %v14308_v35 = vld [vmem:[#allocation3 + $0x228] sm:$0xff] }
 0xb0b   :  { %19709 = vmatmul.mubr.msk.bf16.gmra.mrb[124].mxu0 %vm4988_vm2, %v13811_v10  ;;  %v14921_v10 = vpack.c.bf16 %v14875_v48, %v14874_v1 }
 0xb0c   :  { %19716 = vmatprep.mubr.msk.bf16.mxu0 %vm4988_vm2, %v25694_v52  ;;  %v14309_v52 = vld [vmem:[#allocation3 + $0x230] sm:$0xff] }
 0xb13   :  { %19717 = vmatmul.mubr.msk.bf16.vlgmr.msra.gmra.mrb[64].mxu0 %vm4988_vm2, %v25699_v25  ;;  %v14357_v25 = vpack.c.bf16 %v14309_v52, %v14308_v35  ;;  %v14879_v35 = vld [vmem:[#allocation3 + $0x2f1] sm:$0xff]  ;;  %v14880_v52 = vld [vmem:[#allocation3 + $0x309] sm:$0xff] }
 0xb14   :  { %19720 = vmatprep.mubr.msk.bf16.mxu0 %vm4988_vm2, %v25710_v20  ;;  %19781 = vmatpush3.bf16.msra.mxu0 %v25908_v7  ;;  %v26553_v20 = vld [vmem:[#allocation75_spill] sm:$0xff] }
 0xb15   :  { %19782 = vmatprep.subr.bf16.mxu0 %v21433_v29  ;;  %v14854_v7 = vld [vmem:[#allocation3 + $0x129] sm:$0xff] }
 0xb16   :  { %v14911_v62 = vpack.c.bf16 %v14855_v51, %v14854_v7  ;;  %v14898_v7 = vld [vmem:[#allocation3 + $0x429] sm:$0xff]  ;;  %v14899_v51 = vld [vmem:[#allocation3 + $0x431] sm:$0xff] }
 0xb17   :  { %v14933_v13 = vpack.c.bf16 %v14899_v51, %v14898_v7 }
 0xb18   :  { %19783 = vmatpush3.bf16.msra.mxu0 %v21433_v29  ;;  %v14922_v29 = vpack.c.bf16 %v14877_v53, %v14876_v50 }
 0xb1b   :  { %19721 = vmatmul.mubr.msk.bf16.gmra.mrb[68].mxu0 %vm4988_vm2, %v25713_v44  ;;  %v26554_v44 = vld [vmem:[#allocation76_spill] sm:$0xff] }
 0xb1c   :  { %19724 = vmatprep.mubr.msk.bf16.mxu0 %vm4988_vm2, %v25719_v36  ;;  %v14340_v36 = vld [vmem:[#allocation3 + $0x468] sm:$0xff] }
 0xb23   :  { %19725 = vmatmul.mubr.msk.bf16.gmra.mrb[72].mxu0 %vm4988_vm2, %v25721_v63  ;;  %v14341_v63 = vld [vmem:[#allocation3 + $0x470] sm:$0xff] }
 0xb24   :  { %19728 = vmatprep.mubr.msk.bf16.mxu0 %vm4988_vm2, %v25727_v6  ;;  %v14373_v6 = vpack.c.bf16 %v14341_v63, %v14340_v36  ;;  %v14882_v36 = vld [vmem:[#allocation3 + $0x329] sm:$0xff]  ;;  %v14883_v63 = vld [vmem:[#allocation3 + $0x331] sm:$0xff] }
 0xb2b   :  { %19729 = vmatmul.mubr.msk.bf16.gmra.mrb[76].mxu0 %vm4988_vm2, %v25729_v54  ;;  %v14840_v54 = vld [vmem:[#allocation3 + $0x49] sm:$0xff] }
 0xb2c   :  { %19732 = vmatprep.mubr.msk.bf16.mxu0 %vm4988_vm2, %v25735_v23  ;;  %v14841_v23 = vld [vmem:[#allocation3 + $0x51] sm:$0xff] }
 0xb33   :  { %19733 = vmatmul.mubr.msk.bf16.gmra.mrb[80].mxu0 %vm4988_vm2, %v25737_v5  ;;  %v14904_v5 = vpack.c.bf16 %v14841_v23, %v14840_v54  ;;  %v14885_v54 = vld [vmem:[#allocation3 + $0x351] sm:$0xff]  ;;  %v14925_v23 = vpack.c.bf16 %v14883_v63, %v14882_v36 }
 0xb34   :  { %19736 = vmatprep.mubr.msk.bf16.mxu0 %vm4988_vm2, %v25743_v8  ;;  %v14842_v8 = vld [vmem:[#allocation3 + $0x69] sm:$0xff] }
 0xb3b   :  { %19737 = vmatmul.mubr.msk.bf16.gmra.mrb[84].mxu0 %vm4988_vm2, %v25745_v17  ;;  %v14843_v17 = vld [vmem:[#allocation3 + $0x71] sm:$0xff] }
 0xb3c   :  { %19740 = vmatprep.mubr.msk.bf16.mxu0 %vm4988_vm2, %v25751_v61  ;;  %v14844_v61 = vld [vmem:[#allocation3 + $0x89] sm:$0xff] }
 0xb43   :  { %19741 = vmatmul.mubr.msk.bf16.gmra.mrb[88].mxu0 %vm4988_vm2, %v25753_v3  ;;  %v14845_v3 = vld [vmem:[#allocation3 + $0x91] sm:$0xff] }
 0xb44   :  { %19744 = vmatprep.mubr.msk.bf16.mxu0 %vm4988_vm2, %v25759_v60  ;;  %v14905_v60 = vpack.c.bf16 %v14843_v17, %v14842_v8  ;;  %v14886_v8 = vld [vmem:[#allocation3 + $0x369] sm:$0xff]  ;;  %v14887_v17 = vld [vmem:[#allocation3 + $0x371] sm:$0xff] }
 0xb4b   :  { %19745 = vmatmul.mubr.msk.bf16.gmra.mrb[92].mxu0 %vm4988_vm2, %v14357_v25  ;;  %v14881_v25 = vld [vmem:[#allocation3 + $0x311] sm:$0xff] }
 0xb4c   :  { %19748 = vmatprep.mubr.msk.bf16.mxu0 %vm4988_vm2, %v25764_v14  ;;  %v14906_v14 = vpack.c.bf16 %v14845_v3, %v14844_v61  ;;  %v14888_v61 = vld [vmem:[#allocation3 + $0x389] sm:$0xff]  ;;  %v14889_v3 = vld [vmem:[#allocation3 + $0x391] sm:$0xff] }
 0xb53   :  { %19749 = vmatmul.mubr.msk.bf16.gmra.mrb[96].mxu0 %vm4988_vm2, %v25766_v39  ;;  %v14846_v39 = vld [vmem:[#allocation3 + $0xa9] sm:$0xff] }
 0xb54   :  { %19752 = vmatprep.mubr.msk.bf16.mxu0 %vm4988_vm2, %v25772_v40  ;;  %v14847_v40 = vld [vmem:[#allocation3 + $0xb1] sm:$0xff] }
 0xb5b   :  { %19753 = vmatmul.mubr.msk.bf16.gmra.mrb[100].mxu0 %vm4988_vm2, %v25774_v49  ;;  %v14848_v49 = vld [vmem:[#allocation3 + $0xc9] sm:$0xff] }
 0xb5c   :  { %19756 = vmatprep.mubr.msk.bf16.mxu0 %vm4988_vm2, %v25780_v27  ;;  %v14849_v27 = vld [vmem:[#allocation3 + $0xd1] sm:$0xff] }
 0xb63   :  { %19757 = vmatmul.mubr.msk.bf16.gmra.mrb[104].mxu0 %vm4988_vm2, %v25782_v21  ;;  %v14907_v21 = vpack.c.bf16 %v14847_v40, %v14846_v39  ;;  %v14890_v39 = vld [vmem:[#allocation3 + $0x3a9] sm:$0xff]  ;;  %v14891_v40 = vld [vmem:[#allocation3 + $0x3b1] sm:$0xff] }
 0xb64   :  { %19760 = vmatprep.mubr.msk.bf16.mxu0 %vm4988_vm2, %v25788_v58  ;;  %v14908_v58 = vpack.c.bf16 %v14849_v27, %v14848_v49  ;;  %v14892_v49 = vld [vmem:[#allocation3 + $0x3c9] sm:$0xff]  ;;  %v14893_v27 = vld [vmem:[#allocation3 + $0x3d1] sm:$0xff] }
 0xb6b   :  { %19761 = vmatmul.mubr.msk.bf16.gmra.mrb[108].mxu0 %vm4988_vm2, %v25790_v18  ;;  %v14850_v18 = vld [vmem:[#allocation3 + $0xe9] sm:$0xff] }
 0xb6c   :  { %19764 = vmatprep.mubr.msk.bf16.mxu0 %vm4988_vm2, %v26553_v20 }
 0xb73   :  { %19765 = vmatmul.mubr.msk.bf16.gmra.mrb[112].mxu0 %vm4988_vm2, %v26554_v44  ;;  %v14924_v44 = vpack.c.bf16 %v14881_v25, %v14880_v52 }
 0xb74   :  { %19768 = vmatprep.mubr.msk.bf16.mxu0 %vm4988_vm2, %v25804_v22  ;;  %v14852_v22 = vld [vmem:[#allocation3 + $0x109] sm:$0xff] }
 0xb7b   :  { %19769 = vmatmul.mubr.msk.bf16.gmra.mrb[116].mxu0 %vm4988_vm2, %v25806_v9  ;;  %v14853_v9 = vld [vmem:[#allocation3 + $0x111] sm:$0xff] }
 0xb7c   :  { %19772 = vmatprep.mubr.msk.bf16.mxu0 %vm4988_vm2, %v25812_v38 }
 0xb83   :  { %19773 = vmatmul.mubr.msk.bf16.gmra.mrb[120].mxu0 %vm4988_vm2, %v25814_v55  ;;  %v14851_v55 = vld [vmem:[#allocation3 + $0xf1] sm:$0xff] }
 0xb84   :  { %19776 = vmatprep.mubr.msk.bf16.mxu0 %vm4988_vm2, %v25820_v16  ;;  %v14909_v38 = vpack.c.bf16 %v14851_v55, %v14850_v18  ;;  %v14910_v16 = vpack.c.bf16 %v14853_v9, %v14852_v22  ;;  %v14894_v18 = vld [vmem:[#allocation3 + $0x3e9] sm:$0xff]  ;;  %v14895_v55 = vld [vmem:[#allocation3 + $0x3f1] sm:$0xff] }
 0xb85   :  { %v14896_v22 = vld [vmem:[#allocation3 + $0x409] sm:$0xff]  ;;  %v14897_v9 = vld [vmem:[#allocation3 + $0x411] sm:$0xff] }
 0xb8b   :  { %19777 = vmatmul.mubr.msk.bf16.gmra.mrb[124].mxu0 %vm4988_vm2, %v14373_v6  ;;  %v14884_v6 = vld [vmem:[#allocation3 + $0x349] sm:$0xff] }
 0xb8c   :  { %19784 = vmatprep.mubr.msk.bf16.mxu0 %vm4988_vm2, %v14904_v5  ;;  %v14926_v5 = vpack.c.bf16 %v14885_v54, %v14884_v6  ;;  %v26563_v6 = vld [vmem:[#allocation11_spill] sm:$0xff] }
 0xb8d   :  { %v26564_v54 = vmax.f32 %v26563_v6, 0.0 }
 0xb93   :  { %19785 = vmatmul.mubr.msk.bf16.vlgmr.msra.gmra.mrb[64].mxu0 %vm4988_vm2, %v14905_v60  ;;  %v14927_v60 = vpack.c.bf16 %v14887_v17, %v14886_v8 }
 0xb94   :  { %19788 = vmatprep.mubr.msk.bf16.mxu0 %vm4988_vm2, %v14906_v14  ;;  %v14928_v14 = vpack.c.bf16 %v14889_v3, %v14888_v61 }
 0xb9b   :  { %19789 = vmatmul.mubr.msk.bf16.gmra.mrb[68].mxu0 %vm4988_vm2, %v14907_v21  ;;  %v14929_v21 = vpack.c.bf16 %v14891_v40, %v14890_v39  ;;  %v26567_v39 = vld [vmem:[#allocation13_spill] sm:$0xff] }
 0xb9c   :  { %19792 = vmatprep.mubr.msk.bf16.mxu0 %vm4988_vm2, %v14908_v58  ;;  %v14930_v58 = vpack.c.bf16 %v14893_v27, %v14892_v49  ;;  %v26568_v40 = vmax.f32 %v26567_v39, 0.0  ;;  %v26569_v27 = vld [vmem:[#allocation14_spill] sm:$0xff] }
 0xba3   :  { %19793 = vmatmul.mubr.msk.bf16.gmra.mrb[72].mxu0 %vm4988_vm2, %v14909_v38  ;;  %v14931_v38 = vpack.c.bf16 %v14895_v55, %v14894_v18 }
 0xba4   :  { %19796 = vmatprep.mubr.msk.bf16.mxu0 %vm4988_vm2, %v14910_v16  ;;  %v14932_v16 = vpack.c.bf16 %v14897_v9, %v14896_v22 }
 0xbab   :  { %19797 = vmatmul.mubr.msk.bf16.gmra.mrb[76].mxu0 %vm4988_vm2, %v14911_v62  ;;  %v14903_v62 = vld [vmem:[#allocation3 + $0x471] sm:$0xff] }
 0xbac   :  { %19800 = vmatprep.mubr.msk.bf16.mxu0 %vm4988_vm2, %v14912_v26  ;;  %v14935_v26 = vpack.c.bf16 %v14903_v62, %v14902_v15 }
 0xbb3   :  { %19801 = vmatmul.mubr.msk.bf16.gmra.mrb[80].mxu0 %vm4988_vm2, %v14913_v32 }
 0xbb4   :  { %19804 = vmatprep.mubr.msk.bf16.mxu0 %vm4988_vm2, %v14914_v43 }
 0xbbb   :  { %19805 = vmatmul.mubr.msk.bf16.gmra.mrb[84].mxu0 %vm4988_vm2, %v14915_v2  ;;  %v26557_v2 = vld [vmem:[#allocation8_spill] sm:$0xff] }
 0xbbc   :  { %19808 = vmatprep.mubr.msk.bf16.mxu0 %vm4988_vm2, %v14916_v4  ;;  %v26558_v4 = vmax.f32 %v26557_v2, 0.0 }
 0xbc3   :  { %19809 = vmatmul.mubr.msk.bf16.gmra.mrb[88].mxu0 %vm4988_vm2, %v14917_v42 }
 0xbc4   :  { %19812 = vmatprep.mubr.msk.bf16.mxu0 %vm4988_vm2, %v25861_v24  ;;  %v14878_v24 = vld [vmem:[#allocation3 + $0x2e9] sm:$0xff] }
 0xbc5   :  { %v14923_v20 = vpack.c.bf16 %v14879_v35, %v14878_v24 }
 0xbcb   :  { %19813 = vmatmul.mubr.msk.bf16.gmra.mrb[92].mxu0 %vm4988_vm2, %v14919_v34 }
 0xbcc   :  { %19816 = vmatprep.mubr.msk.bf16.mxu0 %vm4988_vm2, %v14920_v45 }
 0xbd3   :  { %19817 = vmatmul.mubr.msk.bf16.gmra.mrb[96].mxu0 %vm4988_vm2, %v14921_v10 }
 0xbd4   :  { %19820 = vmatprep.mubr.msk.bf16.mxu0 %vm4988_vm2, %v14922_v29 }
 0xbdb   :  { %19821 = vmatmul.mubr.msk.bf16.gmra.mrb[100].mxu0 %vm4988_vm2, %v14923_v20 }
 0xbdc   :  { %19824 = vmatprep.mubr.msk.bf16.mxu0 %vm4988_vm2, %v14924_v44 }
 0xbe3   :  { %19825 = vmatmul.mubr.msk.bf16.gmra.mrb[104].mxu0 %vm4988_vm2, %v14925_v23 }
 0xbe4   :  { %19828 = vmatprep.mubr.msk.bf16.mxu0 %vm4988_vm2, %v14926_v5  ;;  %v26565_v5 = vld [vmem:[#allocation12_spill] sm:$0xff] }
 0xbe5   :  { %v26566_v8 = vmax.f32 %v26565_v5, 0.0 }
 0xbeb   :  { %19829 = vmatmul.mubr.msk.bf16.gmra.mrb[108].mxu0 %vm4988_vm2, %v14927_v60 }
 0xbec   :  { %19832 = vmatprep.mubr.msk.bf16.mxu0 %vm4988_vm2, %v14928_v14 }
 0xbf3   :  { %19833 = vmatmul.mubr.msk.bf16.gmra.mrb[112].mxu0 %vm4988_vm2, %v14929_v21  ;;  %v26570_v21 = vmax.f32 %v26569_v27, 0.0 }
 0xbf4   :  { %19836 = vmatprep.mubr.msk.bf16.mxu0 %vm4988_vm2, %v14930_v58 }
 0xbfb   :  { %19837 = vmatmul.mubr.msk.bf16.gmra.mrb[116].mxu0 %vm4988_vm2, %v14931_v38 }
 0xbfc   :  { %19840 = vmatprep.mubr.msk.bf16.mxu0 %vm4988_vm2, %v14932_v16 }
 0xc03   :  { %19841 = vmatmul.mubr.msk.bf16.gmra.mrb[120].mxu0 %vm4988_vm2, %v14933_v13 }
 0xc04   :  { %19844 = vmatprep.mubr.msk.bf16.mxu0 %vm4988_vm2, %v25895_v56 }
 0xc0b   :  { %19845 = vmatmul.mubr.msk.bf16.gmra.mrb[124].mxu0 %vm4988_vm2, %v14935_v26 }
 0xc66   :  { %v19786_v28 = vpop.f32.mrb[64].mxu0 }
 0xc67   :  { %v15411_v30 = vadd.f32 %v19786_v28, %v26045_v59  ;;  %v15083_v0 = vpop.f32.mrb[65].mxu0 }
 0xc68   :  { %v15409_v32 = vadd.f32 %v26045_v59, %v15083_v0  ;;  %v19787_v43 = vpop.f32.mrb[66].mxu0 }
 0xc69   :  { %v15412_v31 = vadd.f32 %v19787_v43, %v26045_v59  ;;  %v15086_v56 = vpop.f32.mrb[67].mxu0  ;;  %v15475_v33 = vadd.f32 %v15411_v30, %v26556_v37  ;;  %v26571_v43 = vld [vmem:[#allocation15_spill] sm:$0xff]  ;;  %v26574_v37 = vmax.f32 %v26573_v11, 0.0 }
 0xc6a   :  { %v15473_v47 = vadd.f32 %v15409_v32, %v26558_v4  ;;  %v15410_v19 = vadd.f32 %v26045_v59, %v15086_v56 }
 0xc6b   :  { %v15476_v34 = vadd.f32 %v15412_v31, %v26560_v57  ;;  %v15539_v1 = vmax.f32 %v15475_v33, 0.0  ;;  %v26572_v31 = vmax.f32 %v26571_v43, 0.0 }
 0xc6c   :  { %v15537_v42 = vmax.f32 %v15473_v47, 0.0  ;;  %v15474_v45 = vadd.f32 %v15410_v19, %v26562_v12 }
 0xc6d   :  { %v15540_v24 = vmax.f32 %v15476_v34, 0.0  ;;  %v15604_v63 = vsel %vm4988_vm2, %v15539_v1, 0.0  ;;  %v26577_v34 = vld [vmem:[#allocation18_spill] sm:$0xff] }
 0xc6e   :  { %v15538_v48 = vmax.f32 %v15474_v45, 0.0  ;;  %v19790_v50 = vpop.f32.mrb[68].mxu0  ;;  %v15601_v29 = vsel %vm4988_vm2, %v15537_v42, 0.0  ;;  %v26575_v42 = vld [vmem:[#allocation17_spill] sm:$0xff]  ;;  %v26578_v41 = vmax.f32 %v26577_v34, 0.0 }
 0xc6f   :  { %v15415_v53 = vadd.f32 %v19790_v50, %v26045_v59  ;;  %v15099_v10 = vpop.f32.mrb[69].mxu0  ;;  %v15606_v60 = vsel %vm4988_vm2, %v15540_v24, 0.0  ;;  %v26576_v46 = vmax.f32 %v26575_v42, 0.0 }
 0xc70   :  { %v15602_v35 = vsel %vm4988_vm2, %v15538_v48, 0.0  ;;  %v15413_v52 = vadd.f32 %v26045_v59, %v15099_v10  ;;  %v19791_v25 = vpop.f32.mrb[70].mxu0 }
 0xc71   :  { %v15603_v20 = vadd.f32 %v15602_v35, %v15601_v29  ;;  %v15416_v44 = vadd.f32 %v19791_v25, %v26045_v59  ;;  %v15102_v36 = vpop.f32.mrb[71].mxu0  ;;  %v15479_v23 = vadd.f32 %v15415_v53, %v26564_v54  ;;  %v26579_v54 = vld [vmem:[#allocation19_spill] sm:$0xff] }
 0xc72   :  { %v15477_v17 = vadd.f32 %v15413_v52, %v26566_v8  ;;  %v15414_v61 = vadd.f32 %v26045_v59, %v15102_v36  ;;  %v26581_v8 = vld [vmem:[#allocation20_spill] sm:$0xff] }
 0xc73   :  { %v15605_v3 = vadd.f32 %v15604_v63, %v15603_v20  ;;  %v15480_v49 = vadd.f32 %v15416_v44, %v26568_v40  ;;  %v15543_v55 = vmax.f32 %v15479_v23, 0.0  ;;  %v26580_v23 = vmax.f32 %v26579_v54, 0.0  ;;  %v26583_v40 = vld [vmem:[#allocation21_spill] sm:$0xff] }
 0xc74   :  { %v15541_v14 = vmax.f32 %v15477_v17, 0.0  ;;  %v15478_v58 = vadd.f32 %v15414_v61, %v26570_v21  ;;  %v26582_v17 = vmax.f32 %v26581_v8, 0.0  ;;  %v26585_v21 = vld [vmem:[#allocation22_spill] sm:$0xff] }
 0xc75   :  { %v15607_v18 = vadd.f32 %v15606_v60, %v15605_v3  ;;  %v15544_v13 = vmax.f32 %v15480_v49, 0.0  ;;  %v15612_v32 = vsel %vm4988_vm2, %v15543_v55, 0.0  ;;  %v26584_v49 = vmax.f32 %v26583_v40, 0.0 }
 0xc76   :  { %v15608_v22 = vsel %vm4988_vm2, %v15541_v14, 0.0  ;;  %v15542_v9 = vmax.f32 %v15478_v58, 0.0  ;;  %v19794_v38 = vpop.f32.mrb[72].mxu0  ;;  %v26586_v58 = vmax.f32 %v26585_v21, 0.0 }
 0xc77   :  { %v15609_v16 = vadd.f32 %v15608_v22, %v15607_v18  ;;  %v15419_v7 = vadd.f32 %v19794_v38, %v26045_v59  ;;  %v15115_v51 = vpop.f32.mrb[73].mxu0  ;;  %v15614_v47 = vsel %vm4988_vm2, %v15544_v13, 0.0 }
 0xc78   :  { %v15610_v15 = vsel %vm4988_vm2, %v15542_v9, 0.0  ;;  %v15417_v62 = vadd.f32 %v26045_v59, %v15115_v51  ;;  %v19795_v26 = vpop.f32.mrb[74].mxu0 }
 0xc79   :  { %v15611_v28 = vadd.f32 %v15610_v15, %v15609_v16  ;;  %v15420_v30 = vadd.f32 %v19795_v26, %v26045_v59  ;;  %v15118_v0 = vpop.f32.mrb[75].mxu0  ;;  %v15483_v56 = vadd.f32 %v15419_v7, %v26572_v31  ;;  %v26587_v31 = vld [vmem:[#allocation23_spill] sm:$0xff] }
 0xc7a   :  { %v15481_v33 = vadd.f32 %v15417_v62, %v26574_v37  ;;  %v15418_v2 = vadd.f32 %v26045_v59, %v15118_v0  ;;  %v26589_v37 = vld [vmem:[#allocation24_spill] sm:$0xff] }
 0xc7b   :  { %v15613_v4 = vadd.f32 %v15612_v32, %v15611_v28  ;;  %v15484_v57 = vadd.f32 %v15420_v30, %v26576_v46  ;;  %v15547_v1 = vmax.f32 %v15483_v56, 0.0  ;;  %v26588_v56 = vmax.f32 %v26587_v31, 0.0  ;;  %v26591_v46 = vld [vmem:[#allocation25_spill] sm:$0xff] }
 0xc7c   :  { %v15545_v19 = vmax.f32 %v15481_v33, 0.0  ;;  %v15482_v12 = vadd.f32 %v15418_v2, %v26578_v41  ;;  %v26590_v33 = vmax.f32 %v26589_v37, 0.0  ;;  %v26593_v41 = vld [vmem:[#allocation26_spill] sm:$0xff] }
 0xc7d   :  { %v15615_v45 = vadd.f32 %v15614_v47, %v15613_v4  ;;  %v15548_v35 = vmax.f32 %v15484_v57, 0.0  ;;  %v15620_v6 = vsel %vm4988_vm2, %v15547_v1, 0.0  ;;  %v26592_v57 = vmax.f32 %v26591_v46, 0.0 }
 0xc7e   :  { %v15616_v48 = vsel %vm4988_vm2, %v15545_v19, 0.0  ;;  %v15546_v50 = vmax.f32 %v15482_v12, 0.0  ;;  %v19798_v53 = vpop.f32.mrb[76].mxu0  ;;  %v26594_v12 = vmax.f32 %v26593_v41, 0.0 }
 0xc7f   :  { %v15617_v10 = vadd.f32 %v15616_v48, %v15615_v45  ;;  %v15423_v29 = vadd.f32 %v19798_v53, %v26045_v59  ;;  %v15131_v24 = vpop.f32.mrb[77].mxu0  ;;  %v15622_v14 = vsel %vm4988_vm2, %v15548_v35, 0.0 }
 0xc80   :  { %v15618_v52 = vsel %vm4988_vm2, %v15546_v50, 0.0  ;;  %v15421_v25 = vadd.f32 %v26045_v59, %v15131_v24  ;;  %v19799_v20 = vpop.f32.mrb[78].mxu0 }
 0xc81   :  { %v15619_v44 = vadd.f32 %v15618_v52, %v15617_v10  ;;  %v15424_v36 = vadd.f32 %v19799_v20, %v26045_v59  ;;  %v15134_v63 = vpop.f32.mrb[79].mxu0  ;;  %v15487_v5 = vadd.f32 %v15423_v29, %v26580_v23  ;;  %v26595_v23 = vld [vmem:[#allocation27_spill] sm:$0xff] }
 0xc82   :  { %v15485_v61 = vadd.f32 %v15421_v25, %v26582_v17  ;;  %v15422_v3 = vadd.f32 %v26045_v59, %v15134_v63  ;;  %v26597_v17 = vld [vmem:[#allocation28_spill] sm:$0xff] }
 0xc83   :  { %v15621_v60 = vadd.f32 %v15620_v6, %v15619_v44  ;;  %v15488_v27 = vadd.f32 %v15424_v36, %v26584_v49  ;;  %v15551_v22 = vmax.f32 %v15487_v5, 0.0  ;;  %v26596_v5 = vmax.f32 %v26595_v23, 0.0  ;;  %v26599_v49 = vld [vmem:[#allocation29_spill] sm:$0xff] }
 0xc84   :  { %v15549_v39 = vmax.f32 %v15485_v61, 0.0  ;;  %v15486_v18 = vadd.f32 %v15422_v3, %v26586_v58  ;;  %v26598_v61 = vmax.f32 %v26597_v17, 0.0  ;;  %v26601_v58 = vld [vmem:[#allocation30_spill] sm:$0xff] }
 0xc85   :  { %v15623_v55 = vadd.f32 %v15622_v14, %v15621_v60  ;;  %v15552_v15 = vmax.f32 %v15488_v27, 0.0  ;;  %v15628_v43 = vsel %vm4988_vm2, %v15551_v22, 0.0  ;;  %v26600_v27 = vmax.f32 %v26599_v49, 0.0 }
 0xc86   :  { %v15624_v9 = vsel %vm4988_vm2, %v15549_v39, 0.0  ;;  %v15550_v38 = vmax.f32 %v15486_v18, 0.0  ;;  %v19802_v16 = vpop.f32.mrb[80].mxu0  ;;  %v26602_v18 = vmax.f32 %v26601_v58, 0.0 }
 0xc87   :  { %v15625_v7 = vadd.f32 %v15624_v9, %v15623_v55  ;;  %v15427_v51 = vadd.f32 %v19802_v16, %v26045_v59  ;;  %v15147_v13 = vpop.f32.mrb[81].mxu0  ;;  %v15630_v19 = vsel %vm4988_vm2, %v15552_v15, 0.0 }
 0xc88   :  { %v15626_v62 = vsel %vm4988_vm2, %v15550_v38, 0.0  ;;  %v15425_v26 = vadd.f32 %v26045_v59, %v15147_v13  ;;  %v19803_v28 = vpop.f32.mrb[82].mxu0 }
 0xc89   :  { %v15627_v30 = vadd.f32 %v15626_v62, %v15625_v7  ;;  %v15428_v0 = vadd.f32 %v19803_v28, %v26045_v59  ;;  %v15150_v32 = vpop.f32.mrb[83].mxu0  ;;  %v15491_v11 = vadd.f32 %v15427_v51, %v26588_v56  ;;  %v26603_v56 = vld [vmem:[#allocation31_spill] sm:$0xff] }
 0xc8a   :  { %v15489_v2 = vadd.f32 %v15425_v26, %v26590_v33  ;;  %v15426_v4 = vadd.f32 %v26045_v59, %v15150_v32  ;;  %v26605_v33 = vld [vmem:[#allocation32_spill] sm:$0xff] }
 0xc8b   :  { %v15629_v47 = vadd.f32 %v15628_v43, %v15627_v30  ;;  %v15492_v34 = vadd.f32 %v15428_v0, %v26592_v57  ;;  %v15555_v48 = vmax.f32 %v15491_v11, 0.0  ;;  %v26604_v11 = vmax.f32 %v26603_v56, 0.0  ;;  %v26607_v57 = vld [vmem:[#allocation33_spill] sm:$0xff] }
 0xc8c   :  { %v15553_v42 = vmax.f32 %v15489_v2, 0.0  ;;  %v15490_v45 = vadd.f32 %v15426_v4, %v26594_v12  ;;  %v26606_v2 = vmax.f32 %v26605_v33, 0.0  ;;  %v26609_v12 = vld [vmem:[#allocation34_spill] sm:$0xff] }
 0xc8d   :  { %v15631_v1 = vadd.f32 %v15630_v19, %v15629_v47  ;;  %v15556_v52 = vmax.f32 %v15492_v34, 0.0  ;;  %v15636_v54 = vsel %vm4988_vm2, %v15555_v48, 0.0  ;;  %v26608_v34 = vmax.f32 %v26607_v57, 0.0 }
 0xc8e   :  { %v15632_v50 = vsel %vm4988_vm2, %v15553_v42, 0.0  ;;  %v15554_v53 = vmax.f32 %v15490_v45, 0.0  ;;  %v19806_v10 = vpop.f32.mrb[84].mxu0  ;;  %v26610_v45 = vmax.f32 %v26609_v12, 0.0 }
 0xc8f   :  { %v15633_v29 = vadd.f32 %v15632_v50, %v15631_v1  ;;  %v15431_v24 = vadd.f32 %v19806_v10, %v26045_v59  ;;  %v15163_v35 = vpop.f32.mrb[85].mxu0  ;;  %v15638_v39 = vsel %vm4988_vm2, %v15556_v52, 0.0 }
 0xc90   :  { %v15634_v25 = vsel %vm4988_vm2, %v15554_v53, 0.0  ;;  %v15429_v20 = vadd.f32 %v26045_v59, %v15163_v35  ;;  %v19807_v44 = vpop.f32.mrb[86].mxu0 }
 0xc91   :  { %v15635_v36 = vadd.f32 %v15634_v25, %v15633_v29  ;;  %v15432_v63 = vadd.f32 %v19807_v44, %v26045_v59  ;;  %v15166_v6 = vpop.f32.mrb[87].mxu0  ;;  %v15495_v8 = vadd.f32 %v15431_v24, %v26596_v5  ;;  %v26611_v5 = vld [vmem:[#allocation35_spill] sm:$0xff] }
 0xc92   :  { %v15493_v3 = vadd.f32 %v15429_v20, %v26598_v61  ;;  %v15430_v60 = vadd.f32 %v26045_v59, %v15166_v6  ;;  %v26613_v61 = vld [vmem:[#allocation36_spill] sm:$0xff] }
 0xc93   :  { %v15637_v14 = vadd.f32 %v15636_v54, %v15635_v36  ;;  %v15496_v21 = vadd.f32 %v15432_v63, %v26600_v27  ;;  %v15559_v9 = vmax.f32 %v15495_v8, 0.0  ;;  %v26612_v8 = vmax.f32 %v26611_v5, 0.0  ;;  %v26615_v27 = vld [vmem:[#allocation37_spill] sm:$0xff]  ;;  %v26627_v5 = vld [vmem:[#allocation43_spill] sm:$0xff] }
 0xc94   :  { %v15557_v40 = vmax.f32 %v15493_v3, 0.0  ;;  %v15494_v55 = vadd.f32 %v15430_v60, %v26602_v18  ;;  %v26614_v3 = vmax.f32 %v26613_v61, 0.0  ;;  %v26617_v18 = vld [vmem:[#allocation38_spill] sm:$0xff]  ;;  %v26629_v61 = vld [vmem:[#allocation44_spill] sm:$0xff] }
 0xc95   :  { %v15639_v22 = vadd.f32 %v15638_v39, %v15637_v14  ;;  %v15560_v62 = vmax.f32 %v15496_v21, 0.0  ;;  %v15644_v31 = vsel %vm4988_vm2, %v15559_v9, 0.0  ;;  %v26616_v21 = vmax.f32 %v26615_v27, 0.0  ;;  %v26631_v27 = vld [vmem:[#allocation45_spill] sm:$0xff] }
 0xc96   :  { %v15640_v38 = vsel %vm4988_vm2, %v15557_v40, 0.0  ;;  %v15558_v16 = vmax.f32 %v15494_v55, 0.0  ;;  %v19810_v7 = vpop.f32.mrb[88].mxu0  ;;  %v26618_v55 = vmax.f32 %v26617_v18, 0.0  ;;  %v26633_v18 = vld [vmem:[#allocation46_spill] sm:$0xff] }
 0xc97   :  { %v15641_v51 = vadd.f32 %v15640_v38, %v15639_v22  ;;  %v15435_v13 = vadd.f32 %v19810_v7, %v26045_v59  ;;  %v15179_v15 = vpop.f32.mrb[89].mxu0  ;;  %v15646_v42 = vsel %vm4988_vm2, %v15560_v62, 0.0 }
 0xc98   :  { %v15642_v26 = vsel %vm4988_vm2, %v15558_v16, 0.0  ;;  %v15433_v28 = vadd.f32 %v26045_v59, %v15179_v15  ;;  %v19811_v30 = vpop.f32.mrb[90].mxu0 }
 0xc99   :  { %v15643_v0 = vadd.f32 %v15642_v26, %v15641_v51  ;;  %v15436_v32 = vadd.f32 %v19811_v30, %v26045_v59  ;;  %v15182_v43 = vpop.f32.mrb[91].mxu0  ;;  %v15499_v37 = vadd.f32 %v15435_v13, %v26604_v11  ;;  %v26619_v11 = vld [vmem:[#allocation39_spill] sm:$0xff] }
 0xc9a   :  { %v15497_v4 = vadd.f32 %v15433_v28, %v26606_v2  ;;  %v15434_v47 = vadd.f32 %v26045_v59, %v15182_v43  ;;  %v26621_v2 = vld [vmem:[#allocation40_spill] sm:$0xff] }
 0xc9b   :  { %v15645_v19 = vadd.f32 %v15644_v31, %v15643_v0  ;;  %v15500_v41 = vadd.f32 %v15436_v32, %v26608_v34  ;;  %v15563_v50 = vmax.f32 %v15499_v37, 0.0  ;;  %v26620_v37 = vmax.f32 %v26619_v11, 0.0  ;;  %v26623_v34 = vld [vmem:[#allocation41_spill] sm:$0xff]  ;;  %v26635_v11 = vld [vmem:[#allocation47_spill] sm:$0xff] }
 0xc9c   :  { %v15561_v46 = vmax.f32 %v15497_v4, 0.0  ;;  %v15498_v1 = vadd.f32 %v15434_v47, %v26610_v45  ;;  %v26622_v4 = vmax.f32 %v26621_v2, 0.0  ;;  %v26625_v45 = vld [vmem:[#allocation42_spill] sm:$0xff]  ;;  %v26637_v2 = vld [vmem:[#allocation48_spill] sm:$0xff] }
 0xc9d   :  { %v15647_v48 = vadd.f32 %v15646_v42, %v15645_v19  ;;  %v15564_v25 = vmax.f32 %v15500_v41, 0.0  ;;  %v15652_v23 = vsel %vm4988_vm2, %v15563_v50, 0.0  ;;  %v26624_v41 = vmax.f32 %v26623_v34, 0.0  ;;  %v26639_v34 = vld [vmem:[#allocation49_spill] sm:$0xff] }
 0xc9e   :  { %v15648_v53 = vsel %vm4988_vm2, %v15561_v46, 0.0  ;;  %v15562_v10 = vmax.f32 %v15498_v1, 0.0  ;;  %v19814_v29 = vpop.f32.mrb[92].mxu0  ;;  %v26626_v1 = vmax.f32 %v26625_v45, 0.0  ;;  %v26641_v45 = vld [vmem:[#allocation50_spill] sm:$0xff] }
 0xc9f   :  { %v15649_v24 = vadd.f32 %v15648_v53, %v15647_v48  ;;  %v15439_v35 = vadd.f32 %v19814_v29, %v26045_v59  ;;  %v15195_v52 = vpop.f32.mrb[93].mxu0  ;;  %v15654_v40 = vsel %vm4988_vm2, %v15564_v25, 0.0 }
 0xca0   :  { %v15650_v20 = vsel %vm4988_vm2, %v15562_v10, 0.0  ;;  %v15437_v44 = vadd.f32 %v26045_v59, %v15195_v52  ;;  %v19815_v36 = vpop.f32.mrb[94].mxu0 }
 0xca1   :  { %v15651_v63 = vadd.f32 %v15650_v20, %v15649_v24  ;;  %v15440_v6 = vadd.f32 %v19815_v36, %v26045_v59  ;;  %v15198_v54 = vpop.f32.mrb[95].mxu0  ;;  %v15503_v17 = vadd.f32 %v15439_v35, %v26612_v8  ;;  %v26628_v8 = vmax.f32 %v26627_v5, 0.0 }
 0xca2   :  { %v15501_v60 = vadd.f32 %v15437_v44, %v26614_v3  ;;  %v15438_v14 = vadd.f32 %v26045_v59, %v15198_v54  ;;  %v26630_v3 = vmax.f32 %v26629_v61, 0.0 }
 0xca3   :  { %v15653_v39 = vadd.f32 %v15652_v23, %v15651_v63  ;;  %v15504_v58 = vadd.f32 %v15440_v6, %v26616_v21  ;;  %v15567_v38 = vmax.f32 %v15503_v17, 0.0  ;;  %v26632_v21 = vmax.f32 %v26631_v27, 0.0 }
 0xca4   :  { %v15565_v49 = vmax.f32 %v15501_v60, 0.0  ;;  %v15502_v22 = vadd.f32 %v15438_v14, %v26618_v55  ;;  %v26634_v55 = vmax.f32 %v26633_v18, 0.0 }
 0xca5   :  { %v15655_v9 = vadd.f32 %v15654_v40, %v15653_v39  ;;  %v15568_v26 = vmax.f32 %v15504_v58, 0.0  ;;  %v15660_v56 = vsel %vm4988_vm2, %v15567_v38, 0.0 }
 0xca6   :  { %v15656_v16 = vsel %vm4988_vm2, %v15565_v49, 0.0  ;;  %v15566_v7 = vmax.f32 %v15502_v22, 0.0  ;;  %v19818_v51 = vpop.f32.mrb[96].mxu0 }
 0xca7   :  { %v15657_v13 = vadd.f32 %v15656_v16, %v15655_v9  ;;  %v15443_v15 = vadd.f32 %v19818_v51, %v26045_v59  ;;  %v15211_v62 = vpop.f32.mrb[97].mxu0  ;;  %v15662_v46 = vsel %vm4988_vm2, %v15568_v26, 0.0 }
 0xca8   :  { %v15658_v28 = vsel %vm4988_vm2, %v15566_v7, 0.0  ;;  %v15441_v30 = vadd.f32 %v26045_v59, %v15211_v62  ;;  %v19819_v0 = vpop.f32.mrb[98].mxu0 }
 0xca9   :  { %v15659_v32 = vadd.f32 %v15658_v28, %v15657_v13  ;;  %v15444_v43 = vadd.f32 %v19819_v0, %v26045_v59  ;;  %v15214_v31 = vpop.f32.mrb[99].mxu0  ;;  %v15507_v33 = vadd.f32 %v15443_v15, %v26620_v37  ;;  %v26636_v37 = vmax.f32 %v26635_v11, 0.0 }
 0xcaa   :  { %v15505_v47 = vadd.f32 %v15441_v30, %v26622_v4  ;;  %v15442_v19 = vadd.f32 %v26045_v59, %v15214_v31  ;;  %v26638_v4 = vmax.f32 %v26637_v2, 0.0 }
 0xcab   :  { %v15661_v42 = vadd.f32 %v15660_v56, %v15659_v32  ;;  %v15508_v12 = vadd.f32 %v15444_v43, %v26624_v41  ;;  %v15571_v53 = vmax.f32 %v15507_v33, 0.0  ;;  %v26640_v41 = vmax.f32 %v26639_v34, 0.0 }
 0xcac   :  { %v15569_v57 = vmax.f32 %v15505_v47, 0.0  ;;  %v15506_v48 = vadd.f32 %v15442_v19, %v26626_v1  ;;  %v26642_v1 = vmax.f32 %v26641_v45, 0.0 }
 0xcad   :  { %v26187_v50 = vadd.f32 %v15662_v46, %v15661_v42  ;;  %v15572_v25 = vmax.f32 %v15508_v12, 0.0  ;;  %v15673_v23 = vsel %vm4988_vm2, %v15571_v53, 0.0 }
 0xcae   :  { %v15570_v10 = vmax.f32 %v15506_v48, 0.0  ;;  %v19822_v29 = vpop.f32.mrb[100].mxu0  ;;  %v15670_v52 = vsel %vm4988_vm2, %v15569_v57, 0.0 }
 0xcaf   :  { %v15447_v24 = vadd.f32 %v19822_v29, %v26045_v59  ;;  %v15227_v35 = vpop.f32.mrb[101].mxu0  ;;  %v15675_v40 = vsel %vm4988_vm2, %v15572_v25, 0.0 }
 0xcb0   :  { %v15671_v20 = vsel %vm4988_vm2, %v15570_v10, 0.0  ;;  %v15445_v44 = vadd.f32 %v26045_v59, %v15227_v35  ;;  %v19823_v36 = vpop.f32.mrb[102].mxu0 }
 0xcb1   :  { %v15672_v63 = vadd.f32 %v15671_v20, %v15670_v52  ;;  %v15448_v6 = vadd.f32 %v19823_v36, %v26045_v59  ;;  %v15230_v54 = vpop.f32.mrb[103].mxu0  ;;  %v15511_v17 = vadd.f32 %v15447_v24, %v26628_v8 }
 0xcb2   :  { %v15509_v60 = vadd.f32 %v15445_v44, %v26630_v3  ;;  %v15446_v14 = vadd.f32 %v26045_v59, %v15230_v54 }
 0xcb3   :  { %v15674_v39 = vadd.f32 %v15673_v23, %v15672_v63  ;;  %v15512_v58 = vadd.f32 %v15448_v6, %v26632_v21  ;;  %v15575_v38 = vmax.f32 %v15511_v17, 0.0  ;;  %v26643_v17 = vld [vmem:[#allocation51_spill] sm:$0xff] }
 0xcb4   :  { %v15573_v49 = vmax.f32 %v15509_v60, 0.0  ;;  %v15510_v22 = vadd.f32 %v15446_v14, %v26634_v55  ;;  %v26644_v61 = vmax.f32 %v26643_v17, 0.0  ;;  %v26645_v60 = vld [vmem:[#allocation52_spill] sm:$0xff] }
 0xcb5   :  { %v15676_v9 = vadd.f32 %v15675_v40, %v15674_v39  ;;  %v15576_v26 = vmax.f32 %v15512_v58, 0.0  ;;  %v15681_v56 = vsel %vm4988_vm2, %v15575_v38, 0.0  ;;  %v26646_v14 = vmax.f32 %v26645_v60, 0.0  ;;  %v26647_v58 = vld [vmem:[#allocation53_spill] sm:$0xff] }
 0xcb6   :  { %v15677_v16 = vsel %vm4988_vm2, %v15573_v49, 0.0  ;;  %v15574_v7 = vmax.f32 %v15510_v22, 0.0  ;;  %v19826_v51 = vpop.f32.mrb[104].mxu0  ;;  %v26648_v18 = vmax.f32 %v26647_v58, 0.0  ;;  %v26649_v22 = vld [vmem:[#allocation54_spill] sm:$0xff] }
 0xcb7   :  { %v15678_v13 = vadd.f32 %v15677_v16, %v15676_v9  ;;  %v15451_v15 = vadd.f32 %v19826_v51, %v26045_v59  ;;  %v15243_v62 = vpop.f32.mrb[105].mxu0  ;;  %v15683_v46 = vsel %vm4988_vm2, %v15576_v26, 0.0  ;;  %v26650_v9 = vmax.f32 %v26649_v22, 0.0 }
 0xcb8   :  { %v15679_v28 = vsel %vm4988_vm2, %v15574_v7, 0.0  ;;  %v15449_v30 = vadd.f32 %v26045_v59, %v15243_v62  ;;  %v19827_v0 = vpop.f32.mrb[106].mxu0 }
 0xcb9   :  { %v15680_v32 = vadd.f32 %v15679_v28, %v15678_v13  ;;  %v15452_v43 = vadd.f32 %v19827_v0, %v26045_v59  ;;  %v15246_v31 = vpop.f32.mrb[107].mxu0  ;;  %v15515_v33 = vadd.f32 %v15451_v15, %v26636_v37 }
 0xcba   :  { %v15513_v47 = vadd.f32 %v15449_v30, %v26638_v4  ;;  %v15450_v19 = vadd.f32 %v26045_v59, %v15246_v31 }
 0xcbb   :  { %v15682_v42 = vadd.f32 %v15681_v56, %v15680_v32  ;;  %v15516_v12 = vadd.f32 %v15452_v43, %v26640_v41  ;;  %v15579_v10 = vmax.f32 %v15515_v33, 0.0  ;;  %v26651_v33 = vld [vmem:[#allocation55_spill] sm:$0xff] }
 0xcbc   :  { %v15577_v57 = vmax.f32 %v15513_v47, 0.0  ;;  %v15514_v48 = vadd.f32 %v15450_v19, %v26642_v1  ;;  %v26652_v2 = vmax.f32 %v26651_v33, 0.0  ;;  %v26653_v47 = vld [vmem:[#allocation56_spill] sm:$0xff] }
 0xcbd   :  { %v15684_v53 = vadd.f32 %v15683_v46, %v15682_v42  ;;  %v15580_v44 = vmax.f32 %v15516_v12, 0.0  ;;  %v15689_v8 = vsel %vm4988_vm2, %v15579_v10, 0.0  ;;  %v26654_v19 = vmax.f32 %v26653_v47, 0.0  ;;  %v26655_v12 = vld [vmem:[#allocation57_spill] sm:$0xff] }
 0xcbe   :  { %v15685_v29 = vsel %vm4988_vm2, %v15577_v57, 0.0  ;;  %v15578_v24 = vmax.f32 %v15514_v48, 0.0  ;;  %v19830_v35 = vpop.f32.mrb[108].mxu0  ;;  %v26656_v45 = vmax.f32 %v26655_v12, 0.0  ;;  %v26657_v48 = vld [vmem:[#allocation58_spill] sm:$0xff] }
 0xcbf   :  { %v15686_v52 = vadd.f32 %v15685_v29, %v15684_v53  ;;  %v15455_v25 = vadd.f32 %v19830_v35, %v26045_v59  ;;  %v15259_v20 = vpop.f32.mrb[109].mxu0  ;;  %v15691_v27 = vsel %vm4988_vm2, %v15580_v44, 0.0  ;;  %v26658_v53 = vmax.f32 %v26657_v48, 0.0 }
 0xcc0   :  { %v15687_v36 = vsel %vm4988_vm2, %v15578_v24, 0.0  ;;  %v15453_v63 = vadd.f32 %v26045_v59, %v15259_v20  ;;  %v19831_v6 = vpop.f32.mrb[110].mxu0 }
 0xcc1   :  { %v15688_v54 = vadd.f32 %v15687_v36, %v15686_v52  ;;  %v15456_v23 = vadd.f32 %v19831_v6, %v26045_v59  ;;  %v15262_v5 = vpop.f32.mrb[111].mxu0  ;;  %v15519_v3 = vadd.f32 %v15455_v25, %v26644_v61 }
 0xcc2   :  { %v15517_v39 = vadd.f32 %v15453_v63, %v26646_v14  ;;  %v15454_v40 = vadd.f32 %v26045_v59, %v15262_v5 }
 0xcc3   :  { %v15690_v49 = vadd.f32 %v15689_v8, %v15688_v54  ;;  %v15520_v55 = vadd.f32 %v15456_v23, %v26648_v18  ;;  %v15583_v7 = vmax.f32 %v15519_v3, 0.0  ;;  %v26659_v3 = vld [vmem:[#allocation59_spill] sm:$0xff] }
 0xcc4   :  { %v15581_v21 = vmax.f32 %v15517_v39, 0.0  ;;  %v15518_v38 = vadd.f32 %v15454_v40, %v26650_v9  ;;  %v26660_v60 = vmax.f32 %v26659_v3, 0.0  ;;  %v26661_v39 = vld [vmem:[#allocation60_spill] sm:$0xff] }
 0xcc5   :  { %v15692_v16 = vadd.f32 %v15691_v27, %v15690_v49  ;;  %v15584_v30 = vmax.f32 %v15520_v55, 0.0  ;;  %v15697_v37 = vsel %vm4988_vm2, %v15583_v7, 0.0  ;;  %v26662_v40 = vmax.f32 %v26661_v39, 0.0  ;;  %v26663_v55 = vld [vmem:[#allocation61_spill] sm:$0xff] }
 0xcc6   :  { %v15693_v51 = vsel %vm4988_vm2, %v15581_v21, 0.0  ;;  %v15582_v13 = vmax.f32 %v15518_v38, 0.0  ;;  %v19834_v15 = vpop.f32.mrb[112].mxu0  ;;  %v26664_v22 = vmax.f32 %v26663_v55, 0.0  ;;  %v26665_v38 = vld [vmem:[#allocation62_spill] sm:$0xff] }
 0xcc7   :  { %v15694_v62 = vadd.f32 %v15693_v51, %v15692_v16  ;;  %v15459_v26 = vadd.f32 %v19834_v15, %v26045_v59  ;;  %v15275_v28 = vpop.f32.mrb[113].mxu0  ;;  %v15699_v34 = vsel %vm4988_vm2, %v15584_v30, 0.0  ;;  %v26666_v16 = vmax.f32 %v26665_v38, 0.0  ;;  %v26679_v38 = vld [vmem:[#allocation69_spill] sm:$0xff] }
 0xcc8   :  { %v15695_v0 = vsel %vm4988_vm2, %v15582_v13, 0.0  ;;  %v15457_v32 = vadd.f32 %v26045_v59, %v15275_v28  ;;  %v19835_v43 = vpop.f32.mrb[114].mxu0 }
 0xcc9   :  { %v15696_v31 = vadd.f32 %v15695_v0, %v15694_v62  ;;  %v15460_v56 = vadd.f32 %v19835_v43, %v26045_v59  ;;  %v15278_v11 = vpop.f32.mrb[115].mxu0  ;;  %v15523_v4 = vadd.f32 %v15459_v26, %v26652_v2 }
 0xcca   :  { %v15521_v42 = vadd.f32 %v15457_v32, %v26654_v19  ;;  %v15458_v46 = vadd.f32 %v26045_v59, %v15278_v11 }
 0xccb   :  { %v15698_v57 = vadd.f32 %v15697_v37, %v15696_v31  ;;  %v15524_v1 = vadd.f32 %v15460_v56, %v26656_v45  ;;  %v15587_v24 = vmax.f32 %v15523_v4, 0.0  ;;  %v26667_v4 = vld [vmem:[#allocation63_spill] sm:$0xff] }
 0xccc   :  { %v15585_v41 = vmax.f32 %v15521_v42, 0.0  ;;  %v15522_v10 = vadd.f32 %v15458_v46, %v26658_v53  ;;  %v26668_v47 = vmax.f32 %v26667_v4, 0.0  ;;  %v26669_v42 = vld [vmem:[#allocation64_spill] sm:$0xff] }
 0xccd   :  { %v15700_v29 = vadd.f32 %v15699_v34, %v15698_v57  ;;  %v15588_v63 = vmax.f32 %v15524_v1, 0.0  ;;  %v15705_v61 = vsel %vm4988_vm2, %v15587_v24, 0.0  ;;  %v26670_v46 = vmax.f32 %v26669_v42, 0.0  ;;  %v26671_v1 = vld [vmem:[#allocation65_spill] sm:$0xff] }
 0xcce   :  { %v15701_v35 = vsel %vm4988_vm2, %v15585_v41, 0.0  ;;  %v15586_v52 = vmax.f32 %v15522_v10, 0.0  ;;  %v19838_v25 = vpop.f32.mrb[116].mxu0  ;;  %v26672_v48 = vmax.f32 %v26671_v1, 0.0  ;;  %v26673_v10 = vld [vmem:[#allocation66_spill] sm:$0xff] }
 0xccf   :  { %v15702_v20 = vadd.f32 %v15701_v35, %v15700_v29  ;;  %v15463_v44 = vadd.f32 %v19838_v25, %v26045_v59  ;;  %v15291_v36 = vpop.f32.mrb[117].mxu0  ;;  %v15707_v58 = vsel %vm4988_vm2, %v15588_v63, 0.0  ;;  %v26674_v29 = vmax.f32 %v26673_v10, 0.0 }
 0xcd0   :  { %v15703_v6 = vsel %vm4988_vm2, %v15586_v52, 0.0  ;;  %v15461_v54 = vadd.f32 %v26045_v59, %v15291_v36  ;;  %v19839_v23 = vpop.f32.mrb[118].mxu0 }
 0xcd1   :  { %v15704_v5 = vadd.f32 %v15703_v6, %v15702_v20  ;;  %v15464_v8 = vadd.f32 %v19839_v23, %v26045_v59  ;;  %v15294_v17 = vpop.f32.mrb[119].mxu0  ;;  %v15527_v14 = vadd.f32 %v15463_v44, %v26660_v60 }
 0xcd2   :  { %v15525_v49 = vadd.f32 %v15461_v54, %v26662_v40  ;;  %v15462_v27 = vadd.f32 %v26045_v59, %v15294_v17 }
 0xcd3   :  { %v15706_v21 = vadd.f32 %v15705_v61, %v15704_v5  ;;  %v15528_v9 = vadd.f32 %v15464_v8, %v26664_v22  ;;  %v15591_v13 = vmax.f32 %v15527_v14, 0.0  ;;  %v26675_v14 = vld [vmem:[#allocation67_spill] sm:$0xff] }
 0xcd4   :  { %v15589_v18 = vmax.f32 %v15525_v49, 0.0  ;;  %v15526_v7 = vadd.f32 %v15462_v27, %v26666_v16  ;;  %v26676_v39 = vmax.f32 %v26675_v14, 0.0  ;;  %v26677_v49 = vld [vmem:[#allocation68_spill] sm:$0xff]  ;;  %v26680_v16 = vmax.f32 %v26679_v38, 0.0 }
 0xcd5   :  { %v15708_v51 = vadd.f32 %v15707_v58, %v15706_v21  ;;  %v15592_v32 = vmax.f32 %v15528_v9, 0.0  ;;  %v15713_v2 = vsel %vm4988_vm2, %v15591_v13, 0.0  ;;  %v26678_v27 = vmax.f32 %v26677_v49, 0.0 }
 0xcd6   :  { %v15709_v15 = vsel %vm4988_vm2, %v15589_v18, 0.0  ;;  %v15590_v62 = vmax.f32 %v15526_v7, 0.0  ;;  %v19842_v26 = vpop.f32.mrb[120].mxu0  ;;  %v15664_v18 = vrot.slane %v26187_v50, 4 }
 0xcd7   :  { %v15710_v28 = vadd.f32 %v15709_v15, %v15708_v51  ;;  %v15467_v30 = vadd.f32 %v19842_v26, %v26045_v59  ;;  %v15307_v0 = vpop.f32.mrb[121].mxu0  ;;  %v15715_v12 = vsel %vm4988_vm2, %v15592_v32, 0.0  ;;  %v26681_v51 = vld [vmem:[#allocation70_spill] sm:$0xff] }
 0xcd8   :  { %v15711_v43 = vsel %vm4988_vm2, %v15590_v62, 0.0  ;;  %v15465_v31 = vadd.f32 %v26045_v59, %v15307_v0  ;;  %v19843_v56 = vpop.f32.mrb[122].mxu0  ;;  %v26682_v13 = vmax.f32 %v26681_v51, 0.0 }
 0xcd9   :  { %v15712_v11 = vadd.f32 %v15711_v43, %v15710_v28  ;;  %v15468_v37 = vadd.f32 %v19843_v56, %v26045_v59  ;;  %v15310_v33 = vpop.f32.mrb[123].mxu0  ;;  %v15531_v19 = vadd.f32 %v15467_v30, %v26668_v47 }
 0xcda   :  { %v15529_v57 = vadd.f32 %v15465_v31, %v26670_v46  ;;  %v15466_v34 = vadd.f32 %v26045_v59, %v15310_v33 }
 0xcdb   :  { %v15714_v41 = vadd.f32 %v15713_v2, %v15712_v11  ;;  %v15532_v53 = vadd.f32 %v15468_v37, %v26672_v48  ;;  %v15595_v52 = vmax.f32 %v15531_v19, 0.0 }
 0xcdc   :  { %v15593_v45 = vmax.f32 %v15529_v57, 0.0  ;;  %v15530_v24 = vadd.f32 %v15466_v34, %v26674_v29 }
 0xcdd   :  { %v15716_v35 = vadd.f32 %v15715_v12, %v15714_v41  ;;  %v15596_v54 = vmax.f32 %v15532_v53, 0.0  ;;  %v15721_v60 = vsel %vm4988_vm2, %v15595_v52, 0.0 }
 0xcde   :  { %v15717_v25 = vsel %vm4988_vm2, %v15593_v45, 0.0  ;;  %v15594_v20 = vmax.f32 %v15530_v24, 0.0  ;;  %v19846_v44 = vpop.f32.mrb[124].mxu0 }
 0xcdf   :  { %v15718_v36 = vadd.f32 %v15717_v25, %v15716_v35  ;;  %v15471_v63 = vadd.f32 %v19846_v44, %v26045_v59  ;;  %v15323_v6 = vpop.f32.mrb[125].mxu0  ;;  %v15723_v22 = vsel %vm4988_vm2, %v15596_v54, 0.0 }
 0xce0   :  { %v15719_v23 = vsel %vm4988_vm2, %v15594_v20, 0.0  ;;  %v15469_v5 = vadd.f32 %v26045_v59, %v15323_v6  ;;  %v19847_v8 = vpop.f32.mrb[126].mxu0 }
 0xce1   :  { %v15720_v17 = vadd.f32 %v15719_v23, %v15718_v36  ;;  %v15472_v61 = vadd.f32 %v19847_v8, %v26045_v59  ;;  %v15326_v3 = vpop.f32.mrb[127].mxu0  ;;  %v15535_v40 = vadd.f32 %v15471_v63, %v26676_v39 }
 0xce2   :  { %v15533_v21 = vadd.f32 %v15469_v5, %v26678_v27  ;;  %v15470_v58 = vadd.f32 %v26045_v59, %v15326_v3  ;;  %v15665_v59 = vadd.f32 %v15664_v18, %v26187_v50 }
 0xce3   :  { %v15722_v55 = vadd.f32 %v15721_v60, %v15720_v17  ;;  %v15536_v7 = vadd.f32 %v15472_v61, %v26680_v16  ;;  %v15599_v26 = vmax.f32 %v15535_v40, 0.0 }
 0xce4   :  { %v15597_v9 = vmax.f32 %v15533_v21, 0.0  ;;  %v15534_v15 = vadd.f32 %v15470_v58, %v26682_v13  ;;  %v15666_v37 = vrot.slane %v15665_v59, 2 }
 0xce5   :  { %v15724_v62 = vadd.f32 %v15723_v22, %v15722_v55  ;;  %v15600_v32 = vmax.f32 %v15536_v7, 0.0  ;;  %v15729_v56 = vsel %vm4988_vm2, %v15599_v26, 0.0 }
 0xce6   :  { %v15725_v28 = vsel %vm4988_vm2, %v15597_v9, 0.0  ;;  %v15598_v30 = vmax.f32 %v15534_v15, 0.0  ;;  %v15667_v47 = vadd.f32 %v15666_v37, %v15665_v59 }
 0xce7   :  { %v15726_v0 = vadd.f32 %v15725_v28, %v15724_v62  ;;  %v15731_v33 = vsel %vm4988_vm2, %v15600_v32, 0.0 }
 0xce8   :  { %v15727_v43 = vsel %vm4988_vm2, %v15598_v30, 0.0  ;;  %v15668_v42 = vrot.slane %v15667_v47, 1 }
 0xce9   :  { %v15728_v31 = vadd.f32 %v15727_v43, %v15726_v0 }
 0xcea   :  { %v15669_v34 = vadd.f32 %v15668_v42, %v15667_v47 }
 0xceb   :  { %v15730_v11 = vadd.f32 %v15729_v56, %v15728_v31 }
 0xcec   :  { %v15739_v12 = vmul.f32 0.00390625, %v15669_v34 }
 0xced   :  { %v15732_v2 = vadd.f32 %v15731_v33, %v15730_v11 }
 0xcef   :  { %v15733_v4 = vrot.slane %v15732_v2, 4 }
 0xcf1   :  { %v15734_v19 = vadd.f32 %v15733_v4, %v15732_v2 }
 0xcf3   :  { %v15735_v46 = vrot.slane %v15734_v19, 2 }
 0xcf5   :  { %v15736_v57 = vadd.f32 %v15735_v46, %v15734_v19 }
 0xcf7   :  { %v15737_v41 = vrot.slane %v15736_v57, 1 }
 0xcf9   :  { %v15738_v50 = vadd.f32 %v15737_v41, %v15736_v57 }
 0xcfb   :  { %v15740_v45 = vmul.f32 0.00390625, %v15738_v50 }
 0xcfd   :  { %v15744_v1 = vsel %vm15743_vm3, %v15740_v45, %v15739_v12 }
 0xcfe   :  { %15747 = vst.msk [vmem:[#allocation4] sm:$0x3] %vm15746_vm4, %v15744_v1 }
 0xcff   :  { %21446 = shalt.err (!%p21443_p4)
}
 0xd00   :  { %s21447_s13 = scalar_lea.hbm %s26326_s7, 32 }
 0xd01   :  { %p21448_p5 = scmp.ne.s32.totalorder %s26326_s7, %s21447_s13  ;;  %p21451_p6 = scmp.lt.u32.totalorder %s21447_s13, %s26326_s7 }
 0xd03   :  { %p21453_p7 = pnand %p21451_p6, %p21448_p5 }
 0xd05   :  { %21456 = shalt.err (!%p21453_p7)
}
 0xd06   :  { %15757 = dma.vmem_to_hbm [thread:$0]  %s15755_s9, 32, %s26326_s7, [#allocation5]  }
 0xd07   :  { %21457 = dma.done.wait [#allocation5], 32  }
 0xd08   :  { %21458 = vsyncadd [#allocation5], 4294967264 }
 0xd09   :  { %15761 = vsyncpa [#allocation5], 1 }

</bundles_post_ra>
